<compile_context>
chip_gen: v6e
topology: v6e:2x2x1
jax: 0.10.0
libtpu: 0.0.40
codegen_flags: <defaults>
</compile_context>

<pallas_src>
import functools

import numpy as np
import jax
import jax.numpy as jnp
from jax.experimental import pallas as pl
from jax.experimental.pallas import tpu as pltpu

_EPS = 1e-5  # PyTorch BatchNorm2d default eps


def _round_up(x, m):
    return (x + m - 1) // m * m


def _select_config():
    """Per-chip tiling / scoped-VMEM knobs (v5e/v6e: 128 MiB VMEM, v7x: 64 MiB per TC)."""
    try:
        vmem_phys = int(pltpu.get_tpu_info().vmem_capacity_bytes)
    except Exception:
        vmem_phys = None
    if vmem_phys is not None and vmem_phys >= 100 * 1024 * 1024:
        return dict(tile_m=512, tile_n=512, max_full_k=8192, k_tile=2048,
                    vmem_limit=96 * 1024 * 1024)
    return dict(tile_m=256, tile_n=256, max_full_k=4096, k_tile=2048,
                vmem_limit=32 * 1024 * 1024)


_CFG = _select_config()


def _cparams(dims):
    return pltpu.CompilerParams(dimension_semantics=dims,
                                vmem_limit_bytes=_CFG["vmem_limit"])


def _pick_tile(dim, max_tile, align):
    """Return (padded_dim, tile): prefer a tile dividing dim (no HBM pad of the operand)."""
    p = _round_up(dim, align)
    if p <= max_tile:
        return p, p
    if dim % align == 0:
        t = max_tile
        floor = max(align, max_tile // 4)
        while t >= floor:
            if dim % t == 0:
                return dim, t
            t -= align
    return _round_up(dim, max_tile), max_tile


# ----------------------------- matmul kernels ---------------------------------------------


def _mm_direct_kernel(*refs, relu, has_bias):
    """Single-K-block path: o = relu?(A @ W [+ bias]); no accumulator scratch round-trip."""
    a_ref, w_ref = refs[0], refs[1]
    o_ref = refs[3] if has_bias else refs[2]
    r = jnp.dot(a_ref[...], w_ref[...], preferred_element_type=jnp.float32)
    if has_bias:
        r = r + refs[2][...]
    if relu:
        r = jnp.maximum(r, 0.0)
    o_ref[...] = r.astype(o_ref.dtype)


def _mm_ktiled_kernel(*refs, relu, has_bias):
    """K-tiled path (K > MAX_FULL_K only): f32 VMEM accumulator across the K grid axis."""
    a_ref, w_ref = refs[0], refs[1]
    o_ref = refs[3] if has_bias else refs[2]
    acc_ref = refs[-1]

    @pl.when(pl.program_id(2) == 0)
    def _init():
        acc_ref[...] = jnp.zeros_like(acc_ref)

    acc_ref[...] += jnp.dot(a_ref[...], w_ref[...], preferred_element_type=jnp.float32)

    @pl.when(pl.program_id(2) == pl.num_programs(2) - 1)
    def _finalize():
        r = acc_ref[...]
        if has_bias:
            r = r + refs[2][...]
        if relu:
            r = jnp.maximum(r, 0.0)
        o_ref[...] = r.astype(o_ref.dtype)


def matmul_bias(a, w, bias=None, *, relu=False, out_dtype=jnp.bfloat16, keep_n_pad=False):
    """Conv-as-matmul with optional fused bias + ReLU; bf16 MXU inputs, f32 epilogue."""
    m, k = a.shape
    k2, n = w.shape
    assert k == k2
    has_bias = bias is not None

    m_pad, tm = _pick_tile(m, _CFG["tile_m"], 8)
    n_pad, tn = _pick_tile(n, _CFG["tile_n"], 128)
    # guarantee >=2 parallel tiles for the v7x megacore when the problem fits one tile
    if m_pad // tm == 1 and n_pad // tn == 1 and n_pad % 256 == 0:
        tn = n_pad // 2

    a_p = a.astype(jnp.bfloat16)
    if m_pad != m:
        a_p = jnp.pad(a_p, ((0, m_pad - m), (0, 0)))
    w_p = w.astype(jnp.bfloat16)
    if n_pad != n:
        w_p = jnp.pad(w_p, ((0, 0), (0, n_pad - n)))

    operands = [a_p, w_p]
    if has_bias:
        b_p = bias.reshape(1, n).astype(jnp.float32)
        if n_pad != n:
            b_p = jnp.pad(b_p, ((0, 0), (0, n_pad - n)))
        operands.append(b_p)

    if k <= _CFG["max_full_k"]:
        in_specs = [pl.BlockSpec((tm, k), lambda i, j: (i, 0)),
                    pl.BlockSpec((k, tn), lambda i, j: (0, j))]
        if has_bias:
            in_specs.append(pl.BlockSpec((1, tn), lambda i, j: (0, j)))
        out = pl.pallas_call(
            functools.partial(_mm_direct_kernel, relu=relu, has_bias=has_bias),
            out_shape=jax.ShapeDtypeStruct((m_pad, n_pad), out_dtype),
            grid_spec=pltpu.PrefetchScalarGridSpec(
                num_scalar_prefetch=0,
                grid=(m_pad // tm, n_pad // tn),
                in_specs=in_specs,
                out_specs=pl.BlockSpec((tm, tn), lambda i, j: (i, j))),
            compiler_params=_cparams(("parallel", "parallel")),
        )(*operands)
    else:
        tk = _CFG["k_tile"]
        k_pad = _round_up(k, tk)
        if k_pad != k:
            operands[0] = jnp.pad(operands[0], ((0, 0), (0, k_pad - k)))
            operands[1] = jnp.pad(operands[1], ((0, k_pad - k), (0, 0)))
        in_specs = [pl.BlockSpec((tm, tk), lambda i, j, kk: (i, kk)),
                    pl.BlockSpec((tk, tn), lambda i, j, kk: (kk, j))]
        if has_bias:
            in_specs.append(pl.BlockSpec((1, tn), lambda i, j, kk: (0, j)))
        out = pl.pallas_call(
            functools.partial(_mm_ktiled_kernel, relu=relu, has_bias=has_bias),
            out_shape=jax.ShapeDtypeStruct((m_pad, n_pad), out_dtype),
            grid_spec=pltpu.PrefetchScalarGridSpec(
                num_scalar_prefetch=0,
                grid=(m_pad // tm, n_pad // tn, k_pad // tk),
                in_specs=in_specs,
                out_specs=pl.BlockSpec((tm, tn), lambda i, j, kk: (i, j)),
                scratch_shapes=[pltpu.VMEM((tm, tn), jnp.float32)]),
            compiler_params=_cparams(("parallel", "parallel", "arbitrary")),
        )(*operands)

    if m_pad != m:
        out = out[:m]
    if (not keep_n_pad) and n_pad != n:
        out = out[:, :n]
    return out


def _concat_mm_kernel(*refs, n_parts, relu, has_bias):
    """o = relu?(sum_t A_t @ W_t [+ bias]) — fused channel-concat + 1x1 conv."""
    a_refs = refs[:n_parts]
    w_refs = refs[n_parts:2 * n_parts]
    idx = 2 * n_parts
    o_ref = refs[idx + 1] if has_bias else refs[idx]
    acc = jnp.dot(a_refs[0][...], w_refs[0][...], preferred_element_type=jnp.float32)
    for t in range(1, n_parts):
        acc = acc + jnp.dot(a_refs[t][...], w_refs[t][...],
                            preferred_element_type=jnp.float32)
    if has_bias:
        acc = acc + refs[idx][...]
    if relu:
        acc = jnp.maximum(acc, 0.0)
    o_ref[...] = acc.astype(o_ref.dtype)


def concat_matmul(a_list, w_list, bias=None, *, relu=False, out_dtype=jnp.bfloat16):
    """Compute concat(a_list, axis=1) @ concat(w_list, axis=0) without the HBM concat."""
    n_parts = len(a_list)
    m = a_list[0].shape[0]
    n = w_list[0].shape[1]
    has_bias = bias is not None
    m_pad, tm = _pick_tile(m, _CFG["tile_m"], 8)
    n_pad, tn = _pick_tile(n, _CFG["tile_n"], 128)
    if m_pad // tm == 1 and n_pad // tn == 1 and n_pad % 256 == 0:
        tn = n_pad // 2

    a_ps, w_ps = [], []
    for a, w in zip(a_list, w_list):
        a = a.astype(jnp.bfloat16)
        if m_pad != m:
            a = jnp.pad(a, ((0, m_pad - m), (0, 0)))
        w = w.astype(jnp.bfloat16)
        if n_pad != n:
            w = jnp.pad(w, ((0, 0), (0, n_pad - n)))
        a_ps.append(a)
        w_ps.append(w)

    operands = a_ps + w_ps
    in_specs = ([pl.BlockSpec((tm, a.shape[1]), lambda i, j: (i, 0)) for a in a_ps]
                + [pl.BlockSpec((w.shape[0], tn), lambda i, j: (0, j)) for w in w_ps])
    if has_bias:
        b_p = bias.reshape(1, n).astype(jnp.float32)
        if n_pad != n:
            b_p = jnp.pad(b_p, ((0, 0), (0, n_pad - n)))
        operands.append(b_p)
        in_specs.append(pl.BlockSpec((1, tn), lambda i, j: (0, j)))

    out = pl.pallas_call(
        functools.partial(_concat_mm_kernel, n_parts=n_parts, relu=relu, has_bias=has_bias),
        out_shape=jax.ShapeDtypeStruct((m_pad, n_pad), out_dtype),
        grid_spec=pltpu.PrefetchScalarGridSpec(
            num_scalar_prefetch=0,
            grid=(m_pad // tm, n_pad // tn),
            in_specs=in_specs,
            out_specs=pl.BlockSpec((tm, tn), lambda i, j: (i, j))),
        compiler_params=_cparams(("parallel", "parallel")),
    )(*operands)
    if m_pad != m:
        out = out[:m]
    if n_pad != n:
        out = out[:, :n]
    return out


# ----------------------------- implicit-GEMM 3x3 conv (stride 1) --------------------------


def _conv_s1_kernel(*refs, kw, dil, wo, cin, relu, has_bias):
    """One output row per step.  Row taps (ki) come from the grid / index_map; column taps
    (kj) are static in-kernel slices of the padded input row.  f32 accumulation over ki."""
    x_ref, w_ref = refs[0], refs[1]
    o_ref = refs[3] if has_bias else refs[2]
    acc_ref = refs[-1]
    ki = pl.program_id(3)

    @pl.when(ki == 0)
    def _init():
        acc_ref[...] = jnp.zeros_like(acc_ref)

    x = x_ref[0, 0]      # (Wp, Cin)  padded input row for this ki tap
    wt = w_ref[0]        # (KW*Cin, tn)
    acc = acc_ref[...]
    for kj in range(kw):
        a = x[kj * dil:kj * dil + wo, :]
        wk = wt[kj * cin:(kj + 1) * cin, :]
        acc = acc + jnp.dot(a, wk, preferred_element_type=jnp.float32)
    acc_ref[...] = acc

    @pl.when(ki == pl.num_programs(3) - 1)
    def _finalize():
        r = acc_ref[...]
        if has_bias:
            r = r + refs[2][...]
        if relu:
            r = jnp.maximum(r, 0.0)
        o_ref[0, 0] = r.astype(o_ref.dtype)


def _conv2d_implicit_s1(x, w_oihw, bias=None, *, dilation=1, padding=0, relu=False,
                        keep_out_pad=False):
    """Stride-1 KxK conv as implicit GEMM (no im2col patch matrix in HBM)."""
    nb, h, w, cin = x.shape
    cout, cin2, kh, kw = w_oihw.shape
    assert cin == cin2
    d = dilation
    ho = h + 2 * padding - d * (kh - 1)
    wo = w + 2 * padding - d * (kw - 1)
    wp = w + 2 * padding
    assert ho >= 1 and wo >= 1

    xp = x.astype(jnp.bfloat16)
    if padding:
        xp = jnp.pad(xp, ((0, 0), (padding, padding), (padding, padding), (0, 0)))

    n_pad, tn = _pick_tile(cout, _CFG["tile_n"], 128)
    w2 = jnp.transpose(w_oihw, (2, 3, 1, 0)).reshape(kh, kw * cin, cout).astype(jnp.bfloat16)
    if n_pad != cout:
        w2 = jnp.pad(w2, ((0, 0), (0, 0), (0, n_pad - cout)))

    operands = [xp, w2]
    in_specs = [
        pl.BlockSpec((1, 1, wp, cin), lambda n, hh, j, ki: (n, hh + ki * d, 0, 0)),
        pl.BlockSpec((1, kw * cin, tn), lambda n, hh, j, ki: (ki, 0, j)),
    ]
    has_bias = bias is not None
    if has_bias:
        b_p = bias.reshape(1, cout).astype(jnp.float32)
        if n_pad != cout:
            b_p = jnp.pad(b_p, ((0, 0), (0, n_pad - cout)))
        operands.append(b_p)
        in_specs.append(pl.BlockSpec((1, tn), lambda n, hh, j, ki: (0, j)))

    out = pl.pallas_call(
        functools.partial(_conv_s1_kernel, kw=kw, dil=d, wo=wo, cin=cin,
                          relu=relu, has_bias=has_bias),
        out_shape=jax.ShapeDtypeStruct((nb, ho, wo, n_pad), jnp.bfloat16),
        grid_spec=pltpu.PrefetchScalarGridSpec(
            num_scalar_prefetch=0,
            grid=(nb, ho, n_pad // tn, kh),
            in_specs=in_specs,
            out_specs=pl.BlockSpec((1, 1, wo, tn), lambda n, hh, j, ki: (n, hh, 0, j)),
            scratch_shapes=[pltpu.VMEM((wo, tn), jnp.float32)]),
        compiler_params=_cparams(("parallel", "parallel", "parallel", "arbitrary")),
    )(*operands)
    if (not keep_out_pad) and n_pad != cout:
        out = out[..., :cout]
    return out


# ----------------------------- conv dispatch / glue ----------------------------------------


def _im2col(x, kh, kw, stride, dilation, padding):
    # TODO(synk): stride>1 convs (the small stand-in backbone only) still use XLA im2col;
    # the real pretrained wrn38 trunk is not implemented here.
    n, h, w, c = x.shape
    xp = jnp.pad(x, ((0, 0), (padding, padding), (padding, padding), (0, 0)))
    ho = (h + 2 * padding - dilation * (kh - 1) - 1) // stride + 1
    wo = (w + 2 * padding - dilation * (kw - 1) - 1) // stride + 1
    cols = []
    for i in range(kh):
        for j in range(kw):
            hi0 = i * dilation
            wj0 = j * dilation
            patch = xp[:, hi0:hi0 + (ho - 1) * stride + 1:stride,
                          wj0:wj0 + (wo - 1) * stride + 1:stride, :]
            cols.append(patch)
    cols = jnp.concatenate(cols, axis=-1)
    return cols.reshape(n * ho * wo, kh * kw * c), (n, ho, wo)


def conv2d(x, w_oihw, *, stride=1, dilation=1, padding=0, bn=False, relu=False,
           keep_out_pad=False):
    """Conv2d(bias=False) [+ folded eval-mode Norm2d + ReLU]."""
    cout, cin, kh, kw = w_oihw.shape
    w_f = w_oihw.astype(jnp.float32)
    if bn:
        # eval BatchNorm2d with default/identity stats folds to a pure scale on the weights.
        # TODO(synk): with a real checkpoint fold gamma/sqrt(var+eps) per output channel into
        # the weight columns and (beta - mean*scale) into a bias row.
        w_f = w_f * np.float32(1.0 / np.sqrt(1.0 + _EPS))
    nb = x.shape[0]
    if kh == 1 and kw == 1 and stride == 1 and padding == 0:
        _, ho, wo, _ = x.shape
        y = matmul_bias(x.reshape(nb * ho * wo, cin), w_f.reshape(cout, cin).T,
                        relu=relu, keep_n_pad=keep_out_pad)
        return y.reshape(nb, ho, wo, y.shape[-1])
    if stride == 1:
        return _conv2d_implicit_s1(x, w_f, dilation=dilation, padding=padding,
                                   relu=relu, keep_out_pad=keep_out_pad)
    cols, (nb, ho, wo) = _im2col(x, kh, kw, stride, dilation, padding)
    w2 = jnp.transpose(w_f, (2, 3, 1, 0)).reshape(kh * kw * cin, cout)
    y = matmul_bias(cols, w2, relu=relu, keep_n_pad=keep_out_pad)
    return y.reshape(nb, ho, wo, y.shape[-1])


def concat_conv1x1(branches, w_oihw, *, relu=False):
    """1x1 conv over channel-concatenated branches, without materializing the concat."""
    nb, h, w, _ = branches[0].shape
    cout = w_oihw.shape[0]
    m = nb * h * w
    a_list, w_list = [], []
    off = 0
    for b in branches:
        ci = b.shape[-1]
        a_list.append(b.reshape(m, ci))
        w_list.append(jnp.transpose(w_oihw[:, off:off + ci, 0, 0], (1, 0)))  # (ci, cout)
        off += ci
    y = concat_matmul(a_list, w_list, relu=relu)
    return y.reshape(nb, h, w, cout)


# ----------------------------- global average pool -----------------------------------------


def _gap_kernel(x_ref, o_ref, acc_ref, *, inv_count):
    @pl.when(pl.program_id(1) == 0)
    def _init():
        acc_ref[...] = jnp.zeros_like(acc_ref)

    acc_ref[...] += jnp.sum(x_ref[...].astype(jnp.float32), axis=1, keepdims=True)

    @pl.when(pl.program_id(1) == pl.num_programs(1) - 1)
    def _finalize():
        o_ref[...] = (acc_ref[...] * inv_count).astype(o_ref.dtype)


def global_avg_pool(x_nhwc):
    """AdaptiveAvgPool2d(1): (N, H, W, C) -> (N, 1, 1, C), channels stay on lanes."""
    n, h, w, c = x_nhwc.shape
    hw = h * w
    x2 = x_nhwc.reshape(n, hw, c)
    if hw <= 2048:
        chunk = _round_up(hw, 8)
        hw_pad = chunk
    else:
        chunk = 1024
        hw_pad = _round_up(hw, chunk)
    if hw_pad != hw:
        x2 = jnp.pad(x2, ((0, 0), (0, hw_pad - hw), (0, 0)))  # zeros don't change the sum
    pooled = pl.pallas_call(
        functools.partial(_gap_kernel, inv_count=1.0 / hw),
        out_shape=jax.ShapeDtypeStruct((n, 1, c), jnp.bfloat16),
        grid_spec=pltpu.PrefetchScalarGridSpec(
            num_scalar_prefetch=0,
            grid=(n, hw_pad // chunk),
            in_specs=[pl.BlockSpec((1, chunk, c), lambda i, j: (i, j, 0))],
            out_specs=pl.BlockSpec((1, 1, c), lambda i, j: (i, 0, 0)),
            scratch_shapes=[pltpu.VMEM((1, 1, c), jnp.float32)]),
        compiler_params=_cparams(("parallel", "arbitrary")),
    )(x2)
    return pooled.reshape(n, 1, 1, c)


# ----------------------------- bilinear upsample (align_corners=True) ----------------------


def _interp_matrix(out_size, in_size):
    m = np.zeros((out_size, in_size), np.float32)
    for i in range(out_size):
        src = 0.0 if (out_size == 1 or in_size == 1) else i * (in_size - 1) / (out_size - 1)
        lo = int(np.floor(src))
        hi = min(lo + 1, in_size - 1)
        frac = src - lo
        m[i, lo] += 1.0 - frac
        m[i, hi] += frac
    return m


def _interp_rows(out_size, in_size):
    lo = np.zeros((out_size,), np.int32)
    hi = np.zeros((out_size,), np.int32)
    for i in range(out_size):
        src = 0.0 if (out_size == 1 or in_size == 1) else i * (in_size - 1) / (out_size - 1)
        l = int(np.floor(src))
        lo[i] = l
        hi[i] = min(l + 1, in_size - 1)
    return lo, hi


def _upsample_kernel(rlo_ref, rhi_ref, xlo_ref, xhi_ref, cmat_ref, o_ref, *, h_in, h_out):
    hh = pl.program_id(1)
    lo = rlo_ref[hh]
    if h_in == 1 or h_out == 1:
        f = jnp.float32(0.0)
    else:
        denom = h_out - 1
        f = (hh * (h_in - 1) - lo * denom).astype(jnp.float32) / jnp.float32(denom)
    row_lo = xlo_ref[0, 0].astype(jnp.float32)            # (W, C)
    row_hi = xhi_ref[0, 0].astype(jnp.float32)
    row = row_lo + f * (row_hi - row_lo)                   # VPU lerp along H
    out = jnp.dot(cmat_ref[...], row, preferred_element_type=jnp.float32)  # (Wo, C)
    o_ref[0, 0] = out.astype(o_ref.dtype)


def upsample_bilinear_align_corners(x, out_hw):
    """F.interpolate(mode='bilinear', align_corners=True) as a fused NHWC Pallas kernel:
    per output row the two source rows (scalar-prefetched indices) are lerped on the VPU and
    columns are mixed by a small (Wo x W) matmul — no layout transposes, C stays on lanes."""
    nb, h, w, c = x.shape
    ho, wo = out_hw
    if (h, w) == (ho, wo):
        return x
    if h == 1 and w == 1:
        return jnp.broadcast_to(x, (nb, ho, wo, c))        # pure replication, no arithmetic
    row_lo, row_hi = _interp_rows(ho, h)
    cmat = jnp.asarray(_interp_matrix(wo, w))
    out = pl.pallas_call(
        functools.partial(_upsample_kernel, h_in=h, h_out=ho),
        out_shape=jax.ShapeDtypeStruct((nb, ho, wo, c), x.dtype),
        grid_spec=pltpu.PrefetchScalarGridSpec(
            num_scalar_prefetch=2,
            grid=(nb, ho),
            in_specs=[
                pl.BlockSpec((1, 1, w, c), lambda n, hh, rlo, rhi: (n, rlo[hh], 0, 0)),
                pl.BlockSpec((1, 1, w, c), lambda n, hh, rlo, rhi: (n, rhi[hh], 0, 0)),
                pl.BlockSpec((wo, w), lambda n, hh, rlo, rhi: (0, 0)),
            ],
            out_specs=pl.BlockSpec((1, 1, wo, c), lambda n, hh, rlo, rhi: (n, hh, 0, 0))),
        compiler_params=_cparams(("parallel", "parallel")),
    )(jnp.asarray(row_lo), jnp.asarray(row_hi), x, x, cmat)
    return out


# ----------------------------- model definition --------------------------------------------

NUM_CLASSES = 5
S2_CH = 64                 # trunk s2 feature channels (stand-in for wrn38's 128)
MID_CH = 96
HIGH_LEVEL_CH = 128        # trunk high-level channels (stand-in for wrn38's 4096)
BOTTLENECK_CH = 256        # ASPP reduction_dim
ASPP_OUT_CH = 5 * BOTTLENECK_CH
FINE_CH = 48
ASPP_RATES = (12, 24, 36)  # output_stride == 8 doubles the default (6, 12, 18) rates


def _kaiming(key, shape):
    fan_in = shape[1] * shape[2] * shape[3]
    return jax.random.normal(key, shape, jnp.float32) * np.sqrt(2.0 / fan_in)


def init_params(key, num_classes=NUM_CLASSES):
    keys = jax.random.split(key, 16)
    p = {}
    # TODO(synk): the real wrn38 trunk is a large pretrained Wide-ResNet; this is a small
    # deterministic stride-8 stand-in honoring the (s2_features, _, final_features) contract.
    p['bb1'] = _kaiming(keys[0], (S2_CH, 3, 3, 3))
    p['bb2'] = _kaiming(keys[1], (MID_CH, S2_CH, 3, 3))
    p['bb3'] = _kaiming(keys[2], (HIGH_LEVEL_CH, MID_CH, 3, 3))
    # ASPP
    p['aspp_img'] = _kaiming(keys[3], (BOTTLENECK_CH, HIGH_LEVEL_CH, 1, 1))
    p['aspp_1x1'] = _kaiming(keys[4], (BOTTLENECK_CH, HIGH_LEVEL_CH, 1, 1))
    p['aspp_r12'] = _kaiming(keys[5], (BOTTLENECK_CH, HIGH_LEVEL_CH, 3, 3))
    p['aspp_r24'] = _kaiming(keys[6], (BOTTLENECK_CH, HIGH_LEVEL_CH, 3, 3))
    p['aspp_r36'] = _kaiming(keys[7], (BOTTLENECK_CH, HIGH_LEVEL_CH, 3, 3))
    # decoder / head
    p['bot_aspp'] = _kaiming(keys[8], (256, ASPP_OUT_CH, 1, 1))
    p['bot_fine'] = _kaiming(keys[9], (FINE_CH, S2_CH, 1, 1))
    p['final1'] = _kaiming(keys[10], (256, 256 + FINE_CH, 3, 3))
    p['final2'] = _kaiming(keys[11], (256, 256, 3, 3))
    p['final3'] = _kaiming(keys[12], (num_classes, 256, 1, 1))
    return p


def deepv3plus_forward(params, x_nchw):
    """Eval-mode forward; returns {'pred': (N, num_classes, H, W)} in NCHW like PyTorch."""
    x = jnp.transpose(x_nchw, (0, 2, 3, 1)).astype(jnp.bfloat16)  # NCHW -> NHWC, bf16 flow
    in_h, in_w = x.shape[1], x.shape[2]

    # ---- backbone (stride-8 stand-in trunk) ----
    s2 = conv2d(x, params['bb1'], stride=2, padding=1, bn=True, relu=True)            # s2
    s4 = conv2d(s2, params['bb2'], stride=2, padding=1, bn=True, relu=True)           # s4
    final_feats = conv2d(s4, params['bb3'], stride=2, padding=1, bn=True, relu=True)  # s8
    fh, fw = final_feats.shape[1], final_feats.shape[2]

    # ---- ASPP (output_stride=8) ----
    pooled = global_avg_pool(final_feats)                                  # (N,1,1,C)
    img = conv2d(pooled, params['aspp_img'], bn=True, relu=True)
    img = upsample_bilinear_align_corners(img, (fh, fw))
    b0 = conv2d(final_feats, params['aspp_1x1'], bn=True, relu=True)
    branches = [img, b0]
    for rate, name in zip(ASPP_RATES, ('aspp_r12', 'aspp_r24', 'aspp_r36')):
        branches.append(conv2d(final_feats, params[name], dilation=rate, padding=rate,
                               bn=True, relu=True))
    # fused concat(branches) + bot_aspp 1x1 (1280 -> 256); no 1280-ch tensor in HBM
    conv_aspp = concat_conv1x1(branches, params['bot_aspp'])

    # ---- decoder ----
    # bot_fine: keep the 48->128 lane padding (lane-dense stores); the extra channels are 0.
    conv_s2 = conv2d(s2, params['bot_fine'], keep_out_pad=True)            # (N,H2,W2,128)
    conv_aspp = upsample_bilinear_align_corners(conv_aspp, (s2.shape[1], s2.shape[2]))
    cat_s4 = jnp.concatenate([conv_s2, conv_aspp], axis=-1)                # 128 + 256 = 384
    # TODO(synk): fuse this concat into the final1 implicit-GEMM conv (two x/w operand pairs)
    # to avoid the HBM round-trip of the 384-channel decoder tensor.

    fine_pad = conv_s2.shape[-1]
    w_f1 = params['final1']                                                # (256, 304, 3, 3)
    w_f1 = jnp.concatenate(
        [w_f1[:, :FINE_CH],
         jnp.zeros((w_f1.shape[0], fine_pad - FINE_CH, 3, 3), w_f1.dtype),
         w_f1[:, FINE_CH:]], axis=1)                                       # zero rows for pad

    y = conv2d(cat_s4, w_f1, padding=1, bn=True, relu=True)
    y = conv2d(y, params['final2'], padding=1, bn=True, relu=True)
    y = conv2d(y, params['final3'])                                        # -> num_classes
    out = upsample_bilinear_align_corners(y, (in_h, in_w))

    # TODO(synk): the training branch (self.criterion on gts/coarse) is not implemented;
    # the eval path returns {'pred': ...} exactly as the module does.
    return {'pred': jnp.transpose(out, (0, 3, 1, 2)).astype(jnp.float32)}  # back to NCHW


# ----------------------------- main ---------------------------------------------------------

if __name__ == "__main__":
    key = jax.random.PRNGKey(0)
    pkey, xkey = jax.random.split(key)
    params = init_params(pkey)
    x = jax.random.normal(xkey, (2, 3, 32, 32), jnp.float32)  # inputs['images'], NCHW

    fwd = jax.jit(deepv3plus_forward)
    out = fwd(params, x)
    pred = jax.block_until_ready(out['pred'])
    assert pred.shape == (2, NUM_CLASSES, 32, 32), pred.shape
    assert pred.dtype == jnp.float32
    assert bool(jnp.all(jnp.isfinite(pred)))
    print("KERNEL_OK")
</pallas_src>

<mosaic_0001>
module attributes {stable_mosaic.version = 11 : i64} {
  func.func @_mm_direct_kernel(%arg0: i32, %arg1: i32, %arg2: memref<256x27xbf16, #tpu.memory_space<vmem>>, %arg3: memref<27x128xbf16, #tpu.memory_space<vmem>>, %arg4: memref<256x128xbf16, #tpu.memory_space<vmem>>) attributes {dimension_semantics = [#tpu.dimension_semantics<parallel>, #tpu.dimension_semantics<parallel>], iteration_bounds = array<i64: 2, 1>, scalar_prefetch = 0 : i64, scratch_operands = 0 : i64, tpu.core_type = #tpu.core_type<tc>, window_params = [{transform_indices = @transform_0, window_bounds = array<i64: 256, 27>}, {transform_indices = @transform_1, window_bounds = array<i64: 27, 128>}, {transform_indices = @transform_2, window_bounds = array<i64: 256, 128>}]} {
    %c0 = arith.constant 0 : index
    %c0_0 = arith.constant 0 : index
    %0 = vector.load %arg2[%c0, %c0_0] : memref<256x27xbf16, #tpu.memory_space<vmem>>, vector<256x27xbf16>
    %c0_1 = arith.constant 0 : index
    %c0_2 = arith.constant 0 : index
    %1 = vector.load %arg3[%c0_1, %c0_2] : memref<27x128xbf16, #tpu.memory_space<vmem>>, vector<27x128xbf16>
    %cst = arith.constant dense<0.000000e+00> : vector<256x128xf32>
    %2 = tpu.matmul %0, %1, %cst {dimension_numbers = #tpu.dot_dimension_numbers<[1], [0], [0], [1], [0, 0, 1, 1], [], []>} : vector<256x27xbf16>, vector<27x128xbf16>, vector<256x128xf32> -> vector<256x128xf32>
    %cst_3 = arith.constant 0.000000e+00 : f32
    %3 = vector.broadcast %cst_3 : f32 to vector<256x128xf32>
    %4 = arith.maximumf %2, %3 : vector<256x128xf32>
    %5 = arith.truncf %4 : vector<256x128xf32> to vector<256x128xbf16>
    %c0_4 = arith.constant 0 : index
    %c0_5 = arith.constant 0 : index
    %6 = vector.load %arg4[%c0_4, %c0_5] : memref<256x128xbf16, #tpu.memory_space<vmem>>, vector<256x128xbf16>
    tpu.vector_store %arg4[%c0_4, %c0_5], %5 {strides = array<i32>} : memref<256x128xbf16, #tpu.memory_space<vmem>>, vector<256x128xbf16>,
    return
  }
  func.func @transform_0(%arg0: i32, %arg1: i32) -> (i32, i32) {
    %c0_i32 = arith.constant 0 : i32
    %c0_i32_0 = arith.constant 0 : i32
    return %arg0, %c0_i32 : i32, i32
  }
  func.func @transform_1(%arg0: i32, %arg1: i32) -> (i32, i32) {
    %c0_i32 = arith.constant 0 : i32
    %c0_i32_0 = arith.constant 0 : i32
    return %c0_i32, %arg1 : i32, i32
  }
  func.func @transform_2(%arg0: i32, %arg1: i32) -> (i32, i32) {
    %c0_i32 = arith.constant 0 : i32
    return %arg0, %arg1 : i32, i32
  }
}

module attributes {stable_mosaic.version = 11 : i64} {
  func.func @_mm_direct_kernel(%arg0: i32, %arg1: i32, %arg2: memref<128x576xbf16, #tpu.memory_space<vmem>>, %arg3: memref<576x128xbf16, #tpu.memory_space<vmem>>, %arg4: memref<128x128xbf16, #tpu.memory_space<vmem>>) attributes {dimension_semantics = [#tpu.dimension_semantics<parallel>, #tpu.dimension_semantics<parallel>], iteration_bounds = array<i64: 1, 1>, scalar_prefetch = 0 : i64, scratch_operands = 0 : i64, tpu.core_type = #tpu.core_type<tc>, window_params = [{transform_indices = @transform_0, window_bounds = array<i64: 128, 576>}, {transform_indices = @transform_1, window_bounds = array<i64: 576, 128>}, {transform_indices = @transform_2, window_bounds = array<i64: 128, 128>}]} {
    %c0 = arith.constant 0 : index
    %c0_0 = arith.constant 0 : index
    %0 = vector.load %arg2[%c0, %c0_0] : memref<128x576xbf16, #tpu.memory_space<vmem>>, vector<128x576xbf16>
    %c0_1 = arith.constant 0 : index
    %c0_2 = arith.constant 0 : index
    %1 = vector.load %arg3[%c0_1, %c0_2] : memref<576x128xbf16, #tpu.memory_space<vmem>>, vector<576x128xbf16>
    %cst = arith.constant dense<0.000000e+00> : vector<128x128xf32>
    %2 = tpu.matmul %0, %1, %cst {dimension_numbers = #tpu.dot_dimension_numbers<[1], [0], [0], [1], [0, 0, 1, 1], [], []>} : vector<128x576xbf16>, vector<576x128xbf16>, vector<128x128xf32> -> vector<128x128xf32>
    %cst_3 = arith.constant 0.000000e+00 : f32
    %3 = vector.broadcast %cst_3 : f32 to vector<128x128xf32>
    %4 = arith.maximumf %2, %3 : vector<128x128xf32>
    %5 = arith.truncf %4 : vector<128x128xf32> to vector<128x128xbf16>
    %c0_4 = arith.constant 0 : index
    %c0_5 = arith.constant 0 : index
    %6 = vector.load %arg4[%c0_4, %c0_5] : memref<128x128xbf16, #tpu.memory_space<vmem>>, vector<128x128xbf16>
    tpu.vector_store %arg4[%c0_4, %c0_5], %5 {strides = array<i32>} : memref<128x128xbf16, #tpu.memory_space<vmem>>, vector<128x128xbf16>,
    return
  }
  func.func @transform_0(%arg0: i32, %arg1: i32) -> (i32, i32) {
    %c0_i32 = arith.constant 0 : i32
    %c0_i32_0 = arith.constant 0 : i32
    return %arg0, %c0_i32 : i32, i32
  }
  func.func @transform_1(%arg0: i32, %arg1: i32) -> (i32, i32) {
    %c0_i32 = arith.constant 0 : i32
    %c0_i32_0 = arith.constant 0 : i32
    return %c0_i32, %arg1 : i32, i32
  }
  func.func @transform_2(%arg0: i32, %arg1: i32) -> (i32, i32) {
    %c0_i32 = arith.constant 0 : i32
    return %arg0, %arg1 : i32, i32
  }
}

module attributes {stable_mosaic.version = 11 : i64} {
  func.func @_mm_direct_kernel(%arg0: i32, %arg1: i32, %arg2: memref<32x864xbf16, #tpu.memory_space<vmem>>, %arg3: memref<864x128xbf16, #tpu.memory_space<vmem>>, %arg4: memref<32x128xbf16, #tpu.memory_space<vmem>>) attributes {dimension_semantics = [#tpu.dimension_semantics<parallel>, #tpu.dimension_semantics<parallel>], iteration_bounds = array<i64: 1, 1>, scalar_prefetch = 0 : i64, scratch_operands = 0 : i64, tpu.core_type = #tpu.core_type<tc>, window_params = [{transform_indices = @transform_0, window_bounds = array<i64: 32, 864>}, {transform_indices = @transform_1, window_bounds = array<i64: 864, 128>}, {transform_indices = @transform_2, window_bounds = array<i64: 32, 128>}]} {
    %c0 = arith.constant 0 : index
    %c0_0 = arith.constant 0 : index
    %0 = vector.load %arg2[%c0, %c0_0] : memref<32x864xbf16, #tpu.memory_space<vmem>>, vector<32x864xbf16>
    %c0_1 = arith.constant 0 : index
    %c0_2 = arith.constant 0 : index
    %1 = vector.load %arg3[%c0_1, %c0_2] : memref<864x128xbf16, #tpu.memory_space<vmem>>, vector<864x128xbf16>
    %cst = arith.constant dense<0.000000e+00> : vector<32x128xf32>
    %2 = tpu.matmul %0, %1, %cst {dimension_numbers = #tpu.dot_dimension_numbers<[1], [0], [0], [1], [0, 0, 1, 1], [], []>} : vector<32x864xbf16>, vector<864x128xbf16>, vector<32x128xf32> -> vector<32x128xf32>
    %cst_3 = arith.constant 0.000000e+00 : f32
    %3 = vector.broadcast %cst_3 : f32 to vector<32x128xf32>
    %4 = arith.maximumf %2, %3 : vector<32x128xf32>
    %5 = arith.truncf %4 : vector<32x128xf32> to vector<32x128xbf16>
    %c0_4 = arith.constant 0 : index
    %c0_5 = arith.constant 0 : index
    %6 = vector.load %arg4[%c0_4, %c0_5] : memref<32x128xbf16, #tpu.memory_space<vmem>>, vector<32x128xbf16>
    tpu.vector_store %arg4[%c0_4, %c0_5], %5 {strides = array<i32>} : memref<32x128xbf16, #tpu.memory_space<vmem>>, vector<32x128xbf16>,
    return
  }
  func.func @transform_0(%arg0: i32, %arg1: i32) -> (i32, i32) {
    %c0_i32 = arith.constant 0 : i32
    %c0_i32_0 = arith.constant 0 : i32
    return %arg0, %c0_i32 : i32, i32
  }
  func.func @transform_1(%arg0: i32, %arg1: i32) -> (i32, i32) {
    %c0_i32 = arith.constant 0 : i32
    %c0_i32_0 = arith.constant 0 : i32
    return %c0_i32, %arg1 : i32, i32
  }
  func.func @transform_2(%arg0: i32, %arg1: i32) -> (i32, i32) {
    %c0_i32 = arith.constant 0 : i32
    return %arg0, %arg1 : i32, i32
  }
}

module attributes {stable_mosaic.version = 11 : i64} {
  func.func @_conv_s1_kernel(%arg0: i32, %arg1: i32, %arg2: i32, %arg3: i32, %arg4: memref<1x1x76x128xbf16, #tpu.memory_space<vmem>>, %arg5: memref<1x384x256xbf16, #tpu.memory_space<vmem>>, %arg6: memref<1x1x4x256xbf16, #tpu.memory_space<vmem>>, %arg7: memref<4x256xf32, #tpu.memory_space<vmem>>) attributes {dimension_semantics = [#tpu.dimension_semantics<parallel>, #tpu.dimension_semantics<parallel>, #tpu.dimension_semantics<parallel>, #tpu.dimension_semantics<arbitrary>], iteration_bounds = array<i64: 2, 4, 1, 3>, scalar_prefetch = 0 : i64, scratch_operands = 1 : i64, tpu.core_type = #tpu.core_type<tc>, window_params = [{transform_indices = @transform_0, window_bounds = array<i64: 1, 1, 76, 128>}, {transform_indices = @transform_1, window_bounds = array<i64: 1, 384, 256>}, {transform_indices = @transform_2, window_bounds = array<i64: 1, 1, 4, 256>}]} {
    %c0_i32 = arith.constant 0 : i32
    %0 = arith.cmpi eq, %arg3, %c0_i32 : i32
    %1 = arith.extui %0 : i1 to i32
    %c0_i32_0 = arith.constant 0 : i32
    %2 = arith.cmpi ne, %1, %c0_i32_0 : i32
    scf.if %2 {
      %cst_14 = arith.constant 0.000000e+00 : f32
      %24 = vector.broadcast %cst_14 : f32 to vector<4x256xf32>
      %c0_15 = arith.constant 0 : index
      %c0_16 = arith.constant 0 : index
      %25 = vector.load %arg7[%c0_15, %c0_16] : memref<4x256xf32, #tpu.memory_space<vmem>>, vector<4x256xf32>
      tpu.vector_store %arg7[%c0_15, %c0_16], %24 {strides = array<i32>} : memref<4x256xf32, #tpu.memory_space<vmem>>, vector<4x256xf32>,
    } else {
    }
    %c0 = arith.constant 0 : index
    %c0_1 = arith.constant 0 : index
    %c0_2 = arith.constant 0 : index
    %c0_3 = arith.constant 0 : index
    %3 = vector.load %arg4[%c0, %c0_1, %c0_2, %c0_3] : memref<1x1x76x128xbf16, #tpu.memory_space<vmem>>, vector<1x1x76x128xbf16>
    %4 = vector.shape_cast %3 : vector<1x1x76x128xbf16> to vector<76x128xbf16>
    %c0_4 = arith.constant 0 : index
    %c0_5 = arith.constant 0 : index
    %c0_6 = arith.constant 0 : index
    %5 = vector.load %arg5[%c0_4, %c0_5, %c0_6] : memref<1x384x256xbf16, #tpu.memory_space<vmem>>, vector<1x384x256xbf16>
    %6 = vector.shape_cast %5 : vector<1x384x256xbf16> to vector<384x256xbf16>
    %c0_7 = arith.constant 0 : index
    %c0_8 = arith.constant 0 : index
    %7 = vector.load %arg7[%c0_7, %c0_8] : memref<4x256xf32, #tpu.memory_space<vmem>>, vector<4x256xf32>
    %8 = vector.extract_strided_slice %4 {offsets = [0, 0], sizes = [4, 128], strides = [1, 1]} : vector<76x128xbf16> to vector<4x128xbf16>
    %9 = vector.extract_strided_slice %6 {offsets = [0, 0], sizes = [128, 256], strides = [1, 1]} : vector<384x256xbf16> to vector<128x256xbf16>
    %cst = arith.constant dense<0.000000e+00> : vector<4x256xf32>
    %10 = tpu.matmul %8, %9, %cst {dimension_numbers = #tpu.dot_dimension_numbers<[1], [0], [0], [1], [0, 0, 1, 1], [], []>} : vector<4x128xbf16>, vector<128x256xbf16>, vector<4x256xf32> -> vector<4x256xf32>
    %11 = arith.addf %7, %10 : vector<4x256xf32>
    %12 = vector.extract_strided_slice %4 {offsets = [36, 0], sizes = [4, 128], strides = [1, 1]} : vector<76x128xbf16> to vector<4x128xbf16>
    %13 = vector.extract_strided_slice %6 {offsets = [128, 0], sizes = [128, 256], strides = [1, 1]} : vector<384x256xbf16> to vector<128x256xbf16>
    %cst_9 = arith.constant dense<0.000000e+00> : vector<4x256xf32>
    %14 = tpu.matmul %12, %13, %cst_9 {dimension_numbers = #tpu.dot_dimension_numbers<[1], [0], [0], [1], [0, 0, 1, 1], [], []>} : vector<4x128xbf16>, vector<128x256xbf16>, vector<4x256xf32> -> vector<4x256xf32>
    %15 = arith.addf %11, %14 : vector<4x256xf32>
    %16 = vector.extract_strided_slice %4 {offsets = [72, 0], sizes = [4, 128], strides = [1, 1]} : vector<76x128xbf16> to vector<4x128xbf16>
    %17 = vector.extract_strided_slice %6 {offsets = [256, 0], sizes = [128, 256], strides = [1, 1]} : vector<384x256xbf16> to vector<128x256xbf16>
    %cst_10 = arith.constant dense<0.000000e+00> : vector<4x256xf32>
    %18 = tpu.matmul %16, %17, %cst_10 {dimension_numbers = #tpu.dot_dimension_numbers<[1], [0], [0], [1], [0, 0, 1, 1], [], []>} : vector<4x128xbf16>, vector<128x256xbf16>, vector<4x256xf32> -> vector<4x256xf32>
    %19 = arith.addf %15, %18 : vector<4x256xf32>
    %c0_11 = arith.constant 0 : index
    %c0_12 = arith.constant 0 : index
    %20 = vector.load %arg7[%c0_11, %c0_12] : memref<4x256xf32, #tpu.memory_space<vmem>>, vector<4x256xf32>
    tpu.vector_store %arg7[%c0_11, %c0_12], %19 {strides = array<i32>} : memref<4x256xf32, #tpu.memory_space<vmem>>, vector<4x256xf32>,
    %c2_i32 = arith.constant 2 : i32
    %21 = arith.cmpi eq, %arg3, %c2_i32 : i32
    %22 = arith.extui %21 : i1 to i32
    %c0_i32_13 = arith.constant 0 : i32
    %23 = arith.cmpi ne, %22, %c0_i32_13 : i32
    scf.if %23 {
      %c0_14 = arith.constant 0 : index
      %c0_15 = arith.constant 0 : index
      %24 = vector.load %arg7[%c0_14, %c0_15] : memref<4x256xf32, #tpu.memory_space<vmem>>, vector<4x256xf32>
      %cst_16 = arith.constant 0.000000e+00 : f32
      %25 = vector.broadcast %cst_16 : f32 to vector<4x256xf32>
      %26 = arith.maximumf %24, %25 : vector<4x256xf32>
      %27 = arith.truncf %26 : vector<4x256xf32> to vector<4x256xbf16>
      %c0_17 = arith.constant 0 : index
      %c0_18 = arith.constant 0 : index
      %c0_19 = arith.constant 0 : index
      %c0_20 = arith.constant 0 : index
      %28 = vector.load %arg6[%c0_17, %c0_18, %c0_19, %c0_20] : memref<1x1x4x256xbf16, #tpu.memory_space<vmem>>, vector<1x1x4x256xbf16>
      %29 = vector.shape_cast %28 : vector<1x1x4x256xbf16> to vector<4x256xbf16>
      %30 = vector.shape_cast %27 : vector<4x256xbf16> to vector<1x1x4x256xbf16>
      tpu.vector_store %arg6[%c0_17, %c0_18, %c0_19, %c0_20], %30 {strides = array<i32>} : memref<1x1x4x256xbf16, #tpu.memory_space<vmem>>, vector<1x1x4x256xbf16>,
    } else {
    }
    return
  }
  func.func @transform_0(%arg0: i32, %arg1: i32, %arg2: i32, %arg3: i32) -> (i32, i32, i32, i32) {
    %c36_i32 = arith.constant 36 : i32
    %0 = arith.muli %arg3, %c36_i32 : i32
    %1 = arith.addi %arg1, %0 : i32
    %c0_i32 = arith.constant 0 : i32
    %c0_i32_0 = arith.constant 0 : i32
    %c0_i32_1 = arith.constant 0 : i32
    return %arg0, %1, %c0_i32, %c0_i32_0 : i32, i32, i32, i32
  }
  func.func @transform_1(%arg0: i32, %arg1: i32, %arg2: i32, %arg3: i32) -> (i32, i32, i32) {
    %c0_i32 = arith.constant 0 : i32
    %c0_i32_0 = arith.constant 0 : i32
    return %arg3, %c0_i32, %arg2 : i32, i32, i32
  }
  func.func @transform_2(%arg0: i32, %arg1: i32, %arg2: i32, %arg3: i32) -> (i32, i32, i32, i32) {
    %c0_i32 = arith.constant 0 : i32
    %c0_i32_0 = arith.constant 0 : i32
    return %arg0, %arg1, %c0_i32, %arg2 : i32, i32, i32, i32
  }
}

module attributes {stable_mosaic.version = 11 : i64} {
  func.func @_conv_s1_kernel(%arg0: i32, %arg1: i32, %arg2: i32, %arg3: i32, %arg4: memref<1x1x52x128xbf16, #tpu.memory_space<vmem>>, %arg5: memref<1x384x256xbf16, #tpu.memory_space<vmem>>, %arg6: memref<1x1x4x256xbf16, #tpu.memory_space<vmem>>, %arg7: memref<4x256xf32, #tpu.memory_space<vmem>>) attributes {dimension_semantics = [#tpu.dimension_semantics<parallel>, #tpu.dimension_semantics<parallel>, #tpu.dimension_semantics<parallel>, #tpu.dimension_semantics<arbitrary>], iteration_bounds = array<i64: 2, 4, 1, 3>, scalar_prefetch = 0 : i64, scratch_operands = 1 : i64, tpu.core_type = #tpu.core_type<tc>, window_params = [{transform_indices = @transform_0, window_bounds = array<i64: 1, 1, 52, 128>}, {transform_indices = @transform_1, window_bounds = array<i64: 1, 384, 256>}, {transform_indices = @transform_2, window_bounds = array<i64: 1, 1, 4, 256>}]} {
    %c0_i32 = arith.constant 0 : i32
    %0 = arith.cmpi eq, %arg3, %c0_i32 : i32
    %1 = arith.extui %0 : i1 to i32
    %c0_i32_0 = arith.constant 0 : i32
    %2 = arith.cmpi ne, %1, %c0_i32_0 : i32
    scf.if %2 {
      %cst_14 = arith.constant 0.000000e+00 : f32
      %24 = vector.broadcast %cst_14 : f32 to vector<4x256xf32>
      %c0_15 = arith.constant 0 : index
      %c0_16 = arith.constant 0 : index
      %25 = vector.load %arg7[%c0_15, %c0_16] : memref<4x256xf32, #tpu.memory_space<vmem>>, vector<4x256xf32>
      tpu.vector_store %arg7[%c0_15, %c0_16], %24 {strides = array<i32>} : memref<4x256xf32, #tpu.memory_space<vmem>>, vector<4x256xf32>,
    } else {
    }
    %c0 = arith.constant 0 : index
    %c0_1 = arith.constant 0 : index
    %c0_2 = arith.constant 0 : index
    %c0_3 = arith.constant 0 : index
    %3 = vector.load %arg4[%c0, %c0_1, %c0_2, %c0_3] : memref<1x1x52x128xbf16, #tpu.memory_space<vmem>>, vector<1x1x52x128xbf16>
    %4 = vector.shape_cast %3 : vector<1x1x52x128xbf16> to vector<52x128xbf16>
    %c0_4 = arith.constant 0 : index
    %c0_5 = arith.constant 0 : index
    %c0_6 = arith.constant 0 : index
    %5 = vector.load %arg5[%c0_4, %c0_5, %c0_6] : memref<1x384x256xbf16, #tpu.memory_space<vmem>>, vector<1x384x256xbf16>
    %6 = vector.shape_cast %5 : vector<1x384x256xbf16> to vector<384x256xbf16>
    %c0_7 = arith.constant 0 : index
    %c0_8 = arith.constant 0 : index
    %7 = vector.load %arg7[%c0_7, %c0_8] : memref<4x256xf32, #tpu.memory_space<vmem>>, vector<4x256xf32>
    %8 = vector.extract_strided_slice %4 {offsets = [0, 0], sizes = [4, 128], strides = [1, 1]} : vector<52x128xbf16> to vector<4x128xbf16>
    %9 = vector.extract_strided_slice %6 {offsets = [0, 0], sizes = [128, 256], strides = [1, 1]} : vector<384x256xbf16> to vector<128x256xbf16>
    %cst = arith.constant dense<0.000000e+00> : vector<4x256xf32>
    %10 = tpu.matmul %8, %9, %cst {dimension_numbers = #tpu.dot_dimension_numbers<[1], [0], [0], [1], [0, 0, 1, 1], [], []>} : vector<4x128xbf16>, vector<128x256xbf16>, vector<4x256xf32> -> vector<4x256xf32>
    %11 = arith.addf %7, %10 : vector<4x256xf32>
    %12 = vector.extract_strided_slice %4 {offsets = [24, 0], sizes = [4, 128], strides = [1, 1]} : vector<52x128xbf16> to vector<4x128xbf16>
    %13 = vector.extract_strided_slice %6 {offsets = [128, 0], sizes = [128, 256], strides = [1, 1]} : vector<384x256xbf16> to vector<128x256xbf16>
    %cst_9 = arith.constant dense<0.000000e+00> : vector<4x256xf32>
    %14 = tpu.matmul %12, %13, %cst_9 {dimension_numbers = #tpu.dot_dimension_numbers<[1], [0], [0], [1], [0, 0, 1, 1], [], []>} : vector<4x128xbf16>, vector<128x256xbf16>, vector<4x256xf32> -> vector<4x256xf32>
    %15 = arith.addf %11, %14 : vector<4x256xf32>
    %16 = vector.extract_strided_slice %4 {offsets = [48, 0], sizes = [4, 128], strides = [1, 1]} : vector<52x128xbf16> to vector<4x128xbf16>
    %17 = vector.extract_strided_slice %6 {offsets = [256, 0], sizes = [128, 256], strides = [1, 1]} : vector<384x256xbf16> to vector<128x256xbf16>
    %cst_10 = arith.constant dense<0.000000e+00> : vector<4x256xf32>
    %18 = tpu.matmul %16, %17, %cst_10 {dimension_numbers = #tpu.dot_dimension_numbers<[1], [0], [0], [1], [0, 0, 1, 1], [], []>} : vector<4x128xbf16>, vector<128x256xbf16>, vector<4x256xf32> -> vector<4x256xf32>
    %19 = arith.addf %15, %18 : vector<4x256xf32>
    %c0_11 = arith.constant 0 : index
    %c0_12 = arith.constant 0 : index
    %20 = vector.load %arg7[%c0_11, %c0_12] : memref<4x256xf32, #tpu.memory_space<vmem>>, vector<4x256xf32>
    tpu.vector_store %arg7[%c0_11, %c0_12], %19 {strides = array<i32>} : memref<4x256xf32, #tpu.memory_space<vmem>>, vector<4x256xf32>,
    %c2_i32 = arith.constant 2 : i32
    %21 = arith.cmpi eq, %arg3, %c2_i32 : i32
    %22 = arith.extui %21 : i1 to i32
    %c0_i32_13 = arith.constant 0 : i32
    %23 = arith.cmpi ne, %22, %c0_i32_13 : i32
    scf.if %23 {
      %c0_14 = arith.constant 0 : index
      %c0_15 = arith.constant 0 : index
      %24 = vector.load %arg7[%c0_14, %c0_15] : memref<4x256xf32, #tpu.memory_space<vmem>>, vector<4x256xf32>
      %cst_16 = arith.constant 0.000000e+00 : f32
      %25 = vector.broadcast %cst_16 : f32 to vector<4x256xf32>
      %26 = arith.maximumf %24, %25 : vector<4x256xf32>
      %27 = arith.truncf %26 : vector<4x256xf32> to vector<4x256xbf16>
      %c0_17 = arith.constant 0 : index
      %c0_18 = arith.constant 0 : index
      %c0_19 = arith.constant 0 : index
      %c0_20 = arith.constant 0 : index
      %28 = vector.load %arg6[%c0_17, %c0_18, %c0_19, %c0_20] : memref<1x1x4x256xbf16, #tpu.memory_space<vmem>>, vector<1x1x4x256xbf16>
      %29 = vector.shape_cast %28 : vector<1x1x4x256xbf16> to vector<4x256xbf16>
      %30 = vector.shape_cast %27 : vector<4x256xbf16> to vector<1x1x4x256xbf16>
      tpu.vector_store %arg6[%c0_17, %c0_18, %c0_19, %c0_20], %30 {strides = array<i32>} : memref<1x1x4x256xbf16, #tpu.memory_space<vmem>>, vector<1x1x4x256xbf16>,
    } else {
    }
    return
  }
  func.func @transform_0(%arg0: i32, %arg1: i32, %arg2: i32, %arg3: i32) -> (i32, i32, i32, i32) {
    %c24_i32 = arith.constant 24 : i32
    %0 = arith.muli %arg3, %c24_i32 : i32
    %1 = arith.addi %arg1, %0 : i32
    %c0_i32 = arith.constant 0 : i32
    %c0_i32_0 = arith.constant 0 : i32
    %c0_i32_1 = arith.constant 0 : i32
    return %arg0, %1, %c0_i32, %c0_i32_0 : i32, i32, i32, i32
  }
  func.func @transform_1(%arg0: i32, %arg1: i32, %arg2: i32, %arg3: i32) -> (i32, i32, i32) {
    %c0_i32 = arith.constant 0 : i32
    %c0_i32_0 = arith.constant 0 : i32
    return %arg3, %c0_i32, %arg2 : i32, i32, i32
  }
  func.func @transform_2(%arg0: i32, %arg1: i32, %arg2: i32, %arg3: i32) -> (i32, i32, i32, i32) {
    %c0_i32 = arith.constant 0 : i32
    %c0_i32_0 = arith.constant 0 : i32
    return %arg0, %arg1, %c0_i32, %arg2 : i32, i32, i32, i32
  }
}

module attributes {stable_mosaic.version = 11 : i64} {
  func.func @_gap_kernel(%arg0: i32, %arg1: i32, %arg2: memref<1x16x128xbf16, #tpu.memory_space<vmem>>, %arg3: memref<1x1x128xbf16, #tpu.memory_space<vmem>>, %arg4: memref<1x1x128xf32, #tpu.memory_space<vmem>>) attributes {dimension_semantics = [#tpu.dimension_semantics<parallel>, #tpu.dimension_semantics<arbitrary>], iteration_bounds = array<i64: 2, 1>, scalar_prefetch = 0 : i64, scratch_operands = 1 : i64, tpu.core_type = #tpu.core_type<tc>, window_params = [{transform_indices = @transform_0, window_bounds = array<i64: 1, 16, 128>}, {transform_indices = @transform_1, window_bounds = array<i64: 1, 1, 128>}]} {
    %c0_i32 = arith.constant 0 : i32
    %0 = arith.cmpi eq, %arg1, %c0_i32 : i32
    %1 = arith.extui %0 : i1 to i32
    %c0_i32_0 = arith.constant 0 : i32
    %2 = arith.cmpi ne, %1, %c0_i32_0 : i32
    scf.if %2 {
      %cst_11 = arith.constant 0.000000e+00 : f32
      %13 = vector.broadcast %cst_11 : f32 to vector<1x1x128xf32>
      %c0_12 = arith.constant 0 : index
      %c0_13 = arith.constant 0 : index
      %c0_14 = arith.constant 0 : index
      %14 = vector.load %arg4[%c0_12, %c0_13, %c0_14] : memref<1x1x128xf32, #tpu.memory_space<vmem>>, vector<1x1x128xf32>
      tpu.vector_store %arg4[%c0_12, %c0_13, %c0_14], %13 {strides = array<i32>} : memref<1x1x128xf32, #tpu.memory_space<vmem>>, vector<1x1x128xf32>,
    } else {
    }
    %c0 = arith.constant 0 : index
    %c0_1 = arith.constant 0 : index
    %c0_2 = arith.constant 0 : index
    %3 = vector.load %arg4[%c0, %c0_1, %c0_2] : memref<1x1x128xf32, #tpu.memory_space<vmem>>, vector<1x1x128xf32>
    %c0_3 = arith.constant 0 : index
    %c0_4 = arith.constant 0 : index
    %c0_5 = arith.constant 0 : index
    %4 = vector.load %arg2[%c0_3, %c0_4, %c0_5] : memref<1x16x128xbf16, #tpu.memory_space<vmem>>, vector<1x16x128xbf16>
    %5 = arith.extf %4 : vector<1x16x128xbf16> to vector<1x16x128xf32>
    %cst = arith.constant dense<0.000000e+00> : vector<1x128xf32>
    %6 = vector.multi_reduction <add>, %5, %cst [1] : vector<1x16x128xf32> to vector<1x128xf32>
    %7 = vector.shape_cast %6 : vector<1x128xf32> to vector<1x1x128xf32>
    %8 = arith.addf %3, %7 : vector<1x1x128xf32>
    %c0_6 = arith.constant 0 : index
    %c0_7 = arith.constant 0 : index
    %c0_8 = arith.constant 0 : index
    %9 = vector.load %arg4[%c0_6, %c0_7, %c0_8] : memref<1x1x128xf32, #tpu.memory_space<vmem>>, vector<1x1x128xf32>
    tpu.vector_store %arg4[%c0_6, %c0_7, %c0_8], %8 {strides = array<i32>} : memref<1x1x128xf32, #tpu.memory_space<vmem>>, vector<1x1x128xf32>,
    %c0_i32_9 = arith.constant 0 : i32
    %10 = arith.cmpi eq, %arg1, %c0_i32_9 : i32
    %11 = arith.extui %10 : i1 to i32
    %c0_i32_10 = arith.constant 0 : i32
    %12 = arith.cmpi ne, %11, %c0_i32_10 : i32
    scf.if %12 {
      %c0_11 = arith.constant 0 : index
      %c0_12 = arith.constant 0 : index
      %c0_13 = arith.constant 0 : index
      %13 = vector.load %arg4[%c0_11, %c0_12, %c0_13] : memref<1x1x128xf32, #tpu.memory_space<vmem>>, vector<1x1x128xf32>
      %cst_14 = arith.constant 6.250000e-02 : f32
      %14 = vector.broadcast %cst_14 : f32 to vector<1x1x128xf32>
      %15 = arith.mulf %13, %14 : vector<1x1x128xf32>
      %16 = arith.truncf %15 : vector<1x1x128xf32> to vector<1x1x128xbf16>
      %c0_15 = arith.constant 0 : index
      %c0_16 = arith.constant 0 : index
      %c0_17 = arith.constant 0 : index
      %17 = vector.load %arg3[%c0_15, %c0_16, %c0_17] : memref<1x1x128xbf16, #tpu.memory_space<vmem>>, vector<1x1x128xbf16>
      tpu.vector_store %arg3[%c0_15, %c0_16, %c0_17], %16 {strides = array<i32>} : memref<1x1x128xbf16, #tpu.memory_space<vmem>>, vector<1x1x128xbf16>,
    } else {
    }
    return
  }
  func.func @transform_0(%arg0: i32, %arg1: i32) -> (i32, i32, i32) {
    %c0_i32 = arith.constant 0 : i32
    %c0_i32_0 = arith.constant 0 : i32
    return %arg0, %arg1, %c0_i32 : i32, i32, i32
  }
  func.func @transform_1(%arg0: i32, %arg1: i32) -> (i32, i32, i32) {
    %c0_i32 = arith.constant 0 : i32
    %c0_i32_0 = arith.constant 0 : i32
    %c0_i32_1 = arith.constant 0 : i32
    return %arg0, %c0_i32, %c0_i32_0 : i32, i32, i32
  }
}

module attributes {stable_mosaic.version = 11 : i64} {
  func.func @_conv_s1_kernel(%arg0: i32, %arg1: i32, %arg2: i32, %arg3: i32, %arg4: memref<1x1x28x128xbf16, #tpu.memory_space<vmem>>, %arg5: memref<1x384x256xbf16, #tpu.memory_space<vmem>>, %arg6: memref<1x1x4x256xbf16, #tpu.memory_space<vmem>>, %arg7: memref<4x256xf32, #tpu.memory_space<vmem>>) attributes {dimension_semantics = [#tpu.dimension_semantics<parallel>, #tpu.dimension_semantics<parallel>, #tpu.dimension_semantics<parallel>, #tpu.dimension_semantics<arbitrary>], iteration_bounds = array<i64: 2, 4, 1, 3>, scalar_prefetch = 0 : i64, scratch_operands = 1 : i64, tpu.core_type = #tpu.core_type<tc>, window_params = [{transform_indices = @transform_0, window_bounds = array<i64: 1, 1, 28, 128>}, {transform_indices = @transform_1, window_bounds = array<i64: 1, 384, 256>}, {transform_indices = @transform_2, window_bounds = array<i64: 1, 1, 4, 256>}]} {
    %c0_i32 = arith.constant 0 : i32
    %0 = arith.cmpi eq, %arg3, %c0_i32 : i32
    %1 = arith.extui %0 : i1 to i32
    %c0_i32_0 = arith.constant 0 : i32
    %2 = arith.cmpi ne, %1, %c0_i32_0 : i32
    scf.if %2 {
      %cst_14 = arith.constant 0.000000e+00 : f32
      %24 = vector.broadcast %cst_14 : f32 to vector<4x256xf32>
      %c0_15 = arith.constant 0 : index
      %c0_16 = arith.constant 0 : index
      %25 = vector.load %arg7[%c0_15, %c0_16] : memref<4x256xf32, #tpu.memory_space<vmem>>, vector<4x256xf32>
      tpu.vector_store %arg7[%c0_15, %c0_16], %24 {strides = array<i32>} : memref<4x256xf32, #tpu.memory_space<vmem>>, vector<4x256xf32>,
    } else {
    }
    %c0 = arith.constant 0 : index
    %c0_1 = arith.constant 0 : index
    %c0_2 = arith.constant 0 : index
    %c0_3 = arith.constant 0 : index
    %3 = vector.load %arg4[%c0, %c0_1, %c0_2, %c0_3] : memref<1x1x28x128xbf16, #tpu.memory_space<vmem>>, vector<1x1x28x128xbf16>
    %4 = vector.shape_cast %3 : vector<1x1x28x128xbf16> to vector<28x128xbf16>
    %c0_4 = arith.constant 0 : index
    %c0_5 = arith.constant 0 : index
    %c0_6 = arith.constant 0 : index
    %5 = vector.load %arg5[%c0_4, %c0_5, %c0_6] : memref<1x384x256xbf16, #tpu.memory_space<vmem>>, vector<1x384x256xbf16>
    %6 = vector.shape_cast %5 : vector<1x384x256xbf16> to vector<384x256xbf16>
    %c0_7 = arith.constant 0 : index
    %c0_8 = arith.constant 0 : index
    %7 = vector.load %arg7[%c0_7, %c0_8] : memref<4x256xf32, #tpu.memory_space<vmem>>, vector<4x256xf32>
    %8 = vector.extract_strided_slice %4 {offsets = [0, 0], sizes = [4, 128], strides = [1, 1]} : vector<28x128xbf16> to vector<4x128xbf16>
    %9 = vector.extract_strided_slice %6 {offsets = [0, 0], sizes = [128, 256], strides = [1, 1]} : vector<384x256xbf16> to vector<128x256xbf16>
    %cst = arith.constant dense<0.000000e+00> : vector<4x256xf32>
    %10 = tpu.matmul %8, %9, %cst {dimension_numbers = #tpu.dot_dimension_numbers<[1], [0], [0], [1], [0, 0, 1, 1], [], []>} : vector<4x128xbf16>, vector<128x256xbf16>, vector<4x256xf32> -> vector<4x256xf32>
    %11 = arith.addf %7, %10 : vector<4x256xf32>
    %12 = vector.extract_strided_slice %4 {offsets = [12, 0], sizes = [4, 128], strides = [1, 1]} : vector<28x128xbf16> to vector<4x128xbf16>
    %13 = vector.extract_strided_slice %6 {offsets = [128, 0], sizes = [128, 256], strides = [1, 1]} : vector<384x256xbf16> to vector<128x256xbf16>
    %cst_9 = arith.constant dense<0.000000e+00> : vector<4x256xf32>
    %14 = tpu.matmul %12, %13, %cst_9 {dimension_numbers = #tpu.dot_dimension_numbers<[1], [0], [0], [1], [0, 0, 1, 1], [], []>} : vector<4x128xbf16>, vector<128x256xbf16>, vector<4x256xf32> -> vector<4x256xf32>
    %15 = arith.addf %11, %14 : vector<4x256xf32>
    %16 = vector.extract_strided_slice %4 {offsets = [24, 0], sizes = [4, 128], strides = [1, 1]} : vector<28x128xbf16> to vector<4x128xbf16>
    %17 = vector.extract_strided_slice %6 {offsets = [256, 0], sizes = [128, 256], strides = [1, 1]} : vector<384x256xbf16> to vector<128x256xbf16>
    %cst_10 = arith.constant dense<0.000000e+00> : vector<4x256xf32>
    %18 = tpu.matmul %16, %17, %cst_10 {dimension_numbers = #tpu.dot_dimension_numbers<[1], [0], [0], [1], [0, 0, 1, 1], [], []>} : vector<4x128xbf16>, vector<128x256xbf16>, vector<4x256xf32> -> vector<4x256xf32>
    %19 = arith.addf %15, %18 : vector<4x256xf32>
    %c0_11 = arith.constant 0 : index
    %c0_12 = arith.constant 0 : index
    %20 = vector.load %arg7[%c0_11, %c0_12] : memref<4x256xf32, #tpu.memory_space<vmem>>, vector<4x256xf32>
    tpu.vector_store %arg7[%c0_11, %c0_12], %19 {strides = array<i32>} : memref<4x256xf32, #tpu.memory_space<vmem>>, vector<4x256xf32>,
    %c2_i32 = arith.constant 2 : i32
    %21 = arith.cmpi eq, %arg3, %c2_i32 : i32
    %22 = arith.extui %21 : i1 to i32
    %c0_i32_13 = arith.constant 0 : i32
    %23 = arith.cmpi ne, %22, %c0_i32_13 : i32
    scf.if %23 {
      %c0_14 = arith.constant 0 : index
      %c0_15 = arith.constant 0 : index
      %24 = vector.load %arg7[%c0_14, %c0_15] : memref<4x256xf32, #tpu.memory_space<vmem>>, vector<4x256xf32>
      %cst_16 = arith.constant 0.000000e+00 : f32
      %25 = vector.broadcast %cst_16 : f32 to vector<4x256xf32>
      %26 = arith.maximumf %24, %25 : vector<4x256xf32>
      %27 = arith.truncf %26 : vector<4x256xf32> to vector<4x256xbf16>
      %c0_17 = arith.constant 0 : index
      %c0_18 = arith.constant 0 : index
      %c0_19 = arith.constant 0 : index
      %c0_20 = arith.constant 0 : index
      %28 = vector.load %arg6[%c0_17, %c0_18, %c0_19, %c0_20] : memref<1x1x4x256xbf16, #tpu.memory_space<vmem>>, vector<1x1x4x256xbf16>
      %29 = vector.shape_cast %28 : vector<1x1x4x256xbf16> to vector<4x256xbf16>
      %30 = vector.shape_cast %27 : vector<4x256xbf16> to vector<1x1x4x256xbf16>
      tpu.vector_store %arg6[%c0_17, %c0_18, %c0_19, %c0_20], %30 {strides = array<i32>} : memref<1x1x4x256xbf16, #tpu.memory_space<vmem>>, vector<1x1x4x256xbf16>,
    } else {
    }
    return
  }
  func.func @transform_0(%arg0: i32, %arg1: i32, %arg2: i32, %arg3: i32) -> (i32, i32, i32, i32) {
    %c12_i32 = arith.constant 12 : i32
    %0 = arith.muli %arg3, %c12_i32 : i32
    %1 = arith.addi %arg1, %0 : i32
    %c0_i32 = arith.constant 0 : i32
    %c0_i32_0 = arith.constant 0 : i32
    %c0_i32_1 = arith.constant 0 : i32
    return %arg0, %1, %c0_i32, %c0_i32_0 : i32, i32, i32, i32
  }
  func.func @transform_1(%arg0: i32, %arg1: i32, %arg2: i32, %arg3: i32) -> (i32, i32, i32) {
    %c0_i32 = arith.constant 0 : i32
    %c0_i32_0 = arith.constant 0 : i32
    return %arg3, %c0_i32, %arg2 : i32, i32, i32
  }
  func.func @transform_2(%arg0: i32, %arg1: i32, %arg2: i32, %arg3: i32) -> (i32, i32, i32, i32) {
    %c0_i32 = arith.constant 0 : i32
    %c0_i32_0 = arith.constant 0 : i32
    return %arg0, %arg1, %c0_i32, %arg2 : i32, i32, i32, i32
  }
}

module attributes {stable_mosaic.version = 11 : i64} {
  func.func @_mm_direct_kernel(%arg0: i32, %arg1: i32, %arg2: memref<8x128xbf16, #tpu.memory_space<vmem>>, %arg3: memref<128x128xbf16, #tpu.memory_space<vmem>>, %arg4: memref<8x128xbf16, #tpu.memory_space<vmem>>) attributes {dimension_semantics = [#tpu.dimension_semantics<parallel>, #tpu.dimension_semantics<parallel>], iteration_bounds = array<i64: 1, 2>, scalar_prefetch = 0 : i64, scratch_operands = 0 : i64, tpu.core_type = #tpu.core_type<tc>, window_params = [{transform_indices = @transform_0, window_bounds = array<i64: 8, 128>}, {transform_indices = @transform_1, window_bounds = array<i64: 128, 128>}, {transform_indices = @transform_2, window_bounds = array<i64: 8, 128>}]} {
    %c0 = arith.constant 0 : index
    %c0_0 = arith.constant 0 : index
    %0 = vector.load %arg2[%c0, %c0_0] : memref<8x128xbf16, #tpu.memory_space<vmem>>, vector<8x128xbf16>
    %c0_1 = arith.constant 0 : index
    %c0_2 = arith.constant 0 : index
    %1 = vector.load %arg3[%c0_1, %c0_2] : memref<128x128xbf16, #tpu.memory_space<vmem>>, vector<128x128xbf16>
    %cst = arith.constant dense<0.000000e+00> : vector<8x128xf32>
    %2 = tpu.matmul %0, %1, %cst {dimension_numbers = #tpu.dot_dimension_numbers<[1], [0], [0], [1], [0, 0, 1, 1], [], []>} : vector<8x128xbf16>, vector<128x128xbf16>, vector<8x128xf32> -> vector<8x128xf32>
    %cst_3 = arith.constant 0.000000e+00 : f32
    %3 = vector.broadcast %cst_3 : f32 to vector<8x128xf32>
    %4 = arith.maximumf %2, %3 : vector<8x128xf32>
    %5 = arith.truncf %4 : vector<8x128xf32> to vector<8x128xbf16>
    %c0_4 = arith.constant 0 : index
    %c0_5 = arith.constant 0 : index
    %6 = vector.load %arg4[%c0_4, %c0_5] : memref<8x128xbf16, #tpu.memory_space<vmem>>, vector<8x128xbf16>
    tpu.vector_store %arg4[%c0_4, %c0_5], %5 {strides = array<i32>} : memref<8x128xbf16, #tpu.memory_space<vmem>>, vector<8x128xbf16>,
    return
  }
  func.func @transform_0(%arg0: i32, %arg1: i32) -> (i32, i32) {
    %c0_i32 = arith.constant 0 : i32
    %c0_i32_0 = arith.constant 0 : i32
    return %arg0, %c0_i32 : i32, i32
  }
  func.func @transform_1(%arg0: i32, %arg1: i32) -> (i32, i32) {
    %c0_i32 = arith.constant 0 : i32
    %c0_i32_0 = arith.constant 0 : i32
    return %c0_i32, %arg1 : i32, i32
  }
  func.func @transform_2(%arg0: i32, %arg1: i32) -> (i32, i32) {
    %c0_i32 = arith.constant 0 : i32
    return %arg0, %arg1 : i32, i32
  }
}

module attributes {stable_mosaic.version = 11 : i64} {
  func.func @_mm_direct_kernel(%arg0: i32, %arg1: i32, %arg2: memref<32x128xbf16, #tpu.memory_space<vmem>>, %arg3: memref<128x128xbf16, #tpu.memory_space<vmem>>, %arg4: memref<32x128xbf16, #tpu.memory_space<vmem>>) attributes {dimension_semantics = [#tpu.dimension_semantics<parallel>, #tpu.dimension_semantics<parallel>], iteration_bounds = array<i64: 1, 2>, scalar_prefetch = 0 : i64, scratch_operands = 0 : i64, tpu.core_type = #tpu.core_type<tc>, window_params = [{transform_indices = @transform_0, window_bounds = array<i64: 32, 128>}, {transform_indices = @transform_1, window_bounds = array<i64: 128, 128>}, {transform_indices = @transform_2, window_bounds = array<i64: 32, 128>}]} {
    %c0 = arith.constant 0 : index
    %c0_0 = arith.constant 0 : index
    %0 = vector.load %arg2[%c0, %c0_0] : memref<32x128xbf16, #tpu.memory_space<vmem>>, vector<32x128xbf16>
    %c0_1 = arith.constant 0 : index
    %c0_2 = arith.constant 0 : index
    %1 = vector.load %arg3[%c0_1, %c0_2] : memref<128x128xbf16, #tpu.memory_space<vmem>>, vector<128x128xbf16>
    %cst = arith.constant dense<0.000000e+00> : vector<32x128xf32>
    %2 = tpu.matmul %0, %1, %cst {dimension_numbers = #tpu.dot_dimension_numbers<[1], [0], [0], [1], [0, 0, 1, 1], [], []>} : vector<32x128xbf16>, vector<128x128xbf16>, vector<32x128xf32> -> vector<32x128xf32>
    %cst_3 = arith.constant 0.000000e+00 : f32
    %3 = vector.broadcast %cst_3 : f32 to vector<32x128xf32>
    %4 = arith.maximumf %2, %3 : vector<32x128xf32>
    %5 = arith.truncf %4 : vector<32x128xf32> to vector<32x128xbf16>
    %c0_4 = arith.constant 0 : index
    %c0_5 = arith.constant 0 : index
    %6 = vector.load %arg4[%c0_4, %c0_5] : memref<32x128xbf16, #tpu.memory_space<vmem>>, vector<32x128xbf16>
    tpu.vector_store %arg4[%c0_4, %c0_5], %5 {strides = array<i32>} : memref<32x128xbf16, #tpu.memory_space<vmem>>, vector<32x128xbf16>,
    return
  }
  func.func @transform_0(%arg0: i32, %arg1: i32) -> (i32, i32) {
    %c0_i32 = arith.constant 0 : i32
    %c0_i32_0 = arith.constant 0 : i32
    return %arg0, %c0_i32 : i32, i32
  }
  func.func @transform_1(%arg0: i32, %arg1: i32) -> (i32, i32) {
    %c0_i32 = arith.constant 0 : i32
    %c0_i32_0 = arith.constant 0 : i32
    return %c0_i32, %arg1 : i32, i32
  }
  func.func @transform_2(%arg0: i32, %arg1: i32) -> (i32, i32) {
    %c0_i32 = arith.constant 0 : i32
    return %arg0, %arg1 : i32, i32
  }
}

module attributes {stable_mosaic.version = 11 : i64} {
  func.func @_concat_mm_kernel(%arg0: i32, %arg1: i32, %arg2: memref<32x256xbf16, #tpu.memory_space<vmem>>, %arg3: memref<32x256xbf16, #tpu.memory_space<vmem>>, %arg4: memref<32x256xbf16, #tpu.memory_space<vmem>>, %arg5: memref<32x256xbf16, #tpu.memory_space<vmem>>, %arg6: memref<32x256xbf16, #tpu.memory_space<vmem>>, %arg7: memref<256x128xbf16, #tpu.memory_space<vmem>>, %arg8: memref<256x128xbf16, #tpu.memory_space<vmem>>, %arg9: memref<256x128xbf16, #tpu.memory_space<vmem>>, %arg10: memref<256x128xbf16, #tpu.memory_space<vmem>>, %arg11: memref<256x128xbf16, #tpu.memory_space<vmem>>, %arg12: memref<32x128xbf16, #tpu.memory_space<vmem>>) attributes {dimension_semantics = [#tpu.dimension_semantics<parallel>, #tpu.dimension_semantics<parallel>], iteration_bounds = array<i64: 1, 2>, scalar_prefetch = 0 : i64, scratch_operands = 0 : i64, tpu.core_type = #tpu.core_type<tc>, window_params = [{transform_indices = @transform_0, window_bounds = array<i64: 32, 256>}, {transform_indices = @transform_1, window_bounds = array<i64: 32, 256>}, {transform_indices = @transform_2, window_bounds = array<i64: 32, 256>}, {transform_indices = @transform_3, window_bounds = array<i64: 32, 256>}, {transform_indices = @transform_4, window_bounds = array<i64: 32, 256>}, {transform_indices = @transform_5, window_bounds = array<i64: 256, 128>}, {transform_indices = @transform_6, window_bounds = array<i64: 256, 128>}, {transform_indices = @transform_7, window_bounds = array<i64: 256, 128>}, {transform_indices = @transform_8, window_bounds = array<i64: 256, 128>}, {transform_indices = @transform_9, window_bounds = array<i64: 256, 128>}, {transform_indices = @transform_10, window_bounds = array<i64: 32, 128>}]} {
    %c0 = arith.constant 0 : index
    %c0_0 = arith.constant 0 : index
    %0 = vector.load %arg2[%c0, %c0_0] : memref<32x256xbf16, #tpu.memory_space<vmem>>, vector<32x256xbf16>
    %c0_1 = arith.constant 0 : index
    %c0_2 = arith.constant 0 : index
    %1 = vector.load %arg7[%c0_1, %c0_2] : memref<256x128xbf16, #tpu.memory_space<vmem>>, vector<256x128xbf16>
    %cst = arith.constant dense<0.000000e+00> : vector<32x128xf32>
    %2 = tpu.matmul %0, %1, %cst {dimension_numbers = #tpu.dot_dimension_numbers<[1], [0], [0], [1], [0, 0, 1, 1], [], []>} : vector<32x256xbf16>, vector<256x128xbf16>, vector<32x128xf32> -> vector<32x128xf32>
    %c0_3 = arith.constant 0 : index
    %c0_4 = arith.constant 0 : index
    %3 = vector.load %arg3[%c0_3, %c0_4] : memref<32x256xbf16, #tpu.memory_space<vmem>>, vector<32x256xbf16>
    %c0_5 = arith.constant 0 : index
    %c0_6 = arith.constant 0 : index
    %4 = vector.load %arg8[%c0_5, %c0_6] : memref<256x128xbf16, #tpu.memory_space<vmem>>, vector<256x128xbf16>
    %cst_7 = arith.constant dense<0.000000e+00> : vector<32x128xf32>
    %5 = tpu.matmul %3, %4, %cst_7 {dimension_numbers = #tpu.dot_dimension_numbers<[1], [0], [0], [1], [0, 0, 1, 1], [], []>} : vector<32x256xbf16>, vector<256x128xbf16>, vector<32x128xf32> -> vector<32x128xf32>
    %6 = arith.addf %2, %5 : vector<32x128xf32>
    %c0_8 = arith.constant 0 : index
    %c0_9 = arith.constant 0 : index
    %7 = vector.load %arg4[%c0_8, %c0_9] : memref<32x256xbf16, #tpu.memory_space<vmem>>, vector<32x256xbf16>
    %c0_10 = arith.constant 0 : index
    %c0_11 = arith.constant 0 : index
    %8 = vector.load %arg9[%c0_10, %c0_11] : memref<256x128xbf16, #tpu.memory_space<vmem>>, vector<256x128xbf16>
    %cst_12 = arith.constant dense<0.000000e+00> : vector<32x128xf32>
    %9 = tpu.matmul %7, %8, %cst_12 {dimension_numbers = #tpu.dot_dimension_numbers<[1], [0], [0], [1], [0, 0, 1, 1], [], []>} : vector<32x256xbf16>, vector<256x128xbf16>, vector<32x128xf32> -> vector<32x128xf32>
    %10 = arith.addf %6, %9 : vector<32x128xf32>
    %c0_13 = arith.constant 0 : index
    %c0_14 = arith.constant 0 : index
    %11 = vector.load %arg5[%c0_13, %c0_14] : memref<32x256xbf16, #tpu.memory_space<vmem>>, vector<32x256xbf16>
    %c0_15 = arith.constant 0 : index
    %c0_16 = arith.constant 0 : index
    %12 = vector.load %arg10[%c0_15, %c0_16] : memref<256x128xbf16, #tpu.memory_space<vmem>>, vector<256x128xbf16>
    %cst_17 = arith.constant dense<0.000000e+00> : vector<32x128xf32>
    %13 = tpu.matmul %11, %12, %cst_17 {dimension_numbers = #tpu.dot_dimension_numbers<[1], [0], [0], [1], [0, 0, 1, 1], [], []>} : vector<32x256xbf16>, vector<256x128xbf16>, vector<32x128xf32> -> vector<32x128xf32>
    %14 = arith.addf %10, %13 : vector<32x128xf32>
    %c0_18 = arith.constant 0 : index
    %c0_19 = arith.constant 0 : index
    %15 = vector.load %arg6[%c0_18, %c0_19] : memref<32x256xbf16, #tpu.memory_space<vmem>>, vector<32x256xbf16>
    %c0_20 = arith.constant 0 : index
    %c0_21 = arith.constant 0 : index
    %16 = vector.load %arg11[%c0_20, %c0_21] : memref<256x128xbf16, #tpu.memory_space<vmem>>, vector<256x128xbf16>
    %cst_22 = arith.constant dense<0.000000e+00> : vector<32x128xf32>
    %17 = tpu.matmul %15, %16, %cst_22 {dimension_numbers = #tpu.dot_dimension_numbers<[1], [0], [0], [1], [0, 0, 1, 1], [], []>} : vector<32x256xbf16>, vector<256x128xbf16>, vector<32x128xf32> -> vector<32x128xf32>
    %18 = arith.addf %14, %17 : vector<32x128xf32>
    %19 = arith.truncf %18 : vector<32x128xf32> to vector<32x128xbf16>
    %c0_23 = arith.constant 0 : index
    %c0_24 = arith.constant 0 : index
    %20 = vector.load %arg12[%c0_23, %c0_24] : memref<32x128xbf16, #tpu.memory_space<vmem>>, vector<32x128xbf16>
    tpu.vector_store %arg12[%c0_23, %c0_24], %19 {strides = array<i32>} : memref<32x128xbf16, #tpu.memory_space<vmem>>, vector<32x128xbf16>,
    return
  }
  func.func @transform_0(%arg0: i32, %arg1: i32) -> (i32, i32) {
    %c0_i32 = arith.constant 0 : i32
    %c0_i32_0 = arith.constant 0 : i32
    return %arg0, %c0_i32 : i32, i32
  }
  func.func @transform_1(%arg0: i32, %arg1: i32) -> (i32, i32) {
    %c0_i32 = arith.constant 0 : i32
    %c0_i32_0 = arith.constant 0 : i32
    return %arg0, %c0_i32 : i32, i32
  }
  func.func @transform_2(%arg0: i32, %arg1: i32) -> (i32, i32) {
    %c0_i32 = arith.constant 0 : i32
    %c0_i32_0 = arith.constant 0 : i32
    return %arg0, %c0_i32 : i32, i32
  }
  func.func @transform_3(%arg0: i32, %arg1: i32) -> (i32, i32) {
    %c0_i32 = arith.constant 0 : i32
    %c0_i32_0 = arith.constant 0 : i32
    return %arg0, %c0_i32 : i32, i32
  }
  func.func @transform_4(%arg0: i32, %arg1: i32) -> (i32, i32) {
    %c0_i32 = arith.constant 0 : i32
    %c0_i32_0 = arith.constant 0 : i32
    return %arg0, %c0_i32 : i32, i32
  }
  func.func @transform_5(%arg0: i32, %arg1: i32) -> (i32, i32) {
    %c0_i32 = arith.constant 0 : i32
    %c0_i32_0 = arith.constant 0 : i32
    return %c0_i32, %arg1 : i32, i32
  }
  func.func @transform_6(%arg0: i32, %arg1: i32) -> (i32, i32) {
    %c0_i32 = arith.constant 0 : i32
    %c0_i32_0 = arith.constant 0 : i32
    return %c0_i32, %arg1 : i32, i32
  }
  func.func @transform_7(%arg0: i32, %arg1: i32) -> (i32, i32) {
    %c0_i32 = arith.constant 0 : i32
    %c0_i32_0 = arith.constant 0 : i32
    return %c0_i32, %arg1 : i32, i32
  }
  func.func @transform_8(%arg0: i32, %arg1: i32) -> (i32, i32) {
    %c0_i32 = arith.constant 0 : i32
    %c0_i32_0 = arith.constant 0 : i32
    return %c0_i32, %arg1 : i32, i32
  }
  func.func @transform_9(%arg0: i32, %arg1: i32) -> (i32, i32) {
    %c0_i32 = arith.constant 0 : i32
    %c0_i32_0 = arith.constant 0 : i32
    return %c0_i32, %arg1 : i32, i32
  }
  func.func @transform_10(%arg0: i32, %arg1: i32) -> (i32, i32) {
    %c0_i32 = arith.constant 0 : i32
    return %arg0, %arg1 : i32, i32
  }
}

module attributes {stable_mosaic.version = 11 : i64} {
  func.func @_upsample_kernel(%arg0: i32, %arg1: i32, %arg2: memref<16xi32, #tpu.memory_space<smem>>, %arg3: memref<16xi32, #tpu.memory_space<smem>>, %arg4: memref<1x1x4x256xbf16, #tpu.memory_space<vmem>>, %arg5: memref<1x1x4x256xbf16, #tpu.memory_space<vmem>>, %arg6: memref<16x4xf32, #tpu.memory_space<vmem>>, %arg7: memref<1x1x16x256xbf16, #tpu.memory_space<vmem>>) attributes {dimension_semantics = [#tpu.dimension_semantics<parallel>, #tpu.dimension_semantics<parallel>], iteration_bounds = array<i64: 2, 16>, scalar_prefetch = 2 : i64, scratch_operands = 0 : i64, tpu.core_type = #tpu.core_type<tc>, window_params = [{transform_indices = @transform_0, window_bounds = array<i64: 1, 1, 4, 256>}, {transform_indices = @transform_1, window_bounds = array<i64: 1, 1, 4, 256>}, {pipeline_mode = #tpu.pipeline_mode<synchronous>, transform_indices = @transform_2, window_bounds = array<i64: 16, 4>}, {transform_indices = @transform_3, window_bounds = array<i64: 1, 1, 16, 256>}]} {
    %0 = arith.index_cast %arg1 : i32 to index
    %1 = memref.load %arg2[%0] : memref<16xi32, #tpu.memory_space<smem>>
    %c3_i32 = arith.constant 3 : i32
    %2 = arith.muli %arg1, %c3_i32 : i32
    %c15_i32 = arith.constant 15 : i32
    %3 = arith.muli %1, %c15_i32 : i32
    %4 = arith.subi %2, %3 : i32
    %5 = arith.sitofp %4 : i32 to f32
    %cst = arith.constant 1.500000e+01 : f32
    %6 = arith.divf %5, %cst : f32
    %c0 = arith.constant 0 : index
    %c0_0 = arith.constant 0 : index
    %c0_1 = arith.constant 0 : index
    %c0_2 = arith.constant 0 : index
    %7 = vector.load %arg4[%c0, %c0_0, %c0_1, %c0_2] : memref<1x1x4x256xbf16, #tpu.memory_space<vmem>>, vector<1x1x4x256xbf16>
    %8 = vector.shape_cast %7 : vector<1x1x4x256xbf16> to vector<4x256xbf16>
    %9 = arith.extf %8 : vector<4x256xbf16> to vector<4x256xf32>
    %c0_3 = arith.constant 0 : index
    %c0_4 = arith.constant 0 : index
    %c0_5 = arith.constant 0 : index
    %c0_6 = arith.constant 0 : index
    %10 = vector.load %arg5[%c0_3, %c0_4, %c0_5, %c0_6] : memref<1x1x4x256xbf16, #tpu.memory_space<vmem>>, vector<1x1x4x256xbf16>
    %11 = vector.shape_cast %10 : vector<1x1x4x256xbf16> to vector<4x256xbf16>
    %12 = arith.extf %11 : vector<4x256xbf16> to vector<4x256xf32>
    %13 = arith.subf %12, %9 : vector<4x256xf32>
    %14 = vector.broadcast %6 : f32 to vector<4x256xf32>
    %15 = arith.mulf %14, %13 : vector<4x256xf32>
    %16 = arith.addf %9, %15 : vector<4x256xf32>
    %c0_7 = arith.constant 0 : index
    %c0_8 = arith.constant 0 : index
    %17 = vector.load %arg6[%c0_7, %c0_8] : memref<16x4xf32, #tpu.memory_space<vmem>>, vector<16x4xf32>
    %cst_9 = arith.constant dense<0.000000e+00> : vector<16x256xf32>
    %18 = tpu.matmul %17, %16, %cst_9 {dimension_numbers = #tpu.dot_dimension_numbers<[1], [0], [0], [1], [0, 0, 1, 1], [], []>} : vector<16x4xf32>, vector<4x256xf32>, vector<16x256xf32> -> vector<16x256xf32>
    %19 = arith.truncf %18 : vector<16x256xf32> to vector<16x256xbf16>
    %c0_10 = arith.constant 0 : index
    %c0_11 = arith.constant 0 : index
    %c0_12 = arith.constant 0 : index
    %c0_13 = arith.constant 0 : index
    %20 = vector.load %arg7[%c0_10, %c0_11, %c0_12, %c0_13] : memref<1x1x16x256xbf16, #tpu.memory_space<vmem>>, vector<1x1x16x256xbf16>
    %21 = vector.shape_cast %20 : vector<1x1x16x256xbf16> to vector<16x256xbf16>
    %22 = vector.shape_cast %19 : vector<16x256xbf16> to vector<1x1x16x256xbf16>
    tpu.vector_store %arg7[%c0_10, %c0_11, %c0_12, %c0_13], %22 {strides = array<i32>} : memref<1x1x16x256xbf16, #tpu.memory_space<vmem>>, vector<1x1x16x256xbf16>,
    return
  }
  func.func @transform_0(%arg0: i32, %arg1: i32, %arg2: memref<16xi32, #tpu.memory_space<smem>>, %arg3: memref<16xi32, #tpu.memory_space<smem>>) -> (i32, i32, i32, i32) {
    %0 = arith.index_cast %arg1 : i32 to index
    %1 = memref.load %arg2[%0] : memref<16xi32, #tpu.memory_space<smem>>
    %c0_i32 = arith.constant 0 : i32
    %c0_i32_0 = arith.constant 0 : i32
    %c0_i32_1 = arith.constant 0 : i32
    return %arg0, %1, %c0_i32, %c0_i32_0 : i32, i32, i32, i32
  }
  func.func @transform_1(%arg0: i32, %arg1: i32, %arg2: memref<16xi32, #tpu.memory_space<smem>>, %arg3: memref<16xi32, #tpu.memory_space<smem>>) -> (i32, i32, i32, i32) {
    %0 = arith.index_cast %arg1 : i32 to index
    %1 = memref.load %arg3[%0] : memref<16xi32, #tpu.memory_space<smem>>
    %c0_i32 = arith.constant 0 : i32
    %c0_i32_0 = arith.constant 0 : i32
    %c0_i32_1 = arith.constant 0 : i32
    return %arg0, %1, %c0_i32, %c0_i32_0 : i32, i32, i32, i32
  }
  func.func @transform_2(%arg0: i32, %arg1: i32, %arg2: memref<16xi32, #tpu.memory_space<smem>>, %arg3: memref<16xi32, #tpu.memory_space<smem>>) -> (i32, i32) {
    %c0_i32 = arith.constant 0 : i32
    %c0_i32_0 = arith.constant 0 : i32
    %c0_i32_1 = arith.constant 0 : i32
    return %c0_i32, %c0_i32_0 : i32, i32
  }
  func.func @transform_3(%arg0: i32, %arg1: i32, %arg2: memref<16xi32, #tpu.memory_space<smem>>, %arg3: memref<16xi32, #tpu.memory_space<smem>>) -> (i32, i32, i32, i32) {
    %c0_i32 = arith.constant 0 : i32
    %c0_i32_0 = arith.constant 0 : i32
    %c0_i32_1 = arith.constant 0 : i32
    return %arg0, %arg1, %c0_i32, %c0_i32_0 : i32, i32, i32, i32
  }
}

module attributes {stable_mosaic.version = 11 : i64} {
  func.func @_mm_direct_kernel(%arg0: i32, %arg1: i32, %arg2: memref<256x64xbf16, #tpu.memory_space<vmem>>, %arg3: memref<64x128xbf16, #tpu.memory_space<vmem>>, %arg4: memref<256x128xbf16, #tpu.memory_space<vmem>>) attributes {dimension_semantics = [#tpu.dimension_semantics<parallel>, #tpu.dimension_semantics<parallel>], iteration_bounds = array<i64: 2, 1>, scalar_prefetch = 0 : i64, scratch_operands = 0 : i64, tpu.core_type = #tpu.core_type<tc>, window_params = [{transform_indices = @transform_0, window_bounds = array<i64: 256, 64>}, {transform_indices = @transform_1, window_bounds = array<i64: 64, 128>}, {transform_indices = @transform_2, window_bounds = array<i64: 256, 128>}]} {
    %c0 = arith.constant 0 : index
    %c0_0 = arith.constant 0 : index
    %0 = vector.load %arg2[%c0, %c0_0] : memref<256x64xbf16, #tpu.memory_space<vmem>>, vector<256x64xbf16>
    %c0_1 = arith.constant 0 : index
    %c0_2 = arith.constant 0 : index
    %1 = vector.load %arg3[%c0_1, %c0_2] : memref<64x128xbf16, #tpu.memory_space<vmem>>, vector<64x128xbf16>
    %cst = arith.constant dense<0.000000e+00> : vector<256x128xf32>
    %2 = tpu.matmul %0, %1, %cst {dimension_numbers = #tpu.dot_dimension_numbers<[1], [0], [0], [1], [0, 0, 1, 1], [], []>} : vector<256x64xbf16>, vector<64x128xbf16>, vector<256x128xf32> -> vector<256x128xf32>
    %3 = arith.truncf %2 : vector<256x128xf32> to vector<256x128xbf16>
    %c0_3 = arith.constant 0 : index
    %c0_4 = arith.constant 0 : index
    %4 = vector.load %arg4[%c0_3, %c0_4] : memref<256x128xbf16, #tpu.memory_space<vmem>>, vector<256x128xbf16>
    tpu.vector_store %arg4[%c0_3, %c0_4], %3 {strides = array<i32>} : memref<256x128xbf16, #tpu.memory_space<vmem>>, vector<256x128xbf16>,
    return
  }
  func.func @transform_0(%arg0: i32, %arg1: i32) -> (i32, i32) {
    %c0_i32 = arith.constant 0 : i32
    %c0_i32_0 = arith.constant 0 : i32
    return %arg0, %c0_i32 : i32, i32
  }
  func.func @transform_1(%arg0: i32, %arg1: i32) -> (i32, i32) {
    %c0_i32 = arith.constant 0 : i32
    %c0_i32_0 = arith.constant 0 : i32
    return %c0_i32, %arg1 : i32, i32
  }
  func.func @transform_2(%arg0: i32, %arg1: i32) -> (i32, i32) {
    %c0_i32 = arith.constant 0 : i32
    return %arg0, %arg1 : i32, i32
  }
}

module attributes {stable_mosaic.version = 11 : i64} {
  func.func @_conv_s1_kernel(%arg0: i32, %arg1: i32, %arg2: i32, %arg3: i32, %arg4: memref<1x1x18x384xbf16, #tpu.memory_space<vmem>>, %arg5: memref<1x1152x256xbf16, #tpu.memory_space<vmem>>, %arg6: memref<1x1x16x256xbf16, #tpu.memory_space<vmem>>, %arg7: memref<16x256xf32, #tpu.memory_space<vmem>>) attributes {dimension_semantics = [#tpu.dimension_semantics<parallel>, #tpu.dimension_semantics<parallel>, #tpu.dimension_semantics<parallel>, #tpu.dimension_semantics<arbitrary>], iteration_bounds = array<i64: 2, 16, 1, 3>, scalar_prefetch = 0 : i64, scratch_operands = 1 : i64, tpu.core_type = #tpu.core_type<tc>, window_params = [{transform_indices = @transform_0, window_bounds = array<i64: 1, 1, 18, 384>}, {transform_indices = @transform_1, window_bounds = array<i64: 1, 1152, 256>}, {transform_indices = @transform_2, window_bounds = array<i64: 1, 1, 16, 256>}]} {
    %c0_i32 = arith.constant 0 : i32
    %0 = arith.cmpi eq, %arg3, %c0_i32 : i32
    %1 = arith.extui %0 : i1 to i32
    %c0_i32_0 = arith.constant 0 : i32
    %2 = arith.cmpi ne, %1, %c0_i32_0 : i32
    scf.if %2 {
      %cst_14 = arith.constant 0.000000e+00 : f32
      %24 = vector.broadcast %cst_14 : f32 to vector<16x256xf32>
      %c0_15 = arith.constant 0 : index
      %c0_16 = arith.constant 0 : index
      %25 = vector.load %arg7[%c0_15, %c0_16] : memref<16x256xf32, #tpu.memory_space<vmem>>, vector<16x256xf32>
      tpu.vector_store %arg7[%c0_15, %c0_16], %24 {strides = array<i32>} : memref<16x256xf32, #tpu.memory_space<vmem>>, vector<16x256xf32>,
    } else {
    }
    %c0 = arith.constant 0 : index
    %c0_1 = arith.constant 0 : index
    %c0_2 = arith.constant 0 : index
    %c0_3 = arith.constant 0 : index
    %3 = vector.load %arg4[%c0, %c0_1, %c0_2, %c0_3] : memref<1x1x18x384xbf16, #tpu.memory_space<vmem>>, vector<1x1x18x384xbf16>
    %4 = vector.shape_cast %3 : vector<1x1x18x384xbf16> to vector<18x384xbf16>
    %c0_4 = arith.constant 0 : index
    %c0_5 = arith.constant 0 : index
    %c0_6 = arith.constant 0 : index
    %5 = vector.load %arg5[%c0_4, %c0_5, %c0_6] : memref<1x1152x256xbf16, #tpu.memory_space<vmem>>, vector<1x1152x256xbf16>
    %6 = vector.shape_cast %5 : vector<1x1152x256xbf16> to vector<1152x256xbf16>
    %c0_7 = arith.constant 0 : index
    %c0_8 = arith.constant 0 : index
    %7 = vector.load %arg7[%c0_7, %c0_8] : memref<16x256xf32, #tpu.memory_space<vmem>>, vector<16x256xf32>
    %8 = vector.extract_strided_slice %4 {offsets = [0, 0], sizes = [16, 384], strides = [1, 1]} : vector<18x384xbf16> to vector<16x384xbf16>
    %9 = vector.extract_strided_slice %6 {offsets = [0, 0], sizes = [384, 256], strides = [1, 1]} : vector<1152x256xbf16> to vector<384x256xbf16>
    %cst = arith.constant dense<0.000000e+00> : vector<16x256xf32>
    %10 = tpu.matmul %8, %9, %cst {dimension_numbers = #tpu.dot_dimension_numbers<[1], [0], [0], [1], [0, 0, 1, 1], [], []>} : vector<16x384xbf16>, vector<384x256xbf16>, vector<16x256xf32> -> vector<16x256xf32>
    %11 = arith.addf %7, %10 : vector<16x256xf32>
    %12 = vector.extract_strided_slice %4 {offsets = [1, 0], sizes = [16, 384], strides = [1, 1]} : vector<18x384xbf16> to vector<16x384xbf16>
    %13 = vector.extract_strided_slice %6 {offsets = [384, 0], sizes = [384, 256], strides = [1, 1]} : vector<1152x256xbf16> to vector<384x256xbf16>
    %cst_9 = arith.constant dense<0.000000e+00> : vector<16x256xf32>
    %14 = tpu.matmul %12, %13, %cst_9 {dimension_numbers = #tpu.dot_dimension_numbers<[1], [0], [0], [1], [0, 0, 1, 1], [], []>} : vector<16x384xbf16>, vector<384x256xbf16>, vector<16x256xf32> -> vector<16x256xf32>
    %15 = arith.addf %11, %14 : vector<16x256xf32>
    %16 = vector.extract_strided_slice %4 {offsets = [2, 0], sizes = [16, 384], strides = [1, 1]} : vector<18x384xbf16> to vector<16x384xbf16>
    %17 = vector.extract_strided_slice %6 {offsets = [768, 0], sizes = [384, 256], strides = [1, 1]} : vector<1152x256xbf16> to vector<384x256xbf16>
    %cst_10 = arith.constant dense<0.000000e+00> : vector<16x256xf32>
    %18 = tpu.matmul %16, %17, %cst_10 {dimension_numbers = #tpu.dot_dimension_numbers<[1], [0], [0], [1], [0, 0, 1, 1], [], []>} : vector<16x384xbf16>, vector<384x256xbf16>, vector<16x256xf32> -> vector<16x256xf32>
    %19 = arith.addf %15, %18 : vector<16x256xf32>
    %c0_11 = arith.constant 0 : index
    %c0_12 = arith.constant 0 : index
    %20 = vector.load %arg7[%c0_11, %c0_12] : memref<16x256xf32, #tpu.memory_space<vmem>>, vector<16x256xf32>
    tpu.vector_store %arg7[%c0_11, %c0_12], %19 {strides = array<i32>} : memref<16x256xf32, #tpu.memory_space<vmem>>, vector<16x256xf32>,
    %c2_i32 = arith.constant 2 : i32
    %21 = arith.cmpi eq, %arg3, %c2_i32 : i32
    %22 = arith.extui %21 : i1 to i32
    %c0_i32_13 = arith.constant 0 : i32
    %23 = arith.cmpi ne, %22, %c0_i32_13 : i32
    scf.if %23 {
      %c0_14 = arith.constant 0 : index
      %c0_15 = arith.constant 0 : index
      %24 = vector.load %arg7[%c0_14, %c0_15] : memref<16x256xf32, #tpu.memory_space<vmem>>, vector<16x256xf32>
      %cst_16 = arith.constant 0.000000e+00 : f32
      %25 = vector.broadcast %cst_16 : f32 to vector<16x256xf32>
      %26 = arith.maximumf %24, %25 : vector<16x256xf32>
      %27 = arith.truncf %26 : vector<16x256xf32> to vector<16x256xbf16>
      %c0_17 = arith.constant 0 : index
      %c0_18 = arith.constant 0 : index
      %c0_19 = arith.constant 0 : index
      %c0_20 = arith.constant 0 : index
      %28 = vector.load %arg6[%c0_17, %c0_18, %c0_19, %c0_20] : memref<1x1x16x256xbf16, #tpu.memory_space<vmem>>, vector<1x1x16x256xbf16>
      %29 = vector.shape_cast %28 : vector<1x1x16x256xbf16> to vector<16x256xbf16>
      %30 = vector.shape_cast %27 : vector<16x256xbf16> to vector<1x1x16x256xbf16>
      tpu.vector_store %arg6[%c0_17, %c0_18, %c0_19, %c0_20], %30 {strides = array<i32>} : memref<1x1x16x256xbf16, #tpu.memory_space<vmem>>, vector<1x1x16x256xbf16>,
    } else {
    }
    return
  }
  func.func @transform_0(%arg0: i32, %arg1: i32, %arg2: i32, %arg3: i32) -> (i32, i32, i32, i32) {
    %c1_i32 = arith.constant 1 : i32
    %0 = arith.muli %arg3, %c1_i32 : i32
    %1 = arith.addi %arg1, %0 : i32
    %c0_i32 = arith.constant 0 : i32
    %c0_i32_0 = arith.constant 0 : i32
    %c0_i32_1 = arith.constant 0 : i32
    return %arg0, %1, %c0_i32, %c0_i32_0 : i32, i32, i32, i32
  }
  func.func @transform_1(%arg0: i32, %arg1: i32, %arg2: i32, %arg3: i32) -> (i32, i32, i32) {
    %c0_i32 = arith.constant 0 : i32
    %c0_i32_0 = arith.constant 0 : i32
    return %arg3, %c0_i32, %arg2 : i32, i32, i32
  }
  func.func @transform_2(%arg0: i32, %arg1: i32, %arg2: i32, %arg3: i32) -> (i32, i32, i32, i32) {
    %c0_i32 = arith.constant 0 : i32
    %c0_i32_0 = arith.constant 0 : i32
    return %arg0, %arg1, %c0_i32, %arg2 : i32, i32, i32, i32
  }
}

module attributes {stable_mosaic.version = 11 : i64} {
  func.func @_conv_s1_kernel(%arg0: i32, %arg1: i32, %arg2: i32, %arg3: i32, %arg4: memref<1x1x18x256xbf16, #tpu.memory_space<vmem>>, %arg5: memref<1x768x256xbf16, #tpu.memory_space<vmem>>, %arg6: memref<1x1x16x256xbf16, #tpu.memory_space<vmem>>, %arg7: memref<16x256xf32, #tpu.memory_space<vmem>>) attributes {dimension_semantics = [#tpu.dimension_semantics<parallel>, #tpu.dimension_semantics<parallel>, #tpu.dimension_semantics<parallel>, #tpu.dimension_semantics<arbitrary>], iteration_bounds = array<i64: 2, 16, 1, 3>, scalar_prefetch = 0 : i64, scratch_operands = 1 : i64, tpu.core_type = #tpu.core_type<tc>, window_params = [{transform_indices = @transform_0, window_bounds = array<i64: 1, 1, 18, 256>}, {transform_indices = @transform_1, window_bounds = array<i64: 1, 768, 256>}, {transform_indices = @transform_2, window_bounds = array<i64: 1, 1, 16, 256>}]} {
    %c0_i32 = arith.constant 0 : i32
    %0 = arith.cmpi eq, %arg3, %c0_i32 : i32
    %1 = arith.extui %0 : i1 to i32
    %c0_i32_0 = arith.constant 0 : i32
    %2 = arith.cmpi ne, %1, %c0_i32_0 : i32
    scf.if %2 {
      %cst_14 = arith.constant 0.000000e+00 : f32
      %24 = vector.broadcast %cst_14 : f32 to vector<16x256xf32>
      %c0_15 = arith.constant 0 : index
      %c0_16 = arith.constant 0 : index
      %25 = vector.load %arg7[%c0_15, %c0_16] : memref<16x256xf32, #tpu.memory_space<vmem>>, vector<16x256xf32>
      tpu.vector_store %arg7[%c0_15, %c0_16], %24 {strides = array<i32>} : memref<16x256xf32, #tpu.memory_space<vmem>>, vector<16x256xf32>,
    } else {
    }
    %c0 = arith.constant 0 : index
    %c0_1 = arith.constant 0 : index
    %c0_2 = arith.constant 0 : index
    %c0_3 = arith.constant 0 : index
    %3 = vector.load %arg4[%c0, %c0_1, %c0_2, %c0_3] : memref<1x1x18x256xbf16, #tpu.memory_space<vmem>>, vector<1x1x18x256xbf16>
    %4 = vector.shape_cast %3 : vector<1x1x18x256xbf16> to vector<18x256xbf16>
    %c0_4 = arith.constant 0 : index
    %c0_5 = arith.constant 0 : index
    %c0_6 = arith.constant 0 : index
    %5 = vector.load %arg5[%c0_4, %c0_5, %c0_6] : memref<1x768x256xbf16, #tpu.memory_space<vmem>>, vector<1x768x256xbf16>
    %6 = vector.shape_cast %5 : vector<1x768x256xbf16> to vector<768x256xbf16>
    %c0_7 = arith.constant 0 : index
    %c0_8 = arith.constant 0 : index
    %7 = vector.load %arg7[%c0_7, %c0_8] : memref<16x256xf32, #tpu.memory_space<vmem>>, vector<16x256xf32>
    %8 = vector.extract_strided_slice %4 {offsets = [0, 0], sizes = [16, 256], strides = [1, 1]} : vector<18x256xbf16> to vector<16x256xbf16>
    %9 = vector.extract_strided_slice %6 {offsets = [0, 0], sizes = [256, 256], strides = [1, 1]} : vector<768x256xbf16> to vector<256x256xbf16>
    %cst = arith.constant dense<0.000000e+00> : vector<16x256xf32>
    %10 = tpu.matmul %8, %9, %cst {dimension_numbers = #tpu.dot_dimension_numbers<[1], [0], [0], [1], [0, 0, 1, 1], [], []>} : vector<16x256xbf16>, vector<256x256xbf16>, vector<16x256xf32> -> vector<16x256xf32>
    %11 = arith.addf %7, %10 : vector<16x256xf32>
    %12 = vector.extract_strided_slice %4 {offsets = [1, 0], sizes = [16, 256], strides = [1, 1]} : vector<18x256xbf16> to vector<16x256xbf16>
    %13 = vector.extract_strided_slice %6 {offsets = [256, 0], sizes = [256, 256], strides = [1, 1]} : vector<768x256xbf16> to vector<256x256xbf16>
    %cst_9 = arith.constant dense<0.000000e+00> : vector<16x256xf32>
    %14 = tpu.matmul %12, %13, %cst_9 {dimension_numbers = #tpu.dot_dimension_numbers<[1], [0], [0], [1], [0, 0, 1, 1], [], []>} : vector<16x256xbf16>, vector<256x256xbf16>, vector<16x256xf32> -> vector<16x256xf32>
    %15 = arith.addf %11, %14 : vector<16x256xf32>
    %16 = vector.extract_strided_slice %4 {offsets = [2, 0], sizes = [16, 256], strides = [1, 1]} : vector<18x256xbf16> to vector<16x256xbf16>
    %17 = vector.extract_strided_slice %6 {offsets = [512, 0], sizes = [256, 256], strides = [1, 1]} : vector<768x256xbf16> to vector<256x256xbf16>
    %cst_10 = arith.constant dense<0.000000e+00> : vector<16x256xf32>
    %18 = tpu.matmul %16, %17, %cst_10 {dimension_numbers = #tpu.dot_dimension_numbers<[1], [0], [0], [1], [0, 0, 1, 1], [], []>} : vector<16x256xbf16>, vector<256x256xbf16>, vector<16x256xf32> -> vector<16x256xf32>
    %19 = arith.addf %15, %18 : vector<16x256xf32>
    %c0_11 = arith.constant 0 : index
    %c0_12 = arith.constant 0 : index
    %20 = vector.load %arg7[%c0_11, %c0_12] : memref<16x256xf32, #tpu.memory_space<vmem>>, vector<16x256xf32>
    tpu.vector_store %arg7[%c0_11, %c0_12], %19 {strides = array<i32>} : memref<16x256xf32, #tpu.memory_space<vmem>>, vector<16x256xf32>,
    %c2_i32 = arith.constant 2 : i32
    %21 = arith.cmpi eq, %arg3, %c2_i32 : i32
    %22 = arith.extui %21 : i1 to i32
    %c0_i32_13 = arith.constant 0 : i32
    %23 = arith.cmpi ne, %22, %c0_i32_13 : i32
    scf.if %23 {
      %c0_14 = arith.constant 0 : index
      %c0_15 = arith.constant 0 : index
      %24 = vector.load %arg7[%c0_14, %c0_15] : memref<16x256xf32, #tpu.memory_space<vmem>>, vector<16x256xf32>
      %cst_16 = arith.constant 0.000000e+00 : f32
      %25 = vector.broadcast %cst_16 : f32 to vector<16x256xf32>
      %26 = arith.maximumf %24, %25 : vector<16x256xf32>
      %27 = arith.truncf %26 : vector<16x256xf32> to vector<16x256xbf16>
      %c0_17 = arith.constant 0 : index
      %c0_18 = arith.constant 0 : index
      %c0_19 = arith.constant 0 : index
      %c0_20 = arith.constant 0 : index
      %28 = vector.load %arg6[%c0_17, %c0_18, %c0_19, %c0_20] : memref<1x1x16x256xbf16, #tpu.memory_space<vmem>>, vector<1x1x16x256xbf16>
      %29 = vector.shape_cast %28 : vector<1x1x16x256xbf16> to vector<16x256xbf16>
      %30 = vector.shape_cast %27 : vector<16x256xbf16> to vector<1x1x16x256xbf16>
      tpu.vector_store %arg6[%c0_17, %c0_18, %c0_19, %c0_20], %30 {strides = array<i32>} : memref<1x1x16x256xbf16, #tpu.memory_space<vmem>>, vector<1x1x16x256xbf16>,
    } else {
    }
    return
  }
  func.func @transform_0(%arg0: i32, %arg1: i32, %arg2: i32, %arg3: i32) -> (i32, i32, i32, i32) {
    %c1_i32 = arith.constant 1 : i32
    %0 = arith.muli %arg3, %c1_i32 : i32
    %1 = arith.addi %arg1, %0 : i32
    %c0_i32 = arith.constant 0 : i32
    %c0_i32_0 = arith.constant 0 : i32
    %c0_i32_1 = arith.constant 0 : i32
    return %arg0, %1, %c0_i32, %c0_i32_0 : i32, i32, i32, i32
  }
  func.func @transform_1(%arg0: i32, %arg1: i32, %arg2: i32, %arg3: i32) -> (i32, i32, i32) {
    %c0_i32 = arith.constant 0 : i32
    %c0_i32_0 = arith.constant 0 : i32
    return %arg3, %c0_i32, %arg2 : i32, i32, i32
  }
  func.func @transform_2(%arg0: i32, %arg1: i32, %arg2: i32, %arg3: i32) -> (i32, i32, i32, i32) {
    %c0_i32 = arith.constant 0 : i32
    %c0_i32_0 = arith.constant 0 : i32
    return %arg0, %arg1, %c0_i32, %arg2 : i32, i32, i32, i32
  }
}

module attributes {stable_mosaic.version = 11 : i64} {
  func.func @_upsample_kernel(%arg0: i32, %arg1: i32, %arg2: memref<32xi32, #tpu.memory_space<smem>>, %arg3: memref<32xi32, #tpu.memory_space<smem>>, %arg4: memref<1x1x16x5xbf16, #tpu.memory_space<vmem>>, %arg5: memref<1x1x16x5xbf16, #tpu.memory_space<vmem>>, %arg6: memref<32x16xf32, #tpu.memory_space<vmem>>, %arg7: memref<1x1x32x5xbf16, #tpu.memory_space<vmem>>) attributes {dimension_semantics = [#tpu.dimension_semantics<parallel>, #tpu.dimension_semantics<parallel>], iteration_bounds = array<i64: 2, 32>, scalar_prefetch = 2 : i64, scratch_operands = 0 : i64, tpu.core_type = #tpu.core_type<tc>, window_params = [{transform_indices = @transform_0, window_bounds = array<i64: 1, 1, 16, 5>}, {transform_indices = @transform_1, window_bounds = array<i64: 1, 1, 16, 5>}, {pipeline_mode = #tpu.pipeline_mode<synchronous>, transform_indices = @transform_2, window_bounds = array<i64: 32, 16>}, {transform_indices = @transform_3, window_bounds = array<i64: 1, 1, 32, 5>}]} {
    %0 = arith.index_cast %arg1 : i32 to index
    %1 = memref.load %arg2[%0] : memref<32xi32, #tpu.memory_space<smem>>
    %c15_i32 = arith.constant 15 : i32
    %2 = arith.muli %arg1, %c15_i32 : i32
    %c31_i32 = arith.constant 31 : i32
    %3 = arith.muli %1, %c31_i32 : i32
    %4 = arith.subi %2, %3 : i32
    %5 = arith.sitofp %4 : i32 to f32
    %cst = arith.constant 3.100000e+01 : f32
    %6 = arith.divf %5, %cst : f32
    %c0 = arith.constant 0 : index
    %c0_0 = arith.constant 0 : index
    %c0_1 = arith.constant 0 : index
    %c0_2 = arith.constant 0 : index
    %7 = vector.load %arg4[%c0, %c0_0, %c0_1, %c0_2] : memref<1x1x16x5xbf16, #tpu.memory_space<vmem>>, vector<1x1x16x5xbf16>
    %8 = vector.shape_cast %7 : vector<1x1x16x5xbf16> to vector<16x5xbf16>
    %9 = arith.extf %8 : vector<16x5xbf16> to vector<16x5xf32>
    %c0_3 = arith.constant 0 : index
    %c0_4 = arith.constant 0 : index
    %c0_5 = arith.constant 0 : index
    %c0_6 = arith.constant 0 : index
    %10 = vector.load %arg5[%c0_3, %c0_4, %c0_5, %c0_6] : memref<1x1x16x5xbf16, #tpu.memory_space<vmem>>, vector<1x1x16x5xbf16>
    %11 = vector.shape_cast %10 : vector<1x1x16x5xbf16> to vector<16x5xbf16>
    %12 = arith.extf %11 : vector<16x5xbf16> to vector<16x5xf32>
    %13 = arith.subf %12, %9 : vector<16x5xf32>
    %14 = vector.broadcast %6 : f32 to vector<16x5xf32>
    %15 = arith.mulf %14, %13 : vector<16x5xf32>
    %16 = arith.addf %9, %15 : vector<16x5xf32>
    %c0_7 = arith.constant 0 : index
    %c0_8 = arith.constant 0 : index
    %17 = vector.load %arg6[%c0_7, %c0_8] : memref<32x16xf32, #tpu.memory_space<vmem>>, vector<32x16xf32>
    %cst_9 = arith.constant dense<0.000000e+00> : vector<32x5xf32>
    %18 = tpu.matmul %17, %16, %cst_9 {dimension_numbers = #tpu.dot_dimension_numbers<[1], [0], [0], [1], [0, 0, 1, 1], [], []>} : vector<32x16xf32>, vector<16x5xf32>, vector<32x5xf32> -> vector<32x5xf32>
    %19 = arith.truncf %18 : vector<32x5xf32> to vector<32x5xbf16>
    %c0_10 = arith.constant 0 : index
    %c0_11 = arith.constant 0 : index
    %c0_12 = arith.constant 0 : index
    %c0_13 = arith.constant 0 : index
    %20 = vector.load %arg7[%c0_10, %c0_11, %c0_12, %c0_13] : memref<1x1x32x5xbf16, #tpu.memory_space<vmem>>, vector<1x1x32x5xbf16>
    %21 = vector.shape_cast %20 : vector<1x1x32x5xbf16> to vector<32x5xbf16>
    %22 = vector.shape_cast %19 : vector<32x5xbf16> to vector<1x1x32x5xbf16>
    tpu.vector_store %arg7[%c0_10, %c0_11, %c0_12, %c0_13], %22 {strides = array<i32>} : memref<1x1x32x5xbf16, #tpu.memory_space<vmem>>, vector<1x1x32x5xbf16>,
    return
  }
  func.func @transform_0(%arg0: i32, %arg1: i32, %arg2: memref<32xi32, #tpu.memory_space<smem>>, %arg3: memref<32xi32, #tpu.memory_space<smem>>) -> (i32, i32, i32, i32) {
    %0 = arith.index_cast %arg1 : i32 to index
    %1 = memref.load %arg2[%0] : memref<32xi32, #tpu.memory_space<smem>>
    %c0_i32 = arith.constant 0 : i32
    %c0_i32_0 = arith.constant 0 : i32
    %c0_i32_1 = arith.constant 0 : i32
    return %arg0, %1, %c0_i32, %c0_i32_0 : i32, i32, i32, i32
  }
  func.func @transform_1(%arg0: i32, %arg1: i32, %arg2: memref<32xi32, #tpu.memory_space<smem>>, %arg3: memref<32xi32, #tpu.memory_space<smem>>) -> (i32, i32, i32, i32) {
    %0 = arith.index_cast %arg1 : i32 to index
    %1 = memref.load %arg3[%0] : memref<32xi32, #tpu.memory_space<smem>>
    %c0_i32 = arith.constant 0 : i32
    %c0_i32_0 = arith.constant 0 : i32
    %c0_i32_1 = arith.constant 0 : i32
    return %arg0, %1, %c0_i32, %c0_i32_0 : i32, i32, i32, i32
  }
  func.func @transform_2(%arg0: i32, %arg1: i32, %arg2: memref<32xi32, #tpu.memory_space<smem>>, %arg3: memref<32xi32, #tpu.memory_space<smem>>) -> (i32, i32) {
    %c0_i32 = arith.constant 0 : i32
    %c0_i32_0 = arith.constant 0 : i32
    %c0_i32_1 = arith.constant 0 : i32
    return %c0_i32, %c0_i32_0 : i32, i32
  }
  func.func @transform_3(%arg0: i32, %arg1: i32, %arg2: memref<32xi32, #tpu.memory_space<smem>>, %arg3: memref<32xi32, #tpu.memory_space<smem>>) -> (i32, i32, i32, i32) {
    %c0_i32 = arith.constant 0 : i32
    %c0_i32_0 = arith.constant 0 : i32
    %c0_i32_1 = arith.constant 0 : i32
    return %arg0, %arg1, %c0_i32, %c0_i32_0 : i32, i32, i32, i32
  }
}

module attributes {stable_mosaic.version = 11 : i64} {
  func.func @_mm_direct_kernel(%arg0: i32, %arg1: i32, %arg2: memref<256x256xbf16, #tpu.memory_space<vmem>>, %arg3: memref<256x128xbf16, #tpu.memory_space<vmem>>, %arg4: memref<256x128xbf16, #tpu.memory_space<vmem>>) attributes {dimension_semantics = [#tpu.dimension_semantics<parallel>, #tpu.dimension_semantics<parallel>], iteration_bounds = array<i64: 2, 1>, scalar_prefetch = 0 : i64, scratch_operands = 0 : i64, tpu.core_type = #tpu.core_type<tc>, window_params = [{transform_indices = @transform_0, window_bounds = array<i64: 256, 256>}, {transform_indices = @transform_1, window_bounds = array<i64: 256, 128>}, {transform_indices = @transform_2, window_bounds = array<i64: 256, 128>}]} {
    %c0 = arith.constant 0 : index
    %c0_0 = arith.constant 0 : index
    %0 = vector.load %arg2[%c0, %c0_0] : memref<256x256xbf16, #tpu.memory_space<vmem>>, vector<256x256xbf16>
    %c0_1 = arith.constant 0 : index
    %c0_2 = arith.constant 0 : index
    %1 = vector.load %arg3[%c0_1, %c0_2] : memref<256x128xbf16, #tpu.memory_space<vmem>>, vector<256x128xbf16>
    %cst = arith.constant dense<0.000000e+00> : vector<256x128xf32>
    %2 = tpu.matmul %0, %1, %cst {dimension_numbers = #tpu.dot_dimension_numbers<[1], [0], [0], [1], [0, 0, 1, 1], [], []>} : vector<256x256xbf16>, vector<256x128xbf16>, vector<256x128xf32> -> vector<256x128xf32>
    %3 = arith.truncf %2 : vector<256x128xf32> to vector<256x128xbf16>
    %c0_3 = arith.constant 0 : index
    %c0_4 = arith.constant 0 : index
    %4 = vector.load %arg4[%c0_3, %c0_4] : memref<256x128xbf16, #tpu.memory_space<vmem>>, vector<256x128xbf16>
    tpu.vector_store %arg4[%c0_3, %c0_4], %3 {strides = array<i32>} : memref<256x128xbf16, #tpu.memory_space<vmem>>, vector<256x128xbf16>,
    return
  }
  func.func @transform_0(%arg0: i32, %arg1: i32) -> (i32, i32) {
    %c0_i32 = arith.constant 0 : i32
    %c0_i32_0 = arith.constant 0 : i32
    return %arg0, %c0_i32 : i32, i32
  }
  func.func @transform_1(%arg0: i32, %arg1: i32) -> (i32, i32) {
    %c0_i32 = arith.constant 0 : i32
    %c0_i32_0 = arith.constant 0 : i32
    return %c0_i32, %arg1 : i32, i32
  }
  func.func @transform_2(%arg0: i32, %arg1: i32) -> (i32, i32) {
    %c0_i32 = arith.constant 0 : i32
    return %arg0, %arg1 : i32, i32
  }
}

</mosaic_0001>

<bundles_post_ra>
// kernel: deepv3plus_forward.16
= control target key start
LH: loop header
LB: loop body
LE: loop exit
PB: predicated region body
PF: predicated region fallthrough
CT: control target
= control target key end

     0   :  { %s1157_s9 = smov 0   ;;  %s1159_s10 = smov 0   ;;  %s1255_s0 = inlined_call_operand.vmem [shape: bf16[512,27], index: 0, kind: input, shape index: {}]   ;;  %s1256_s1 = inlined_call_operand.vmem [shape: bf16[27,128], index: 1, kind: input, shape index: {}]   ;;  %s1257_s2 = inlined_call_operand.vmem [shape: bf16[512,128], index: 2, kind: output, shape index: {}]  }
   0x1   :  { %s1161_s11 = smov 0  }
   0x2 LB: > { %s24_s12 = sadd.s32 1, %s1135_s10  ;;  %p816_p0 = scmp.ge.s32.totalorder %s1139_s11, 1  ;;  %s1139_s11 = sphi %s1161_s11, %s12_s11   ;;  %s1135_s10 = sphi %s1159_s10, %s1259_s10   ;;  %s1131_s9 = sphi %s1157_s9, %s1258_s9  }
   0x3   : > { %p26_p1 = scmp.ge.s32.totalorder %s24_s12, 2  ;;  %p136_p2 = scmp.lt.s32.totalorder %s1139_s11, 3 }
   0x5   : > { %s1261_s12 = smov (%p26_p1, %s24_s12), 0  ;;  %p137_p3 = pnand %p816_p0, %p136_p2 }
   0x6   : > { %s817_s15 = sshll.u32 (!%p137_p3), %s1131_s9, 5 }
   0x7   : > { %140 = sbr.rel (%p137_p3) target bundleno = 253 (0xfd), region = 28  ;;  %p166_p4 = scmp.lt.s32.totalorder (!%p137_p3), %s817_s15, 63 }
   0xc   : > { %v1099_v0 = vld [vmem:[%s1256_s1 + $0x8] sm:$0x3f]   ;;  %vm361_vm0 = vcmask 1044480   ;;  %vm362_vm1 = vcmask 1045504   ;;  %v1141_v1 = vmov 65535   ;;  %v1100_v5 = vld [vmem:[%s1256_s1] sm:$0xff]  }
   0xd   : > { %v363_v2 = vsel %vm361_vm0, 4294967295, %v1141_v1  ;;  %s1263_s15 = smov (!%p166_p4, %s817_s15), 63  ;;  %vm312_vm2 = vcmask 220160  }
   0xe   : > { %v364_v3 = vsel %vm362_vm1, %v363_v2, 0  ;;  %s818_s18 = sshll.u32 %s1263_s15, 2 }
   0xf   : > { %v366_v4 = vand.u32 %v1099_v0, %v364_v3  ;;  %s1189_s21 = scalar_lea.vmem %s1255_s0, %s818_s18  ;;  %s1228_s24 = scalar_lea.vmem %s1257_s2, %s818_s18 }
  0x10   : > { %v1101_v6 = vld [vmem:[%s1189_s21] sm:$0xff]   ;;  %v1103_v8 = vld [vmem:[%s1189_s21 + $0x8] sm:$0xff]   ;;  %v1105_v10 = vld [vmem:[%s1189_s21 + $0x10] sm:$0xff]  }
  0x11   : > { %1034 = vmatprep.subr.bf16.mxu0 %v366_v4  ;;  %1070 = vmatprep.subr.bf16.mxu1 %v366_v4  ;;  %v1102_v7 = vld [vmem:[%s1189_s21 + $0x40] sm:$0xff]   ;;  %v1104_v9 = vld [vmem:[%s1189_s21 + $0x48] sm:$0xff]   ;;  %v1106_v11 = vld [vmem:[%s1189_s21 + $0x50] sm:$0xff]  }
  0x12   : > { %1035 = vmatpush3.bf16.msra.mxu0 %v366_v4  ;;  %1072 = vmatpush3.bf16.msra.mxu1 %v366_v4  ;;  %v1107_v12 = vld [vmem:[%s1189_s21 + $0x18] sm:$0xff]   ;;  %v1109_v14 = vld [vmem:[%s1189_s21 + $0x20] sm:$0xff]   ;;  %v1111_v16 = vld [vmem:[%s1189_s21 + $0x28] sm:$0xff]  }
  0x13   : > { %1036 = vmatprep.subr.bf16.mxu0 %v1100_v5  ;;  %1071 = vmatprep.subr.bf16.mxu1 %v1100_v5  ;;  %v1108_v13 = vld [vmem:[%s1189_s21 + $0x58] sm:$0xff]   ;;  %v1110_v15 = vld [vmem:[%s1189_s21 + $0x60] sm:$0xff]   ;;  %v1112_v17 = vld [vmem:[%s1189_s21 + $0x68] sm:$0xff]  }
  0x14   : > { %1038 = vmatprep.mubr.msk.bf16.mxu0 %vm312_vm2, %v1101_v6  ;;  %1054 = vmatprep.mubr.msk.bf16.mxu1 %vm312_vm2, %v1102_v7  ;;  %v1113_v18 = vld [vmem:[%s1189_s21 + $0x30] sm:$0xff]   ;;  %v1115_v20 = vld [vmem:[%s1189_s21 + $0x38] sm:$0xff]  }
  0x15   : > { %v1114_v19 = vld [vmem:[%s1189_s21 + $0x70] sm:$0xff]   ;;  %v1116_v21 = vld [vmem:[%s1189_s21 + $0x78] sm:$0xff]  }
  0x16   : > { %1037 = vmatpush3.bf16.msra.mxu0 %v1100_v5  ;;  %1073 = vmatpush3.bf16.msra.mxu1 %v1100_v5 }
  0x19   : > { %1039 = vmatmul.mubr.msk.bf16.vlgmr.msra.gmra.mxu0 %vm312_vm2, %v1103_v8  ;;  %1055 = vmatmul.mubr.msk.bf16.vlgmr.msra.gmra.mxu1 %vm312_vm2, %v1104_v9 }
  0x1a   : > { %1042 = vmatprep.mubr.msk.bf16.mxu0 %vm312_vm2, %v1105_v10  ;;  %1058 = vmatprep.mubr.msk.bf16.mxu1 %vm312_vm2, %v1106_v11 }
  0x21   : > { %1043 = vmatmul.mubr.msk.bf16.gmra.mxu0 %vm312_vm2, %v1107_v12  ;;  %1059 = vmatmul.mubr.msk.bf16.gmra.mxu1 %vm312_vm2, %v1108_v13 }
  0x22   : > { %1046 = vmatprep.mubr.msk.bf16.mxu0 %vm312_vm2, %v1109_v14  ;;  %1062 = vmatprep.mubr.msk.bf16.mxu1 %vm312_vm2, %v1110_v15 }
  0x29   : > { %1047 = vmatmul.mubr.msk.bf16.gmra.mxu0 %vm312_vm2, %v1111_v16  ;;  %1063 = vmatmul.mubr.msk.bf16.gmra.mxu1 %vm312_vm2, %v1112_v17 }
  0x2a   : > { %1050 = vmatprep.mubr.msk.bf16.mxu0 %vm312_vm2, %v1113_v18  ;;  %1066 = vmatprep.mubr.msk.bf16.mxu1 %vm312_vm2, %v1114_v19 }
  0x31   : > { %1051 = vmatmul.mubr.msk.bf16.gmra.mxu0 %vm312_vm2, %v1115_v20  ;;  %1067 = vmatmul.mubr.msk.bf16.gmra.mxu1 %vm312_vm2, %v1116_v21 }
  0xd9   : > { %v1040_v22 = vpop.f32.mrf.mxu0  ;;  %v1056_v23 = vpop.f32.mrf.mxu1 }
  0xda   : > { %v531_v28 = vmax.f32 %v1040_v22, 0.0  ;;  %v547_v29 = vmax.f32 %v1056_v23, 0.0 }
  0xdb   : > { %v402_v24 = vpop.f32.mrf.mxu0  ;;  %v466_v25 = vpop.f32.mrf.mxu1 }
  0xdc   : > { %v529_v32 = vmax.f32 %v402_v24, 0.0  ;;  %v545_v33 = vmax.f32 %v466_v25, 0.0 }
  0xdd   : > { %v1041_v26 = vpop.f32.mrf.mxu0  ;;  %v1057_v27 = vpop.f32.mrf.mxu1 }
  0xde   : > { %v532_v30 = vmax.f32 %v1041_v26, 0.0  ;;  %v548_v31 = vmax.f32 %v1057_v27, 0.0 }
  0xdf   : > { %v405_v34 = vpop.f32.mrf.mxu0  ;;  %v469_v35 = vpop.f32.mrf.mxu1 }
  0xe0   : > { %v929_v36 = vpack.c.bf16 %v532_v30, %v531_v28  ;;  %v969_v37 = vpack.c.bf16 %v548_v31, %v547_v29  ;;  %v530_v38 = vmax.f32 %v405_v34, 0.0  ;;  %v546_v39 = vmax.f32 %v469_v35, 0.0 }
  0xe1   : > { %v1044_v40 = vpop.f32.mrf.mxu0  ;;  %v1060_v41 = vpop.f32.mrf.mxu1 }
  0xe2   : > { %1001 = vst [vmem:[%s1228_s24 + $0x8] sm:$0xff] %v929_v36   ;;  %1009 = vst [vmem:[%s1228_s24 + $0x48] sm:$0xff] %v969_v37   ;;  %v924_v42 = vpack.c.bf16 %v530_v38, %v529_v32  ;;  %v964_v43 = vpack.c.bf16 %v546_v39, %v545_v33  ;;  %v535_v48 = vmax.f32 %v1044_v40, 0.0  ;;  %v551_v49 = vmax.f32 %v1060_v41, 0.0 }
  0xe3   : > { %v418_v44 = vpop.f32.mrf.mxu0  ;;  %v482_v45 = vpop.f32.mrf.mxu1 }
  0xe4   : > { %925 = vst [vmem:[%s1228_s24] sm:$0xff] %v924_v42   ;;  %1008 = vst [vmem:[%s1228_s24 + $0x40] sm:$0xff] %v964_v43   ;;  %v533_v52 = vmax.f32 %v418_v44, 0.0  ;;  %v549_v53 = vmax.f32 %v482_v45, 0.0 }
  0xe5   : > { %v1045_v46 = vpop.f32.mrf.mxu0  ;;  %v1061_v47 = vpop.f32.mrf.mxu1 }
  0xe6   : > { %v536_v50 = vmax.f32 %v1045_v46, 0.0  ;;  %v552_v51 = vmax.f32 %v1061_v47, 0.0 }
  0xe7   : > { %v421_v54 = vpop.f32.mrf.mxu0  ;;  %v485_v55 = vpop.f32.mrf.mxu1 }
  0xe8   : > { %v939_v56 = vpack.c.bf16 %v536_v50, %v535_v48  ;;  %v979_v57 = vpack.c.bf16 %v552_v51, %v551_v49  ;;  %v534_v58 = vmax.f32 %v421_v54, 0.0  ;;  %v550_v59 = vmax.f32 %v485_v55, 0.0 }
  0xe9   : > { %v1048_v60 = vpop.f32.mrf.mxu0  ;;  %v1064_v61 = vpop.f32.mrf.mxu1 }
  0xea   : > { %1003 = vst [vmem:[%s1228_s24 + $0x18] sm:$0xff] %v939_v56   ;;  %1011 = vst [vmem:[%s1228_s24 + $0x58] sm:$0xff] %v979_v57   ;;  %v934_v62 = vpack.c.bf16 %v534_v58, %v533_v52  ;;  %v974_v63 = vpack.c.bf16 %v550_v59, %v549_v53  ;;  %v539_v4 = vmax.f32 %v1048_v60, 0.0  ;;  %v555_v5 = vmax.f32 %v1064_v61, 0.0 }
  0xeb   : > { %v434_v0 = vpop.f32.mrf.mxu0  ;;  %v498_v1 = vpop.f32.mrf.mxu1 }
  0xec   : > { %1002 = vst [vmem:[%s1228_s24 + $0x10] sm:$0xff] %v934_v62   ;;  %1010 = vst [vmem:[%s1228_s24 + $0x50] sm:$0xff] %v974_v63   ;;  %v537_v8 = vmax.f32 %v434_v0, 0.0  ;;  %v553_v9 = vmax.f32 %v498_v1, 0.0 }
  0xed   : > { %v1049_v2 = vpop.f32.mrf.mxu0  ;;  %v1065_v3 = vpop.f32.mrf.mxu1 }
  0xee   : > { %v540_v6 = vmax.f32 %v1049_v2, 0.0  ;;  %v556_v7 = vmax.f32 %v1065_v3, 0.0 }
  0xef   : > { %v437_v10 = vpop.f32.mrf.mxu0  ;;  %v501_v11 = vpop.f32.mrf.mxu1 }
  0xf0   : > { %v949_v12 = vpack.c.bf16 %v540_v6, %v539_v4  ;;  %v989_v13 = vpack.c.bf16 %v556_v7, %v555_v5  ;;  %v538_v14 = vmax.f32 %v437_v10, 0.0  ;;  %v554_v15 = vmax.f32 %v501_v11, 0.0 }
  0xf1   : > { %v1052_v16 = vpop.f32.mrf.mxu0  ;;  %v1068_v17 = vpop.f32.mrf.mxu1 }
  0xf2   : > { %1005 = vst [vmem:[%s1228_s24 + $0x28] sm:$0xff] %v949_v12   ;;  %1013 = vst [vmem:[%s1228_s24 + $0x68] sm:$0xff] %v989_v13   ;;  %v944_v18 = vpack.c.bf16 %v538_v14, %v537_v8  ;;  %v984_v19 = vpack.c.bf16 %v554_v15, %v553_v9  ;;  %v543_v24 = vmax.f32 %v1052_v16, 0.0  ;;  %v559_v25 = vmax.f32 %v1068_v17, 0.0 }
  0xf3   : > { %v450_v20 = vpop.f32.mrf.mxu0  ;;  %v514_v21 = vpop.f32.mrf.mxu1 }
  0xf4   : > { %1004 = vst [vmem:[%s1228_s24 + $0x20] sm:$0xff] %v944_v18   ;;  %1012 = vst [vmem:[%s1228_s24 + $0x60] sm:$0xff] %v984_v19   ;;  %v541_v28 = vmax.f32 %v450_v20, 0.0  ;;  %v557_v29 = vmax.f32 %v514_v21, 0.0 }
  0xf5   : > { %v1053_v22 = vpop.f32.mrf.mxu0  ;;  %v1069_v23 = vpop.f32.mrf.mxu1 }
  0xf6   : > { %v544_v26 = vmax.f32 %v1053_v22, 0.0  ;;  %v560_v27 = vmax.f32 %v1069_v23, 0.0 }
  0xf7   : > { %v453_v30 = vpop.f32.mrf.mxu0  ;;  %v517_v31 = vpop.f32.mrf.mxu1 }
  0xf8   : > { %v959_v32 = vpack.c.bf16 %v544_v26, %v543_v24  ;;  %v999_v33 = vpack.c.bf16 %v560_v27, %v559_v25  ;;  %v542_v34 = vmax.f32 %v453_v30, 0.0  ;;  %v558_v35 = vmax.f32 %v517_v31, 0.0 }
  0xfa   : > { %1007 = vst [vmem:[%s1228_s24 + $0x38] sm:$0xff] %v959_v32   ;;  %1015 = vst [vmem:[%s1228_s24 + $0x78] sm:$0xff] %v999_v33   ;;  %v954_v36 = vpack.c.bf16 %v542_v34, %v541_v28  ;;  %v994_v37 = vpack.c.bf16 %v558_v35, %v557_v29 }
  0xfc   : > { %1006 = vst [vmem:[%s1228_s24 + $0x30] sm:$0xff] %v954_v36   ;;  %1014 = vst [vmem:[%s1228_s24 + $0x70] sm:$0xff] %v994_v37  }
  0xfd PF: > { %s12_s11 = sadd.s32 1, %s1139_s11   ;;  %s1258_s9 = smov %s1135_s10 }
  0xfe   : > { %p9_p5 = scmp.ge.s32.totalorder %s12_s11, 4   ;;  %s1259_s10 = smov %s1261_s12 }
 0x100   :  { %11 = sbr.rel (!%p9_p5) target bundleno = 2 (0x2), region = 61 }

// kernel: deepv3plus_forward.17
= control target key start
LH: loop header
LB: loop body
LE: loop exit
PB: predicated region body
PF: predicated region fallthrough
CT: control target
= control target key end

     0   :  { %vm548_vm0 = vcmask 523264   ;;  %s1705_s1 = inlined_call_operand.vmem [shape: bf16[576,128], index: 1, kind: input, shape index: {}]   ;;  %s1706_s0 = inlined_call_operand.vmem [shape: bf16[128,576], index: 0, kind: input, shape index: {}]   ;;  %s1707_s2 = inlined_call_operand.vmem [shape: bf16[128,128], index: 2, kind: output, shape index: {}]  }
   0x1   :  { %v1299_v0 = vld [vmem:[%s1705_s1 + $0x78] sm:$0xff]   ;;  %v1303_v4 = vld [vmem:[%s1705_s1 + $0x70] sm:$0xff]   ;;  %v1307_v8 = vld [vmem:[%s1705_s1 + $0x68] sm:$0xff]  }
   0x2   :  { %v1300_v1 = vld [vmem:[%s1705_s1 + $0xf8] sm:$0xff]   ;;  %1127 = vmatprep.subr.bf16.mxu0 %v1299_v0  ;;  %v1304_v5 = vld [vmem:[%s1705_s1 + $0xf0] sm:$0xff]   ;;  %v1308_v9 = vld [vmem:[%s1705_s1 + $0xe8] sm:$0xff]  }
   0x3   :  { %v1301_v2 = vld [vmem:[%s1705_s1 + $0x38] sm:$0xff]   ;;  %1191 = vmatprep.subr.bf16.mxu1 %v1300_v1  ;;  %v1305_v6 = vld [vmem:[%s1705_s1 + $0x30] sm:$0xff]   ;;  %v1309_v10 = vld [vmem:[%s1705_s1 + $0x28] sm:$0xff]  }
   0x4   :  { %v1302_v3 = vld [vmem:[%s1705_s1 + $0xb8] sm:$0xff]   ;;  %1128 = vmatpush3.bf16.msra.mxu0 %v1301_v2  ;;  %v1306_v7 = vld [vmem:[%s1705_s1 + $0xb0] sm:$0xff]   ;;  %v1310_v11 = vld [vmem:[%s1705_s1 + $0xa8] sm:$0xff]  }
   0x5   :  { %1192 = vmatpush3.bf16.msra.mxu1 %v1302_v3  ;;  %1129 = vmatprep.subr.bf16.mxu0 %v1303_v4  ;;  %v1311_v12 = vld [vmem:[%s1705_s1 + $0x60] sm:$0xff]   ;;  %v1315_v16 = vld [vmem:[%s1705_s1 + $0x58] sm:$0xff]   ;;  %v1319_v20 = vld [vmem:[%s1705_s1 + $0x50] sm:$0xff]  }
   0x6   :  { %1193 = vmatprep.subr.bf16.mxu1 %v1304_v5  ;;  %v1312_v13 = vld [vmem:[%s1705_s1 + $0xe0] sm:$0xff]   ;;  %v1316_v17 = vld [vmem:[%s1705_s1 + $0xd8] sm:$0xff]   ;;  %v1320_v21 = vld [vmem:[%s1705_s1 + $0xd0] sm:$0xff]  }
   0x7   :  { %v1313_v14 = vld [vmem:[%s1705_s1 + $0x20] sm:$0xff]   ;;  %v1317_v18 = vld [vmem:[%s1705_s1 + $0x18] sm:$0xff]   ;;  %v1321_v22 = vld [vmem:[%s1705_s1 + $0x10] sm:$0xff]  }
   0x8   :  { %1130 = vmatpush3.bf16.msra.mxu0 %v1305_v6  ;;  %v1314_v15 = vld [vmem:[%s1705_s1 + $0xa0] sm:$0xff]   ;;  %v1318_v19 = vld [vmem:[%s1705_s1 + $0x98] sm:$0xff]   ;;  %v1322_v23 = vld [vmem:[%s1705_s1 + $0x90] sm:$0xff]  }
   0x9   :  { %1194 = vmatpush3.bf16.msra.mxu1 %v1306_v7  ;;  %1131 = vmatprep.subr.bf16.mxu0 %v1307_v8  ;;  %v1323_v24 = vld [vmem:[%s1705_s1 + $0x48] sm:$0xff]   ;;  %v1327_v28 = vld [vmem:[%s1705_s1 + $0x40] sm:$0xff]   ;;  %v1337_v36 = vld [vmem:[%s1705_s1 + $0x118] sm:$0xff]  }
   0xa   :  { %1195 = vmatprep.subr.bf16.mxu1 %v1308_v9  ;;  %v1324_v25 = vld [vmem:[%s1705_s1 + $0xc8] sm:$0xff]   ;;  %v1328_v29 = vld [vmem:[%s1705_s1 + $0xc0] sm:$0xff]   ;;  %v1350_v42 = vld [vmem:[%s1705_s1 + $0x110] sm:$0xff]  }
   0xb   :  { %v1325_v26 = vld [vmem:[%s1705_s1 + $0x8] sm:$0xff]   ;;  %v1329_v30 = vld [vmem:[%s1705_s1] sm:$0xff]   ;;  %v1346_v43 = vld [vmem:[%s1706_s0 + $0x5c] ss:$20 sps:$4 sm:$0xff]  }
   0xc   :  { %1132 = vmatpush3.bf16.msra.mxu0 %v1309_v10  ;;  %v1326_v27 = vld [vmem:[%s1705_s1 + $0x88] sm:$0xff]   ;;  %v1330_v31 = vld [vmem:[%s1705_s1 + $0x80] sm:$0xff]   ;;  %v1351_v47 = vld [vmem:[%s1706_s0 + $0x7c] ss:$20 sps:$4 sm:$0xff]  }
   0xd   :  { %1196 = vmatpush3.bf16.msra.mxu1 %v1310_v11  ;;  %1133 = vmatprep.subr.bf16.mxu0 %v1311_v12  ;;  %v1331_v32 = vld [vmem:[%s1706_s0] ss:$20 sps:$4 sm:$0xff]   ;;  %v1333_v33 = vld [vmem:[%s1706_s0 + $0x4] ss:$20 sps:$4 sm:$0xff]   ;;  %v1334_v34 = vld [vmem:[%s1706_s0 + $0x8] ss:$20 sps:$4 sm:$0xff]  }
   0xe   :  { %1197 = vmatprep.subr.bf16.mxu1 %v1312_v13  ;;  %v1336_v35 = vld [vmem:[%s1706_s0 + $0xc] ss:$20 sps:$4 sm:$0xff]   ;;  %605 = vmatprep.mubr.bf16.mxu0 %v1333_v33  ;;  %v1340_v38 = vld [vmem:[%s1706_s0 + $0x34] ss:$20 sps:$4 sm:$0xff]   ;;  %v1343_v40 = vld [vmem:[%s1706_s0 + $0x30] ss:$20 sps:$4 sm:$0xff]  }
   0xf   :  { %702 = vmatprep.mubr.bf16.mxu1 %v1336_v35  ;;  %v1338_v37 = vld [vmem:[%s1706_s0 + $0x2c] ss:$20 sps:$4 sm:$0xff]   ;;  %v1342_v39 = vld [vmem:[%s1706_s0 + $0x28] ss:$20 sps:$4 sm:$0xff]   ;;  %v1348_v44 = vld [vmem:[%s1706_s0 + $0x50] ss:$20 sps:$4 sm:$0xff]  }
  0x10   :  { %1134 = vmatpush3.bf16.msra.mxu0 %v1313_v14  ;;  %v1344_v41 = vld [vmem:[%s1706_s0 + $0x54] ss:$20 sps:$4 sm:$0xff]   ;;  %v1349_v45 = vld [vmem:[%s1706_s0 + $0x58] ss:$20 sps:$4 sm:$0xff]   ;;  %v1376_v49 = vld [vmem:[%s1705_s1 + $0x100] sm:$0xff]  }
  0x11   :  { %1198 = vmatpush3.bf16.msra.mxu1 %v1314_v15  ;;  %1135 = vmatprep.subr.bf16.mxu0 %v1315_v16  ;;  %v1363_v46 = vld [vmem:[%s1705_s1 + $0x108] sm:$0xff]   ;;  %v1353_v48 = vld [vmem:[%s1706_s0 + $0x84] ss:$20 sps:$4 sm:$0xff]   ;;  %v1356_v51 = vld [vmem:[%s1706_s0 + $0x80] ss:$20 sps:$4 sm:$0xff]  }
  0x12   :  { %1199 = vmatprep.subr.bf16.mxu1 %v1316_v17  ;;  %v1355_v50 = vld [vmem:[%s1706_s0 + $0x78] ss:$20 sps:$4 sm:$0xff]   ;;  %v1361_v54 = vld [vmem:[%s1706_s0 + $0xa0] ss:$20 sps:$4 sm:$0xff]   ;;  %v1362_v55 = vld [vmem:[%s1706_s0 + $0xa8] ss:$20 sps:$4 sm:$0xff]  }
  0x13   :  { %v1357_v52 = vld [vmem:[%s1706_s0 + $0xa4] ss:$20 sps:$4 sm:$0xff]   ;;  %v1359_v53 = vld [vmem:[%s1706_s0 + $0xac] ss:$20 sps:$4 sm:$0xff]   ;;  %v1366_v57 = vld [vmem:[%s1706_s0 + $0xd4] ss:$20 sps:$4 sm:$0xff]  }
  0x14   :  { %1136 = vmatpush3.bf16.msra.mxu0 %v1317_v18  ;;  %v1364_v56 = vld [vmem:[%s1706_s0 + $0xcc] ss:$20 sps:$4 sm:$0xff]   ;;  %v1368_v58 = vld [vmem:[%s1706_s0 + $0xc8] ss:$20 sps:$4 sm:$0xff]   ;;  %v1369_v59 = vld [vmem:[%s1706_s0 + $0xd0] ss:$20 sps:$4 sm:$0xff]  }
  0x15   :  { %1200 = vmatpush3.bf16.msra.mxu1 %v1318_v19  ;;  %1137 = vmatprep.subr.bf16.mxu0 %v1319_v20  ;;  %v1370_v60 = vld [vmem:[%s1706_s0 + $0xf4] ss:$20 sps:$4 sm:$0xff]   ;;  %v1372_v61 = vld [vmem:[%s1706_s0 + $0xfc] ss:$20 sps:$4 sm:$0xff]   ;;  %v1375_v63 = vld [vmem:[%s1706_s0 + $0xf8] ss:$20 sps:$4 sm:$0xff]  }
  0x16   :  { %1201 = vmatprep.subr.bf16.mxu1 %v1320_v21  ;;  %v1374_v62 = vld [vmem:[%s1706_s0 + $0xf0] ss:$20 sps:$4 sm:$0xff]   ;;  %v1381_v2 = vld [vmem:[%s1706_s0 + $0x118] ss:$20 sps:$4 sm:$0xff]   ;;  %v1382_v3 = vld [vmem:[%s1706_s0 + $0x120] ss:$20 sps:$4 sm:$0xff]  }
  0x17   :  { %v1377_v0 = vld [vmem:[%s1706_s0 + $0x11c] ss:$20 sps:$4 sm:$0xff]   ;;  %v1379_v1 = vld [vmem:[%s1706_s0 + $0x124] ss:$20 sps:$4 sm:$0xff]   ;;  %v1387_v8 = vld [vmem:[%s1706_s0 + $0x60] ss:$20 sps:$4 sm:$0xff]  }
  0x18   :  { %1138 = vmatpush3.bf16.msra.mxu0 %v1321_v22  ;;  %v1383_v4 = vld [vmem:[%s1706_s0 + $0x10] ss:$20 sps:$4 sm:$0xff]   ;;  %v1385_v6 = vld [vmem:[%s1706_s0 + $0x38] ss:$20 sps:$4 sm:$0xff]   ;;  %v1388_v9 = vld [vmem:[%s1706_s0 + $0x100] ss:$20 sps:$4 sm:$0xff]  }
  0x19   :  { %1202 = vmatpush3.bf16.msra.mxu1 %v1322_v23  ;;  %1139 = vmatprep.subr.bf16.mxu0 %v1323_v24  ;;  %v1384_v5 = vld [vmem:[%s1706_s0 + $0xb0] ss:$20 sps:$4 sm:$0xff]   ;;  %v1386_v7 = vld [vmem:[%s1706_s0 + $0xd8] ss:$20 sps:$4 sm:$0xff]   ;;  %v1389_v10 = vld [vmem:[%s1706_s0 + $0x88] ss:$20 sps:$4 sm:$0xff]  }
  0x1a   :  { %1203 = vmatprep.subr.bf16.mxu1 %v1324_v25  ;;  %v1390_v11 = vld [vmem:[%s1706_s0 + $0x128] ss:$20 sps:$4 sm:$0xff]  }
  0x1c   :  { %1140 = vmatpush3.bf16.msra.mxu0 %v1325_v26 }
  0x1d   :  { %1204 = vmatpush3.bf16.msra.mxu1 %v1326_v27  ;;  %1141 = vmatprep.subr.bf16.mxu0 %v1327_v28 }
  0x1e   :  { %1205 = vmatprep.subr.bf16.mxu1 %v1328_v29 }
  0x20   :  { %1142 = vmatpush3.bf16.msra.mxu0 %v1329_v30 }
  0x21   :  { %1206 = vmatpush3.bf16.msra.mxu1 %v1330_v31  ;;  %1267 = vmatprep.subr.bf16.mxu0 %v1337_v36 }
  0x22   :  { %1291 = vmatprep.subr.bf16.mxu1 %v1337_v36 }
  0x23   :  { %606 = vmatmul.mubr.bf16.vlgmr.msra.gmra.mxu0 %v1331_v32 }
  0x24   :  { %703 = vmatmul.mubr.bf16.vlgmr.msra.gmra.mxu1 %v1334_v34  ;;  %1268 = vmatpush3.bf16.msra.mxu0 %v1337_v36 }
  0x25   :  { %1295 = vmatpush3.bf16.msra.mxu1 %v1337_v36  ;;  %613 = vmatprep.mubr.bf16.mxu0 %v1338_v37 }
  0x26   :  { %710 = vmatprep.mubr.bf16.mxu1 %v1340_v38  ;;  %1269 = vmatprep.subr.bf16.mxu0 %v1350_v42 }
  0x27   :  { %1292 = vmatprep.subr.bf16.mxu1 %v1350_v42 }
  0x28   :  { %1270 = vmatpush3.bf16.msra.mxu0 %v1350_v42 }
  0x29   :  { %1296 = vmatpush3.bf16.msra.mxu1 %v1350_v42  ;;  %1271 = vmatprep.subr.bf16.mxu0 %v1363_v46 }
  0x2a   :  { %1293 = vmatprep.subr.bf16.mxu1 %v1363_v46 }
  0x2b   :  { %614 = vmatmul.mubr.bf16.gmra.mxu0 %v1342_v39 }
  0x2c   :  { %711 = vmatmul.mubr.bf16.gmra.mxu1 %v1343_v40  ;;  %621 = vmatprep.mubr.bf16.mxu0 %v1344_v41 }
  0x2d   :  { %718 = vmatprep.mubr.bf16.mxu1 %v1346_v43  ;;  %1272 = vmatpush3.bf16.msra.mxu0 %v1363_v46 }
  0x2e   :  { %1297 = vmatpush3.bf16.msra.mxu1 %v1363_v46  ;;  %1273 = vmatprep.subr.bf16.mxu0 %v1376_v49 }
  0x2f   :  { %1294 = vmatprep.subr.bf16.mxu1 %v1376_v49 }
  0x31   :  { %1274 = vmatpush3.bf16.msra.mxu0 %v1376_v49 }
  0x32   :  { %1298 = vmatpush3.bf16.msra.mxu1 %v1376_v49 }
  0x33   :  { %622 = vmatmul.mubr.bf16.gmra.mxu0 %v1348_v44 }
  0x34   :  { %719 = vmatmul.mubr.bf16.gmra.mxu1 %v1349_v45  ;;  %629 = vmatprep.mubr.bf16.mxu0 %v1351_v47 }
  0x35   :  { %726 = vmatprep.mubr.bf16.mxu1 %v1353_v48 }
  0x3b   :  { %630 = vmatmul.mubr.bf16.gmra.mxu0 %v1355_v50 }
  0x3c   :  { %727 = vmatmul.mubr.bf16.gmra.mxu1 %v1356_v51  ;;  %637 = vmatprep.mubr.bf16.mxu0 %v1357_v52 }
  0x3d   :  { %734 = vmatprep.mubr.bf16.mxu1 %v1359_v53 }
  0x43   :  { %638 = vmatmul.mubr.bf16.gmra.mxu0 %v1361_v54 }
  0x44   :  { %735 = vmatmul.mubr.bf16.gmra.mxu1 %v1362_v55  ;;  %645 = vmatprep.mubr.bf16.mxu0 %v1364_v56 }
  0x45   :  { %742 = vmatprep.mubr.bf16.mxu1 %v1366_v57 }
  0x4b   :  { %646 = vmatmul.mubr.bf16.gmra.mxu0 %v1368_v58 }
  0x4c   :  { %743 = vmatmul.mubr.bf16.gmra.mxu1 %v1369_v59  ;;  %653 = vmatprep.mubr.bf16.mxu0 %v1370_v60 }
  0x4d   :  { %750 = vmatprep.mubr.bf16.mxu1 %v1372_v61 }
  0x53   :  { %654 = vmatmul.mubr.bf16.gmra.mxu0 %v1374_v62 }
  0x54   :  { %751 = vmatmul.mubr.bf16.gmra.mxu1 %v1375_v63  ;;  %661 = vmatprep.mubr.bf16.mxu0 %v1377_v0 }
  0x55   :  { %758 = vmatprep.mubr.bf16.mxu1 %v1379_v1 }
  0x5b   :  { %662 = vmatmul.mubr.bf16.gmra.mxu0 %v1381_v2 }
  0x5c   :  { %759 = vmatmul.mubr.bf16.gmra.mxu1 %v1382_v3  ;;  %1275 = vmatprep.mubr.msk.bf16.mxu0 %vm548_vm0, %v1383_v4 }
  0x5d   :  { %1283 = vmatprep.mubr.msk.bf16.mxu1 %vm548_vm0, %v1384_v5 }
  0x63   :  { %1276 = vmatmul.mubr.msk.bf16.vlgmr.msra.gmra.mxu0 %vm548_vm0, %v1385_v6 }
  0x64   :  { %1284 = vmatmul.mubr.msk.bf16.vlgmr.msra.gmra.mxu1 %vm548_vm0, %v1386_v7  ;;  %1279 = vmatprep.mubr.msk.bf16.mxu0 %vm548_vm0, %v1387_v8 }
  0x65   :  { %1287 = vmatprep.mubr.msk.bf16.mxu1 %vm548_vm0, %v1388_v9 }
  0x6b   :  { %1280 = vmatmul.mubr.msk.bf16.gmra.mxu0 %vm548_vm0, %v1389_v10 }
  0x6c   :  { %1288 = vmatmul.mubr.msk.bf16.gmra.mxu1 %vm548_vm0, %v1390_v11 }
  0xe3   :  { %v1143_v12 = vpop.f32.mrf.mxu0 }
  0xe4   :  { %v1207_v13 = vpop.f32.mrf.mxu1 }
  0xe5   :  { %v1144_v14 = vpop.f32.mrf.mxu0 }
  0xe6   :  { %v1145_v15 = vadd.f32 %v1144_v14, %v1143_v12  ;;  %v1208_v16 = vpop.f32.mrf.mxu1 }
  0xe7   :  { %v1209_v17 = vadd.f32 %v1208_v16, %v1207_v13  ;;  %v1146_v18 = vpop.f32.mrf.mxu0 }
  0xe8   :  { %v1210_v19 = vpop.f32.mrf.mxu1 }
  0xe9   :  { %v1147_v20 = vpop.f32.mrf.mxu0  ;;  %v1642_v21 = vadd.f32 %v1209_v17, %v1145_v15 }
  0xea   :  { %v1211_v22 = vpop.f32.mrf.mxu1  ;;  %v1148_v10 = vadd.f32 %v1147_v20, %v1146_v18 }
  0xeb   :  { %1708 = vst [vmem:[#allocation2_spill] sm:$0xff] %v1642_v21  ;;  %v1149_v23 = vpop.f32.mrf.mxu0  ;;  %v1212_v11 = vadd.f32 %v1211_v22, %v1210_v19 }
  0xec   :  { %v1213_v24 = vpop.f32.mrf.mxu1 }
  0xed   :  { %v1150_v25 = vpop.f32.mrf.mxu0 }
  0xee   :  { %v1214_v26 = vpop.f32.mrf.mxu1  ;;  %v1151_v14 = vadd.f32 %v1150_v25, %v1149_v23 }
  0xef   :  { %v1152_v27 = vpop.f32.mrf.mxu0  ;;  %v1215_v15 = vadd.f32 %v1214_v26, %v1213_v24 }
  0xf0   :  { %v1216_v28 = vpop.f32.mrf.mxu1 }
  0xf1   :  { %v1153_v29 = vpop.f32.mrf.mxu0 }
  0xf2   :  { %v1217_v30 = vpop.f32.mrf.mxu1  ;;  %v1154_v16 = vadd.f32 %v1153_v29, %v1152_v27  ;;  %v713_v27 = vadd.f32 %v1215_v15, %v1151_v14 }
  0xf3   :  { %v1644_v31 = vpop.f32.mrf.mxu0  ;;  %v1218_v17 = vadd.f32 %v1217_v30, %v1216_v28 }
  0xf4   :  { %v1646_v32 = vpop.f32.mrf.mxu1 }
  0xf5   :  { %1709 = vst [vmem:[#allocation3_spill] sm:$0xff] %v1646_v32  ;;  %v1648_v33 = vpop.f32.mrf.mxu0  ;;  %v716_v29 = vadd.f32 %v1218_v17, %v1154_v16 }
  0xf6   :  { %1710 = vst [vmem:[#allocation4_spill] sm:$0xff] %v1648_v33  ;;  %v1650_v34 = vpop.f32.mrf.mxu1 }
  0xf7   :  { %1711 = vst [vmem:[#allocation5_spill] sm:$0xff] %v1650_v34  ;;  %v1652_v35 = vpop.f32.mrf.mxu0  ;;  %v708_v34 = vadd.f32 %v1212_v11, %v1148_v10  ;;  %v1729_v11 = vld [vmem:[#allocation2_spill] sm:$0xff] }
  0xf8   :  { %1712 = vst [vmem:[#allocation6_spill] sm:$0xff] %v1652_v35  ;;  %v1654_v36 = vpop.f32.mrf.mxu1 }
  0xf9   :  { %1713 = vst [vmem:[#allocation7_spill] sm:$0xff] %v1654_v36  ;;  %v1656_v37 = vpop.f32.mrf.mxu0 }
  0xfa   :  { %1714 = vst [vmem:[#allocation8_spill] sm:$0xff] %v1656_v37  ;;  %v1658_v38 = vpop.f32.mrf.mxu1 }
  0xfb   :  { %1715 = vst [vmem:[#allocation9_spill] sm:$0xff] %v1658_v38  ;;  %v1161_v39 = vpop.f32.mrf.mxu0 }
  0xfc   :  { %v1225_v40 = vpop.f32.mrf.mxu1  ;;  %v1721_v24 = vld [vmem:[#allocation3_spill] sm:$0xff] }
  0xfd   :  { %v1162_v41 = vpop.f32.mrf.mxu0  ;;  %v1720_v22 = vld [vmem:[#allocation4_spill] sm:$0xff] }
  0xfe   :  { %v1226_v42 = vpop.f32.mrf.mxu1  ;;  %v1157_v23 = vadd.f32 %v1720_v22, %v1644_v31  ;;  %v1722_v25 = vld [vmem:[#allocation5_spill] sm:$0xff] }
  0xff   :  { %v1660_v43 = vpop.f32.mrf.mxu0  ;;  %v1221_v26 = vadd.f32 %v1722_v25, %v1721_v24  ;;  %v1723_v30 = vld [vmem:[#allocation6_spill] sm:$0xff] }
 0x100   :  { %1716 = vst [vmem:[#allocation10_spill] sm:$0xff] %v1660_v43  ;;  %v1662_v44 = vpop.f32.mrf.mxu1  ;;  %v1227_v43 = vadd.f32 %v1226_v42, %v1225_v40 }
 0x101   :  { %1717 = vst [vmem:[#allocation11_spill] sm:$0xff] %v1662_v44  ;;  %v1165_v45 = vpop.f32.mrf.mxu0  ;;  %v1163_v44 = vadd.f32 %v1162_v41, %v1161_v39  ;;  %v1724_v39 = vld [vmem:[#allocation8_spill] sm:$0xff]  ;;  %v1725_v41 = vld [vmem:[#allocation7_spill] sm:$0xff] }
 0x102   :  { %v1229_v46 = vpop.f32.mrf.mxu1  ;;  %v1160_v40 = vadd.f32 %v1724_v39, %v1723_v30  ;;  %v1726_v42 = vld [vmem:[#allocation9_spill] sm:$0xff] }
 0x103   :  { %v1167_v47 = vpop.f32.mrf.mxu0 }
 0x104   :  { %v1231_v48 = vpop.f32.mrf.mxu1 }
 0x105   :  { %v1168_v49 = vpop.f32.mrf.mxu0 }
 0x106   :  { %v1232_v50 = vpop.f32.mrf.mxu1  ;;  %v1169_v37 = vadd.f32 %v1168_v49, %v1167_v47  ;;  %v1224_v47 = vadd.f32 %v1726_v42, %v1725_v41 }
 0x107   :  { %v1170_v51 = vpop.f32.mrf.mxu0  ;;  %v1233_v35 = vadd.f32 %v1232_v50, %v1231_v48  ;;  %v729_v50 = vadd.f32 %v1227_v43, %v1163_v44 }
 0x108   :  { %v1234_v52 = vpop.f32.mrf.mxu1 }
 0x109   :  { %v1171_v53 = vpop.f32.mrf.mxu0 }
 0x10a   :  { %v1235_v54 = vpop.f32.mrf.mxu1  ;;  %v1172_v32 = vadd.f32 %v1171_v53, %v1170_v51  ;;  %v1727_v51 = vld [vmem:[#allocation10_spill] sm:$0xff]  ;;  %v1728_v53 = vld [vmem:[#allocation11_spill] sm:$0xff] }
 0x10b   :  { %v1173_v55 = vpop.f32.mrf.mxu0  ;;  %v1236_v33 = vadd.f32 %v1235_v54, %v1234_v52  ;;  %v1166_v52 = vadd.f32 %v1165_v45, %v1727_v51  ;;  %v1230_v54 = vadd.f32 %v1229_v46, %v1728_v53 }
 0x10c   :  { %v1237_v56 = vpop.f32.mrf.mxu1 }
 0x10d   :  { %v1174_v57 = vpop.f32.mrf.mxu0  ;;  %v732_v25 = vadd.f32 %v1230_v54, %v1166_v52 }
 0x10e   :  { %v1238_v58 = vpop.f32.mrf.mxu1  ;;  %v1175_v38 = vadd.f32 %v1174_v57, %v1173_v55  ;;  %v737_v55 = vadd.f32 %v1233_v35, %v1169_v37 }
 0x10f   :  { %v1176_v59 = vpop.f32.mrf.mxu0  ;;  %v1239_v36 = vadd.f32 %v1238_v58, %v1237_v56 }
 0x110   :  { %v1240_v60 = vpop.f32.mrf.mxu1 }
 0x111   :  { %v1177_v61 = vpop.f32.mrf.mxu0  ;;  %v745_v48 = vadd.f32 %v1239_v36, %v1175_v38 }
 0x112   :  { %v1241_v62 = vpop.f32.mrf.mxu1  ;;  %v1178_v18 = vadd.f32 %v1177_v61, %v1176_v59  ;;  %v740_v61 = vadd.f32 %v1236_v33, %v1172_v32 }
 0x113   :  { %v1179_v63 = vpop.f32.mrf.mxu0  ;;  %v1242_v19 = vadd.f32 %v1241_v62, %v1240_v60 }
 0x114   :  { %v1243_v0 = vpop.f32.mrf.mxu1 }
 0x115   :  { %v1180_v1 = vpop.f32.mrf.mxu0  ;;  %v748_v60 = vadd.f32 %v1242_v19, %v1178_v18 }
 0x116   :  { %v1244_v2 = vpop.f32.mrf.mxu1  ;;  %v1181_v57 = vadd.f32 %v1180_v1, %v1179_v63 }
 0x117   :  { %v1182_v3 = vpop.f32.mrf.mxu0  ;;  %v1245_v62 = vadd.f32 %v1244_v2, %v1243_v0 }
 0x118   :  { %v1664_v4 = vpop.f32.mrf.mxu1 }
 0x119   :  { %1718 = vst [vmem:[#allocation12_spill] sm:$0xff] %v1664_v4  ;;  %v1183_v5 = vpop.f32.mrf.mxu0 }
 0x11a   :  { %v1666_v6 = vpop.f32.mrf.mxu1  ;;  %v1184_v10 = vadd.f32 %v1183_v5, %v1182_v3 }
 0x11b   :  { %1719 = vst [vmem:[#allocation13_spill] sm:$0xff] %v1666_v6  ;;  %v1185_v7 = vpop.f32.mrf.mxu0 }
 0x11c   :  { %v1249_v8 = vpop.f32.mrf.mxu1 }
 0x11d   :  { %v1186_v9 = vpop.f32.mrf.mxu0 }
 0x11e   :  { %v1250_v12 = vpop.f32.mrf.mxu1  ;;  %v1187_v38 = vadd.f32 %v1186_v9, %v1185_v7 }
 0x11f   :  { %v1188_v13 = vpop.f32.mrf.mxu0  ;;  %v1251_v43 = vadd.f32 %v1250_v12, %v1249_v8 }
 0x120   :  { %v1252_v21 = vpop.f32.mrf.mxu1  ;;  %v1730_v0 = vld [vmem:[#allocation12_spill] sm:$0xff] }
 0x121   :  { %v1189_v4 = vpop.f32.mrf.mxu0 }
 0x122   :  { %v1253_v6 = vpop.f32.mrf.mxu1  ;;  %v1190_v46 = vadd.f32 %v1189_v4, %v1188_v13  ;;  %v1731_v2 = vld [vmem:[#allocation13_spill] sm:$0xff]  ;;  %v761_v4 = vadd.f32 %v1251_v43, %v1187_v38 }
 0x123   :  { %v1277_v20 = vpop.f32.mrf.mxu0  ;;  %v1254_v1 = vadd.f32 %v1253_v6, %v1252_v21  ;;  %v1248_v3 = vadd.f32 %v1731_v2, %v1730_v0  ;;  %v721_v6 = vadd.f32 %v1221_v26, %v1157_v23 }
 0x124   :  { %v1285_v28 = vpop.f32.mrf.mxu1  ;;  %v810_v31 = vadd.f32 %v1277_v20, %v713_v27 }
 0x125   :  { %v801_v49 = vpop.f32.mrf.mxu0  ;;  %v842_v58 = vadd.f32 %v1285_v28, %v745_v48  ;;  %v764_v39 = vadd.f32 %v1254_v1, %v1190_v46  ;;  %v756_v51 = vadd.f32 %v1248_v3, %v1184_v10 }
 0x126   :  { %v833_v56 = vpop.f32.mrf.mxu1  ;;  %v802_v14 = vadd.f32 %v801_v49, %v1729_v11  ;;  %v866_v17 = vmax.f32 %v810_v31, 0.0  ;;  %v724_v49 = vadd.f32 %v1224_v47, %v1160_v40 }
 0x127   :  { %v1278_v59 = vpop.f32.mrf.mxu0  ;;  %v834_v44 = vadd.f32 %v833_v56, %v737_v55  ;;  %v874_v20 = vmax.f32 %v842_v58, 0.0 }
 0x128   :  { %v813_v15 = vadd.f32 %v1278_v59, %v716_v29  ;;  %v1286_v36 = vpop.f32.mrf.mxu1  ;;  %v864_v5 = vmax.f32 %v802_v14, 0.0  ;;  %v753_v29 = vadd.f32 %v1245_v62, %v1181_v57 }
 0x129   :  { %v845_v45 = vadd.f32 %v1286_v36, %v748_v60  ;;  %v804_v16 = vpop.f32.mrf.mxu0  ;;  %v872_v9 = vmax.f32 %v834_v44, 0.0 }
 0x12a   :  { %v867_v35 = vmax.f32 %v813_v15, 0.0  ;;  %v805_v37 = vadd.f32 %v804_v16, %v708_v34  ;;  %v836_v63 = vpop.f32.mrf.mxu1 }
 0x12b   :  { %v875_v18 = vmax.f32 %v845_v45, 0.0  ;;  %v837_v32 = vadd.f32 %v836_v63, %v740_v61  ;;  %v1281_v33 = vpop.f32.mrf.mxu0 }
 0x12c   :  { %v1088_v19 = vpack.c.bf16 %v867_v35, %v866_v17  ;;  %v865_v7 = vmax.f32 %v805_v37, 0.0  ;;  %v1289_v8 = vpop.f32.mrf.mxu1  ;;  %v826_v34 = vadd.f32 %v1281_v33, %v729_v50 }
 0x12d   :  { %v1108_v12 = vpack.c.bf16 %v875_v18, %v874_v20  ;;  %v873_v22 = vmax.f32 %v837_v32, 0.0  ;;  %v817_v13 = vpop.f32.mrf.mxu0  ;;  %v858_v28 = vadd.f32 %v1289_v8, %v761_v4 }
 0x12e   :  { %1120 = vst [vmem:[%s1707_s2 + $0x8] sm:$0xff] %v1088_v19   ;;  %v1083_v21 = vpack.c.bf16 %v865_v7, %v864_v5  ;;  %v849_v24 = vpop.f32.mrf.mxu1  ;;  %v818_v41 = vadd.f32 %v817_v13, %v721_v6  ;;  %v870_v52 = vmax.f32 %v826_v34, 0.0 }
 0x12f   :  { %1124 = vst [vmem:[%s1707_s2 + $0x28] sm:$0xff] %v1108_v12   ;;  %v1103_v27 = vpack.c.bf16 %v873_v22, %v872_v9  ;;  %v1282_v30 = vpop.f32.mrf.mxu0  ;;  %v850_v23 = vadd.f32 %v849_v24, %v753_v29  ;;  %v878_v55 = vmax.f32 %v858_v28, 0.0 }
 0x130   :  { %1084 = vst [vmem:[%s1707_s2] sm:$0xff] %v1083_v21   ;;  %v829_v42 = vadd.f32 %v1282_v30, %v732_v25  ;;  %v1290_v48 = vpop.f32.mrf.mxu1  ;;  %v868_v58 = vmax.f32 %v818_v41, 0.0 }
 0x131   :  { %1123 = vst [vmem:[%s1707_s2 + $0x20] sm:$0xff] %v1103_v27   ;;  %v861_v26 = vadd.f32 %v1290_v48, %v764_v39  ;;  %v820_v50 = vpop.f32.mrf.mxu0  ;;  %v876_v61 = vmax.f32 %v850_v23, 0.0 }
 0x132   :  { %v871_v53 = vmax.f32 %v829_v42, 0.0  ;;  %v821_v54 = vadd.f32 %v820_v50, %v724_v49  ;;  %v852_v31 = vpop.f32.mrf.mxu1 }
 0x133   :  { %v879_v56 = vmax.f32 %v861_v26, 0.0  ;;  %v853_v57 = vadd.f32 %v852_v31, %v756_v51 }
 0x134   :  { %v1098_v59 = vpack.c.bf16 %v871_v53, %v870_v52  ;;  %v869_v60 = vmax.f32 %v821_v54, 0.0 }
 0x135   :  { %v1118_v40 = vpack.c.bf16 %v879_v56, %v878_v55  ;;  %v877_v47 = vmax.f32 %v853_v57, 0.0 }
 0x136   :  { %1122 = vst [vmem:[%s1707_s2 + $0x18] sm:$0xff] %v1098_v59   ;;  %v1093_v62 = vpack.c.bf16 %v869_v60, %v868_v58 }
 0x137   :  { %1126 = vst [vmem:[%s1707_s2 + $0x38] sm:$0xff] %v1118_v40   ;;  %v1113_v10 = vpack.c.bf16 %v877_v47, %v876_v61 }
 0x138   :  { %1121 = vst [vmem:[%s1707_s2 + $0x10] sm:$0xff] %v1093_v62  }
 0x139   :  { %1125 = vst [vmem:[%s1707_s2 + $0x30] sm:$0xff] %v1113_v10  }

// kernel: deepv3plus_forward.18
= control target key start
LH: loop header
LB: loop body
LE: loop exit
PB: predicated region body
PF: predicated region fallthrough
CT: control target
= control target key end

     0   :  { %vm530_vm0 = vcmask 785408   ;;  %s1257_s1 = inlined_call_operand.vmem [shape: bf16[864,128], index: 1, kind: input, shape index: {}]   ;;  %s1258_s0 = inlined_call_operand.vmem [shape: bf16[32,864], index: 0, kind: input, shape index: {}]   ;;  %s1259_s2 = inlined_call_operand.vmem [shape: bf16[32,128], index: 2, kind: output, shape index: {}]  }
   0x1   :  { %v958_v0 = vld [vmem:[%s1257_s1 + $0x78] sm:$0xff]   ;;  %v962_v4 = vld [vmem:[%s1257_s1 + $0x70] sm:$0xff]   ;;  %v966_v8 = vld [vmem:[%s1257_s1 + $0x68] sm:$0xff]  }
   0x2   :  { %v959_v1 = vld [vmem:[%s1257_s1 + $0xf8] sm:$0xff]   ;;  %850 = vmatprep.subr.bf16.mxu0 %v958_v0  ;;  %v963_v5 = vld [vmem:[%s1257_s1 + $0xf0] sm:$0xff]   ;;  %v967_v9 = vld [vmem:[%s1257_s1 + $0xe8] sm:$0xff]  }
   0x3   :  { %v960_v2 = vld [vmem:[%s1257_s1 + $0x38] sm:$0xff]   ;;  %878 = vmatprep.subr.bf16.mxu1 %v959_v1  ;;  %v964_v6 = vld [vmem:[%s1257_s1 + $0x30] sm:$0xff]   ;;  %v968_v10 = vld [vmem:[%s1257_s1 + $0x28] sm:$0xff]  }
   0x4   :  { %v961_v3 = vld [vmem:[%s1257_s1 + $0xb8] sm:$0xff]   ;;  %851 = vmatpush3.bf16.msra.mxu0 %v960_v2  ;;  %v965_v7 = vld [vmem:[%s1257_s1 + $0xb0] sm:$0xff]   ;;  %v969_v11 = vld [vmem:[%s1257_s1 + $0xa8] sm:$0xff]  }
   0x5   :  { %879 = vmatpush3.bf16.msra.mxu1 %v961_v3  ;;  %852 = vmatprep.subr.bf16.mxu0 %v962_v4  ;;  %v970_v12 = vld [vmem:[%s1257_s1 + $0x60] sm:$0xff]   ;;  %v974_v16 = vld [vmem:[%s1257_s1 + $0x58] sm:$0xff]   ;;  %v978_v20 = vld [vmem:[%s1257_s1 + $0x50] sm:$0xff]  }
   0x6   :  { %880 = vmatprep.subr.bf16.mxu1 %v963_v5  ;;  %v971_v13 = vld [vmem:[%s1257_s1 + $0xe0] sm:$0xff]   ;;  %v975_v17 = vld [vmem:[%s1257_s1 + $0xd8] sm:$0xff]   ;;  %v979_v21 = vld [vmem:[%s1257_s1 + $0xd0] sm:$0xff]  }
   0x7   :  { %v972_v14 = vld [vmem:[%s1257_s1 + $0x20] sm:$0xff]   ;;  %v976_v18 = vld [vmem:[%s1257_s1 + $0x18] sm:$0xff]   ;;  %v980_v22 = vld [vmem:[%s1257_s1 + $0x10] sm:$0xff]  }
   0x8   :  { %853 = vmatpush3.bf16.msra.mxu0 %v964_v6  ;;  %v973_v15 = vld [vmem:[%s1257_s1 + $0xa0] sm:$0xff]   ;;  %v977_v19 = vld [vmem:[%s1257_s1 + $0x98] sm:$0xff]   ;;  %v981_v23 = vld [vmem:[%s1257_s1 + $0x90] sm:$0xff]  }
   0x9   :  { %881 = vmatpush3.bf16.msra.mxu1 %v965_v7  ;;  %854 = vmatprep.subr.bf16.mxu0 %v966_v8  ;;  %v982_v24 = vld [vmem:[%s1257_s1 + $0x48] sm:$0xff]   ;;  %v986_v28 = vld [vmem:[%s1257_s1 + $0x40] sm:$0xff]   ;;  %v996_v36 = vld [vmem:[%s1257_s1 + $0x178] sm:$0xff]  }
   0xa   :  { %882 = vmatprep.subr.bf16.mxu1 %v967_v9  ;;  %v983_v25 = vld [vmem:[%s1257_s1 + $0xc8] sm:$0xff]   ;;  %v987_v29 = vld [vmem:[%s1257_s1 + $0xc0] sm:$0xff]   ;;  %v997_v37 = vld [vmem:[%s1257_s1 + $0x138] sm:$0xff]  }
   0xb   :  { %v984_v26 = vld [vmem:[%s1257_s1 + $0x8] sm:$0xff]   ;;  %v988_v30 = vld [vmem:[%s1257_s1] sm:$0xff]   ;;  %v998_v38 = vld [vmem:[%s1257_s1 + $0x170] sm:$0xff]  }
   0xc   :  { %855 = vmatpush3.bf16.msra.mxu0 %v968_v10  ;;  %v985_v27 = vld [vmem:[%s1257_s1 + $0x88] sm:$0xff]   ;;  %v989_v31 = vld [vmem:[%s1257_s1 + $0x80] sm:$0xff]   ;;  %v999_v39 = vld [vmem:[%s1257_s1 + $0x130] sm:$0xff]  }
   0xd   :  { %883 = vmatpush3.bf16.msra.mxu1 %v969_v11  ;;  %856 = vmatprep.subr.bf16.mxu0 %v970_v12  ;;  %v990_v32 = vld [vmem:[%s1258_s0] ss:$28 sps:$4 sm:$0xff]   ;;  %v993_v34 = vld [vmem:[%s1258_s0 + $0x8] ss:$28 sps:$4 sm:$0xff]   ;;  %v1012_v50 = vld [vmem:[%s1258_s0 + $0x38] ss:$28 sps:$4 sm:$0xff]  }
   0xe   :  { %884 = vmatprep.subr.bf16.mxu1 %v971_v13  ;;  %v992_v33 = vld [vmem:[%s1258_s0 + $0x4] ss:$28 sps:$4 sm:$0xff]   ;;  %v995_v35 = vld [vmem:[%s1258_s0 + $0xc] ss:$28 sps:$4 sm:$0xff]   ;;  %v1005_v45 = vld [vmem:[%s1257_s1 + $0x158] sm:$0xff]  }
   0xf   :  { %569 = vmatprep.mubr.bf16.mxu0 %v992_v33  ;;  %618 = vmatprep.mubr.bf16.mxu1 %v995_v35  ;;  %v1000_v40 = vld [vmem:[%s1257_s1 + $0x168] sm:$0xff]   ;;  %v1002_v43 = vld [vmem:[%s1257_s1 + $0x160] sm:$0xff]   ;;  %v1007_v47 = vld [vmem:[%s1258_s0 + $0x3c] ss:$28 sps:$4 sm:$0xff]  }
  0x10   :  { %857 = vmatpush3.bf16.msra.mxu0 %v972_v14  ;;  %v1001_v41 = vld [vmem:[%s1257_s1 + $0x128] sm:$0xff]   ;;  %v1004_v44 = vld [vmem:[%s1257_s1 + $0x120] sm:$0xff]   ;;  %v1011_v49 = vld [vmem:[%s1257_s1 + $0x118] sm:$0xff]  }
  0x11   :  { %885 = vmatpush3.bf16.msra.mxu1 %v973_v15  ;;  %858 = vmatprep.subr.bf16.mxu0 %v974_v16  ;;  %v1003_v42 = vld [vmem:[%s1257_s1 + $0x1a8] sm:$0xff]   ;;  %v1006_v46 = vld [vmem:[%s1257_s1 + $0x1a0] sm:$0xff]   ;;  %v1014_v52 = vld [vmem:[%s1257_s1 + $0x150] sm:$0xff]  }
  0x12   :  { %886 = vmatprep.subr.bf16.mxu1 %v975_v17  ;;  %v1009_v48 = vld [vmem:[%s1258_s0 + $0x44] ss:$28 sps:$4 sm:$0xff]   ;;  %v1015_v53 = vld [vmem:[%s1257_s1 + $0x198] sm:$0xff]   ;;  %v1016_v54 = vld [vmem:[%s1257_s1 + $0x110] sm:$0xff]  }
  0x13   :  { %v1013_v51 = vld [vmem:[%s1258_s0 + $0x40] ss:$28 sps:$4 sm:$0xff]   ;;  %v1018_v55 = vld [vmem:[%s1257_s1 + $0x190] sm:$0xff]   ;;  %v1017_v56 = vld [vmem:[%s1257_s1 + $0x148] sm:$0xff]  }
  0x14   :  { %859 = vmatpush3.bf16.msra.mxu0 %v976_v18  ;;  %v1021_v57 = vld [vmem:[%s1257_s1 + $0x188] sm:$0xff]   ;;  %v1020_v59 = vld [vmem:[%s1257_s1 + $0x140] sm:$0xff]   ;;  %v1025_v60 = vld [vmem:[%s1258_s0 + $0x14] ss:$28 sps:$4 sm:$0xff]  }
  0x15   :  { %887 = vmatpush3.bf16.msra.mxu1 %v977_v19  ;;  %860 = vmatprep.subr.bf16.mxu0 %v978_v20  ;;  %v1019_v58 = vld [vmem:[%s1257_s1 + $0x108] sm:$0xff]   ;;  %v1026_v61 = vld [vmem:[%s1257_s1 + $0x180] sm:$0xff]   ;;  %v1027_v62 = vld [vmem:[%s1258_s0 + $0x18] ss:$28 sps:$4 sm:$0xff]  }
  0x16   :  { %888 = vmatprep.subr.bf16.mxu1 %v979_v21  ;;  %v1022_v63 = vld [vmem:[%s1257_s1 + $0x100] sm:$0xff]   ;;  %v1023_v0 = vld [vmem:[%s1258_s0 + $0x10] ss:$28 sps:$4 sm:$0xff]  }
  0x17   :  { %v1028_v1 = vld [vmem:[%s1258_s0 + $0x50] ss:$28 sps:$4 sm:$0xff]   ;;  %v1031_v3 = vld [vmem:[%s1258_s0 + $0x48] ss:$28 sps:$4 sm:$0xff]  }
  0x18   :  { %861 = vmatpush3.bf16.msra.mxu0 %v980_v22  ;;  %v1029_v2 = vld [vmem:[%s1258_s0 + $0x4c] ss:$28 sps:$4 sm:$0xff]  }
  0x19   :  { %889 = vmatpush3.bf16.msra.mxu1 %v981_v23  ;;  %862 = vmatprep.subr.bf16.mxu0 %v982_v24 }
  0x1a   :  { %890 = vmatprep.subr.bf16.mxu1 %v983_v25 }
  0x1c   :  { %863 = vmatpush3.bf16.msra.mxu0 %v984_v26 }
  0x1d   :  { %891 = vmatpush3.bf16.msra.mxu1 %v985_v27  ;;  %864 = vmatprep.subr.bf16.mxu0 %v986_v28 }
  0x1e   :  { %892 = vmatprep.subr.bf16.mxu1 %v987_v29 }
  0x20   :  { %865 = vmatpush3.bf16.msra.mxu0 %v988_v30 }
  0x21   :  { %893 = vmatpush3.bf16.msra.mxu1 %v989_v31  ;;  %906 = vmatprep.subr.bf16.mxu0 %v996_v36 }
  0x22   :  { %942 = vmatprep.subr.bf16.mxu1 %v1003_v42 }
  0x23   :  { %570 = vmatmul.mubr.bf16.vlgmr.msra.gmra.mxu0 %v990_v32 }
  0x24   :  { %619 = vmatmul.mubr.bf16.vlgmr.msra.gmra.mxu1 %v993_v34  ;;  %907 = vmatpush3.bf16.msra.mxu0 %v997_v37 }
  0x25   :  { %908 = vmatprep.subr.bf16.mxu0 %v998_v38  ;;  %943 = vmatpush3.bf16.msra.mxu1 %v1003_v42 }
  0x26   :  { %944 = vmatprep.subr.bf16.mxu1 %v1006_v46  ;;  %577 = vmatprep.mubr.bf16.mxu0 %v1007_v47 }
  0x27   :  { %626 = vmatprep.mubr.bf16.mxu1 %v1009_v48 }
  0x28   :  { %909 = vmatpush3.bf16.msra.mxu0 %v999_v39 }
  0x29   :  { %910 = vmatprep.subr.bf16.mxu0 %v1000_v40  ;;  %945 = vmatpush3.bf16.msra.mxu1 %v1006_v46 }
  0x2a   :  { %946 = vmatprep.subr.bf16.mxu1 %v1015_v53 }
  0x2b   :  { %578 = vmatmul.mubr.bf16.gmra.mxu0 %v1012_v50 }
  0x2c   :  { %911 = vmatpush3.bf16.msra.mxu0 %v1001_v41  ;;  %627 = vmatmul.mubr.bf16.gmra.mxu1 %v1013_v51 }
  0x2d   :  { %912 = vmatprep.subr.bf16.mxu0 %v1002_v43  ;;  %947 = vmatpush3.bf16.msra.mxu1 %v1015_v53 }
  0x2e   :  { %948 = vmatprep.subr.bf16.mxu1 %v1018_v55  ;;  %667 = vmatprep.mubr.bf16.mxu0 %v1025_v60 }
  0x2f   :  { %954 = vmatprep.mubr.msk.bf16.mxu1 %vm530_vm0, %v1027_v62 }
  0x30   :  { %913 = vmatpush3.bf16.msra.mxu0 %v1004_v44 }
  0x31   :  { %914 = vmatprep.subr.bf16.mxu0 %v1005_v45  ;;  %949 = vmatpush3.bf16.msra.mxu1 %v1018_v55 }
  0x32   :  { %950 = vmatprep.subr.bf16.mxu1 %v1021_v57 }
  0x34   :  { %915 = vmatpush3.bf16.msra.mxu0 %v1011_v49 }
  0x35   :  { %916 = vmatprep.subr.bf16.mxu0 %v1014_v52  ;;  %951 = vmatpush3.bf16.msra.mxu1 %v1021_v57 }
  0x36   :  { %952 = vmatprep.subr.bf16.mxu1 %v1026_v61 }
  0x38   :  { %917 = vmatpush3.bf16.msra.mxu0 %v1016_v54 }
  0x39   :  { %918 = vmatprep.subr.bf16.mxu0 %v1017_v56  ;;  %953 = vmatpush3.bf16.msra.mxu1 %v1026_v61 }
  0x3c   :  { %919 = vmatpush3.bf16.msra.mxu0 %v1019_v58  ;;  %955 = vmatmul.mubr.msk.bf16.vlgmr.msra.gmra.mxu1 %vm530_vm0, %v1028_v1 }
  0x3d   :  { %920 = vmatprep.subr.bf16.mxu0 %v1020_v59 }
  0x40   :  { %921 = vmatpush3.bf16.msra.mxu0 %v1022_v63 }
  0x43   :  { %668 = vmatmul.mubr.bf16.vlgmr.msra.gmra.mxu0 %v1023_v0 }
  0x44   :  { %675 = vmatprep.mubr.bf16.mxu0 %v1029_v2 }
  0x4b   :  { %676 = vmatmul.mubr.bf16.gmra.mxu0 %v1031_v3 }
  0xe3   :  { %v866_v4 = vpop.f32.mrf.mxu0 }
  0xe4   :  { %v894_v5 = vpop.f32.mrf.mxu1 }
  0xe5   :  { %v867_v6 = vpop.f32.mrf.mxu0 }
  0xe6   :  { %v895_v7 = vpop.f32.mrf.mxu1  ;;  %v868_v20 = vadd.f32 %v867_v6, %v866_v4 }
  0xe7   :  { %v869_v8 = vpop.f32.mrf.mxu0  ;;  %v896_v21 = vadd.f32 %v895_v7, %v894_v5 }
  0xe8   :  { %v897_v9 = vpop.f32.mrf.mxu1 }
  0xe9   :  { %v870_v10 = vpop.f32.mrf.mxu0  ;;  %v621_v26 = vadd.f32 %v896_v21, %v868_v20 }
  0xea   :  { %v898_v11 = vpop.f32.mrf.mxu1  ;;  %v871_v27 = vadd.f32 %v870_v10, %v869_v8 }
  0xeb   :  { %v872_v12 = vpop.f32.mrf.mxu0  ;;  %v899_v28 = vadd.f32 %v898_v11, %v897_v9 }
  0xec   :  { %v900_v13 = vpop.f32.mrf.mxu1 }
  0xed   :  { %v873_v14 = vpop.f32.mrf.mxu0  ;;  %v624_v36 = vadd.f32 %v899_v28, %v871_v27 }
  0xee   :  { %v901_v15 = vpop.f32.mrf.mxu1  ;;  %v874_v33 = vadd.f32 %v873_v14, %v872_v12 }
  0xef   :  { %v875_v16 = vpop.f32.mrf.mxu0  ;;  %v902_v34 = vadd.f32 %v901_v15, %v900_v13 }
  0xf0   :  { %v903_v17 = vpop.f32.mrf.mxu1 }
  0xf1   :  { %v876_v18 = vpop.f32.mrf.mxu0  ;;  %v629_v42 = vadd.f32 %v902_v34, %v874_v33 }
  0xf2   :  { %v904_v19 = vpop.f32.mrf.mxu1  ;;  %v877_v44 = vadd.f32 %v876_v18, %v875_v16 }
  0xf3   :  { %v905_v45 = vadd.f32 %v904_v19, %v903_v17 }
  0xf5   :  { %v632_v53 = vadd.f32 %v905_v45, %v877_v44 }
  0xfc   :  { %v956_v23 = vpop.f32.mrf.mxu1 }
  0xfe   :  { %v718_v25 = vpop.f32.mrf.mxu1 }
 0x100   :  { %v957_v31 = vpop.f32.mrf.mxu1 }
 0x102   :  { %v721_v39 = vpop.f32.mrf.mxu1 }
 0x103   :  { %v922_v22 = vpop.f32.mrf.mxu0 }
 0x105   :  { %v923_v24 = vpop.f32.mrf.mxu0 }
 0x106   :  { %v924_v29 = vadd.f32 %v923_v24, %v922_v22 }
 0x107   :  { %v925_v30 = vpop.f32.mrf.mxu0 }
 0x108   :  { %v670_v32 = vadd.f32 %v924_v29, %v621_v26 }
 0x109   :  { %v926_v35 = vpop.f32.mrf.mxu0 }
 0x10a   :  { %v927_v37 = vadd.f32 %v926_v35, %v925_v30  ;;  %v719_v40 = vadd.f32 %v718_v25, %v670_v32 }
 0x10b   :  { %v928_v38 = vpop.f32.mrf.mxu0 }
 0x10c   :  { %v673_v41 = vadd.f32 %v927_v37, %v624_v36  ;;  %v733_v49 = vmax.f32 %v719_v40, 0.0 }
 0x10d   :  { %v929_v43 = vpop.f32.mrf.mxu0 }
 0x10e   :  { %v930_v46 = vadd.f32 %v929_v43, %v928_v38  ;;  %v722_v47 = vadd.f32 %v721_v39, %v673_v41 }
 0x10f   :  { %v931_v48 = vpop.f32.mrf.mxu0 }
 0x110   :  { %v678_v50 = vadd.f32 %v930_v46, %v629_v42  ;;  %v734_v51 = vmax.f32 %v722_v47, 0.0 }
 0x111   :  { %v932_v52 = vpop.f32.mrf.mxu0 }
 0x112   :  { %v842_v54 = vpack.c.bf16 %v734_v51, %v733_v49  ;;  %v933_v55 = vadd.f32 %v932_v52, %v931_v48  ;;  %v727_v56 = vadd.f32 %v956_v23, %v678_v50 }
 0x114   :  { %843 = vst [vmem:[%s1259_s2] sm:$0xff] %v842_v54   ;;  %v681_v57 = vadd.f32 %v933_v55, %v632_v53  ;;  %v735_v59 = vmax.f32 %v727_v56, 0.0 }
 0x116   :  { %v730_v58 = vadd.f32 %v957_v31, %v681_v57 }
 0x118   :  { %v736_v60 = vmax.f32 %v730_v58, 0.0 }
 0x11a   :  { %v847_v61 = vpack.c.bf16 %v736_v60, %v735_v59 }
 0x11c   :  { %849 = vst [vmem:[%s1259_s2 + $0x8] sm:$0xff] %v847_v61  }

// kernel: deepv3plus_forward.24
= control target key start
LH: loop header
LB: loop body
LE: loop exit
PB: predicated region body
PF: predicated region fallthrough
CT: control target
= control target key end

     0   :  { %s1128_s9 = smov 0   ;;  %s1130_s10 = smov 0   ;;  %s1273_s0 = inlined_call_operand.vmem [shape: bf16[2,76,76,128], index: 0, kind: input, shape index: {}]   ;;  %s1274_s1 = inlined_call_operand.vmem [shape: bf16[3,384,256], index: 1, kind: input, shape index: {}]   ;;  %s1275_s2 = inlined_call_operand.vmem [shape: bf16[2,4,4,256], index: 2, kind: output, shape index: {}]  }
   0x1   :  { %s1132_s11 = smov 0   ;;  %s1134_s12 = smov 0  }
   0x2   :  { %s1136_s13 = smov 0   ;;  %s1138_s14 = smov 0  }
   0x3   :  { %s1140_s15 = smov 0  }
   0x4 LB: > { %s27_s16 = sadd.s32 1, %s1097_s12  ;;  %s34_s17 = sadd.s32 1, %s1101_s13  ;;  %s1109_s15 = sphi %s1140_s15, %s12_s15   ;;  %s1105_s14 = sphi %s1138_s14, %s1281_s14   ;;  %s1101_s13 = sphi %s1136_s13, %s1280_s13   ;;  %s1097_s12 = sphi %s1134_s12, %s1279_s12   ;;  %s1093_s11 = sphi %s1132_s11, %s1278_s11   ;;  %s1089_s10 = sphi %s1130_s10, %s1277_s10   ;;  %s1085_s9 = sphi %s1128_s9, %s1276_s9  }
   0x5   : > { %p28_p0 = scmp.ge.s32.totalorder %s27_s16, 3  ;;  %p860_p1 = scmp.ge.s32.totalorder %s1109_s15, 1 }
   0x6   : > { %p173_p2 = scmp.lt.s32.totalorder %s1109_s15, 25  ;;  %s38_s18 = sadd.s32 1, %s1105_s14 }
   0x7   : > { %s1283_s16 = smov (%p28_p0, %s27_s16), 0  ;;  %s1285_s17 = smov (!%p28_p0, %s34_s17), %s1101_s13 }
   0x8   : > { %p174_p3 = pnand %p860_p1, %p173_p2  ;;  %p36_p4 = scmp.ge.s32.totalorder %s1285_s17, 4 }
   0x9   : > { %s218_s19 = smul.u32 (!%p174_p3), 36, %s1085_s9  ;;  %p220_p6 = scmp.lt.s32.totalorder (!%p174_p3), %s1093_s11, 1 }
   0xa   : > { %s1287_s17 = smov (%p36_p4, %s1285_s17), 0  ;;  %s1289_s18 = smov (!%p36_p4, %s38_s18), %s1105_s14 }
   0xb   : > { %p40_p5 = scmp.ge.s32.totalorder %s1289_s18, 2  ;;  %177 = sbr.rel (%p174_p3) target bundleno = 311 (0x137), region = 28 }
   0xc   : > { %s219_s20 = sadd.s32 (!%p174_p3), %s1089_s10, %s218_s19  ;;  %p232_p7 = scmp.lt.s32.totalorder (!%p174_p3), %s1085_s9, 2 }
   0xd   : > { %s1291_s18 = smov (%p40_p5, %s1289_s18), 0  ;;  %p222_p8 = scmp.lt.s32.totalorder (!%p174_p3), %s219_s20, 75 }
   0xe   : > { %p244_p9 = scmp.lt.s32.totalorder (!%p174_p3), %s1089_s10, 3  ;;  %p866_p10 = scmp.ne.s32.totalorder (!%p174_p3), %s1085_s9, 0 }
  0x10   : > { %s1293_s11 = smov (!%p220_p6, %s1093_s11), 1  ;;  %s1295_s20 = smov (!%p222_p8, %s219_s20), 75 }
  0x11   : > { %s922_s21 = smul.u32 760, %s1293_s11  ;;  %s864_s5 = sshll.u32 %s1293_s11, 3 }
  0x12   : > { %s233_s22 = scalar_select %p232_p7, %s1085_s9, 2 }
  0x13   : > { %s921_s23 = smul.u32 10, %s1295_s20  ;;  %s1297_s10 = smov (!%p244_p9, %s1089_s10), 3 }
  0x14   : > { %s923_s24 = smul.u32 384, %s233_s22  ;;  %s863_s6 = sshll.u32 %s1297_s10, 1 }
  0x15   : > { %s226_s25 = sadd.s32 %s922_s21, %s921_s23  ;;  %s251_s7 = sadd.s32 %s864_s5, %s863_s6 }
  0x16   : > { %s861_s26 = sshll.u32 %s226_s25, 2  ;;  %s1182_s29 = scalar_lea.vmem %s1274_s1, %s923_s24 }
  0x17   : > { %s1187_s4 = scalar_lea.vmem %s1273_s0, %s861_s26  ;;  %s865_s8 = sshll.u32 %s251_s7, 1 }
  0x18   : > { %s1193_s21 = scalar_lea.vmem %s1275_s2, %s865_s8  ;;  %259 = sbr.rel (%p866_p10) target bundleno = 31 (0x1f), region = 32 }
  0x1d   : > { %v1111_v0 = vmov 0.0  }
  0x1e   : > { %260 = vst [vmem:[#allocation2] sm:$0xff] %v1111_v0 }
  0x1f PF: > { %v982_v1 = vld [vmem:[%s1182_s29 + $0x74] ss:$8 sps:$4 sm:$0xff]   ;;  %v984_v2 = vld [vmem:[%s1182_s29 + $0x70] ss:$8 sps:$4 sm:$0xff]   ;;  %v1112_v3 = vmov 0   ;;  %p916_p11 = scmp.ne.s32.totalorder %s1085_s9, 2 }
  0x20   : > { %425 = vmatprep.mubr.bf16.mxu0 %v1112_v3  ;;  %556 = vmatprep.mubr.bf16.mxu1 %v1112_v3  ;;  %v985_v4 = vld [vmem:[%s1182_s29 + $0xf4] ss:$8 sps:$4 sm:$0xff]   ;;  %v987_v5 = vld [vmem:[%s1182_s29 + $0xf0] ss:$8 sps:$4 sm:$0xff]   ;;  %v988_v6 = vld [vmem:[%s1182_s29 + $0x64] ss:$8 sps:$4 sm:$0xff]  }
  0x21   : > { %393 = vmatprep.subr.bf16.mxu0 %v982_v1  ;;  %v990_v7 = vld [vmem:[%s1182_s29 + $0x60] ss:$8 sps:$4 sm:$0xff]   ;;  %524 = vmatprep.subr.bf16.mxu1 %v985_v4  ;;  %v991_v8 = vld [vmem:[%s1182_s29 + $0xe4] ss:$8 sps:$4 sm:$0xff]   ;;  %v994_v10 = vld [vmem:[%s1182_s29 + $0x54] ss:$8 sps:$4 sm:$0xff]  }
  0x22   : > { %394 = vmatpush1.bf16.msra.mxu0 %v984_v2  ;;  %525 = vmatpush1.bf16.msra.mxu1 %v987_v5  ;;  %v993_v9 = vld [vmem:[%s1182_s29 + $0xe0] ss:$8 sps:$4 sm:$0xff]   ;;  %v996_v11 = vld [vmem:[%s1182_s29 + $0x50] ss:$8 sps:$4 sm:$0xff]   ;;  %v997_v12 = vld [vmem:[%s1182_s29 + $0xd4] ss:$8 sps:$4 sm:$0xff]  }
  0x23   : > { %395 = vmatprep.subr.bf16.mxu0 %v988_v6  ;;  %526 = vmatprep.subr.bf16.mxu1 %v991_v8  ;;  %v1000_v13 = vld [vmem:[%s1182_s29 + $0x44] ss:$8 sps:$4 sm:$0xff]   ;;  %v999_v14 = vld [vmem:[%s1182_s29 + $0xd0] ss:$8 sps:$4 sm:$0xff]   ;;  %v1002_v16 = vld [vmem:[%s1182_s29 + $0x40] ss:$8 sps:$4 sm:$0xff]  }
  0x24   : > { %v1003_v15 = vld [vmem:[%s1182_s29 + $0xc4] ss:$8 sps:$4 sm:$0xff]   ;;  %v1006_v17 = vld [vmem:[%s1182_s29 + $0x34] ss:$8 sps:$4 sm:$0xff]   ;;  %v1005_v18 = vld [vmem:[%s1182_s29 + $0xc0] ss:$8 sps:$4 sm:$0xff]  }
  0x25   : > { %v1009_v19 = vld [vmem:[%s1182_s29 + $0xb4] ss:$8 sps:$4 sm:$0xff]   ;;  %v1008_v20 = vld [vmem:[%s1182_s29 + $0x30] ss:$8 sps:$4 sm:$0xff]   ;;  %v1012_v21 = vld [vmem:[%s1182_s29 + $0x24] ss:$8 sps:$4 sm:$0xff]  }
  0x26   : > { %396 = vmatpush1.bf16.msra.mxu0 %v990_v7  ;;  %527 = vmatpush1.bf16.msra.mxu1 %v993_v9  ;;  %v1011_v22 = vld [vmem:[%s1182_s29 + $0xb0] ss:$8 sps:$4 sm:$0xff]   ;;  %v1015_v23 = vld [vmem:[%s1182_s29 + $0xa4] ss:$8 sps:$4 sm:$0xff]   ;;  %v1014_v24 = vld [vmem:[%s1182_s29 + $0x20] ss:$8 sps:$4 sm:$0xff]  }
  0x27   : > { %397 = vmatprep.subr.bf16.mxu0 %v994_v10  ;;  %528 = vmatprep.subr.bf16.mxu1 %v997_v12  ;;  %v1018_v25 = vld [vmem:[%s1182_s29 + $0x14] ss:$8 sps:$4 sm:$0xff]   ;;  %v1017_v26 = vld [vmem:[%s1182_s29 + $0xa0] ss:$8 sps:$4 sm:$0xff]   ;;  %v1020_v28 = vld [vmem:[%s1182_s29 + $0x10] ss:$8 sps:$4 sm:$0xff]  }
  0x28   : > { %v1021_v27 = vld [vmem:[%s1182_s29 + $0x94] ss:$8 sps:$4 sm:$0xff]   ;;  %v1024_v29 = vld [vmem:[%s1182_s29 + $0x4] ss:$8 sps:$4 sm:$0xff]   ;;  %v1023_v30 = vld [vmem:[%s1182_s29 + $0x90] ss:$8 sps:$4 sm:$0xff]  }
  0x29   : > { %v1027_v31 = vld [vmem:[%s1182_s29 + $0x84] ss:$8 sps:$4 sm:$0xff]   ;;  %v1026_v32 = vld [vmem:[%s1182_s29] ss:$8 sps:$4 sm:$0xff]   ;;  %v1032_v33 = vld [vmem:[%s1182_s29 + $0x174] ss:$8 sps:$4 sm:$0xff]  }
  0x2a   : > { %398 = vmatpush1.bf16.msra.mxu0 %v996_v11  ;;  %529 = vmatpush1.bf16.msra.mxu1 %v999_v14  ;;  %v1033_v34 = vld [vmem:[%s1187_s4 + $0x10] ss:$0 sps:$4 sm:$0xff]   ;;  %v1029_v35 = vld [vmem:[%s1182_s29 + $0x80] ss:$8 sps:$4 sm:$0xff]   ;;  %v1036_v39 = vld [vmem:[%s1182_s29 + $0x164] ss:$8 sps:$4 sm:$0xff]  }
  0x2b   : > { %399 = vmatprep.subr.bf16.mxu0 %v1000_v13  ;;  %530 = vmatprep.subr.bf16.mxu1 %v1003_v15  ;;  %v261_v36 = vld [vmem:[%s1187_s4] sm:$0xf]  ;;  %v1030_v37 = vld [vmem:[%s1182_s29 + $0x170] ss:$8 sps:$4 sm:$0xff]   ;;  %v442_v38 = vrot.slane %v1033_v34, 2 }
  0x2c   : > { %v1034_v40 = vld [vmem:[%s1182_s29 + $0x160] ss:$8 sps:$4 sm:$0xff]   ;;  %v1039_v41 = vld [vmem:[%s1182_s29 + $0x154] ss:$8 sps:$4 sm:$0xff]   ;;  %v1037_v42 = vld [vmem:[%s1182_s29 + $0x150] ss:$8 sps:$4 sm:$0xff]  }
  0x2d   : > { %v1042_v43 = vld [vmem:[%s1182_s29 + $0x144] ss:$8 sps:$4 sm:$0xff]   ;;  %v1040_v44 = vld [vmem:[%s1182_s29 + $0x140] ss:$8 sps:$4 sm:$0xff]   ;;  %v1045_v45 = vld [vmem:[%s1182_s29 + $0x134] ss:$8 sps:$4 sm:$0xff]  }
  0x2e   : > { %400 = vmatpush1.bf16.msra.mxu0 %v1002_v16  ;;  %531 = vmatpush1.bf16.msra.mxu1 %v1005_v18  ;;  %v1043_v46 = vld [vmem:[%s1182_s29 + $0x130] ss:$8 sps:$4 sm:$0xff]   ;;  %v1048_v47 = vld [vmem:[%s1182_s29 + $0x124] ss:$8 sps:$4 sm:$0xff]   ;;  %v1046_v48 = vld [vmem:[%s1182_s29 + $0x120] ss:$8 sps:$4 sm:$0xff]  }
  0x2f   : > { %401 = vmatprep.subr.bf16.mxu0 %v1006_v17  ;;  %532 = vmatprep.subr.bf16.mxu1 %v1009_v19  ;;  %v1051_v49 = vld [vmem:[%s1182_s29 + $0x114] ss:$8 sps:$4 sm:$0xff]   ;;  %v1049_v50 = vld [vmem:[%s1182_s29 + $0x110] ss:$8 sps:$4 sm:$0xff]   ;;  %v1054_v51 = vld [vmem:[%s1182_s29 + $0x104] ss:$8 sps:$4 sm:$0xff]  }
  0x30   : > { %v1052_v52 = vld [vmem:[%s1182_s29 + $0x100] ss:$8 sps:$4 sm:$0xff]   ;;  %v263_v53 = vld [vmem:[%s1187_s4 + $0x24] sm:$0x3] }
  0x31   : > { %v312_v63 = vld [vmem:[#allocation2] sm:$0xff] }
  0x32   : > { %402 = vmatpush1.bf16.msra.mxu0 %v1008_v20  ;;  %533 = vmatpush1.bf16.msra.mxu1 %v1011_v22 }
  0x33   : > { %403 = vmatprep.subr.bf16.mxu0 %v1012_v21  ;;  %534 = vmatprep.subr.bf16.mxu1 %v1015_v23 }
  0x36   : > { %404 = vmatpush1.bf16.msra.mxu0 %v1014_v24  ;;  %535 = vmatpush1.bf16.msra.mxu1 %v1017_v26 }
  0x37   : > { %405 = vmatprep.subr.bf16.mxu0 %v1018_v25  ;;  %536 = vmatprep.subr.bf16.mxu1 %v1021_v27 }
  0x3a   : > { %406 = vmatpush1.bf16.msra.mxu0 %v1020_v28  ;;  %537 = vmatpush1.bf16.msra.mxu1 %v1023_v30 }
  0x3b   : > { %407 = vmatprep.subr.bf16.mxu0 %v1024_v29  ;;  %538 = vmatprep.subr.bf16.mxu1 %v1027_v31 }
  0x3e   : > { %408 = vmatpush1.bf16.msra.mxu0 %v1026_v32  ;;  %539 = vmatpush1.bf16.msra.mxu1 %v1029_v35 }
  0x3f   : > { %650 = vmatprep.subr.bf16.mxu0 %v1032_v33 }
  0x41   : > { %426 = vmatmul.mubr.bf16.vlgmr.msra.gmra.mxu0 %v261_v36  ;;  %557 = vmatmul.mubr.bf16.vlgmr.msra.gmra.mxu1 %v442_v38 }
  0x42   : > { %651 = vmatpush1.bf16.msra.mxu0 %v1030_v37  ;;  %682 = vmatprep.mubr.bf16.mxu0 %v1112_v3 }
  0x43   : > { %652 = vmatprep.subr.bf16.mxu0 %v1036_v39 }
  0x46   : > { %653 = vmatpush1.bf16.msra.mxu0 %v1034_v40 }
  0x47   : > { %654 = vmatprep.subr.bf16.mxu0 %v1039_v41 }
  0x4a   : > { %655 = vmatpush1.bf16.msra.mxu0 %v1037_v42 }
  0x4b   : > { %656 = vmatprep.subr.bf16.mxu0 %v1042_v43 }
  0x4e   : > { %657 = vmatpush1.bf16.msra.mxu0 %v1040_v44 }
  0x4f   : > { %658 = vmatprep.subr.bf16.mxu0 %v1045_v45 }
  0x52   : > { %659 = vmatpush1.bf16.msra.mxu0 %v1043_v46 }
  0x53   : > { %660 = vmatprep.subr.bf16.mxu0 %v1048_v47 }
  0x56   : > { %661 = vmatpush1.bf16.msra.mxu0 %v1046_v48 }
  0x57   : > { %662 = vmatprep.subr.bf16.mxu0 %v1051_v49 }
  0x5a   : > { %663 = vmatpush1.bf16.msra.mxu0 %v1049_v50 }
  0x5b   : > { %664 = vmatprep.subr.bf16.mxu0 %v1054_v51 }
  0x5e   : > { %665 = vmatpush1.bf16.msra.mxu0 %v1052_v52 }
  0x61   : > { %683 = vmatmul.mubr.bf16.vlgmr.msra.gmra.mxu0 %v263_v53 }
 0x101   : > { %v427_v54 = vpop.f32.mrf.mxu0  ;;  %v558_v56 = vpop.f32.mrf.mxu1 }
 0x103   : > { %v429_v55 = vpop.f32.mrf.mxu0  ;;  %v560_v58 = vpop.f32.mrf.mxu1 }
 0x104   : > { %v436_v62 = vcombine.low %v427_v54, %v429_v55  ;;  %v567_v1 = vcombine.low %v558_v56, %v560_v58 }
 0x105   : > { %v431_v57 = vpop.f32.mrf.mxu0  ;;  %v562_v60 = vpop.f32.mrf.mxu1 }
 0x106   : > { %v438_v0 = vadd.f32 %v436_v62, %v312_v63 }
 0x107   : > { %v432_v59 = vpop.f32.mrf.mxu0  ;;  %v563_v61 = vpop.f32.mrf.mxu1 }
 0x108   : > { %v569_v4 = vadd.f32 %v567_v1, %v438_v0 }
 0x121   : > { %v684_v2 = vpop.f32.mrf.mxu0 }
 0x123   : > { %v686_v3 = vpop.f32.mrf.mxu0 }
 0x124   : > { %v693_v5 = vcombine.low %v684_v2, %v686_v3  ;;  %700 = sbr.rel (%p916_p11) target bundleno = 311 (0x137), region = 36 }
 0x125   : > { %v688_v6 = vpop.f32.mrf.mxu0 }
 0x126   : > { %v695_v7 = vadd.f32 %v693_v5, %v569_v4 }
 0x127   : > { %v689_v8 = vpop.f32.mrf.mxu0 }
 0x128   : > { %696 = vst [vmem:[#allocation2] sm:$0xff] %v695_v7 }
 0x12f   : > { %v701_v9 = vld [vmem:[#allocation2] sm:$0xff] }
 0x130   : > { %v702_v10 = vmax.f32 %v701_v9, 0.0 }
 0x132   : > { %v704_v11 = vcombine.high %v702_v10, %v702_v10 }
 0x134   : > { %v917_v12 = vpack.c.bf16 %v704_v11, %v702_v10 }
 0x136   : > { %918 = vst.sshfl [vmem:[%s1193_s21] sm:$0x33 pattern:$0x76325410] %v917_v12 }
 0x137 PF: > { %s12_s15 = sadd.s32 1, %s1109_s15   ;;  %s1276_s9 = smov %s1097_s12 }
 0x138   : > { %p9_p12 = scmp.ge.s32.totalorder %s12_s15, 26   ;;  %s1277_s10 = smov %s1101_s13 }
 0x139   : > { %s1278_s11 = smov %s1105_s14  ;;  %s1279_s12 = smov %s1283_s16 }
 0x13a   : > { %s1280_s13 = smov %s1287_s17  ;;  %s1281_s14 = smov %s1291_s18 }
 0x13b   :  { %11 = sbr.rel (!%p9_p12) target bundleno = 4 (0x4), region = 69 }

// kernel: deepv3plus_forward.23
= control target key start
LH: loop header
LB: loop body
LE: loop exit
PB: predicated region body
PF: predicated region fallthrough
CT: control target
= control target key end

     0   :  { %s1121_s9 = smov 0   ;;  %s1123_s10 = smov 0   ;;  %s1266_s0 = inlined_call_operand.vmem [shape: bf16[2,52,52,128], index: 0, kind: input, shape index: {}]   ;;  %s1267_s1 = inlined_call_operand.vmem [shape: bf16[3,384,256], index: 1, kind: input, shape index: {}]   ;;  %s1268_s2 = inlined_call_operand.vmem [shape: bf16[2,4,4,256], index: 2, kind: output, shape index: {}]  }
   0x1   :  { %s1125_s11 = smov 0   ;;  %s1127_s12 = smov 0  }
   0x2   :  { %s1129_s13 = smov 0   ;;  %s1131_s14 = smov 0  }
   0x3   :  { %s1133_s15 = smov 0  }
   0x4 LB: > { %s27_s16 = sadd.s32 1, %s1090_s12  ;;  %s34_s17 = sadd.s32 1, %s1094_s13  ;;  %s1102_s15 = sphi %s1133_s15, %s12_s15   ;;  %s1098_s14 = sphi %s1131_s14, %s1274_s14   ;;  %s1094_s13 = sphi %s1129_s13, %s1273_s13   ;;  %s1090_s12 = sphi %s1127_s12, %s1272_s12   ;;  %s1086_s11 = sphi %s1125_s11, %s1271_s11   ;;  %s1082_s10 = sphi %s1123_s10, %s1270_s10   ;;  %s1078_s9 = sphi %s1121_s9, %s1269_s9  }
   0x5   : > { %p28_p0 = scmp.ge.s32.totalorder %s27_s16, 3  ;;  %p855_p1 = scmp.ge.s32.totalorder %s1102_s15, 1 }
   0x6   : > { %p173_p2 = scmp.lt.s32.totalorder %s1102_s15, 25  ;;  %s38_s18 = sadd.s32 1, %s1098_s14 }
   0x7   : > { %s1276_s16 = smov (%p28_p0, %s27_s16), 0  ;;  %s1278_s17 = smov (!%p28_p0, %s34_s17), %s1094_s13 }
   0x8   : > { %p174_p3 = pnand %p855_p1, %p173_p2  ;;  %p36_p4 = scmp.ge.s32.totalorder %s1278_s17, 4 }
   0x9   : > { %s218_s19 = smul.u32 (!%p174_p3), 24, %s1078_s9  ;;  %p220_p6 = scmp.lt.s32.totalorder (!%p174_p3), %s1086_s11, 1 }
   0xa   : > { %s1280_s17 = smov (%p36_p4, %s1278_s17), 0  ;;  %s1282_s18 = smov (!%p36_p4, %s38_s18), %s1098_s14 }
   0xb   : > { %p40_p5 = scmp.ge.s32.totalorder %s1282_s18, 2  ;;  %177 = sbr.rel (%p174_p3) target bundleno = 311 (0x137), region = 28 }
   0xc   : > { %s219_s20 = sadd.s32 (!%p174_p3), %s1082_s10, %s218_s19  ;;  %p232_p7 = scmp.lt.s32.totalorder (!%p174_p3), %s1078_s9, 2 }
   0xd   : > { %s1284_s18 = smov (%p40_p5, %s1282_s18), 0  ;;  %p222_p8 = scmp.lt.s32.totalorder (!%p174_p3), %s219_s20, 51 }
   0xe   : > { %p244_p9 = scmp.lt.s32.totalorder (!%p174_p3), %s1082_s10, 3  ;;  %p861_p10 = scmp.ne.s32.totalorder (!%p174_p3), %s1078_s9, 0 }
  0x10   : > { %s1286_s11 = smov (!%p220_p6, %s1086_s11), 1  ;;  %s1288_s20 = smov (!%p222_p8, %s219_s20), 51 }
  0x11   : > { %s916_s21 = smul.u32 364, %s1286_s11  ;;  %s859_s5 = sshll.u32 %s1286_s11, 3 }
  0x12   : > { %s233_s22 = scalar_select %p232_p7, %s1078_s9, 2 }
  0x13   : > { %s915_s23 = smul.u32 7, %s1288_s20  ;;  %s1290_s10 = smov (!%p244_p9, %s1082_s10), 3 }
  0x14   : > { %s917_s24 = smul.u32 384, %s233_s22  ;;  %s858_s6 = sshll.u32 %s1290_s10, 1 }
  0x15   : > { %s226_s25 = sadd.s32 %s916_s21, %s915_s23  ;;  %s251_s7 = sadd.s32 %s859_s5, %s858_s6 }
  0x16   : > { %s856_s26 = sshll.u32 %s226_s25, 2  ;;  %s1175_s29 = scalar_lea.vmem %s1267_s1, %s917_s24 }
  0x17   : > { %s1180_s4 = scalar_lea.vmem %s1266_s0, %s856_s26  ;;  %s860_s8 = sshll.u32 %s251_s7, 1 }
  0x18   : > { %s1186_s21 = scalar_lea.vmem %s1268_s2, %s860_s8  ;;  %259 = sbr.rel (%p861_p10) target bundleno = 31 (0x1f), region = 32 }
  0x1d   : > { %v1104_v0 = vmov 0.0  }
  0x1e   : > { %260 = vst [vmem:[#allocation2] sm:$0xff] %v1104_v0 }
  0x1f PF: > { %v976_v1 = vld [vmem:[%s1175_s29 + $0x74] ss:$8 sps:$4 sm:$0xff]   ;;  %v978_v2 = vld [vmem:[%s1175_s29 + $0x70] ss:$8 sps:$4 sm:$0xff]   ;;  %v1105_v3 = vmov 0   ;;  %p910_p11 = scmp.ne.s32.totalorder %s1078_s9, 2 }
  0x20   : > { %425 = vmatprep.mubr.bf16.mxu0 %v1105_v3  ;;  %551 = vmatprep.mubr.bf16.mxu1 %v1105_v3  ;;  %v979_v4 = vld [vmem:[%s1175_s29 + $0xf4] ss:$8 sps:$4 sm:$0xff]   ;;  %v981_v5 = vld [vmem:[%s1175_s29 + $0xf0] ss:$8 sps:$4 sm:$0xff]   ;;  %v982_v6 = vld [vmem:[%s1175_s29 + $0x64] ss:$8 sps:$4 sm:$0xff]  }
  0x21   : > { %393 = vmatprep.subr.bf16.mxu0 %v976_v1  ;;  %v984_v7 = vld [vmem:[%s1175_s29 + $0x60] ss:$8 sps:$4 sm:$0xff]   ;;  %519 = vmatprep.subr.bf16.mxu1 %v979_v4  ;;  %v985_v8 = vld [vmem:[%s1175_s29 + $0xe4] ss:$8 sps:$4 sm:$0xff]   ;;  %v988_v10 = vld [vmem:[%s1175_s29 + $0x54] ss:$8 sps:$4 sm:$0xff]  }
  0x22   : > { %394 = vmatpush1.bf16.msra.mxu0 %v978_v2  ;;  %520 = vmatpush1.bf16.msra.mxu1 %v981_v5  ;;  %v987_v9 = vld [vmem:[%s1175_s29 + $0xe0] ss:$8 sps:$4 sm:$0xff]   ;;  %v990_v11 = vld [vmem:[%s1175_s29 + $0x50] ss:$8 sps:$4 sm:$0xff]   ;;  %v991_v12 = vld [vmem:[%s1175_s29 + $0xd4] ss:$8 sps:$4 sm:$0xff]  }
  0x23   : > { %395 = vmatprep.subr.bf16.mxu0 %v982_v6  ;;  %521 = vmatprep.subr.bf16.mxu1 %v985_v8  ;;  %v994_v13 = vld [vmem:[%s1175_s29 + $0x44] ss:$8 sps:$4 sm:$0xff]   ;;  %v993_v14 = vld [vmem:[%s1175_s29 + $0xd0] ss:$8 sps:$4 sm:$0xff]   ;;  %v996_v16 = vld [vmem:[%s1175_s29 + $0x40] ss:$8 sps:$4 sm:$0xff]  }
  0x24   : > { %v997_v15 = vld [vmem:[%s1175_s29 + $0xc4] ss:$8 sps:$4 sm:$0xff]   ;;  %v1000_v17 = vld [vmem:[%s1175_s29 + $0x34] ss:$8 sps:$4 sm:$0xff]   ;;  %v999_v18 = vld [vmem:[%s1175_s29 + $0xc0] ss:$8 sps:$4 sm:$0xff]  }
  0x25   : > { %v1003_v19 = vld [vmem:[%s1175_s29 + $0xb4] ss:$8 sps:$4 sm:$0xff]   ;;  %v1002_v20 = vld [vmem:[%s1175_s29 + $0x30] ss:$8 sps:$4 sm:$0xff]   ;;  %v1006_v21 = vld [vmem:[%s1175_s29 + $0x24] ss:$8 sps:$4 sm:$0xff]  }
  0x26   : > { %396 = vmatpush1.bf16.msra.mxu0 %v984_v7  ;;  %522 = vmatpush1.bf16.msra.mxu1 %v987_v9  ;;  %v1005_v22 = vld [vmem:[%s1175_s29 + $0xb0] ss:$8 sps:$4 sm:$0xff]   ;;  %v1009_v23 = vld [vmem:[%s1175_s29 + $0xa4] ss:$8 sps:$4 sm:$0xff]   ;;  %v1008_v24 = vld [vmem:[%s1175_s29 + $0x20] ss:$8 sps:$4 sm:$0xff]  }
  0x27   : > { %397 = vmatprep.subr.bf16.mxu0 %v988_v10  ;;  %523 = vmatprep.subr.bf16.mxu1 %v991_v12  ;;  %v1012_v25 = vld [vmem:[%s1175_s29 + $0x14] ss:$8 sps:$4 sm:$0xff]   ;;  %v1011_v26 = vld [vmem:[%s1175_s29 + $0xa0] ss:$8 sps:$4 sm:$0xff]   ;;  %v1014_v28 = vld [vmem:[%s1175_s29 + $0x10] ss:$8 sps:$4 sm:$0xff]  }
  0x28   : > { %v1015_v27 = vld [vmem:[%s1175_s29 + $0x94] ss:$8 sps:$4 sm:$0xff]   ;;  %v1018_v29 = vld [vmem:[%s1175_s29 + $0x4] ss:$8 sps:$4 sm:$0xff]   ;;  %v1017_v30 = vld [vmem:[%s1175_s29 + $0x90] ss:$8 sps:$4 sm:$0xff]  }
  0x29   : > { %v1021_v31 = vld [vmem:[%s1175_s29 + $0x84] ss:$8 sps:$4 sm:$0xff]   ;;  %v1020_v32 = vld [vmem:[%s1175_s29] ss:$8 sps:$4 sm:$0xff]   ;;  %v1026_v33 = vld [vmem:[%s1175_s29 + $0x174] ss:$8 sps:$4 sm:$0xff]  }
  0x2a   : > { %398 = vmatpush1.bf16.msra.mxu0 %v990_v11  ;;  %524 = vmatpush1.bf16.msra.mxu1 %v993_v14  ;;  %v1023_v34 = vld [vmem:[%s1175_s29 + $0x80] ss:$8 sps:$4 sm:$0xff]   ;;  %v1024_v36 = vld [vmem:[%s1175_s29 + $0x170] ss:$8 sps:$4 sm:$0xff]   ;;  %v1029_v37 = vld [vmem:[%s1175_s29 + $0x164] ss:$8 sps:$4 sm:$0xff]  }
  0x2b   : > { %399 = vmatprep.subr.bf16.mxu0 %v994_v13  ;;  %525 = vmatprep.subr.bf16.mxu1 %v997_v15  ;;  %v261_v35 = vld [vmem:[%s1180_s4] sm:$0xf]  ;;  %v262_v38 = vld [vmem:[%s1180_s4 + $0xc] sm:$0xf]  ;;  %v1032_v40 = vld [vmem:[%s1175_s29 + $0x154] ss:$8 sps:$4 sm:$0xff]  }
  0x2c   : > { %v1027_v39 = vld [vmem:[%s1175_s29 + $0x160] ss:$8 sps:$4 sm:$0xff]   ;;  %v1030_v41 = vld [vmem:[%s1175_s29 + $0x150] ss:$8 sps:$4 sm:$0xff]   ;;  %v1035_v42 = vld [vmem:[%s1175_s29 + $0x144] ss:$8 sps:$4 sm:$0xff]  }
  0x2d   : > { %v1033_v43 = vld [vmem:[%s1175_s29 + $0x140] ss:$8 sps:$4 sm:$0xff]   ;;  %v1038_v44 = vld [vmem:[%s1175_s29 + $0x134] ss:$8 sps:$4 sm:$0xff]   ;;  %v1036_v45 = vld [vmem:[%s1175_s29 + $0x130] ss:$8 sps:$4 sm:$0xff]  }
  0x2e   : > { %400 = vmatpush1.bf16.msra.mxu0 %v996_v16  ;;  %526 = vmatpush1.bf16.msra.mxu1 %v999_v18  ;;  %v1041_v46 = vld [vmem:[%s1175_s29 + $0x124] ss:$8 sps:$4 sm:$0xff]   ;;  %v1039_v47 = vld [vmem:[%s1175_s29 + $0x120] ss:$8 sps:$4 sm:$0xff]   ;;  %v1044_v48 = vld [vmem:[%s1175_s29 + $0x114] ss:$8 sps:$4 sm:$0xff]  }
  0x2f   : > { %401 = vmatprep.subr.bf16.mxu0 %v1000_v17  ;;  %527 = vmatprep.subr.bf16.mxu1 %v1003_v19  ;;  %v1042_v49 = vld [vmem:[%s1175_s29 + $0x110] ss:$8 sps:$4 sm:$0xff]   ;;  %v1047_v50 = vld [vmem:[%s1175_s29 + $0x104] ss:$8 sps:$4 sm:$0xff]   ;;  %v1045_v51 = vld [vmem:[%s1175_s29 + $0x100] ss:$8 sps:$4 sm:$0xff]  }
  0x30   : > { %v263_v52 = vld [vmem:[%s1180_s4 + $0x18] sm:$0x3]  ;;  %v312_v62 = vld [vmem:[#allocation2] sm:$0xff] }
  0x32   : > { %402 = vmatpush1.bf16.msra.mxu0 %v1002_v20  ;;  %528 = vmatpush1.bf16.msra.mxu1 %v1005_v22 }
  0x33   : > { %403 = vmatprep.subr.bf16.mxu0 %v1006_v21  ;;  %529 = vmatprep.subr.bf16.mxu1 %v1009_v23 }
  0x36   : > { %404 = vmatpush1.bf16.msra.mxu0 %v1008_v24  ;;  %530 = vmatpush1.bf16.msra.mxu1 %v1011_v26 }
  0x37   : > { %405 = vmatprep.subr.bf16.mxu0 %v1012_v25  ;;  %531 = vmatprep.subr.bf16.mxu1 %v1015_v27 }
  0x3a   : > { %406 = vmatpush1.bf16.msra.mxu0 %v1014_v28  ;;  %532 = vmatpush1.bf16.msra.mxu1 %v1017_v30 }
  0x3b   : > { %407 = vmatprep.subr.bf16.mxu0 %v1018_v29  ;;  %533 = vmatprep.subr.bf16.mxu1 %v1021_v31 }
  0x3e   : > { %408 = vmatpush1.bf16.msra.mxu0 %v1020_v32  ;;  %534 = vmatpush1.bf16.msra.mxu1 %v1023_v34 }
  0x3f   : > { %645 = vmatprep.subr.bf16.mxu0 %v1026_v33 }
  0x41   : > { %426 = vmatmul.mubr.bf16.vlgmr.msra.gmra.mxu0 %v261_v35  ;;  %552 = vmatmul.mubr.bf16.vlgmr.msra.gmra.mxu1 %v262_v38 }
  0x42   : > { %646 = vmatpush1.bf16.msra.mxu0 %v1024_v36  ;;  %677 = vmatprep.mubr.bf16.mxu0 %v1105_v3 }
  0x43   : > { %647 = vmatprep.subr.bf16.mxu0 %v1029_v37 }
  0x46   : > { %648 = vmatpush1.bf16.msra.mxu0 %v1027_v39 }
  0x47   : > { %649 = vmatprep.subr.bf16.mxu0 %v1032_v40 }
  0x4a   : > { %650 = vmatpush1.bf16.msra.mxu0 %v1030_v41 }
  0x4b   : > { %651 = vmatprep.subr.bf16.mxu0 %v1035_v42 }
  0x4e   : > { %652 = vmatpush1.bf16.msra.mxu0 %v1033_v43 }
  0x4f   : > { %653 = vmatprep.subr.bf16.mxu0 %v1038_v44 }
  0x52   : > { %654 = vmatpush1.bf16.msra.mxu0 %v1036_v45 }
  0x53   : > { %655 = vmatprep.subr.bf16.mxu0 %v1041_v46 }
  0x56   : > { %656 = vmatpush1.bf16.msra.mxu0 %v1039_v47 }
  0x57   : > { %657 = vmatprep.subr.bf16.mxu0 %v1044_v48 }
  0x5a   : > { %658 = vmatpush1.bf16.msra.mxu0 %v1042_v49 }
  0x5b   : > { %659 = vmatprep.subr.bf16.mxu0 %v1047_v50 }
  0x5e   : > { %660 = vmatpush1.bf16.msra.mxu0 %v1045_v51 }
  0x61   : > { %678 = vmatmul.mubr.bf16.vlgmr.msra.gmra.mxu0 %v263_v52 }
 0x101   : > { %v427_v53 = vpop.f32.mrf.mxu0  ;;  %v553_v55 = vpop.f32.mrf.mxu1 }
 0x103   : > { %v429_v54 = vpop.f32.mrf.mxu0  ;;  %v555_v57 = vpop.f32.mrf.mxu1 }
 0x104   : > { %v436_v61 = vcombine.low %v427_v53, %v429_v54  ;;  %v562_v0 = vcombine.low %v553_v55, %v555_v57 }
 0x105   : > { %v431_v56 = vpop.f32.mrf.mxu0  ;;  %v557_v59 = vpop.f32.mrf.mxu1 }
 0x106   : > { %v438_v63 = vadd.f32 %v436_v61, %v312_v62 }
 0x107   : > { %v432_v58 = vpop.f32.mrf.mxu0  ;;  %v558_v60 = vpop.f32.mrf.mxu1 }
 0x108   : > { %v564_v3 = vadd.f32 %v562_v0, %v438_v63 }
 0x121   : > { %v679_v1 = vpop.f32.mrf.mxu0 }
 0x123   : > { %v681_v2 = vpop.f32.mrf.mxu0 }
 0x124   : > { %v688_v4 = vcombine.low %v679_v1, %v681_v2  ;;  %695 = sbr.rel (%p910_p11) target bundleno = 311 (0x137), region = 36 }
 0x125   : > { %v683_v5 = vpop.f32.mrf.mxu0 }
 0x126   : > { %v690_v6 = vadd.f32 %v688_v4, %v564_v3 }
 0x127   : > { %v684_v7 = vpop.f32.mrf.mxu0 }
 0x128   : > { %691 = vst [vmem:[#allocation2] sm:$0xff] %v690_v6 }
 0x12f   : > { %v696_v8 = vld [vmem:[#allocation2] sm:$0xff] }
 0x130   : > { %v697_v9 = vmax.f32 %v696_v8, 0.0 }
 0x132   : > { %v699_v10 = vcombine.high %v697_v9, %v697_v9 }
 0x134   : > { %v911_v11 = vpack.c.bf16 %v699_v10, %v697_v9 }
 0x136   : > { %912 = vst.sshfl [vmem:[%s1186_s21] sm:$0x33 pattern:$0x76325410] %v911_v11 }
 0x137 PF: > { %s12_s15 = sadd.s32 1, %s1102_s15   ;;  %s1269_s9 = smov %s1090_s12 }
 0x138   : > { %p9_p12 = scmp.ge.s32.totalorder %s12_s15, 26   ;;  %s1270_s10 = smov %s1094_s13 }
 0x139   : > { %s1271_s11 = smov %s1098_s14  ;;  %s1272_s12 = smov %s1276_s16 }
 0x13a   : > { %s1273_s13 = smov %s1280_s17  ;;  %s1274_s14 = smov %s1284_s18 }
 0x13b   :  { %11 = sbr.rel (!%p9_p12) target bundleno = 4 (0x4), region = 69 }

// kernel: deepv3plus_forward.19
= control target key start
LH: loop header
LB: loop body
LE: loop exit
PB: predicated region body
PF: predicated region fallthrough
CT: control target
= control target key end

     0   :  { %s307_s6 = smov 0   ;;  %s309_s7 = smov 0   ;;  %s340_s0 = inlined_call_operand.vmem [shape: bf16[2,16,128], index: 0, kind: input, shape index: {}]   ;;  %s341_s1 = inlined_call_operand.vmem [shape: bf16[2,1,128], index: 1, kind: output, shape index: {}]  }
   0x1   :  { %s311_s8 = smov 0  }
   0x2 LB: > { %s23_s9 = sadd.s32 1, %s290_s7  ;;  %p237_p0 = scmp.ge.s32.totalorder %s294_s8, 1  ;;  %s294_s8 = sphi %s311_s8, %s11_s8   ;;  %s290_s7 = sphi %s309_s7, %s343_s7   ;;  %s286_s6 = sphi %s307_s6, %s342_s6  }
   0x3   : > { %p25_p1 = scmp.ge.s32.totalorder %s23_s9, 2  ;;  %p106_p2 = scmp.lt.s32.totalorder %s294_s8, 3 }
   0x5   : > { %s345_s9 = smov (%p25_p1, %s23_s9), 0  ;;  %p107_p3 = pnand %p237_p0, %p106_p2 }
   0x6   : > { %p129_p4 = scmp.lt.s32.totalorder (!%p107_p3), %s286_s6, 1 }
   0x7   : > { %110 = sbr.rel (%p107_p3) target bundleno = 48 (0x30), region = 24 }
   0xc   : > { %v296_v0 = vmov 0.0   ;;  %s347_s6 = smov (!%p129_p4, %s286_s6), 1  ;;  %vm166_vm0 = vcmask 1040384   ;;  %vm167_vm1 = vsmask.f32 256 }
   0xd   : > { %145 = vst [vmem:[#allocation2] sm:$0x1] %v296_v0  ;;  %s242_s10 = sshll.u32 %s347_s6, 3  ;;  %s140_s16 = scalar_lea.vmem %s341_s1, %s347_s6  ;;  %vm168_vm2 = vmand %vm166_vm0, %vm167_vm1 }
   0xe   : > { %s136_s13 = scalar_lea.vmem %s340_s0, %s242_s10  ;;  %v169_v15 = vld [vmem:[%s140_s16] sm:$0x1] }
   0xf   : > { %v244_v1 = vld [vmem:[%s136_s13] sm:$0xff]  }
  0x10   : > { %v245_v2 = vunpack.c.l.bf16 %v244_v1  ;;  %v246_v3 = vunpack.c.h.bf16 %v244_v1 }
  0x12   : > { %v151_v4 = vadd.f32 %v246_v3, %v245_v2 }
  0x14   : > { %v152_v5 = vrot.slane %v151_v4, 4  ;;  %v146_v10 = vld [vmem:[#allocation2] sm:$0x1] }
  0x16   : > { %v153_v6 = vadd.f32 %v152_v5, %v151_v4 }
  0x18   : > { %v154_v7 = vrot.slane %v153_v6, 2 }
  0x1a   : > { %v155_v8 = vadd.f32 %v154_v7, %v153_v6 }
  0x1c   : > { %v156_v9 = vrot.slane %v155_v8, 1 }
  0x1e   : > { %v157_v11 = vadd.f32 %v156_v9, %v155_v8 }
  0x20   : > { %v158_v12 = vadd.f32 %v157_v11, %v146_v10 }
  0x22   : > { %159 = vst [vmem:[#allocation2] sm:$0x1] %v158_v12 }
  0x29   : > { %v163_v13 = vld [vmem:[#allocation2] sm:$0x1] }
  0x2a   : > { %v164_v14 = vmul.f32 0.0625, %v163_v13 }
  0x2c   : > { %v165_v16 = vpack.c.bf16 %v164_v14, %v164_v14 }
  0x2e   : > { %v170_v17 = vsel %vm168_vm2, %v165_v16, %v169_v15 }
  0x2f   : > { %171 = vst [vmem:[%s140_s16] sm:$0x1] %v170_v17 }
  0x30 PF: > { %s11_s8 = sadd.s32 1, %s294_s8   ;;  %s342_s6 = smov %s290_s7 }
  0x31   : > { %p8_p5 = scmp.ge.s32.totalorder %s11_s8, 4   ;;  %s343_s7 = smov %s345_s9 }
  0x33   :  { %10 = sbr.rel (!%p8_p5) target bundleno = 2 (0x2), region = 62 }

// kernel: deepv3plus_forward.22
= control target key start
LH: loop header
LB: loop body
LE: loop exit
PB: predicated region body
PF: predicated region fallthrough
CT: control target
= control target key end

     0   :  { %s1128_s9 = smov 0   ;;  %s1130_s10 = smov 0   ;;  %s1273_s0 = inlined_call_operand.vmem [shape: bf16[2,28,28,128], index: 0, kind: input, shape index: {}]   ;;  %s1274_s1 = inlined_call_operand.vmem [shape: bf16[3,384,256], index: 1, kind: input, shape index: {}]   ;;  %s1275_s2 = inlined_call_operand.vmem [shape: bf16[2,4,4,256], index: 2, kind: output, shape index: {}]  }
   0x1   :  { %s1132_s11 = smov 0   ;;  %s1134_s12 = smov 0  }
   0x2   :  { %s1136_s13 = smov 0   ;;  %s1138_s14 = smov 0  }
   0x3   :  { %s1140_s15 = smov 0  }
   0x4 LB: > { %s27_s16 = sadd.s32 1, %s1097_s12  ;;  %s34_s17 = sadd.s32 1, %s1101_s13  ;;  %s1109_s15 = sphi %s1140_s15, %s12_s15   ;;  %s1105_s14 = sphi %s1138_s14, %s1281_s14   ;;  %s1101_s13 = sphi %s1136_s13, %s1280_s13   ;;  %s1097_s12 = sphi %s1134_s12, %s1279_s12   ;;  %s1093_s11 = sphi %s1132_s11, %s1278_s11   ;;  %s1089_s10 = sphi %s1130_s10, %s1277_s10   ;;  %s1085_s9 = sphi %s1128_s9, %s1276_s9  }
   0x5   : > { %p28_p0 = scmp.ge.s32.totalorder %s27_s16, 3  ;;  %p860_p1 = scmp.ge.s32.totalorder %s1109_s15, 1 }
   0x6   : > { %p173_p2 = scmp.lt.s32.totalorder %s1109_s15, 25  ;;  %s38_s18 = sadd.s32 1, %s1105_s14 }
   0x7   : > { %s1283_s16 = smov (%p28_p0, %s27_s16), 0  ;;  %s1285_s17 = smov (!%p28_p0, %s34_s17), %s1101_s13 }
   0x8   : > { %p174_p3 = pnand %p860_p1, %p173_p2  ;;  %p36_p4 = scmp.ge.s32.totalorder %s1285_s17, 4 }
   0x9   : > { %s218_s19 = smul.u32 (!%p174_p3), 12, %s1085_s9  ;;  %p220_p6 = scmp.lt.s32.totalorder (!%p174_p3), %s1093_s11, 1 }
   0xa   : > { %s1287_s17 = smov (%p36_p4, %s1285_s17), 0  ;;  %s1289_s18 = smov (!%p36_p4, %s38_s18), %s1105_s14 }
   0xb   : > { %p40_p5 = scmp.ge.s32.totalorder %s1289_s18, 2  ;;  %177 = sbr.rel (%p174_p3) target bundleno = 310 (0x136), region = 28 }
   0xc   : > { %s219_s20 = sadd.s32 (!%p174_p3), %s1089_s10, %s218_s19  ;;  %p232_p7 = scmp.lt.s32.totalorder (!%p174_p3), %s1085_s9, 2 }
   0xd   : > { %s1291_s18 = smov (%p40_p5, %s1289_s18), 0  ;;  %p222_p8 = scmp.lt.s32.totalorder (!%p174_p3), %s219_s20, 27 }
   0xe   : > { %p244_p9 = scmp.lt.s32.totalorder (!%p174_p3), %s1089_s10, 3  ;;  %p867_p10 = scmp.ne.s32.totalorder (!%p174_p3), %s1085_s9, 0 }
  0x10   : > { %s1293_s11 = smov (!%p220_p6, %s1093_s11), 1  ;;  %s1295_s20 = smov (!%p222_p8, %s219_s20), 27 }
  0x11   : > { %s922_s21 = smul.u32 112, %s1293_s11  ;;  %s861_s23 = sshll.u32 %s1295_s20, 2 }
  0x12   : > { %s233_s22 = scalar_select %p232_p7, %s1085_s9, 2 }
  0x13   : > { %s226_s24 = sadd.s32 %s922_s21, %s861_s23  ;;  %s865_s27 = sshll.u32 %s1293_s11, 3 }
  0x14   : > { %s923_s25 = smul.u32 384, %s233_s22  ;;  %s862_s26 = sshll.u32 %s226_s24, 2 }
  0x15   : > { %s1182_s30 = scalar_lea.vmem %s1273_s0, %s862_s26  ;;  %s1297_s10 = smov (!%p244_p9, %s1089_s10), 3 }
  0x16   : > { %s1187_s5 = scalar_lea.vmem %s1274_s1, %s923_s25  ;;  %s864_s6 = sshll.u32 %s1297_s10, 1 }
  0x17   : > { %s251_s7 = sadd.s32 %s865_s27, %s864_s6  ;;  %259 = sbr.rel (%p867_p10) target bundleno = 30 (0x1e), region = 32 }
  0x18   : > { %s866_s8 = sshll.u32 %s251_s7, 1 }
  0x19   : > { %s1193_s21 = scalar_lea.vmem %s1275_s2, %s866_s8 }
  0x1c   : > { %v1111_v0 = vmov 0.0  }
  0x1d   : > { %260 = vst [vmem:[#allocation2] sm:$0xff] %v1111_v0 }
  0x1e PF: > { %v982_v1 = vld [vmem:[%s1187_s5 + $0x74] ss:$8 sps:$4 sm:$0xff]   ;;  %v984_v2 = vld [vmem:[%s1187_s5 + $0x70] ss:$8 sps:$4 sm:$0xff]   ;;  %v1112_v3 = vmov 0   ;;  %p917_p11 = scmp.ne.s32.totalorder %s1085_s9, 2 }
  0x1f   : > { %425 = vmatprep.mubr.bf16.mxu0 %v1112_v3  ;;  %556 = vmatprep.mubr.bf16.mxu1 %v1112_v3  ;;  %v985_v4 = vld [vmem:[%s1187_s5 + $0xf4] ss:$8 sps:$4 sm:$0xff]   ;;  %v987_v5 = vld [vmem:[%s1187_s5 + $0xf0] ss:$8 sps:$4 sm:$0xff]   ;;  %v988_v6 = vld [vmem:[%s1187_s5 + $0x64] ss:$8 sps:$4 sm:$0xff]  }
  0x20   : > { %393 = vmatprep.subr.bf16.mxu0 %v982_v1  ;;  %v990_v7 = vld [vmem:[%s1187_s5 + $0x60] ss:$8 sps:$4 sm:$0xff]   ;;  %524 = vmatprep.subr.bf16.mxu1 %v985_v4  ;;  %v991_v8 = vld [vmem:[%s1187_s5 + $0xe4] ss:$8 sps:$4 sm:$0xff]   ;;  %v994_v10 = vld [vmem:[%s1187_s5 + $0x54] ss:$8 sps:$4 sm:$0xff]  }
  0x21   : > { %394 = vmatpush1.bf16.msra.mxu0 %v984_v2  ;;  %525 = vmatpush1.bf16.msra.mxu1 %v987_v5  ;;  %v993_v9 = vld [vmem:[%s1187_s5 + $0xe0] ss:$8 sps:$4 sm:$0xff]   ;;  %v996_v11 = vld [vmem:[%s1187_s5 + $0x50] ss:$8 sps:$4 sm:$0xff]   ;;  %v997_v12 = vld [vmem:[%s1187_s5 + $0xd4] ss:$8 sps:$4 sm:$0xff]  }
  0x22   : > { %395 = vmatprep.subr.bf16.mxu0 %v988_v6  ;;  %526 = vmatprep.subr.bf16.mxu1 %v991_v8  ;;  %v1000_v13 = vld [vmem:[%s1187_s5 + $0x44] ss:$8 sps:$4 sm:$0xff]   ;;  %v999_v14 = vld [vmem:[%s1187_s5 + $0xd0] ss:$8 sps:$4 sm:$0xff]   ;;  %v1002_v16 = vld [vmem:[%s1187_s5 + $0x40] ss:$8 sps:$4 sm:$0xff]  }
  0x23   : > { %v1003_v15 = vld [vmem:[%s1187_s5 + $0xc4] ss:$8 sps:$4 sm:$0xff]   ;;  %v1006_v17 = vld [vmem:[%s1187_s5 + $0x34] ss:$8 sps:$4 sm:$0xff]   ;;  %v1005_v18 = vld [vmem:[%s1187_s5 + $0xc0] ss:$8 sps:$4 sm:$0xff]  }
  0x24   : > { %v1009_v19 = vld [vmem:[%s1187_s5 + $0xb4] ss:$8 sps:$4 sm:$0xff]   ;;  %v1008_v20 = vld [vmem:[%s1187_s5 + $0x30] ss:$8 sps:$4 sm:$0xff]   ;;  %v1012_v21 = vld [vmem:[%s1187_s5 + $0x24] ss:$8 sps:$4 sm:$0xff]  }
  0x25   : > { %396 = vmatpush1.bf16.msra.mxu0 %v990_v7  ;;  %527 = vmatpush1.bf16.msra.mxu1 %v993_v9  ;;  %v1011_v22 = vld [vmem:[%s1187_s5 + $0xb0] ss:$8 sps:$4 sm:$0xff]   ;;  %v1015_v23 = vld [vmem:[%s1187_s5 + $0xa4] ss:$8 sps:$4 sm:$0xff]   ;;  %v1014_v24 = vld [vmem:[%s1187_s5 + $0x20] ss:$8 sps:$4 sm:$0xff]  }
  0x26   : > { %397 = vmatprep.subr.bf16.mxu0 %v994_v10  ;;  %528 = vmatprep.subr.bf16.mxu1 %v997_v12  ;;  %v1018_v25 = vld [vmem:[%s1187_s5 + $0x14] ss:$8 sps:$4 sm:$0xff]   ;;  %v1017_v26 = vld [vmem:[%s1187_s5 + $0xa0] ss:$8 sps:$4 sm:$0xff]   ;;  %v1020_v28 = vld [vmem:[%s1187_s5 + $0x10] ss:$8 sps:$4 sm:$0xff]  }
  0x27   : > { %v1021_v27 = vld [vmem:[%s1187_s5 + $0x94] ss:$8 sps:$4 sm:$0xff]   ;;  %v1024_v29 = vld [vmem:[%s1187_s5 + $0x4] ss:$8 sps:$4 sm:$0xff]   ;;  %v1023_v30 = vld [vmem:[%s1187_s5 + $0x90] ss:$8 sps:$4 sm:$0xff]  }
  0x28   : > { %v1027_v31 = vld [vmem:[%s1187_s5 + $0x84] ss:$8 sps:$4 sm:$0xff]   ;;  %v1026_v32 = vld [vmem:[%s1187_s5] ss:$8 sps:$4 sm:$0xff]   ;;  %v1032_v33 = vld [vmem:[%s1187_s5 + $0x174] ss:$8 sps:$4 sm:$0xff]  }
  0x29   : > { %398 = vmatpush1.bf16.msra.mxu0 %v996_v11  ;;  %529 = vmatpush1.bf16.msra.mxu1 %v999_v14  ;;  %v1033_v34 = vld [vmem:[%s1182_s30 + $0x4] ss:$0 sps:$4 sm:$0xff]   ;;  %v1029_v35 = vld [vmem:[%s1187_s5 + $0x80] ss:$8 sps:$4 sm:$0xff]   ;;  %v1030_v37 = vld [vmem:[%s1187_s5 + $0x170] ss:$8 sps:$4 sm:$0xff]  }
  0x2a   : > { %399 = vmatprep.subr.bf16.mxu0 %v1000_v13  ;;  %530 = vmatprep.subr.bf16.mxu1 %v1003_v15  ;;  %v261_v36 = vld [vmem:[%s1182_s30] sm:$0xf]  ;;  %v442_v38 = vrot.slane %v1033_v34, 2  ;;  %v1036_v39 = vld [vmem:[%s1187_s5 + $0x164] ss:$8 sps:$4 sm:$0xff]  }
  0x2b   : > { %v1034_v40 = vld [vmem:[%s1187_s5 + $0x160] ss:$8 sps:$4 sm:$0xff]   ;;  %v1039_v41 = vld [vmem:[%s1187_s5 + $0x154] ss:$8 sps:$4 sm:$0xff]   ;;  %v1037_v42 = vld [vmem:[%s1187_s5 + $0x150] ss:$8 sps:$4 sm:$0xff]  }
  0x2c   : > { %v1042_v43 = vld [vmem:[%s1187_s5 + $0x144] ss:$8 sps:$4 sm:$0xff]   ;;  %v1040_v44 = vld [vmem:[%s1187_s5 + $0x140] ss:$8 sps:$4 sm:$0xff]   ;;  %v1045_v45 = vld [vmem:[%s1187_s5 + $0x134] ss:$8 sps:$4 sm:$0xff]  }
  0x2d   : > { %400 = vmatpush1.bf16.msra.mxu0 %v1002_v16  ;;  %531 = vmatpush1.bf16.msra.mxu1 %v1005_v18  ;;  %v1043_v46 = vld [vmem:[%s1187_s5 + $0x130] ss:$8 sps:$4 sm:$0xff]   ;;  %v1048_v47 = vld [vmem:[%s1187_s5 + $0x124] ss:$8 sps:$4 sm:$0xff]   ;;  %v1046_v48 = vld [vmem:[%s1187_s5 + $0x120] ss:$8 sps:$4 sm:$0xff]  }
  0x2e   : > { %401 = vmatprep.subr.bf16.mxu0 %v1006_v17  ;;  %532 = vmatprep.subr.bf16.mxu1 %v1009_v19  ;;  %v1051_v49 = vld [vmem:[%s1187_s5 + $0x114] ss:$8 sps:$4 sm:$0xff]   ;;  %v1049_v50 = vld [vmem:[%s1187_s5 + $0x110] ss:$8 sps:$4 sm:$0xff]   ;;  %v1054_v51 = vld [vmem:[%s1187_s5 + $0x104] ss:$8 sps:$4 sm:$0xff]  }
  0x2f   : > { %v1052_v52 = vld [vmem:[%s1187_s5 + $0x100] ss:$8 sps:$4 sm:$0xff]   ;;  %v263_v53 = vld [vmem:[%s1182_s30 + $0xc] sm:$0x3] }
  0x30   : > { %v312_v63 = vld [vmem:[#allocation2] sm:$0xff] }
  0x31   : > { %402 = vmatpush1.bf16.msra.mxu0 %v1008_v20  ;;  %533 = vmatpush1.bf16.msra.mxu1 %v1011_v22 }
  0x32   : > { %403 = vmatprep.subr.bf16.mxu0 %v1012_v21  ;;  %534 = vmatprep.subr.bf16.mxu1 %v1015_v23 }
  0x35   : > { %404 = vmatpush1.bf16.msra.mxu0 %v1014_v24  ;;  %535 = vmatpush1.bf16.msra.mxu1 %v1017_v26 }
  0x36   : > { %405 = vmatprep.subr.bf16.mxu0 %v1018_v25  ;;  %536 = vmatprep.subr.bf16.mxu1 %v1021_v27 }
  0x39   : > { %406 = vmatpush1.bf16.msra.mxu0 %v1020_v28  ;;  %537 = vmatpush1.bf16.msra.mxu1 %v1023_v30 }
  0x3a   : > { %407 = vmatprep.subr.bf16.mxu0 %v1024_v29  ;;  %538 = vmatprep.subr.bf16.mxu1 %v1027_v31 }
  0x3d   : > { %408 = vmatpush1.bf16.msra.mxu0 %v1026_v32  ;;  %539 = vmatpush1.bf16.msra.mxu1 %v1029_v35 }
  0x3e   : > { %650 = vmatprep.subr.bf16.mxu0 %v1032_v33 }
  0x40   : > { %426 = vmatmul.mubr.bf16.vlgmr.msra.gmra.mxu0 %v261_v36  ;;  %557 = vmatmul.mubr.bf16.vlgmr.msra.gmra.mxu1 %v442_v38 }
  0x41   : > { %651 = vmatpush1.bf16.msra.mxu0 %v1030_v37  ;;  %682 = vmatprep.mubr.bf16.mxu0 %v1112_v3 }
  0x42   : > { %652 = vmatprep.subr.bf16.mxu0 %v1036_v39 }
  0x45   : > { %653 = vmatpush1.bf16.msra.mxu0 %v1034_v40 }
  0x46   : > { %654 = vmatprep.subr.bf16.mxu0 %v1039_v41 }
  0x49   : > { %655 = vmatpush1.bf16.msra.mxu0 %v1037_v42 }
  0x4a   : > { %656 = vmatprep.subr.bf16.mxu0 %v1042_v43 }
  0x4d   : > { %657 = vmatpush1.bf16.msra.mxu0 %v1040_v44 }
  0x4e   : > { %658 = vmatprep.subr.bf16.mxu0 %v1045_v45 }
  0x51   : > { %659 = vmatpush1.bf16.msra.mxu0 %v1043_v46 }
  0x52   : > { %660 = vmatprep.subr.bf16.mxu0 %v1048_v47 }
  0x55   : > { %661 = vmatpush1.bf16.msra.mxu0 %v1046_v48 }
  0x56   : > { %662 = vmatprep.subr.bf16.mxu0 %v1051_v49 }
  0x59   : > { %663 = vmatpush1.bf16.msra.mxu0 %v1049_v50 }
  0x5a   : > { %664 = vmatprep.subr.bf16.mxu0 %v1054_v51 }
  0x5d   : > { %665 = vmatpush1.bf16.msra.mxu0 %v1052_v52 }
  0x60   : > { %683 = vmatmul.mubr.bf16.vlgmr.msra.gmra.mxu0 %v263_v53 }
 0x100   : > { %v427_v54 = vpop.f32.mrf.mxu0  ;;  %v558_v56 = vpop.f32.mrf.mxu1 }
 0x102   : > { %v429_v55 = vpop.f32.mrf.mxu0  ;;  %v560_v58 = vpop.f32.mrf.mxu1 }
 0x103   : > { %v436_v62 = vcombine.low %v427_v54, %v429_v55  ;;  %v567_v1 = vcombine.low %v558_v56, %v560_v58 }
 0x104   : > { %v431_v57 = vpop.f32.mrf.mxu0  ;;  %v562_v60 = vpop.f32.mrf.mxu1 }
 0x105   : > { %v438_v0 = vadd.f32 %v436_v62, %v312_v63 }
 0x106   : > { %v432_v59 = vpop.f32.mrf.mxu0  ;;  %v563_v61 = vpop.f32.mrf.mxu1 }
 0x107   : > { %v569_v4 = vadd.f32 %v567_v1, %v438_v0 }
 0x120   : > { %v684_v2 = vpop.f32.mrf.mxu0 }
 0x122   : > { %v686_v3 = vpop.f32.mrf.mxu0 }
 0x123   : > { %v693_v5 = vcombine.low %v684_v2, %v686_v3  ;;  %700 = sbr.rel (%p917_p11) target bundleno = 310 (0x136), region = 36 }
 0x124   : > { %v688_v6 = vpop.f32.mrf.mxu0 }
 0x125   : > { %v695_v7 = vadd.f32 %v693_v5, %v569_v4 }
 0x126   : > { %v689_v8 = vpop.f32.mrf.mxu0 }
 0x127   : > { %696 = vst [vmem:[#allocation2] sm:$0xff] %v695_v7 }
 0x12e   : > { %v701_v9 = vld [vmem:[#allocation2] sm:$0xff] }
 0x12f   : > { %v702_v10 = vmax.f32 %v701_v9, 0.0 }
 0x131   : > { %v704_v11 = vcombine.high %v702_v10, %v702_v10 }
 0x133   : > { %v918_v12 = vpack.c.bf16 %v704_v11, %v702_v10 }
 0x135   : > { %919 = vst.sshfl [vmem:[%s1193_s21] sm:$0x33 pattern:$0x76325410] %v918_v12 }
 0x136 PF: > { %s12_s15 = sadd.s32 1, %s1109_s15   ;;  %s1276_s9 = smov %s1097_s12 }
 0x137   : > { %p9_p12 = scmp.ge.s32.totalorder %s12_s15, 26   ;;  %s1277_s10 = smov %s1101_s13 }
 0x138   : > { %s1278_s11 = smov %s1105_s14  ;;  %s1279_s12 = smov %s1283_s16 }
 0x139   : > { %s1280_s13 = smov %s1287_s17  ;;  %s1281_s14 = smov %s1291_s18 }
 0x13a   :  { %11 = sbr.rel (!%p9_p12) target bundleno = 4 (0x4), region = 69 }

// kernel: deepv3plus_forward.20
= control target key start
LH: loop header
LB: loop body
LE: loop exit
PB: predicated region body
PF: predicated region fallthrough
CT: control target
= control target key end

     0   :  { %s648_s9 = smov 0   ;;  %s650_s10 = smov 0   ;;  %s735_s0 = inlined_call_operand.vmem [shape: bf16[8,128], index: 0, kind: input, shape index: {}]   ;;  %s736_s1 = inlined_call_operand.vmem [shape: bf16[128,256], index: 1, kind: input, shape index: {}]   ;;  %s737_s2 = inlined_call_operand.vmem [shape: bf16[8,256], index: 2, kind: output, shape index: {}]  }
   0x1   :  { %s652_s11 = smov 0   ;;  %s654_s12 = smov 0  }
   0x2   :  { %s656_s13 = smov 0  }
   0x3 LB: > { %s21_s14 = sadd.s32 1, %s625_s12  ;;  %p64_p1 = scmp.ne.s32.totalorder %s617_s10, %s613_s9  ;;  %s629_s13 = sphi %s656_s13, %s12_s13   ;;  %s625_s12 = sphi %s654_s12, %s741_s12   ;;  %s621_s11 = sphi %s652_s11, %s740_s11   ;;  %s617_s10 = sphi %s650_s10, %s739_s10   ;;  %s613_s9 = sphi %s648_s9, %s738_s9  }
   0x4   : > { %p22_p0 = scmp.ge.s32.totalorder %s21_s14, 2  ;;  %p65_p2 = scmp.eq.s32.totalorder %s629_s13, 0 }
   0x5   : > { %s57_s16 = sadd.s32 1, %s617_s10  ;;  %p496_p5 = scmp.ge.s32.totalorder %s629_s13, 2 }
   0x6   : > { %s743_s14 = smov (%p22_p0, %s21_s14), 0  ;;  %p66_p3 = por %p65_p2, %p64_p1 }
   0x7   : > { %s54_s15 = ssub.s32 %s625_s12, %s743_s14  ;;  %125 = sbr.rel (%p496_p5) target bundleno = 26 (0x1a), region = 20 }
   0x8   : > { %p55_p4 = scmp.eq.s32.totalorder %s54_s15, 0 }
   0xa   : > { %s683_s17 = scalar_select %p55_p4, %s617_s10, %s57_s16  }
   0xc   : > { %128 = sbr.rel (!%p66_p3) target bundleno = 26 (0x1a), region = 24  ;;  %s130_s18 = sand.u32 (%p66_p3), 1, %s617_s10  }
   0xd   : > { %s498_s19 = sshll.u32 (%p66_p3), %s625_s12, 2  ;;  %s497_s20 = sshll.u32 (%p66_p3), %s130_s18, 6 }
   0xe   : > { %s691_s23 = scalar_lea.vmem (%p66_p3), %s736_s1, %s498_s19  ;;  %s132_s24 = scalar_lea.vmem (%p66_p3), [#allocation2], %s497_s20 }
   0xf   : > { %v151_v0 = vld [vmem:[%s691_s23] sm:$0xf] (%p66_p3)  ;;  %v153_v1 = vld [vmem:[%s691_s23 + $0x8] sm:$0xf] (%p66_p3)  ;;  %v155_v2 = vld [vmem:[%s691_s23 + $0x10] sm:$0xf] (%p66_p3) }
  0x10   : > { %152 = vst [vmem:[%s132_s24] sm:$0xf] (%p66_p3), %v151_v0  ;;  %154 = vst [vmem:[%s132_s24 + $0x4] sm:$0xf] (%p66_p3), %v153_v1  ;;  %v157_v3 = vld [vmem:[%s691_s23 + $0x18] sm:$0xf] (%p66_p3) }
  0x11   : > { %v159_v4 = vld [vmem:[%s691_s23 + $0x20] sm:$0xf]  ;;  %156 = vst [vmem:[%s132_s24 + $0x8] sm:$0xf] %v155_v2  ;;  %158 = vst [vmem:[%s132_s24 + $0xc] sm:$0xf] %v157_v3 }
  0x12   : > { %160 = vst [vmem:[%s132_s24 + $0x10] sm:$0xf] %v159_v4  ;;  %v161_v5 = vld [vmem:[%s691_s23 + $0x28] sm:$0xf]  ;;  %v163_v6 = vld [vmem:[%s691_s23 + $0x30] sm:$0xf] }
  0x13   : > { %v165_v7 = vld [vmem:[%s691_s23 + $0x38] sm:$0xf]  ;;  %162 = vst [vmem:[%s132_s24 + $0x14] sm:$0xf] %v161_v5  ;;  %164 = vst [vmem:[%s132_s24 + $0x18] sm:$0xf] %v163_v6 }
  0x14   : > { %166 = vst [vmem:[%s132_s24 + $0x1c] sm:$0xf] %v165_v7  ;;  %v167_v8 = vld [vmem:[%s691_s23 + $0x40] sm:$0xf]  ;;  %v169_v9 = vld [vmem:[%s691_s23 + $0x48] sm:$0xf] }
  0x15   : > { %v171_v10 = vld [vmem:[%s691_s23 + $0x50] sm:$0xf]  ;;  %168 = vst [vmem:[%s132_s24 + $0x20] sm:$0xf] %v167_v8  ;;  %170 = vst [vmem:[%s132_s24 + $0x24] sm:$0xf] %v169_v9 }
  0x16   : > { %172 = vst [vmem:[%s132_s24 + $0x28] sm:$0xf] %v171_v10  ;;  %v173_v11 = vld [vmem:[%s691_s23 + $0x58] sm:$0xf]  ;;  %v175_v12 = vld [vmem:[%s691_s23 + $0x60] sm:$0xf] }
  0x17   : > { %v177_v13 = vld [vmem:[%s691_s23 + $0x68] sm:$0xf]  ;;  %174 = vst [vmem:[%s132_s24 + $0x2c] sm:$0xf] %v173_v11  ;;  %176 = vst [vmem:[%s132_s24 + $0x30] sm:$0xf] %v175_v12 }
  0x18   : > { %178 = vst [vmem:[%s132_s24 + $0x34] sm:$0xf] %v177_v13  ;;  %v179_v14 = vld [vmem:[%s691_s23 + $0x70] sm:$0xf]  ;;  %v181_v15 = vld [vmem:[%s691_s23 + $0x78] sm:$0xf] }
  0x19   : > { %180 = vst [vmem:[%s132_s24 + $0x38] sm:$0xf] %v179_v14  ;;  %182 = vst [vmem:[%s132_s24 + $0x3c] sm:$0xf] %v181_v15 }
  0x1a PF: > { %p499_p6 = scmp.ge.s32.totalorder %s629_s13, 1  ;;  %p237_p7 = scmp.lt.s32.totalorder %s629_s13, 3 }
  0x1c   : > { %p238_p8 = pnand %p499_p6, %p237_p7 }
  0x1d   : > { %s244_s25 = sand.u32 (!%p238_p8), 1, %s613_s9   ;;  %p278_p9 = scmp.lt.s32.totalorder (!%p238_p8), %s621_s11, 1 }
  0x1e   : > { %241 = sbr.rel (%p238_p8) target bundleno = 267 (0x10b), region = 65  ;;  %s500_s26 = sshll.u32 (!%p238_p8), %s244_s25, 6 }
  0x1f   : > { %s246_s27 = scalar_lea.vmem (!%p238_p8), [#allocation2], %s500_s26 }
  0x23   : > { %v631_v16 = vmov 0.0   ;;  %vm632_vm0 = vmmov 0   ;;  %v583_v17 = vld [vmem:[%s246_s27 + $0x38] sm:$0xff]   ;;  %v584_v18 = vld [vmem:[%s246_s27 + $0x30] sm:$0xff]   ;;  %v585_v19 = vld [vmem:[%s246_s27 + $0x28] sm:$0xff]   ;;  %s745_s11 = smov (!%p278_p9, %s621_s11), 1 }
  0x24   : > { %521 = vmatprep.subr.bf16.mxu0 %v631_v16  ;;  %537 = vmatprep.mubr.msk.bf16.mxu0 %vm632_vm0, %v631_v16  ;;  %v586_v20 = vld [vmem:[%s246_s27 + $0x20] sm:$0xff]   ;;  %v587_v21 = vld [vmem:[%s246_s27 + $0x18] sm:$0xff]   ;;  %v588_v22 = vld [vmem:[%s246_s27 + $0x10] sm:$0xff]   ;;  %s501_s30 = sshll.u32 %s745_s11, 2 }
  0x25   : > { %522 = vmatpush3.bf16.msra.mxu0 %v583_v17  ;;  %v589_v23 = vld [vmem:[%s246_s27 + $0x8] sm:$0xff]   ;;  %v590_v24 = vld [vmem:[%s246_s27] sm:$0xff]   ;;  %s283_s5 = scalar_lea.vmem %s737_s2, %s501_s30 }
  0x26   : > { %523 = vmatprep.subr.bf16.mxu0 %v631_v16  ;;  %v285_v25 = vld [vmem:[%s735_s0] sm:$0xf] }
  0x29   : > { %524 = vmatpush3.bf16.msra.mxu0 %v584_v18 }
  0x2a   : > { %525 = vmatprep.subr.bf16.mxu0 %v631_v16 }
  0x2d   : > { %526 = vmatpush3.bf16.msra.mxu0 %v585_v19 }
  0x2e   : > { %527 = vmatprep.subr.bf16.mxu0 %v631_v16 }
  0x31   : > { %528 = vmatpush3.bf16.msra.mxu0 %v586_v20 }
  0x32   : > { %529 = vmatprep.subr.bf16.mxu0 %v631_v16 }
  0x35   : > { %530 = vmatpush3.bf16.msra.mxu0 %v587_v21 }
  0x36   : > { %531 = vmatprep.subr.bf16.mxu0 %v631_v16 }
  0x39   : > { %532 = vmatpush3.bf16.msra.mxu0 %v588_v22 }
  0x3a   : > { %533 = vmatprep.subr.bf16.mxu0 %v631_v16 }
  0x3d   : > { %534 = vmatpush3.bf16.msra.mxu0 %v589_v23 }
  0x3e   : > { %535 = vmatprep.subr.bf16.mxu0 %v631_v16 }
  0x41   : > { %536 = vmatpush3.bf16.msra.mxu0 %v590_v24 }
  0x44   : > { %538 = vmatmul.mubr.bf16.vlgmr.msra.gmra.mxu0 %v285_v25 }
 0x104   : > { %v384_v26 = vpop.f32.mrf.mxu0 }
 0x105   : > { %v390_v27 = vmax.f32 %v384_v26, 0.0 }
 0x106   : > { %v539_v28 = vpop.f32.mrf.mxu0 }
 0x107   : > { %v391_v29 = vpack.c.bf16 %v390_v27, %v390_v27 }
 0x108   : > { %v387_v30 = vpop.f32.mrf.mxu0 }
 0x109   : > { %392 = vst [vmem:[%s283_s5] sm:$0xf] %v391_v29 }
 0x10a   : > { %v540_v31 = vpop.f32.mrf.mxu0 }
 0x10b PF: > { %s12_s13 = sadd.s32 1, %s629_s13   ;;  %s738_s9 = smov %s617_s10 }
 0x10c   : > { %p9_p10 = scmp.ge.s32.totalorder %s12_s13, 4   ;;  %s739_s10 = smov %s683_s17 }
 0x10d   : > { %s740_s11 = smov %s625_s12  ;;  %s741_s12 = smov %s743_s14 }
 0x10e   :  { %11 = sbr.rel (!%p9_p10) target bundleno = 3 (0x3), region = 107 }

// kernel: deepv3plus_forward.21
= control target key start
LH: loop header
LB: loop body
LE: loop exit
PB: predicated region body
PF: predicated region fallthrough
CT: control target
= control target key end

     0   :  { %s757_s9 = smov 0   ;;  %s759_s10 = smov 0   ;;  %s857_s0 = inlined_call_operand.vmem [shape: bf16[32,128], index: 0, kind: input, shape index: {}]   ;;  %s858_s1 = inlined_call_operand.vmem [shape: bf16[128,256], index: 1, kind: input, shape index: {}]   ;;  %s859_s2 = inlined_call_operand.vmem [shape: bf16[32,256], index: 2, kind: output, shape index: {}]  }
   0x1   :  { %s761_s11 = smov 0   ;;  %s763_s12 = smov 0  }
   0x2   :  { %s765_s13 = smov 0  }
   0x3 LB: > { %s21_s14 = sadd.s32 1, %s736_s12  ;;  %s579_s15 = sadd.s32 4294967295, %s740_s13   ;;  %s740_s13 = sphi %s765_s13, %s12_s13   ;;  %s736_s12 = sphi %s763_s12, %s864_s12   ;;  %s732_s11 = sphi %s761_s11, %s863_s11   ;;  %s728_s10 = sphi %s759_s10, %s862_s10   ;;  %s724_s9 = sphi %s757_s9, %s861_s9  }
   0x4   : > { %p22_p0 = scmp.ge.s32.totalorder %s21_s14, 2  ;;  %p64_p1 = scmp.ne.s32.totalorder %s728_s10, %s724_s9 }
   0x5   : > { %p65_p2 = scmp.eq.s32.totalorder %s740_s13, 0  ;;  %p96_p4 = scmp.eq.s32.totalorder %s579_s15, 1 }
   0x6   : > { %s866_s14 = smov (%p22_p0, %s21_s14), 0  ;;  %s57_s17 = sadd.s32 1, %s728_s10 }
   0x7   : > { %p66_p3 = por %p65_p2, %p64_p1  ;;  %s54_s16 = ssub.s32 %s736_s12, %s866_s14 }
   0x8   : > { %p55_p5 = scmp.eq.s32.totalorder %s54_s16, 0  ;;  %p792_p6 = por %p96_p4, %p64_p1 }
   0x9   : > { %p583_p7 = scmp.ge.s32.totalorder %s740_s13, 2 }
   0xa   : > { %s797_s19 = scalar_select %p55_p5, %s728_s10, %s57_s17  }
   0xb   : > { %127 = sbr.rel (%p583_p7) target bundleno = 30 (0x1e), region = 20 }
  0x10   : > { %130 = sbr.rel (!%p66_p3) target bundleno = 30 (0x1e), region = 24  ;;  %s132_s20 = sand.u32 (%p66_p3), 1, %s728_s10  }
  0x11   : > { %s585_s21 = sshll.u32 (%p66_p3), %s736_s12, 2  ;;  %s584_s22 = sshll.u32 (%p66_p3), %s132_s20, 6 }
  0x12   : > { %s805_s25 = scalar_lea.vmem (%p66_p3), %s858_s1, %s585_s21  ;;  %s134_s26 = scalar_lea.vmem (%p66_p3), [#allocation2], %s584_s22 }
  0x13   : > { %v153_v0 = vld [vmem:[%s805_s25] sm:$0xf] (%p66_p3)  ;;  %v155_v1 = vld [vmem:[%s805_s25 + $0x8] sm:$0xf] (%p66_p3)  ;;  %v157_v2 = vld [vmem:[%s805_s25 + $0x10] sm:$0xf] (%p66_p3) }
  0x14   : > { %154 = vst [vmem:[%s134_s26] sm:$0xf] (%p66_p3), %v153_v0  ;;  %156 = vst [vmem:[%s134_s26 + $0x4] sm:$0xf] (%p66_p3), %v155_v1  ;;  %v159_v3 = vld [vmem:[%s805_s25 + $0x18] sm:$0xf] (%p66_p3) }
  0x15   : > { %v161_v4 = vld [vmem:[%s805_s25 + $0x20] sm:$0xf]  ;;  %158 = vst [vmem:[%s134_s26 + $0x8] sm:$0xf] %v157_v2  ;;  %160 = vst [vmem:[%s134_s26 + $0xc] sm:$0xf] %v159_v3 }
  0x16   : > { %162 = vst [vmem:[%s134_s26 + $0x10] sm:$0xf] %v161_v4  ;;  %v163_v5 = vld [vmem:[%s805_s25 + $0x28] sm:$0xf]  ;;  %v165_v6 = vld [vmem:[%s805_s25 + $0x30] sm:$0xf] }
  0x17   : > { %v167_v7 = vld [vmem:[%s805_s25 + $0x38] sm:$0xf]  ;;  %164 = vst [vmem:[%s134_s26 + $0x14] sm:$0xf] %v163_v5  ;;  %166 = vst [vmem:[%s134_s26 + $0x18] sm:$0xf] %v165_v6 }
  0x18   : > { %168 = vst [vmem:[%s134_s26 + $0x1c] sm:$0xf] %v167_v7  ;;  %v169_v8 = vld [vmem:[%s805_s25 + $0x40] sm:$0xf]  ;;  %v171_v9 = vld [vmem:[%s805_s25 + $0x48] sm:$0xf] }
  0x19   : > { %v173_v10 = vld [vmem:[%s805_s25 + $0x50] sm:$0xf]  ;;  %170 = vst [vmem:[%s134_s26 + $0x20] sm:$0xf] %v169_v8  ;;  %172 = vst [vmem:[%s134_s26 + $0x24] sm:$0xf] %v171_v9 }
  0x1a   : > { %174 = vst [vmem:[%s134_s26 + $0x28] sm:$0xf] %v173_v10  ;;  %v175_v11 = vld [vmem:[%s805_s25 + $0x58] sm:$0xf]  ;;  %v177_v12 = vld [vmem:[%s805_s25 + $0x60] sm:$0xf] }
  0x1b   : > { %v179_v13 = vld [vmem:[%s805_s25 + $0x68] sm:$0xf]  ;;  %176 = vst [vmem:[%s134_s26 + $0x2c] sm:$0xf] %v175_v11  ;;  %178 = vst [vmem:[%s134_s26 + $0x30] sm:$0xf] %v177_v12 }
  0x1c   : > { %180 = vst [vmem:[%s134_s26 + $0x34] sm:$0xf] %v179_v13  ;;  %v181_v14 = vld [vmem:[%s805_s25 + $0x70] sm:$0xf]  ;;  %v183_v15 = vld [vmem:[%s805_s25 + $0x78] sm:$0xf] }
  0x1d   : > { %182 = vst [vmem:[%s134_s26 + $0x38] sm:$0xf] %v181_v14  ;;  %184 = vst [vmem:[%s134_s26 + $0x3c] sm:$0xf] %v183_v15 }
  0x1e PF: > { %p586_p8 = scmp.ge.s32.totalorder %s740_s13, 1  ;;  %p239_p9 = scmp.lt.s32.totalorder %s740_s13, 3 }
  0x20   : > { %p240_p10 = pnand %p586_p8, %p239_p9 }
  0x21   : > { %s246_s27 = sand.u32 (!%p240_p10), 1, %s724_s9  }
  0x22   : > { %243 = sbr.rel (%p240_p10) target bundleno = 284 (0x11c), region = 65  ;;  %s587_s30 = sshll.u32 (!%p240_p10), %s246_s27, 6 }
  0x23   : > { %s248_s3 = scalar_lea.vmem (!%p240_p10), [#allocation2], %s587_s30  ;;  %s588_s6 = sshll.u32 (!%p240_p10), %s246_s27, 4 }
  0x24   : > { %s270_s7 = scalar_lea.vmem (!%p240_p10), [#allocation3], %s588_s6 }
  0x27   : > { %v700_v16 = vld [vmem:[%s857_s0] sm:$0xff]   ;;  %v692_v17 = vld [vmem:[%s248_s3 + $0x38] sm:$0xff]   ;;  %v693_v18 = vld [vmem:[%s248_s3 + $0x30] sm:$0xff]   ;;  %s604_s8 = sshll.u32 (%p792_p6), %s732_s11, 2 }
  0x28   : > { %648 = vmatprep.mubr.bf16.mxu0 %v700_v16  ;;  %632 = vmatprep.subr.bf16.mxu0 %v692_v17  ;;  %v694_v19 = vld [vmem:[%s248_s3 + $0x28] sm:$0xff]   ;;  %v695_v20 = vld [vmem:[%s248_s3 + $0x20] sm:$0xff]   ;;  %v696_v21 = vld [vmem:[%s248_s3 + $0x18] sm:$0xff]   ;;  %s443_s16 = scalar_lea.vmem (%p792_p6), %s859_s2, %s604_s8 }
  0x29   : > { %633 = vmatpush3.bf16.msra.mxu0 %v692_v17  ;;  %v697_v22 = vld [vmem:[%s248_s3 + $0x10] sm:$0xff]   ;;  %v698_v23 = vld [vmem:[%s248_s3 + $0x8] sm:$0xff]   ;;  %v699_v24 = vld [vmem:[%s248_s3] sm:$0xff]  }
  0x2a   : > { %634 = vmatprep.subr.bf16.mxu0 %v693_v18  ;;  %v701_v25 = vld [vmem:[%s857_s0 + $0x8] sm:$0xff]  }
  0x2d   : > { %635 = vmatpush3.bf16.msra.mxu0 %v693_v18 }
  0x2e   : > { %636 = vmatprep.subr.bf16.mxu0 %v694_v19 }
  0x31   : > { %637 = vmatpush3.bf16.msra.mxu0 %v694_v19 }
  0x32   : > { %638 = vmatprep.subr.bf16.mxu0 %v695_v20 }
  0x35   : > { %639 = vmatpush3.bf16.msra.mxu0 %v695_v20 }
  0x36   : > { %640 = vmatprep.subr.bf16.mxu0 %v696_v21 }
  0x39   : > { %641 = vmatpush3.bf16.msra.mxu0 %v696_v21 }
  0x3a   : > { %642 = vmatprep.subr.bf16.mxu0 %v697_v22 }
  0x3d   : > { %643 = vmatpush3.bf16.msra.mxu0 %v697_v22 }
  0x3e   : > { %644 = vmatprep.subr.bf16.mxu0 %v698_v23 }
  0x41   : > { %645 = vmatpush3.bf16.msra.mxu0 %v698_v23 }
  0x42   : > { %646 = vmatprep.subr.bf16.mxu0 %v699_v24 }
  0x45   : > { %647 = vmatpush3.bf16.msra.mxu0 %v699_v24 }
  0x48   : > { %649 = vmatmul.mubr.bf16.vlgmr.msra.gmra.mxu0 %v701_v25 }
 0x108   : > { %v650_v26 = vpop.f32.mrf.mxu0 }
 0x109   : > { %v410_v29 = vmax.f32 %v650_v26, 0.0 }
 0x10a   : > { %v393_v27 = vpop.f32.mrf.mxu0 }
 0x10b   : > { %v408_v32 = vmax.f32 %v393_v27, 0.0 }
 0x10c   : > { %v651_v28 = vpop.f32.mrf.mxu0 }
 0x10d   : > { %v411_v30 = vmax.f32 %v651_v28, 0.0 }
 0x10e   : > { %v396_v31 = vpop.f32.mrf.mxu0 }
 0x10f   : > { %v619_v33 = vpack.c.bf16 %v411_v30, %v410_v29  ;;  %v409_v34 = vmax.f32 %v396_v31, 0.0  ;;  %438 = sbr.rel (!%p792_p6) target bundleno = 284 (0x11c), region = 73 }
 0x111   : > { %621 = vst [vmem:[%s270_s7 + $0x8] sm:$0xff] %v619_v33   ;;  %v614_v35 = vpack.c.bf16 %v409_v34, %v408_v32 }
 0x113   : > { %615 = vst [vmem:[%s270_s7] sm:$0xff] %v614_v35  }
 0x118   : > { %v464_v38 = vld [vmem:[%s270_s7 + $0x8] sm:$0xf]  ;;  %v466_v39 = vld [vmem:[%s270_s7 + $0xc] sm:$0xf] }
 0x119   : > { %465 = vst [vmem:[%s443_s16 + $0x10] sm:$0xf] %v464_v38  ;;  %467 = vst [vmem:[%s443_s16 + $0x18] sm:$0xf] %v466_v39 }
 0x11a   : > { %v460_v36 = vld [vmem:[%s270_s7] sm:$0xf]  ;;  %v462_v37 = vld [vmem:[%s270_s7 + $0x4] sm:$0xf] }
 0x11b   : > { %461 = vst [vmem:[%s443_s16] sm:$0xf] %v460_v36  ;;  %463 = vst [vmem:[%s443_s16 + $0x8] sm:$0xf] %v462_v37 }
 0x11c PF: > { %s12_s13 = sadd.s32 1, %s740_s13   ;;  %s861_s9 = smov %s728_s10 }
 0x11d   : > { %p9_p11 = scmp.ge.s32.totalorder %s12_s13, 4   ;;  %s862_s10 = smov %s797_s19 }
 0x11e   : > { %s863_s11 = smov %s736_s12  ;;  %s864_s12 = smov %s866_s14 }
 0x11f   :  { %11 = sbr.rel (!%p9_p11) target bundleno = 3 (0x3), region = 148 }

// kernel: deepv3plus_forward.27
= control target key start
LH: loop header
LB: loop body
LE: loop exit
PB: predicated region body
PF: predicated region fallthrough
CT: control target
= control target key end

     0   :  { %s752_s0 = inlined_call_operand.vmem [shape: s32[16], index: 0, kind: input, shape index: {}]   ;;  %s753_s2 = inlined_call_operand.vmem [shape: bf16[2,4,4,256], index: 2, kind: input, shape index: {}, may-alias: {2,3}]   ;;  %s754_s3 = inlined_call_operand.vmem [shape: bf16[2,4,4,256], index: 3, kind: input, shape index: {}, may-alias: {2,3}]   ;;  %s755_s4 = inlined_call_operand.vmem [shape: f32[16,4], index: 4, kind: input, shape index: {}]   ;;  %s756_s5 = inlined_call_operand.vmem [shape: bf16[2,16,16,256], index: 5, kind: output, shape index: {}]   ;;  %s757_s1 = inlined_call_operand.vmem [shape: s32[16], index: 1, kind: input, shape index: {}]  }
   0x1   :  { %s10_s20 = sshll.u32 %s752_s0, 4  ;;  %s14_s23 = sshll.u32 %s757_s1, 4  ;;  %s11_s20 = int_to_ptr.vmem [resolvable:$true] %s10_s20  ;;  %s15_s23 = int_to_ptr.vmem [resolvable:$true] %s14_s23 }
   0x2   :  { %s575_s24 = scalar_lea.vmem %s11_s20, 16  ;;  %p580_p1 = scmp.lt.s32.totalorder %s11_s20, %s11_s20 }
   0x3   :  { %p576_p0 = scmp.ne.s32.totalorder %s11_s20, %s575_s24  ;;  %p581_p2 = scmp.lt.s32.totalorder %s575_s24, %s575_s24 }
   0x5   :  { %p582_p3 = por %p581_p2, %p580_p1 }
   0x7   :  { %p583_p4 = pnand %p582_p3, %p576_p0 }
   0x9   :  { %586 = shalt.err (!%p583_p4)  }
   0xa   :  { %s641_s25 = smov [#allocation3]   ;;  %s587_s26 = scalar_lea.vmem %s15_s23, 16 }
   0xb   :  { %13 = dma.vmem_to_smem %s11_s20, 16, %s641_s25, [#allocation2] }
   0xc   :  { %p588_p5 = scmp.ne.s32.totalorder %s15_s23, %s587_s26  ;;  %p592_p6 = scmp.lt.s32.totalorder %s15_s23, %s15_s23 }
   0xd   :  { %p593_p7 = scmp.lt.s32.totalorder %s587_s26, %s587_s26 }
   0xf   :  { %p594_p8 = por %p593_p7, %p592_p6 }
  0x11   :  { %p595_p9 = pnand %p594_p8, %p588_p5 }
  0x13   :  { %598 = shalt.err (!%p595_p9)  }
  0x14   :  { %s642_s0 = smov [#allocation4]  }
  0x15   :  { %17 = dma.vmem_to_smem %s15_s23, 16, %s642_s0, [#allocation2] }
  0x16   :  { %619 = dma.done.wait [#allocation2], 32 }
  0x17   :  { %620 = vsyncadd [#allocation2], 4294967264 }
  0x18   :  { %19 = sfence }
  0x19   :  { %s680_s1 = smov 0   ;;  %s682_s27 = smov 0  }
  0x1a   :  { %s684_s28 = smov 0   ;;  %s686_s29 = smov 0  }
  0x1b   :  { %s688_s30 = smov 0  }
  0x1c LB: > { %s34_s6 = sadd.s32 1, %s631_s28  ;;  %s37_s7 = sadd.s32 1, %s635_s29  ;;  %s639_s30 = sphi %s688_s30, %s25_s30   ;;  %s635_s29 = sphi %s686_s29, %s761_s29   ;;  %s631_s28 = sphi %s684_s28, %s760_s28   ;;  %s627_s27 = sphi %s682_s27, %s759_s27   ;;  %s623_s1 = sphi %s680_s1, %s758_s1  }
  0x1d   : > { %p35_p10 = scmp.ge.s32.totalorder %s34_s6, 16  ;;  %p510_p11 = scmp.ge.s32.totalorder %s639_s30, 1 }
  0x1e   : > { %p193_p12 = scmp.lt.s32.totalorder %s639_s30, 33 }
  0x1f   : > { %s763_s6 = smov (%p35_p10, %s34_s6), 0  ;;  %s765_s7 = smov (!%p35_p10, %s37_s7), %s635_s29 }
  0x20   : > { %p194_p13 = pnand %p510_p11, %p193_p12  ;;  %p39_p0 = scmp.ge.s32.totalorder %s765_s7, 2 }
  0x21   : > { %s236_s8 = sld [smem:[#allocation3 + %s623_s1]] (!%p194_p13)  ;;  %p237_p1 = scmp.lt.s32.totalorder (!%p194_p13), %s627_s27, 1 }
  0x22   : > { %s767_s7 = smov (%p39_p0, %s765_s7), 0  ;;  %197 = sbr.rel (%p194_p13) target bundleno = 259 (0x103), region = 32 }
  0x23   : > { %s247_s9 = sld [smem:[#allocation4 + %s623_s1]] (!%p194_p13)  ;;  %s268_s11 = smul.u32 (!%p194_p13), 3, %s623_s1 }
  0x24   : > { %s267_s10 = sld [smem:[#allocation3 + %s623_s1]] (!%p194_p13)  ;;  %p260_p4 = scmp.lt.s32.totalorder (!%p194_p13), %s623_s1, 15 }
  0x27   : > { %v643_v0 = vmov 0.0   ;;  %s769_s27 = smov (!%p237_p1, %s627_s27), 1  ;;  %p239_p2 = scmp.lt.s32.totalorder %s236_s8, 3  ;;  %vm294_vm0 = vcmask 1043456   ;;  %v283_v10 = vld [vmem:[%s755_s4] sm:$0xff]  ;;  %vm287_vm1 = vcmask 31744  }
  0x28   : > { %363 = vmatprep.mubr.f32.mxu0 %v643_v0  ;;  %369 = vmatprep.mubr.f32.mxu1 %v643_v0  ;;  %s512_s12 = sshll.u32 %s769_s27, 3  ;;  %v284_v11 = vld [vmem:[%s755_s4 + $0x8] sm:$0xff]  ;;  %s775_s1 = smov (!%p260_p4, %s623_s1), 15 }
  0x29   : > { %p250_p3 = scmp.lt.s32.totalorder %s247_s9, 3  ;;  %s771_s8 = smov (!%p239_p2, %s236_s8), 3 }
  0x2a   : > { %s511_s13 = sshll.u32 %s771_s8, 1  ;;  %s269_s14 = smul.u32 15, %s267_s10 }
  0x2b   : > { %s773_s9 = smov (!%p250_p3, %s247_s9), 3  ;;  %s243_s15 = sadd.s32 %s512_s12, %s511_s13 }
  0x2c   : > { %s514_s16 = sshll.u32 %s773_s9, 1  ;;  %s513_s17 = sshll.u32 %s243_s15, 1 }
  0x2d   : > { %s254_s18 = sadd.s32 %s514_s16, %s512_s12  ;;  %s245_s21 = scalar_lea.vmem %s753_s2, %s513_s17 }
  0x2e   : > { %s516_s22 = sshll.u32 %s254_s18, 1  ;;  %s270_s26 = ssub.s32 %s268_s11, %s269_s14  ;;  %v275_v1 = vld [vmem:[%s245_s21] sm:$0xf] }
  0x2f   : > { %s256_s25 = scalar_lea.vmem %s754_s3, %s516_s22  ;;  %s271_s0 = scvt.s32.f32 %s270_s26  ;;  %v276_v2 = vunpack.c.l.bf16 %v275_v1 }
  0x30   : > { %v277_v3 = vld [vmem:[%s256_s25] sm:$0xf]  ;;  %s517_s13 = sshll.u32 %s775_s1, 2  ;;  %s518_s14 = sshll.u32 %s769_s27, 6 }
  0x31   : > { %v278_v4 = vunpack.c.l.bf16 %v277_v3  ;;  %s274_s8 = smul.f32 0.06666667, %s271_s0  ;;  %s264_s15 = sadd.s32 %s518_s14, %s517_s13 }
  0x32   : > { %s519_s16 = sshll.u32 %s264_s15, 2 }
  0x33   : > { %v279_v5 = vsub.f32 %v278_v4, %v276_v2  ;;  %v280_v6 = vstv %s274_s8  ;;  %s266_s19 = scalar_lea.vmem %s756_s5, %s519_s16 }
  0x35   : > { %v281_v7 = vmul.f32 %v280_v6, %v279_v5 }
  0x37   : > { %v282_v8 = vadd.f32 %v281_v7, %v276_v2 }
  0x39   : > { %v286_v9 = vcombine.high %v282_v8, %v282_v8 }
  0x3b   : > { %520 = vmatprep.subr.msk.mxu0 %vm294_vm0, %v286_v9  ;;  %530 = vmatprep.subr.msk.mxu1 %vm294_vm0, %v286_v9 }
  0x3c   : > { %521 = vmatpush1.msk.msra.mxu0 %vm294_vm0, %v282_v8  ;;  %531 = vmatpush1.msk.msra.mxu1 %vm294_vm0, %v282_v8 }
  0x3d   : > { %522 = vmatmul.mubr.msk.f32.vlgmr.msra.gmra.mxu0 %vm287_vm1, %v283_v10  ;;  %523 = vmatmul.mubr.msk.f32.vlgmr.msra.gmra.mxu1 %vm287_vm1, %v284_v11 }
  0xfd   : > { %v365_v12 = vpop.f32.mrf.mxu0  ;;  %v371_v13 = vpop.f32.mrf.mxu1 }
  0xff   : > { %v367_v14 = vpop.f32.mrf.mxu0  ;;  %v373_v15 = vpop.f32.mrf.mxu1 }
 0x100   : > { %v528_v16 = vpack.c.bf16 %v367_v14, %v365_v12  ;;  %v529_v17 = vpack.c.bf16 %v373_v15, %v371_v13 }
 0x102   : > { %388 = vst [vmem:[%s266_s19] sm:$0xff] %v528_v16  ;;  %389 = vst [vmem:[%s266_s19 + $0x8] sm:$0xff] %v529_v17 }
 0x103 PF: > { %s25_s30 = sadd.s32 1, %s639_s30   ;;  %s758_s1 = smov %s631_s28 }
 0x104   : > { %p22_p5 = scmp.ge.s32.totalorder %s25_s30, 34   ;;  %s759_s27 = smov %s635_s29 }
 0x105   : > { %s760_s28 = smov %s763_s6  ;;  %s761_s29 = smov %s767_s7 }
 0x106   :  { %24 = sbr.rel (!%p22_p5) target bundleno = 28 (0x1c), region = 65 }

// kernel: deepv3plus_forward.26
= control target key start
LH: loop header
LB: loop body
LE: loop exit
PB: predicated region body
PF: predicated region fallthrough
CT: control target
= control target key end

     0   :  { %s1147_s9 = smov 0   ;;  %s1149_s10 = smov 0   ;;  %s1251_s0 = inlined_call_operand.vmem [shape: bf16[512,64], index: 0, kind: input, shape index: {}]   ;;  %s1252_s1 = inlined_call_operand.vmem [shape: bf16[64,128], index: 1, kind: input, shape index: {}]   ;;  %s1253_s2 = inlined_call_operand.vmem [shape: bf16[512,128], index: 2, kind: output, shape index: {}]  }
   0x1   :  { %s1151_s11 = smov 0  }
   0x2 LB: > { %s24_s12 = sadd.s32 1, %s1126_s10  ;;  %p794_p0 = scmp.ge.s32.totalorder %s1130_s11, 1  ;;  %s1130_s11 = sphi %s1151_s11, %s12_s11   ;;  %s1126_s10 = sphi %s1149_s10, %s1255_s10   ;;  %s1122_s9 = sphi %s1147_s9, %s1254_s9  }
   0x3   : > { %p26_p1 = scmp.ge.s32.totalorder %s24_s12, 2  ;;  %p136_p2 = scmp.lt.s32.totalorder %s1130_s11, 3 }
   0x5   : > { %s1257_s12 = smov (%p26_p1, %s24_s12), 0  ;;  %p137_p3 = pnand %p794_p0, %p136_p2 }
   0x6   : > { %s795_s15 = sshll.u32 (!%p137_p3), %s1122_s9, 5 }
   0x7   : > { %140 = sbr.rel (%p137_p3) target bundleno = 255 (0xff), region = 28  ;;  %p166_p4 = scmp.lt.s32.totalorder (!%p137_p3), %s795_s15, 63 }
   0xc   : > { %v1088_v0 = vld [vmem:[%s1252_s1 + $0x18] sm:$0xff]   ;;  %v1089_v1 = vld [vmem:[%s1252_s1 + $0x10] sm:$0xff]   ;;  %s1259_s15 = smov (!%p166_p4, %s795_s15), 63  ;;  %v1090_v2 = vld [vmem:[%s1252_s1 + $0x8] sm:$0xff]   ;;  %vm329_vm0 = vcmask 523264  }
   0xd   : > { %1016 = vmatprep.subr.bf16.mxu0 %v1088_v0  ;;  %1056 = vmatprep.subr.bf16.mxu1 %v1088_v0  ;;  %s796_s20 = sshll.u32 %s1259_s15, 2  ;;  %v1091_v3 = vld [vmem:[%s1252_s1] sm:$0xff]  }
   0xe   : > { %1017 = vmatpush3.bf16.msra.mxu0 %v1088_v0  ;;  %1060 = vmatpush3.bf16.msra.mxu1 %v1088_v0  ;;  %s1185_s25 = scalar_lea.vmem %s1251_s0, %s796_s20  ;;  %s1224_s28 = scalar_lea.vmem %s1253_s2, %s796_s20 }
   0xf   : > { %1018 = vmatprep.subr.bf16.mxu0 %v1089_v1  ;;  %1057 = vmatprep.subr.bf16.mxu1 %v1089_v1  ;;  %v1092_v4 = vld [vmem:[%s1185_s25] sm:$0xff]   ;;  %v1094_v6 = vld [vmem:[%s1185_s25 + $0x8] sm:$0xff]   ;;  %v1096_v8 = vld [vmem:[%s1185_s25 + $0x10] sm:$0xff]  }
  0x10   : > { %v1093_v5 = vld [vmem:[%s1185_s25 + $0x40] sm:$0xff]   ;;  %1024 = vmatprep.mubr.msk.bf16.mxu0 %vm329_vm0, %v1092_v4  ;;  %v1095_v7 = vld [vmem:[%s1185_s25 + $0x48] sm:$0xff]   ;;  %v1097_v9 = vld [vmem:[%s1185_s25 + $0x50] sm:$0xff]  }
  0x11   : > { %1040 = vmatprep.mubr.msk.bf16.mxu1 %vm329_vm0, %v1093_v5  ;;  %v1098_v10 = vld [vmem:[%s1185_s25 + $0x18] sm:$0xff]   ;;  %v1100_v12 = vld [vmem:[%s1185_s25 + $0x20] sm:$0xff]   ;;  %v1102_v14 = vld [vmem:[%s1185_s25 + $0x28] sm:$0xff]  }
  0x12   : > { %1019 = vmatpush3.bf16.msra.mxu0 %v1089_v1  ;;  %1061 = vmatpush3.bf16.msra.mxu1 %v1089_v1  ;;  %v1099_v11 = vld [vmem:[%s1185_s25 + $0x58] sm:$0xff]   ;;  %v1101_v13 = vld [vmem:[%s1185_s25 + $0x60] sm:$0xff]   ;;  %v1103_v15 = vld [vmem:[%s1185_s25 + $0x68] sm:$0xff]  }
  0x13   : > { %1020 = vmatprep.subr.bf16.mxu0 %v1090_v2  ;;  %1058 = vmatprep.subr.bf16.mxu1 %v1090_v2  ;;  %v1104_v16 = vld [vmem:[%s1185_s25 + $0x30] sm:$0xff]   ;;  %v1106_v18 = vld [vmem:[%s1185_s25 + $0x38] sm:$0xff]  }
  0x14   : > { %v1105_v17 = vld [vmem:[%s1185_s25 + $0x70] sm:$0xff]   ;;  %v1107_v19 = vld [vmem:[%s1185_s25 + $0x78] sm:$0xff]  }
  0x16   : > { %1021 = vmatpush3.bf16.msra.mxu0 %v1090_v2  ;;  %1062 = vmatpush3.bf16.msra.mxu1 %v1090_v2 }
  0x17   : > { %1022 = vmatprep.subr.bf16.mxu0 %v1091_v3  ;;  %1059 = vmatprep.subr.bf16.mxu1 %v1091_v3 }
  0x1a   : > { %1023 = vmatpush3.bf16.msra.mxu0 %v1091_v3  ;;  %1063 = vmatpush3.bf16.msra.mxu1 %v1091_v3 }
  0x1d   : > { %1025 = vmatmul.mubr.msk.bf16.vlgmr.msra.gmra.mxu0 %vm329_vm0, %v1094_v6  ;;  %1041 = vmatmul.mubr.msk.bf16.vlgmr.msra.gmra.mxu1 %vm329_vm0, %v1095_v7 }
  0x1e   : > { %1028 = vmatprep.mubr.msk.bf16.mxu0 %vm329_vm0, %v1096_v8  ;;  %1044 = vmatprep.mubr.msk.bf16.mxu1 %vm329_vm0, %v1097_v9 }
  0x25   : > { %1029 = vmatmul.mubr.msk.bf16.gmra.mxu0 %vm329_vm0, %v1098_v10  ;;  %1045 = vmatmul.mubr.msk.bf16.gmra.mxu1 %vm329_vm0, %v1099_v11 }
  0x26   : > { %1032 = vmatprep.mubr.msk.bf16.mxu0 %vm329_vm0, %v1100_v12  ;;  %1048 = vmatprep.mubr.msk.bf16.mxu1 %vm329_vm0, %v1101_v13 }
  0x2d   : > { %1033 = vmatmul.mubr.msk.bf16.gmra.mxu0 %vm329_vm0, %v1102_v14  ;;  %1049 = vmatmul.mubr.msk.bf16.gmra.mxu1 %vm329_vm0, %v1103_v15 }
  0x2e   : > { %1036 = vmatprep.mubr.msk.bf16.mxu0 %vm329_vm0, %v1104_v16  ;;  %1052 = vmatprep.mubr.msk.bf16.mxu1 %vm329_vm0, %v1105_v17 }
  0x35   : > { %1037 = vmatmul.mubr.msk.bf16.gmra.mxu0 %vm329_vm0, %v1106_v18  ;;  %1053 = vmatmul.mubr.msk.bf16.gmra.mxu1 %vm329_vm0, %v1107_v19 }
  0xdd   : > { %v1026_v20 = vpop.f32.mrf.mxu0  ;;  %v1042_v21 = vpop.f32.mrf.mxu1 }
  0xdf   : > { %v412_v22 = vpop.f32.mrf.mxu0  ;;  %v476_v23 = vpop.f32.mrf.mxu1 }
  0xe1   : > { %v1027_v24 = vpop.f32.mrf.mxu0  ;;  %v1043_v25 = vpop.f32.mrf.mxu1 }
  0xe2   : > { %v909_v26 = vpack.c.bf16 %v1027_v24, %v1026_v20  ;;  %v949_v27 = vpack.c.bf16 %v1043_v25, %v1042_v21 }
  0xe3   : > { %v415_v28 = vpop.f32.mrf.mxu0  ;;  %v479_v29 = vpop.f32.mrf.mxu1 }
  0xe4   : > { %981 = vst [vmem:[%s1224_s28 + $0x8] sm:$0xff] %v909_v26   ;;  %989 = vst [vmem:[%s1224_s28 + $0x48] sm:$0xff] %v949_v27   ;;  %v904_v30 = vpack.c.bf16 %v415_v28, %v412_v22  ;;  %v944_v31 = vpack.c.bf16 %v479_v29, %v476_v23 }
  0xe5   : > { %v1030_v32 = vpop.f32.mrf.mxu0  ;;  %v1046_v33 = vpop.f32.mrf.mxu1 }
  0xe6   : > { %905 = vst [vmem:[%s1224_s28] sm:$0xff] %v904_v30   ;;  %988 = vst [vmem:[%s1224_s28 + $0x40] sm:$0xff] %v944_v31  }
  0xe7   : > { %v428_v34 = vpop.f32.mrf.mxu0  ;;  %v492_v35 = vpop.f32.mrf.mxu1 }
  0xe9   : > { %v1031_v36 = vpop.f32.mrf.mxu0  ;;  %v1047_v37 = vpop.f32.mrf.mxu1 }
  0xea   : > { %v919_v38 = vpack.c.bf16 %v1031_v36, %v1030_v32  ;;  %v959_v39 = vpack.c.bf16 %v1047_v37, %v1046_v33 }
  0xeb   : > { %v431_v40 = vpop.f32.mrf.mxu0  ;;  %v495_v41 = vpop.f32.mrf.mxu1 }
  0xec   : > { %983 = vst [vmem:[%s1224_s28 + $0x18] sm:$0xff] %v919_v38   ;;  %991 = vst [vmem:[%s1224_s28 + $0x58] sm:$0xff] %v959_v39   ;;  %v914_v42 = vpack.c.bf16 %v431_v40, %v428_v34  ;;  %v954_v43 = vpack.c.bf16 %v495_v41, %v492_v35 }
  0xed   : > { %v1034_v44 = vpop.f32.mrf.mxu0  ;;  %v1050_v45 = vpop.f32.mrf.mxu1 }
  0xee   : > { %982 = vst [vmem:[%s1224_s28 + $0x10] sm:$0xff] %v914_v42   ;;  %990 = vst [vmem:[%s1224_s28 + $0x50] sm:$0xff] %v954_v43  }
  0xef   : > { %v444_v46 = vpop.f32.mrf.mxu0  ;;  %v508_v47 = vpop.f32.mrf.mxu1 }
  0xf1   : > { %v1035_v48 = vpop.f32.mrf.mxu0  ;;  %v1051_v49 = vpop.f32.mrf.mxu1 }
  0xf2   : > { %v929_v50 = vpack.c.bf16 %v1035_v48, %v1034_v44  ;;  %v969_v51 = vpack.c.bf16 %v1051_v49, %v1050_v45 }
  0xf3   : > { %v447_v52 = vpop.f32.mrf.mxu0  ;;  %v511_v53 = vpop.f32.mrf.mxu1 }
  0xf4   : > { %985 = vst [vmem:[%s1224_s28 + $0x28] sm:$0xff] %v929_v50   ;;  %993 = vst [vmem:[%s1224_s28 + $0x68] sm:$0xff] %v969_v51   ;;  %v924_v54 = vpack.c.bf16 %v447_v52, %v444_v46  ;;  %v964_v55 = vpack.c.bf16 %v511_v53, %v508_v47 }
  0xf5   : > { %v1038_v56 = vpop.f32.mrf.mxu0  ;;  %v1054_v57 = vpop.f32.mrf.mxu1 }
  0xf6   : > { %984 = vst [vmem:[%s1224_s28 + $0x20] sm:$0xff] %v924_v54   ;;  %992 = vst [vmem:[%s1224_s28 + $0x60] sm:$0xff] %v964_v55  }
  0xf7   : > { %v460_v58 = vpop.f32.mrf.mxu0  ;;  %v524_v59 = vpop.f32.mrf.mxu1 }
  0xf9   : > { %v1039_v60 = vpop.f32.mrf.mxu0  ;;  %v1055_v61 = vpop.f32.mrf.mxu1 }
  0xfa   : > { %v939_v62 = vpack.c.bf16 %v1039_v60, %v1038_v56  ;;  %v979_v63 = vpack.c.bf16 %v1055_v61, %v1054_v57 }
  0xfb   : > { %v463_v0 = vpop.f32.mrf.mxu0  ;;  %v527_v1 = vpop.f32.mrf.mxu1 }
  0xfc   : > { %987 = vst [vmem:[%s1224_s28 + $0x38] sm:$0xff] %v939_v62   ;;  %995 = vst [vmem:[%s1224_s28 + $0x78] sm:$0xff] %v979_v63   ;;  %v934_v2 = vpack.c.bf16 %v463_v0, %v460_v58  ;;  %v974_v3 = vpack.c.bf16 %v527_v1, %v524_v59 }
  0xfe   : > { %986 = vst [vmem:[%s1224_s28 + $0x30] sm:$0xff] %v934_v2   ;;  %994 = vst [vmem:[%s1224_s28 + $0x70] sm:$0xff] %v974_v3  }
  0xff PF: > { %s12_s11 = sadd.s32 1, %s1130_s11   ;;  %s1254_s9 = smov %s1126_s10 }
 0x100   : > { %p9_p5 = scmp.ge.s32.totalorder %s12_s11, 4   ;;  %s1255_s10 = smov %s1257_s12 }
 0x102   :  { %11 = sbr.rel (!%p9_p5) target bundleno = 2 (0x2), region = 61 }

// kernel: deepv3plus_forward.25
= control target key start
LH: loop header
LB: loop body
LE: loop exit
PB: predicated region body
PF: predicated region fallthrough
CT: control target
= control target key end

     0   :  { %s3276_s13 = smov 0   ;;  %s3278_s14 = smov 0   ;;  %s3883_s0 = inlined_call_operand.vmem [shape: bf16[32,256], index: 0, kind: input, shape index: {}]   ;;  %s3884_s1 = inlined_call_operand.vmem [shape: bf16[32,256], index: 1, kind: input, shape index: {}]   ;;  %s3885_s2 = inlined_call_operand.vmem [shape: bf16[32,256], index: 2, kind: input, shape index: {}]   ;;  %s3886_s3 = inlined_call_operand.vmem [shape: bf16[32,256], index: 3, kind: input, shape index: {}]   ;;  %s3887_s4 = inlined_call_operand.vmem [shape: bf16[32,256], index: 4, kind: input, shape index: {}]   ;;  %s3888_s5 = inlined_call_operand.vmem [shape: bf16[256,256], index: 5, kind: input, shape index: {}]   ;;  %s3889_s6 = inlined_call_operand.vmem [shape: bf16[256,256], index: 6, kind: input, shape index: {}]   ;;  %s3890_s7 = inlined_call_operand.vmem [shape: bf16[256,256], index: 7, kind: input, shape index: {}]   ;;  %s3891_s8 = inlined_call_operand.vmem [shape: bf16[256,256], index: 8, kind: input, shape index: {}]   ;;  %s3892_s9 = inlined_call_operand.vmem [shape: bf16[256,256], index: 9, kind: input, shape index: {}]   ;;  %s3893_s10 = inlined_call_operand.vmem [shape: bf16[32,256], index: 10, kind: output, shape index: {}]  }
   0x1   :  { %s3280_s15 = smov 0   ;;  %s3282_s16 = smov 0  }
   0x2   :  { %s3284_s17 = smov 0  }
   0x3 LB: > { %s29_s18 = sadd.s32 1, %s3215_s16  ;;  %s2726_s19 = sadd.s32 4294967295, %s3219_s17   ;;  %s3219_s17 = sphi %s3284_s17, %s20_s17   ;;  %s3215_s16 = sphi %s3282_s16, %s3899_s16   ;;  %s3211_s15 = sphi %s3280_s15, %s3898_s15   ;;  %s3207_s14 = sphi %s3278_s14, %s3897_s14   ;;  %s3203_s13 = sphi %s3276_s13, %s3896_s13  }
   0x4   : > { %p30_p0 = scmp.ge.s32.totalorder %s29_s18, 2  ;;  %p176_p1 = scmp.ne.s32.totalorder %s3207_s14, %s3203_s13 }
   0x5   : > { %p177_p2 = scmp.eq.s32.totalorder %s3219_s17, 0  ;;  %p312_p4 = scmp.eq.s32.totalorder %s2726_s19, 1 }
   0x6   : > { %s3901_s18 = smov (%p30_p0, %s29_s18), 0  ;;  %s169_s22 = sadd.s32 1, %s3207_s14 }
   0x7   : > { %p3308_p3 = por %p177_p2, %p176_p1  ;;  %s166_s21 = ssub.s32 %s3215_s16, %s3901_s18 }
   0x8   : > { %p167_p5 = scmp.eq.s32.totalorder %s166_s21, 0  ;;  %p3315_p6 = por %p312_p4, %p176_p1 }
   0x9   : > { %p2734_p7 = scmp.ge.s32.totalorder %s3219_s17, 2 }
   0xa   : > { %s3320_s24 = scalar_select %p167_p5, %s3207_s14, %s169_s22  }
   0xb   : > { %384 = sbr.rel (%p2734_p7) target bundleno = 141 (0x8d), region = 36 }
  0x10   : > { %387 = sbr.rel (!%p3308_p3) target bundleno = 41 (0x29), region = 40  ;;  %s389_s25 = sand.u32 (%p3308_p3), 1, %s3207_s14  }
  0x11   : > { %s2736_s26 = sshll.u32 (%p3308_p3), %s3215_s16, 2  ;;  %s2735_s27 = sshll.u32 (%p3308_p3), %s389_s25, 7 }
  0x12   : > { %s3330_s30 = scalar_lea.vmem (%p3308_p3), %s3888_s5, %s2736_s26  ;;  %s3334_s11 = scalar_lea.vmem (%p3308_p3), [#allocation2], %s2735_s27 }
  0x13   : > { %v410_v0 = vld [vmem:[%s3330_s30] sm:$0xf] (%p3308_p3)  ;;  %v412_v1 = vld [vmem:[%s3330_s30 + $0x8] sm:$0xf] (%p3308_p3)  ;;  %v414_v2 = vld [vmem:[%s3330_s30 + $0x10] sm:$0xf] (%p3308_p3) }
  0x14   : > { %411 = vst [vmem:[%s3334_s11] sm:$0xf] (%p3308_p3), %v410_v0  ;;  %413 = vst [vmem:[%s3334_s11 + $0x4] sm:$0xf] (%p3308_p3), %v412_v1  ;;  %v416_v3 = vld [vmem:[%s3330_s30 + $0x18] sm:$0xf] (%p3308_p3) }
  0x15   : > { %v418_v4 = vld [vmem:[%s3330_s30 + $0x20] sm:$0xf]  ;;  %415 = vst [vmem:[%s3334_s11 + $0x8] sm:$0xf] %v414_v2  ;;  %417 = vst [vmem:[%s3334_s11 + $0xc] sm:$0xf] %v416_v3 }
  0x16   : > { %419 = vst [vmem:[%s3334_s11 + $0x10] sm:$0xf] %v418_v4  ;;  %v420_v5 = vld [vmem:[%s3330_s30 + $0x28] sm:$0xf]  ;;  %v422_v6 = vld [vmem:[%s3330_s30 + $0x30] sm:$0xf] }
  0x17   : > { %v424_v7 = vld [vmem:[%s3330_s30 + $0x38] sm:$0xf]  ;;  %421 = vst [vmem:[%s3334_s11 + $0x14] sm:$0xf] %v420_v5  ;;  %423 = vst [vmem:[%s3334_s11 + $0x18] sm:$0xf] %v422_v6 }
  0x18   : > { %425 = vst [vmem:[%s3334_s11 + $0x1c] sm:$0xf] %v424_v7  ;;  %v426_v8 = vld [vmem:[%s3330_s30 + $0x40] sm:$0xf]  ;;  %v428_v9 = vld [vmem:[%s3330_s30 + $0x48] sm:$0xf] }
  0x19   : > { %v430_v10 = vld [vmem:[%s3330_s30 + $0x50] sm:$0xf]  ;;  %427 = vst [vmem:[%s3334_s11 + $0x20] sm:$0xf] %v426_v8  ;;  %429 = vst [vmem:[%s3334_s11 + $0x24] sm:$0xf] %v428_v9 }
  0x1a   : > { %431 = vst [vmem:[%s3334_s11 + $0x28] sm:$0xf] %v430_v10  ;;  %v432_v11 = vld [vmem:[%s3330_s30 + $0x58] sm:$0xf]  ;;  %v434_v12 = vld [vmem:[%s3330_s30 + $0x60] sm:$0xf] }
  0x1b   : > { %v436_v13 = vld [vmem:[%s3330_s30 + $0x68] sm:$0xf]  ;;  %433 = vst [vmem:[%s3334_s11 + $0x2c] sm:$0xf] %v432_v11  ;;  %435 = vst [vmem:[%s3334_s11 + $0x30] sm:$0xf] %v434_v12 }
  0x1c   : > { %437 = vst [vmem:[%s3334_s11 + $0x34] sm:$0xf] %v436_v13  ;;  %v438_v14 = vld [vmem:[%s3330_s30 + $0x70] sm:$0xf]  ;;  %v440_v15 = vld [vmem:[%s3330_s30 + $0x78] sm:$0xf] }
  0x1d   : > { %v442_v16 = vld [vmem:[%s3330_s30 + $0x80] sm:$0xf]  ;;  %439 = vst [vmem:[%s3334_s11 + $0x38] sm:$0xf] %v438_v14  ;;  %441 = vst [vmem:[%s3334_s11 + $0x3c] sm:$0xf] %v440_v15 }
  0x1e   : > { %443 = vst [vmem:[%s3334_s11 + $0x40] sm:$0xf] %v442_v16  ;;  %v444_v17 = vld [vmem:[%s3330_s30 + $0x88] sm:$0xf]  ;;  %v446_v18 = vld [vmem:[%s3330_s30 + $0x90] sm:$0xf] }
  0x1f   : > { %v448_v19 = vld [vmem:[%s3330_s30 + $0x98] sm:$0xf]  ;;  %445 = vst [vmem:[%s3334_s11 + $0x44] sm:$0xf] %v444_v17  ;;  %447 = vst [vmem:[%s3334_s11 + $0x48] sm:$0xf] %v446_v18 }
  0x20   : > { %449 = vst [vmem:[%s3334_s11 + $0x4c] sm:$0xf] %v448_v19  ;;  %v450_v20 = vld [vmem:[%s3330_s30 + $0xa0] sm:$0xf]  ;;  %v452_v21 = vld [vmem:[%s3330_s30 + $0xa8] sm:$0xf] }
  0x21   : > { %v454_v22 = vld [vmem:[%s3330_s30 + $0xb0] sm:$0xf]  ;;  %451 = vst [vmem:[%s3334_s11 + $0x50] sm:$0xf] %v450_v20  ;;  %453 = vst [vmem:[%s3334_s11 + $0x54] sm:$0xf] %v452_v21 }
  0x22   : > { %455 = vst [vmem:[%s3334_s11 + $0x58] sm:$0xf] %v454_v22  ;;  %v456_v23 = vld [vmem:[%s3330_s30 + $0xb8] sm:$0xf]  ;;  %v458_v24 = vld [vmem:[%s3330_s30 + $0xc0] sm:$0xf] }
  0x23   : > { %v460_v25 = vld [vmem:[%s3330_s30 + $0xc8] sm:$0xf]  ;;  %457 = vst [vmem:[%s3334_s11 + $0x5c] sm:$0xf] %v456_v23  ;;  %459 = vst [vmem:[%s3334_s11 + $0x60] sm:$0xf] %v458_v24 }
  0x24   : > { %461 = vst [vmem:[%s3334_s11 + $0x64] sm:$0xf] %v460_v25  ;;  %v462_v26 = vld [vmem:[%s3330_s30 + $0xd0] sm:$0xf]  ;;  %v464_v27 = vld [vmem:[%s3330_s30 + $0xd8] sm:$0xf] }
  0x25   : > { %v466_v28 = vld [vmem:[%s3330_s30 + $0xe0] sm:$0xf]  ;;  %463 = vst [vmem:[%s3334_s11 + $0x68] sm:$0xf] %v462_v26  ;;  %465 = vst [vmem:[%s3334_s11 + $0x6c] sm:$0xf] %v464_v27 }
  0x26   : > { %467 = vst [vmem:[%s3334_s11 + $0x70] sm:$0xf] %v466_v28  ;;  %v468_v29 = vld [vmem:[%s3330_s30 + $0xe8] sm:$0xf]  ;;  %v470_v30 = vld [vmem:[%s3330_s30 + $0xf0] sm:$0xf] }
  0x27   : > { %v472_v31 = vld [vmem:[%s3330_s30 + $0xf8] sm:$0xf]  ;;  %469 = vst [vmem:[%s3334_s11 + $0x74] sm:$0xf] %v468_v29  ;;  %471 = vst [vmem:[%s3334_s11 + $0x78] sm:$0xf] %v470_v30 }
  0x28   : > { %473 = vst [vmem:[%s3334_s11 + $0x7c] sm:$0xf] %v472_v31 }
  0x29 PF: > { %561 = sbr.rel (!%p3308_p3) target bundleno = 66 (0x42), region = 81  ;;  %s563_s12 = sand.u32 (%p3308_p3), 1, %s3207_s14  }
  0x2a   : > { %s2738_s19 = sshll.u32 (%p3308_p3), %s3215_s16, 2  ;;  %s2737_s21 = sshll.u32 (%p3308_p3), %s563_s12, 7 }
  0x2b   : > { %s3405_s26 = scalar_lea.vmem (%p3308_p3), %s3889_s6, %s2738_s19  ;;  %s3409_s27 = scalar_lea.vmem (%p3308_p3), [#allocation3], %s2737_s21 }
  0x2c   : > { %v584_v32 = vld [vmem:[%s3405_s26] sm:$0xf] (%p3308_p3)  ;;  %v586_v33 = vld [vmem:[%s3405_s26 + $0x8] sm:$0xf] (%p3308_p3)  ;;  %v588_v34 = vld [vmem:[%s3405_s26 + $0x10] sm:$0xf] (%p3308_p3) }
  0x2d   : > { %585 = vst [vmem:[%s3409_s27] sm:$0xf] (%p3308_p3), %v584_v32  ;;  %587 = vst [vmem:[%s3409_s27 + $0x4] sm:$0xf] (%p3308_p3), %v586_v33  ;;  %v590_v35 = vld [vmem:[%s3405_s26 + $0x18] sm:$0xf] (%p3308_p3) }
  0x2e   : > { %v592_v36 = vld [vmem:[%s3405_s26 + $0x20] sm:$0xf]  ;;  %589 = vst [vmem:[%s3409_s27 + $0x8] sm:$0xf] %v588_v34  ;;  %591 = vst [vmem:[%s3409_s27 + $0xc] sm:$0xf] %v590_v35 }
  0x2f   : > { %593 = vst [vmem:[%s3409_s27 + $0x10] sm:$0xf] %v592_v36  ;;  %v594_v37 = vld [vmem:[%s3405_s26 + $0x28] sm:$0xf]  ;;  %v596_v38 = vld [vmem:[%s3405_s26 + $0x30] sm:$0xf] }
  0x30   : > { %v598_v39 = vld [vmem:[%s3405_s26 + $0x38] sm:$0xf]  ;;  %595 = vst [vmem:[%s3409_s27 + $0x14] sm:$0xf] %v594_v37  ;;  %597 = vst [vmem:[%s3409_s27 + $0x18] sm:$0xf] %v596_v38 }
  0x31   : > { %599 = vst [vmem:[%s3409_s27 + $0x1c] sm:$0xf] %v598_v39  ;;  %v600_v40 = vld [vmem:[%s3405_s26 + $0x40] sm:$0xf]  ;;  %v602_v41 = vld [vmem:[%s3405_s26 + $0x48] sm:$0xf] }
  0x32   : > { %v604_v42 = vld [vmem:[%s3405_s26 + $0x50] sm:$0xf]  ;;  %601 = vst [vmem:[%s3409_s27 + $0x20] sm:$0xf] %v600_v40  ;;  %603 = vst [vmem:[%s3409_s27 + $0x24] sm:$0xf] %v602_v41 }
  0x33   : > { %605 = vst [vmem:[%s3409_s27 + $0x28] sm:$0xf] %v604_v42  ;;  %v606_v43 = vld [vmem:[%s3405_s26 + $0x58] sm:$0xf]  ;;  %v608_v44 = vld [vmem:[%s3405_s26 + $0x60] sm:$0xf] }
  0x34   : > { %v610_v45 = vld [vmem:[%s3405_s26 + $0x68] sm:$0xf]  ;;  %607 = vst [vmem:[%s3409_s27 + $0x2c] sm:$0xf] %v606_v43  ;;  %609 = vst [vmem:[%s3409_s27 + $0x30] sm:$0xf] %v608_v44 }
  0x35   : > { %611 = vst [vmem:[%s3409_s27 + $0x34] sm:$0xf] %v610_v45  ;;  %v612_v46 = vld [vmem:[%s3405_s26 + $0x70] sm:$0xf]  ;;  %v614_v47 = vld [vmem:[%s3405_s26 + $0x78] sm:$0xf] }
  0x36   : > { %v616_v48 = vld [vmem:[%s3405_s26 + $0x80] sm:$0xf]  ;;  %613 = vst [vmem:[%s3409_s27 + $0x38] sm:$0xf] %v612_v46  ;;  %615 = vst [vmem:[%s3409_s27 + $0x3c] sm:$0xf] %v614_v47 }
  0x37   : > { %617 = vst [vmem:[%s3409_s27 + $0x40] sm:$0xf] %v616_v48  ;;  %v618_v49 = vld [vmem:[%s3405_s26 + $0x88] sm:$0xf]  ;;  %v620_v50 = vld [vmem:[%s3405_s26 + $0x90] sm:$0xf] }
  0x38   : > { %v622_v51 = vld [vmem:[%s3405_s26 + $0x98] sm:$0xf]  ;;  %619 = vst [vmem:[%s3409_s27 + $0x44] sm:$0xf] %v618_v49  ;;  %621 = vst [vmem:[%s3409_s27 + $0x48] sm:$0xf] %v620_v50 }
  0x39   : > { %623 = vst [vmem:[%s3409_s27 + $0x4c] sm:$0xf] %v622_v51  ;;  %v624_v52 = vld [vmem:[%s3405_s26 + $0xa0] sm:$0xf]  ;;  %v626_v53 = vld [vmem:[%s3405_s26 + $0xa8] sm:$0xf] }
  0x3a   : > { %v628_v54 = vld [vmem:[%s3405_s26 + $0xb0] sm:$0xf]  ;;  %625 = vst [vmem:[%s3409_s27 + $0x50] sm:$0xf] %v624_v52  ;;  %627 = vst [vmem:[%s3409_s27 + $0x54] sm:$0xf] %v626_v53 }
  0x3b   : > { %629 = vst [vmem:[%s3409_s27 + $0x58] sm:$0xf] %v628_v54  ;;  %v630_v55 = vld [vmem:[%s3405_s26 + $0xb8] sm:$0xf]  ;;  %v632_v56 = vld [vmem:[%s3405_s26 + $0xc0] sm:$0xf] }
  0x3c   : > { %v634_v57 = vld [vmem:[%s3405_s26 + $0xc8] sm:$0xf]  ;;  %631 = vst [vmem:[%s3409_s27 + $0x5c] sm:$0xf] %v630_v55  ;;  %633 = vst [vmem:[%s3409_s27 + $0x60] sm:$0xf] %v632_v56 }
  0x3d   : > { %635 = vst [vmem:[%s3409_s27 + $0x64] sm:$0xf] %v634_v57  ;;  %v636_v58 = vld [vmem:[%s3405_s26 + $0xd0] sm:$0xf]  ;;  %v638_v59 = vld [vmem:[%s3405_s26 + $0xd8] sm:$0xf] }
  0x3e   : > { %v640_v60 = vld [vmem:[%s3405_s26 + $0xe0] sm:$0xf]  ;;  %637 = vst [vmem:[%s3409_s27 + $0x68] sm:$0xf] %v636_v58  ;;  %639 = vst [vmem:[%s3409_s27 + $0x6c] sm:$0xf] %v638_v59 }
  0x3f   : > { %641 = vst [vmem:[%s3409_s27 + $0x70] sm:$0xf] %v640_v60  ;;  %v642_v61 = vld [vmem:[%s3405_s26 + $0xe8] sm:$0xf]  ;;  %v644_v62 = vld [vmem:[%s3405_s26 + $0xf0] sm:$0xf] }
  0x40   : > { %v646_v63 = vld [vmem:[%s3405_s26 + $0xf8] sm:$0xf]  ;;  %643 = vst [vmem:[%s3409_s27 + $0x74] sm:$0xf] %v642_v61  ;;  %645 = vst [vmem:[%s3409_s27 + $0x78] sm:$0xf] %v644_v62 }
  0x41   : > { %647 = vst [vmem:[%s3409_s27 + $0x7c] sm:$0xf] %v646_v63 }
  0x42 PF: > { %735 = sbr.rel (!%p3308_p3) target bundleno = 91 (0x5b), region = 122  ;;  %s737_s28 = sand.u32 (%p3308_p3), 1, %s3207_s14  }
  0x43   : > { %s2740_s29 = sshll.u32 (%p3308_p3), %s3215_s16, 2  ;;  %s2739_s30 = sshll.u32 (%p3308_p3), %s737_s28, 7 }
  0x44   : > { %s3480_s19 = scalar_lea.vmem (%p3308_p3), %s3890_s7, %s2740_s29  ;;  %s3484_s21 = scalar_lea.vmem (%p3308_p3), [#allocation4], %s2739_s30 }
  0x45   : > { %v758_v0 = vld [vmem:[%s3480_s19] sm:$0xf] (%p3308_p3)  ;;  %v760_v1 = vld [vmem:[%s3480_s19 + $0x8] sm:$0xf] (%p3308_p3)  ;;  %v762_v2 = vld [vmem:[%s3480_s19 + $0x10] sm:$0xf] (%p3308_p3) }
  0x46   : > { %759 = vst [vmem:[%s3484_s21] sm:$0xf] (%p3308_p3), %v758_v0  ;;  %761 = vst [vmem:[%s3484_s21 + $0x4] sm:$0xf] (%p3308_p3), %v760_v1  ;;  %v764_v3 = vld [vmem:[%s3480_s19 + $0x18] sm:$0xf] (%p3308_p3) }
  0x47   : > { %v766_v4 = vld [vmem:[%s3480_s19 + $0x20] sm:$0xf]  ;;  %763 = vst [vmem:[%s3484_s21 + $0x8] sm:$0xf] %v762_v2  ;;  %765 = vst [vmem:[%s3484_s21 + $0xc] sm:$0xf] %v764_v3 }
  0x48   : > { %767 = vst [vmem:[%s3484_s21 + $0x10] sm:$0xf] %v766_v4  ;;  %v768_v5 = vld [vmem:[%s3480_s19 + $0x28] sm:$0xf]  ;;  %v770_v6 = vld [vmem:[%s3480_s19 + $0x30] sm:$0xf] }
  0x49   : > { %v772_v7 = vld [vmem:[%s3480_s19 + $0x38] sm:$0xf]  ;;  %769 = vst [vmem:[%s3484_s21 + $0x14] sm:$0xf] %v768_v5  ;;  %771 = vst [vmem:[%s3484_s21 + $0x18] sm:$0xf] %v770_v6 }
  0x4a   : > { %773 = vst [vmem:[%s3484_s21 + $0x1c] sm:$0xf] %v772_v7  ;;  %v774_v8 = vld [vmem:[%s3480_s19 + $0x40] sm:$0xf]  ;;  %v776_v9 = vld [vmem:[%s3480_s19 + $0x48] sm:$0xf] }
  0x4b   : > { %v778_v10 = vld [vmem:[%s3480_s19 + $0x50] sm:$0xf]  ;;  %775 = vst [vmem:[%s3484_s21 + $0x20] sm:$0xf] %v774_v8  ;;  %777 = vst [vmem:[%s3484_s21 + $0x24] sm:$0xf] %v776_v9 }
  0x4c   : > { %779 = vst [vmem:[%s3484_s21 + $0x28] sm:$0xf] %v778_v10  ;;  %v780_v11 = vld [vmem:[%s3480_s19 + $0x58] sm:$0xf]  ;;  %v782_v12 = vld [vmem:[%s3480_s19 + $0x60] sm:$0xf] }
  0x4d   : > { %v784_v13 = vld [vmem:[%s3480_s19 + $0x68] sm:$0xf]  ;;  %781 = vst [vmem:[%s3484_s21 + $0x2c] sm:$0xf] %v780_v11  ;;  %783 = vst [vmem:[%s3484_s21 + $0x30] sm:$0xf] %v782_v12 }
  0x4e   : > { %785 = vst [vmem:[%s3484_s21 + $0x34] sm:$0xf] %v784_v13  ;;  %v786_v14 = vld [vmem:[%s3480_s19 + $0x70] sm:$0xf]  ;;  %v788_v15 = vld [vmem:[%s3480_s19 + $0x78] sm:$0xf] }
  0x4f   : > { %v790_v16 = vld [vmem:[%s3480_s19 + $0x80] sm:$0xf]  ;;  %787 = vst [vmem:[%s3484_s21 + $0x38] sm:$0xf] %v786_v14  ;;  %789 = vst [vmem:[%s3484_s21 + $0x3c] sm:$0xf] %v788_v15 }
  0x50   : > { %791 = vst [vmem:[%s3484_s21 + $0x40] sm:$0xf] %v790_v16  ;;  %v792_v17 = vld [vmem:[%s3480_s19 + $0x88] sm:$0xf]  ;;  %v794_v18 = vld [vmem:[%s3480_s19 + $0x90] sm:$0xf] }
  0x51   : > { %v796_v19 = vld [vmem:[%s3480_s19 + $0x98] sm:$0xf]  ;;  %793 = vst [vmem:[%s3484_s21 + $0x44] sm:$0xf] %v792_v17  ;;  %795 = vst [vmem:[%s3484_s21 + $0x48] sm:$0xf] %v794_v18 }
  0x52   : > { %797 = vst [vmem:[%s3484_s21 + $0x4c] sm:$0xf] %v796_v19  ;;  %v798_v20 = vld [vmem:[%s3480_s19 + $0xa0] sm:$0xf]  ;;  %v800_v21 = vld [vmem:[%s3480_s19 + $0xa8] sm:$0xf] }
  0x53   : > { %v802_v22 = vld [vmem:[%s3480_s19 + $0xb0] sm:$0xf]  ;;  %799 = vst [vmem:[%s3484_s21 + $0x50] sm:$0xf] %v798_v20  ;;  %801 = vst [vmem:[%s3484_s21 + $0x54] sm:$0xf] %v800_v21 }
  0x54   : > { %803 = vst [vmem:[%s3484_s21 + $0x58] sm:$0xf] %v802_v22  ;;  %v804_v23 = vld [vmem:[%s3480_s19 + $0xb8] sm:$0xf]  ;;  %v806_v24 = vld [vmem:[%s3480_s19 + $0xc0] sm:$0xf] }
  0x55   : > { %v808_v25 = vld [vmem:[%s3480_s19 + $0xc8] sm:$0xf]  ;;  %805 = vst [vmem:[%s3484_s21 + $0x5c] sm:$0xf] %v804_v23  ;;  %807 = vst [vmem:[%s3484_s21 + $0x60] sm:$0xf] %v806_v24 }
  0x56   : > { %809 = vst [vmem:[%s3484_s21 + $0x64] sm:$0xf] %v808_v25  ;;  %v810_v26 = vld [vmem:[%s3480_s19 + $0xd0] sm:$0xf]  ;;  %v812_v27 = vld [vmem:[%s3480_s19 + $0xd8] sm:$0xf] }
  0x57   : > { %v814_v28 = vld [vmem:[%s3480_s19 + $0xe0] sm:$0xf]  ;;  %811 = vst [vmem:[%s3484_s21 + $0x68] sm:$0xf] %v810_v26  ;;  %813 = vst [vmem:[%s3484_s21 + $0x6c] sm:$0xf] %v812_v27 }
  0x58   : > { %815 = vst [vmem:[%s3484_s21 + $0x70] sm:$0xf] %v814_v28  ;;  %v816_v29 = vld [vmem:[%s3480_s19 + $0xe8] sm:$0xf]  ;;  %v818_v30 = vld [vmem:[%s3480_s19 + $0xf0] sm:$0xf] }
  0x59   : > { %v820_v31 = vld [vmem:[%s3480_s19 + $0xf8] sm:$0xf]  ;;  %817 = vst [vmem:[%s3484_s21 + $0x74] sm:$0xf] %v816_v29  ;;  %819 = vst [vmem:[%s3484_s21 + $0x78] sm:$0xf] %v818_v30 }
  0x5a   : > { %821 = vst [vmem:[%s3484_s21 + $0x7c] sm:$0xf] %v820_v31 }
  0x5b PF: > { %909 = sbr.rel (!%p3308_p3) target bundleno = 116 (0x74), region = 163  ;;  %s911_s22 = sand.u32 (%p3308_p3), 1, %s3207_s14  }
  0x5c   : > { %s2742_s25 = sshll.u32 (%p3308_p3), %s3215_s16, 2  ;;  %s2741_s26 = sshll.u32 (%p3308_p3), %s911_s22, 7 }
  0x5d   : > { %s3555_s29 = scalar_lea.vmem (%p3308_p3), %s3891_s8, %s2742_s25  ;;  %s3559_s30 = scalar_lea.vmem (%p3308_p3), [#allocation5], %s2741_s26 }
  0x5e   : > { %v932_v32 = vld [vmem:[%s3555_s29] sm:$0xf] (%p3308_p3)  ;;  %v934_v33 = vld [vmem:[%s3555_s29 + $0x8] sm:$0xf] (%p3308_p3)  ;;  %v936_v34 = vld [vmem:[%s3555_s29 + $0x10] sm:$0xf] (%p3308_p3) }
  0x5f   : > { %933 = vst [vmem:[%s3559_s30] sm:$0xf] (%p3308_p3), %v932_v32  ;;  %935 = vst [vmem:[%s3559_s30 + $0x4] sm:$0xf] (%p3308_p3), %v934_v33  ;;  %v938_v35 = vld [vmem:[%s3555_s29 + $0x18] sm:$0xf] (%p3308_p3) }
  0x60   : > { %v940_v36 = vld [vmem:[%s3555_s29 + $0x20] sm:$0xf]  ;;  %937 = vst [vmem:[%s3559_s30 + $0x8] sm:$0xf] %v936_v34  ;;  %939 = vst [vmem:[%s3559_s30 + $0xc] sm:$0xf] %v938_v35 }
  0x61   : > { %941 = vst [vmem:[%s3559_s30 + $0x10] sm:$0xf] %v940_v36  ;;  %v942_v37 = vld [vmem:[%s3555_s29 + $0x28] sm:$0xf]  ;;  %v944_v38 = vld [vmem:[%s3555_s29 + $0x30] sm:$0xf] }
  0x62   : > { %v946_v39 = vld [vmem:[%s3555_s29 + $0x38] sm:$0xf]  ;;  %943 = vst [vmem:[%s3559_s30 + $0x14] sm:$0xf] %v942_v37  ;;  %945 = vst [vmem:[%s3559_s30 + $0x18] sm:$0xf] %v944_v38 }
  0x63   : > { %947 = vst [vmem:[%s3559_s30 + $0x1c] sm:$0xf] %v946_v39  ;;  %v948_v40 = vld [vmem:[%s3555_s29 + $0x40] sm:$0xf]  ;;  %v950_v41 = vld [vmem:[%s3555_s29 + $0x48] sm:$0xf] }
  0x64   : > { %v952_v42 = vld [vmem:[%s3555_s29 + $0x50] sm:$0xf]  ;;  %949 = vst [vmem:[%s3559_s30 + $0x20] sm:$0xf] %v948_v40  ;;  %951 = vst [vmem:[%s3559_s30 + $0x24] sm:$0xf] %v950_v41 }
  0x65   : > { %953 = vst [vmem:[%s3559_s30 + $0x28] sm:$0xf] %v952_v42  ;;  %v954_v43 = vld [vmem:[%s3555_s29 + $0x58] sm:$0xf]  ;;  %v956_v44 = vld [vmem:[%s3555_s29 + $0x60] sm:$0xf] }
  0x66   : > { %v958_v45 = vld [vmem:[%s3555_s29 + $0x68] sm:$0xf]  ;;  %955 = vst [vmem:[%s3559_s30 + $0x2c] sm:$0xf] %v954_v43  ;;  %957 = vst [vmem:[%s3559_s30 + $0x30] sm:$0xf] %v956_v44 }
  0x67   : > { %959 = vst [vmem:[%s3559_s30 + $0x34] sm:$0xf] %v958_v45  ;;  %v960_v46 = vld [vmem:[%s3555_s29 + $0x70] sm:$0xf]  ;;  %v962_v47 = vld [vmem:[%s3555_s29 + $0x78] sm:$0xf] }
  0x68   : > { %v964_v48 = vld [vmem:[%s3555_s29 + $0x80] sm:$0xf]  ;;  %961 = vst [vmem:[%s3559_s30 + $0x38] sm:$0xf] %v960_v46  ;;  %963 = vst [vmem:[%s3559_s30 + $0x3c] sm:$0xf] %v962_v47 }
  0x69   : > { %965 = vst [vmem:[%s3559_s30 + $0x40] sm:$0xf] %v964_v48  ;;  %v966_v49 = vld [vmem:[%s3555_s29 + $0x88] sm:$0xf]  ;;  %v968_v50 = vld [vmem:[%s3555_s29 + $0x90] sm:$0xf] }
  0x6a   : > { %v970_v51 = vld [vmem:[%s3555_s29 + $0x98] sm:$0xf]  ;;  %967 = vst [vmem:[%s3559_s30 + $0x44] sm:$0xf] %v966_v49  ;;  %969 = vst [vmem:[%s3559_s30 + $0x48] sm:$0xf] %v968_v50 }
  0x6b   : > { %971 = vst [vmem:[%s3559_s30 + $0x4c] sm:$0xf] %v970_v51  ;;  %v972_v52 = vld [vmem:[%s3555_s29 + $0xa0] sm:$0xf]  ;;  %v974_v53 = vld [vmem:[%s3555_s29 + $0xa8] sm:$0xf] }
  0x6c   : > { %v976_v54 = vld [vmem:[%s3555_s29 + $0xb0] sm:$0xf]  ;;  %973 = vst [vmem:[%s3559_s30 + $0x50] sm:$0xf] %v972_v52  ;;  %975 = vst [vmem:[%s3559_s30 + $0x54] sm:$0xf] %v974_v53 }
  0x6d   : > { %977 = vst [vmem:[%s3559_s30 + $0x58] sm:$0xf] %v976_v54  ;;  %v978_v55 = vld [vmem:[%s3555_s29 + $0xb8] sm:$0xf]  ;;  %v980_v56 = vld [vmem:[%s3555_s29 + $0xc0] sm:$0xf] }
  0x6e   : > { %v982_v57 = vld [vmem:[%s3555_s29 + $0xc8] sm:$0xf]  ;;  %979 = vst [vmem:[%s3559_s30 + $0x5c] sm:$0xf] %v978_v55  ;;  %981 = vst [vmem:[%s3559_s30 + $0x60] sm:$0xf] %v980_v56 }
  0x6f   : > { %983 = vst [vmem:[%s3559_s30 + $0x64] sm:$0xf] %v982_v57  ;;  %v984_v58 = vld [vmem:[%s3555_s29 + $0xd0] sm:$0xf]  ;;  %v986_v59 = vld [vmem:[%s3555_s29 + $0xd8] sm:$0xf] }
  0x70   : > { %v988_v60 = vld [vmem:[%s3555_s29 + $0xe0] sm:$0xf]  ;;  %985 = vst [vmem:[%s3559_s30 + $0x68] sm:$0xf] %v984_v58  ;;  %987 = vst [vmem:[%s3559_s30 + $0x6c] sm:$0xf] %v986_v59 }
  0x71   : > { %989 = vst [vmem:[%s3559_s30 + $0x70] sm:$0xf] %v988_v60  ;;  %v990_v61 = vld [vmem:[%s3555_s29 + $0xe8] sm:$0xf]  ;;  %v992_v62 = vld [vmem:[%s3555_s29 + $0xf0] sm:$0xf] }
  0x72   : > { %v994_v63 = vld [vmem:[%s3555_s29 + $0xf8] sm:$0xf]  ;;  %991 = vst [vmem:[%s3559_s30 + $0x74] sm:$0xf] %v990_v61  ;;  %993 = vst [vmem:[%s3559_s30 + $0x78] sm:$0xf] %v992_v62 }
  0x73   : > { %995 = vst [vmem:[%s3559_s30 + $0x7c] sm:$0xf] %v994_v63 }
  0x74 PF: > { %1083 = sbr.rel (!%p3308_p3) target bundleno = 141 (0x8d), region = 204  ;;  %s1085_s11 = sand.u32 (%p3308_p3), 1, %s3207_s14  }
  0x75   : > { %s2744_s12 = sshll.u32 (%p3308_p3), %s3215_s16, 2  ;;  %s2743_s19 = sshll.u32 (%p3308_p3), %s1085_s11, 7 }
  0x76   : > { %s3630_s25 = scalar_lea.vmem (%p3308_p3), %s3892_s9, %s2744_s12  ;;  %s3634_s20 = scalar_lea.vmem (%p3308_p3), [#allocation6], %s2743_s19 }
  0x77   : > { %v1106_v0 = vld [vmem:[%s3630_s25] sm:$0xf] (%p3308_p3)  ;;  %v1108_v1 = vld [vmem:[%s3630_s25 + $0x8] sm:$0xf] (%p3308_p3)  ;;  %v1110_v2 = vld [vmem:[%s3630_s25 + $0x10] sm:$0xf] (%p3308_p3) }
  0x78   : > { %1107 = vst [vmem:[%s3634_s20] sm:$0xf] (%p3308_p3), %v1106_v0  ;;  %1109 = vst [vmem:[%s3634_s20 + $0x4] sm:$0xf] (%p3308_p3), %v1108_v1  ;;  %v1112_v3 = vld [vmem:[%s3630_s25 + $0x18] sm:$0xf] (%p3308_p3) }
  0x79   : > { %v1114_v4 = vld [vmem:[%s3630_s25 + $0x20] sm:$0xf]  ;;  %1111 = vst [vmem:[%s3634_s20 + $0x8] sm:$0xf] %v1110_v2  ;;  %1113 = vst [vmem:[%s3634_s20 + $0xc] sm:$0xf] %v1112_v3 }
  0x7a   : > { %1115 = vst [vmem:[%s3634_s20 + $0x10] sm:$0xf] %v1114_v4  ;;  %v1116_v5 = vld [vmem:[%s3630_s25 + $0x28] sm:$0xf]  ;;  %v1118_v6 = vld [vmem:[%s3630_s25 + $0x30] sm:$0xf] }
  0x7b   : > { %v1120_v7 = vld [vmem:[%s3630_s25 + $0x38] sm:$0xf]  ;;  %1117 = vst [vmem:[%s3634_s20 + $0x14] sm:$0xf] %v1116_v5  ;;  %1119 = vst [vmem:[%s3634_s20 + $0x18] sm:$0xf] %v1118_v6 }
  0x7c   : > { %1121 = vst [vmem:[%s3634_s20 + $0x1c] sm:$0xf] %v1120_v7  ;;  %v1122_v8 = vld [vmem:[%s3630_s25 + $0x40] sm:$0xf]  ;;  %v1124_v9 = vld [vmem:[%s3630_s25 + $0x48] sm:$0xf] }
  0x7d   : > { %v1126_v10 = vld [vmem:[%s3630_s25 + $0x50] sm:$0xf]  ;;  %1123 = vst [vmem:[%s3634_s20 + $0x20] sm:$0xf] %v1122_v8  ;;  %1125 = vst [vmem:[%s3634_s20 + $0x24] sm:$0xf] %v1124_v9 }
  0x7e   : > { %1127 = vst [vmem:[%s3634_s20 + $0x28] sm:$0xf] %v1126_v10  ;;  %v1128_v11 = vld [vmem:[%s3630_s25 + $0x58] sm:$0xf]  ;;  %v1130_v12 = vld [vmem:[%s3630_s25 + $0x60] sm:$0xf] }
  0x7f   : > { %v1132_v13 = vld [vmem:[%s3630_s25 + $0x68] sm:$0xf]  ;;  %1129 = vst [vmem:[%s3634_s20 + $0x2c] sm:$0xf] %v1128_v11  ;;  %1131 = vst [vmem:[%s3634_s20 + $0x30] sm:$0xf] %v1130_v12 }
  0x80   : > { %1133 = vst [vmem:[%s3634_s20 + $0x34] sm:$0xf] %v1132_v13  ;;  %v1134_v14 = vld [vmem:[%s3630_s25 + $0x70] sm:$0xf]  ;;  %v1136_v15 = vld [vmem:[%s3630_s25 + $0x78] sm:$0xf] }
  0x81   : > { %v1138_v16 = vld [vmem:[%s3630_s25 + $0x80] sm:$0xf]  ;;  %1135 = vst [vmem:[%s3634_s20 + $0x38] sm:$0xf] %v1134_v14  ;;  %1137 = vst [vmem:[%s3634_s20 + $0x3c] sm:$0xf] %v1136_v15 }
  0x82   : > { %1139 = vst [vmem:[%s3634_s20 + $0x40] sm:$0xf] %v1138_v16  ;;  %v1140_v17 = vld [vmem:[%s3630_s25 + $0x88] sm:$0xf]  ;;  %v1142_v18 = vld [vmem:[%s3630_s25 + $0x90] sm:$0xf] }
  0x83   : > { %v1144_v19 = vld [vmem:[%s3630_s25 + $0x98] sm:$0xf]  ;;  %1141 = vst [vmem:[%s3634_s20 + $0x44] sm:$0xf] %v1140_v17  ;;  %1143 = vst [vmem:[%s3634_s20 + $0x48] sm:$0xf] %v1142_v18 }
  0x84   : > { %1145 = vst [vmem:[%s3634_s20 + $0x4c] sm:$0xf] %v1144_v19  ;;  %v1146_v20 = vld [vmem:[%s3630_s25 + $0xa0] sm:$0xf]  ;;  %v1148_v21 = vld [vmem:[%s3630_s25 + $0xa8] sm:$0xf] }
  0x85   : > { %v1150_v22 = vld [vmem:[%s3630_s25 + $0xb0] sm:$0xf]  ;;  %1147 = vst [vmem:[%s3634_s20 + $0x50] sm:$0xf] %v1146_v20  ;;  %1149 = vst [vmem:[%s3634_s20 + $0x54] sm:$0xf] %v1148_v21 }
  0x86   : > { %1151 = vst [vmem:[%s3634_s20 + $0x58] sm:$0xf] %v1150_v22  ;;  %v1152_v23 = vld [vmem:[%s3630_s25 + $0xb8] sm:$0xf]  ;;  %v1154_v24 = vld [vmem:[%s3630_s25 + $0xc0] sm:$0xf] }
  0x87   : > { %v1156_v25 = vld [vmem:[%s3630_s25 + $0xc8] sm:$0xf]  ;;  %1153 = vst [vmem:[%s3634_s20 + $0x5c] sm:$0xf] %v1152_v23  ;;  %1155 = vst [vmem:[%s3634_s20 + $0x60] sm:$0xf] %v1154_v24 }
  0x88   : > { %1157 = vst [vmem:[%s3634_s20 + $0x64] sm:$0xf] %v1156_v25  ;;  %v1158_v26 = vld [vmem:[%s3630_s25 + $0xd0] sm:$0xf]  ;;  %v1160_v27 = vld [vmem:[%s3630_s25 + $0xd8] sm:$0xf] }
  0x89   : > { %v1162_v28 = vld [vmem:[%s3630_s25 + $0xe0] sm:$0xf]  ;;  %1159 = vst [vmem:[%s3634_s20 + $0x68] sm:$0xf] %v1158_v26  ;;  %1161 = vst [vmem:[%s3634_s20 + $0x6c] sm:$0xf] %v1160_v27 }
  0x8a   : > { %1163 = vst [vmem:[%s3634_s20 + $0x70] sm:$0xf] %v1162_v28  ;;  %v1164_v29 = vld [vmem:[%s3630_s25 + $0xe8] sm:$0xf]  ;;  %v1166_v30 = vld [vmem:[%s3630_s25 + $0xf0] sm:$0xf] }
  0x8b   : > { %v1168_v31 = vld [vmem:[%s3630_s25 + $0xf8] sm:$0xf]  ;;  %1165 = vst [vmem:[%s3634_s20 + $0x74] sm:$0xf] %v1164_v29  ;;  %1167 = vst [vmem:[%s3634_s20 + $0x78] sm:$0xf] %v1166_v30 }
  0x8c   : > { %1169 = vst [vmem:[%s3634_s20 + $0x7c] sm:$0xf] %v1168_v31 }
  0x8d PF: > { %p2745_p8 = scmp.ge.s32.totalorder %s3219_s17, 1  ;;  %p1256_p9 = scmp.lt.s32.totalorder %s3219_s17, 3 }
  0x8f   : > { %p1257_p10 = pnand %p2745_p8, %p1256_p9 }
  0x90   : > { %s1263_s26 = sand.u32 (!%p1257_p10), 1, %s3203_s13  }
  0x91   : > { %1260 = sbr.rel (%p1257_p10) target bundleno = 464 (0x1d0), region = 245  ;;  %s3703_s27 = sshll.u32 (!%p1257_p10), %s1263_s26, 7 }
  0x92   : > { %s3712_s12 = scalar_lea.vmem (!%p1257_p10), [#allocation3], %s3703_s27  ;;  %s3716_s19 = scalar_lea.vmem (!%p1257_p10), [#allocation2], %s3703_s27 }
  0x93   : > { %s3756_s28 = scalar_lea.vmem (!%p1257_p10), [#allocation4], %s3703_s27  ;;  %s3760_s29 = scalar_lea.vmem (!%p1257_p10), [#allocation5], %s3703_s27 }
  0x96   : > { %v3105_v32 = vld [vmem:[%s3884_s1 + $0x4] ss:$8 sps:$4 sm:$0xff]   ;;  %v3071_v34 = vld [vmem:[%s3712_s12 + $0x78] sm:$0xff]   ;;  %v3075_v38 = vld [vmem:[%s3712_s12 + $0x70] sm:$0xff]   ;;  %s2857_s13 = sshll.u32 (%p3315_p6), %s3211_s15, 2 }
  0x97   : > { %v3108_v33 = vld [vmem:[%s3883_s0 + $0x4] ss:$8 sps:$4 sm:$0xff]   ;;  %1630 = vmatprep.mubr.bf16.mxu0 %v3105_v32  ;;  %v3072_v35 = vld [vmem:[%s3716_s19 + $0x78] sm:$0xff]   ;;  %2875 = vmatprep.subr.bf16.mxu0 %v3071_v34  ;;  %v3076_v39 = vld [vmem:[%s3716_s19 + $0x70] sm:$0xff]   ;;  %s2458_s25 = scalar_lea.vmem (%p3315_p6), %s3893_s10, %s2857_s13 }
  0x98   : > { %1795 = vmatprep.mubr.bf16.mxu1 %v3108_v33  ;;  %v3073_v36 = vld [vmem:[%s3712_s12 + $0x38] sm:$0xff]   ;;  %2903 = vmatprep.subr.bf16.mxu1 %v3072_v35  ;;  %v3077_v40 = vld [vmem:[%s3712_s12 + $0x30] sm:$0xff]   ;;  %v3079_v42 = vld [vmem:[%s3712_s12 + $0x68] sm:$0xff]  }
  0x99   : > { %v3074_v37 = vld [vmem:[%s3716_s19 + $0x38] sm:$0xff]   ;;  %2876 = vmatpush3.bf16.msra.mxu0 %v3073_v36  ;;  %v3078_v41 = vld [vmem:[%s3716_s19 + $0x30] sm:$0xff]   ;;  %v3080_v43 = vld [vmem:[%s3716_s19 + $0x68] sm:$0xff]  }
  0x9a   : > { %2904 = vmatpush3.bf16.msra.mxu1 %v3074_v37  ;;  %2877 = vmatprep.subr.bf16.mxu0 %v3075_v38  ;;  %v3081_v44 = vld [vmem:[%s3712_s12 + $0x28] sm:$0xff]   ;;  %v3083_v46 = vld [vmem:[%s3712_s12 + $0x60] sm:$0xff]   ;;  %v3087_v50 = vld [vmem:[%s3712_s12 + $0x58] sm:$0xff]  }
  0x9b   : > { %2905 = vmatprep.subr.bf16.mxu1 %v3076_v39  ;;  %v3082_v45 = vld [vmem:[%s3716_s19 + $0x28] sm:$0xff]   ;;  %v3084_v47 = vld [vmem:[%s3716_s19 + $0x60] sm:$0xff]   ;;  %v3088_v51 = vld [vmem:[%s3716_s19 + $0x58] sm:$0xff]  }
  0x9c   : > { %v3085_v48 = vld [vmem:[%s3712_s12 + $0x20] sm:$0xff]   ;;  %v3089_v52 = vld [vmem:[%s3712_s12 + $0x18] sm:$0xff]   ;;  %v3091_v54 = vld [vmem:[%s3712_s12 + $0x50] sm:$0xff]  }
  0x9d   : > { %2878 = vmatpush3.bf16.msra.mxu0 %v3077_v40  ;;  %v3086_v49 = vld [vmem:[%s3716_s19 + $0x20] sm:$0xff]   ;;  %v3090_v53 = vld [vmem:[%s3716_s19 + $0x18] sm:$0xff]   ;;  %v3092_v55 = vld [vmem:[%s3716_s19 + $0x50] sm:$0xff]  }
  0x9e   : > { %2906 = vmatpush3.bf16.msra.mxu1 %v3078_v41  ;;  %2879 = vmatprep.subr.bf16.mxu0 %v3079_v42  ;;  %v3093_v56 = vld [vmem:[%s3712_s12 + $0x10] sm:$0xff]   ;;  %v3095_v58 = vld [vmem:[%s3712_s12 + $0x48] sm:$0xff]   ;;  %v3099_v62 = vld [vmem:[%s3712_s12 + $0x40] sm:$0xff]  }
  0x9f   : > { %2907 = vmatprep.subr.bf16.mxu1 %v3080_v43  ;;  %v3094_v57 = vld [vmem:[%s3716_s19 + $0x10] sm:$0xff]   ;;  %v3096_v59 = vld [vmem:[%s3716_s19 + $0x48] sm:$0xff]   ;;  %v3100_v63 = vld [vmem:[%s3716_s19 + $0x40] sm:$0xff]  }
  0xa0   : > { %v3097_v60 = vld [vmem:[%s3712_s12 + $0x8] sm:$0xff]   ;;  %v3101_v1 = vld [vmem:[%s3712_s12] sm:$0xff]   ;;  %v3109_v4 = vld [vmem:[%s3756_s28 + $0x78] sm:$0xff]  }
  0xa1   : > { %2880 = vmatpush3.bf16.msra.mxu0 %v3081_v44  ;;  %v3098_v61 = vld [vmem:[%s3716_s19 + $0x8] sm:$0xff]   ;;  %v3102_v3 = vld [vmem:[%s3716_s19] sm:$0xff]   ;;  %v3110_v5 = vld [vmem:[%s3760_s29 + $0x78] sm:$0xff]  }
  0xa2   : > { %2908 = vmatpush3.bf16.msra.mxu1 %v3082_v45  ;;  %2881 = vmatprep.subr.bf16.mxu0 %v3083_v46  ;;  %v3103_v0 = vld [vmem:[%s3884_s1] ss:$8 sps:$4 sm:$0xff]   ;;  %v3111_v6 = vld [vmem:[%s3756_s28 + $0x38] sm:$0xff]   ;;  %v3113_v8 = vld [vmem:[%s3756_s28 + $0x70] sm:$0xff]  }
  0xa3   : > { %2909 = vmatprep.subr.bf16.mxu1 %v3084_v47  ;;  %v3106_v2 = vld [vmem:[%s3883_s0] ss:$8 sps:$4 sm:$0xff]   ;;  %v3112_v7 = vld [vmem:[%s3760_s29 + $0x38] sm:$0xff]   ;;  %v3114_v9 = vld [vmem:[%s3760_s29 + $0x70] sm:$0xff]  }
  0xa4   : > { %v3115_v10 = vld [vmem:[%s3756_s28 + $0x30] sm:$0xff]   ;;  %v3117_v12 = vld [vmem:[%s3756_s28 + $0x68] sm:$0xff]   ;;  %v3121_v16 = vld [vmem:[%s3756_s28 + $0x60] sm:$0xff]  }
  0xa5   : > { %2882 = vmatpush3.bf16.msra.mxu0 %v3085_v48  ;;  %v3116_v11 = vld [vmem:[%s3760_s29 + $0x30] sm:$0xff]   ;;  %v3118_v13 = vld [vmem:[%s3760_s29 + $0x68] sm:$0xff]   ;;  %v3122_v17 = vld [vmem:[%s3760_s29 + $0x60] sm:$0xff]  }
  0xa6   : > { %2910 = vmatpush3.bf16.msra.mxu1 %v3086_v49  ;;  %2883 = vmatprep.subr.bf16.mxu0 %v3087_v50  ;;  %v3119_v14 = vld [vmem:[%s3756_s28 + $0x28] sm:$0xff]   ;;  %v3123_v18 = vld [vmem:[%s3756_s28 + $0x20] sm:$0xff]   ;;  %v3125_v20 = vld [vmem:[%s3756_s28 + $0x58] sm:$0xff]  }
  0xa7   : > { %2911 = vmatprep.subr.bf16.mxu1 %v3088_v51  ;;  %v3120_v15 = vld [vmem:[%s3760_s29 + $0x28] sm:$0xff]   ;;  %v3124_v19 = vld [vmem:[%s3760_s29 + $0x20] sm:$0xff]   ;;  %v3126_v21 = vld [vmem:[%s3760_s29 + $0x58] sm:$0xff]  }
  0xa8   : > { %v3127_v22 = vld [vmem:[%s3756_s28 + $0x18] sm:$0xff]   ;;  %v3135_v28 = vld [vmem:[%s3756_s28 + $0x50] sm:$0xff]   ;;  %v3139_v32 = vld [vmem:[%s3756_s28 + $0x48] sm:$0xff]  }
  0xa9   : > { %2884 = vmatpush3.bf16.msra.mxu0 %v3089_v52  ;;  %v3128_v23 = vld [vmem:[%s3760_s29 + $0x18] sm:$0xff]   ;;  %v3136_v29 = vld [vmem:[%s3760_s29 + $0x50] sm:$0xff]   ;;  %v3140_v33 = vld [vmem:[%s3760_s29 + $0x48] sm:$0xff]  }
  0xaa   : > { %2912 = vmatpush3.bf16.msra.mxu1 %v3090_v53  ;;  %2885 = vmatprep.subr.bf16.mxu0 %v3091_v54  ;;  %v3129_v24 = vld [vmem:[%s3884_s1 + $0x14] ss:$8 sps:$4 sm:$0xff]   ;;  %v3133_v26 = vld [vmem:[%s3884_s1 + $0x10] ss:$8 sps:$4 sm:$0xff]   ;;  %v3141_v34 = vld [vmem:[%s3756_s28 + $0x8] sm:$0xff]  }
  0xab   : > { %2913 = vmatprep.subr.bf16.mxu1 %v3092_v55  ;;  %v3131_v25 = vld [vmem:[%s3883_s0 + $0x14] ss:$8 sps:$4 sm:$0xff]   ;;  %v3134_v27 = vld [vmem:[%s3883_s0 + $0x10] ss:$8 sps:$4 sm:$0xff]   ;;  %v3142_v35 = vld [vmem:[%s3760_s29 + $0x8] sm:$0xff]  }
  0xac   : > { %v3137_v30 = vld [vmem:[%s3756_s28 + $0x10] sm:$0xff]   ;;  %v3143_v36 = vld [vmem:[%s3756_s28 + $0x40] sm:$0xff]  }
  0xad   : > { %2886 = vmatpush3.bf16.msra.mxu0 %v3093_v56  ;;  %v3138_v31 = vld [vmem:[%s3760_s29 + $0x10] sm:$0xff]   ;;  %v3144_v37 = vld [vmem:[%s3760_s29 + $0x40] sm:$0xff]  }
  0xae   : > { %2914 = vmatpush3.bf16.msra.mxu1 %v3094_v57  ;;  %2887 = vmatprep.subr.bf16.mxu0 %v3095_v58  ;;  %v3145_v38 = vld [vmem:[%s3756_s28] sm:$0xff]   ;;  %s3818_s28 = scalar_lea.vmem [#allocation6], %s3703_s27  ;;  %v3157_v48 = vld [vmem:[%s3885_s2 + $0x14] ss:$8 sps:$4 sm:$0xff]   ;;  %v3159_v49 = vld [vmem:[%s3885_s2 + $0x10] ss:$8 sps:$4 sm:$0xff]  }
  0xaf   : > { %2915 = vmatprep.subr.bf16.mxu1 %v3096_v59  ;;  %v3146_v39 = vld [vmem:[%s3760_s29] sm:$0xff]   ;;  %v3153_v44 = vld [vmem:[%s3818_s28 + $0x78] sm:$0xff]   ;;  %v3155_v46 = vld [vmem:[%s3818_s28 + $0x70] sm:$0xff]  }
  0xb0   : > { %v3147_v40 = vld [vmem:[%s3885_s2] ss:$8 sps:$4 sm:$0xff]   ;;  %v3149_v41 = vld [vmem:[%s3885_s2 + $0x4] ss:$8 sps:$4 sm:$0xff]   ;;  %v3154_v45 = vld [vmem:[%s3818_s28 + $0x38] sm:$0xff]  }
  0xb1   : > { %2888 = vmatpush3.bf16.msra.mxu0 %v3097_v60  ;;  %v3150_v42 = vld [vmem:[%s3886_s3] ss:$8 sps:$4 sm:$0xff]   ;;  %v3152_v43 = vld [vmem:[%s3886_s3 + $0x4] ss:$8 sps:$4 sm:$0xff]   ;;  %v3156_v47 = vld [vmem:[%s3818_s28 + $0x30] sm:$0xff]  }
  0xb2   : > { %2916 = vmatpush3.bf16.msra.mxu1 %v3098_v61  ;;  %2889 = vmatprep.subr.bf16.mxu0 %v3099_v62  ;;  %v3160_v50 = vld [vmem:[%s3818_s28 + $0x68] sm:$0xff]   ;;  %v3161_v51 = vld [vmem:[%s3886_s3 + $0x14] ss:$8 sps:$4 sm:$0xff]   ;;  %v3164_v53 = vld [vmem:[%s3886_s3 + $0x10] ss:$8 sps:$4 sm:$0xff]  }
  0xb3   : > { %2917 = vmatprep.subr.bf16.mxu1 %v3100_v63  ;;  %v3163_v52 = vld [vmem:[%s3818_s28 + $0x28] sm:$0xff]   ;;  %v3165_v54 = vld [vmem:[%s3818_s28 + $0x60] sm:$0xff]   ;;  %v3167_v56 = vld [vmem:[%s3818_s28 + $0x58] sm:$0xff]  }
  0xb4   : > { %v3166_v55 = vld [vmem:[%s3818_s28 + $0x20] sm:$0xff]   ;;  %v3168_v57 = vld [vmem:[%s3818_s28 + $0x18] sm:$0xff]   ;;  %v3169_v58 = vld [vmem:[%s3818_s28 + $0x50] sm:$0xff]  }
  0xb5   : > { %2890 = vmatpush3.bf16.msra.mxu0 %v3101_v1  ;;  %v3170_v59 = vld [vmem:[%s3818_s28 + $0x10] sm:$0xff]   ;;  %v3177_v60 = vld [vmem:[%s3887_s4 + $0x4] ss:$8 sps:$4 sm:$0xff]  }
  0xb6   : > { %2918 = vmatpush3.bf16.msra.mxu1 %v3102_v3  ;;  %2931 = vmatprep.subr.bf16.mxu0 %v3109_v4  ;;  %v3171_v61 = vld [vmem:[%s3818_s28 + $0x48] sm:$0xff]   ;;  %v3180_v62 = vld [vmem:[%s3887_s4 + $0x14] ss:$8 sps:$4 sm:$0xff]   ;;  %v3174_v1 = vld [vmem:[%s3818_s28] sm:$0xff]  }
  0xb7   : > { %2959 = vmatprep.subr.bf16.mxu1 %v3110_v5  ;;  %v3172_v63 = vld [vmem:[%s3818_s28 + $0x8] sm:$0xff]   ;;  %v3178_v3 = vld [vmem:[%s3887_s4 + $0x10] ss:$8 sps:$4 sm:$0xff]  }
  0xb8   : > { %1631 = vmatmul.mubr.bf16.vlgmr.msra.gmra.mxu0 %v3103_v0  ;;  %v3173_v0 = vld [vmem:[%s3818_s28 + $0x40] sm:$0xff]   ;;  %s2751_s28 = sshll.u32 %s1263_s26, 4 }
  0xb9   : > { %1796 = vmatmul.mubr.bf16.vlgmr.msra.gmra.mxu1 %v3106_v2  ;;  %2932 = vmatpush3.bf16.msra.mxu0 %v3111_v6  ;;  %v3175_v2 = vld [vmem:[%s3887_s4] ss:$8 sps:$4 sm:$0xff]   ;;  %s1372_s21 = scalar_lea.vmem [#allocation7], %s2751_s28 }
  0xba   : > { %2960 = vmatpush3.bf16.msra.mxu1 %v3112_v7  ;;  %2933 = vmatprep.subr.bf16.mxu0 %v3113_v8 }
  0xbb   : > { %2961 = vmatprep.subr.bf16.mxu1 %v3114_v9  ;;  %1638 = vmatprep.mubr.bf16.mxu0 %v3129_v24 }
  0xbc   : > { %1803 = vmatprep.mubr.bf16.mxu1 %v3131_v25 }
  0xbd   : > { %2934 = vmatpush3.bf16.msra.mxu0 %v3115_v10 }
  0xbe   : > { %2962 = vmatpush3.bf16.msra.mxu1 %v3116_v11  ;;  %2935 = vmatprep.subr.bf16.mxu0 %v3117_v12 }
  0xbf   : > { %2963 = vmatprep.subr.bf16.mxu1 %v3118_v13 }
  0xc0   : > { %1639 = vmatmul.mubr.bf16.gmra.mxu0 %v3133_v26 }
  0xc1   : > { %2936 = vmatpush3.bf16.msra.mxu0 %v3119_v14  ;;  %1804 = vmatmul.mubr.bf16.gmra.mxu1 %v3134_v27 }
  0xc2   : > { %2964 = vmatpush3.bf16.msra.mxu1 %v3120_v15  ;;  %2937 = vmatprep.subr.bf16.mxu0 %v3121_v16 }
  0xc3   : > { %2965 = vmatprep.subr.bf16.mxu1 %v3122_v17  ;;  %1996 = vmatprep.mubr.bf16.mxu0 %v3149_v41 }
  0xc4   : > { %2201 = vmatprep.mubr.bf16.mxu1 %v3152_v43 }
  0xc5   : > { %2938 = vmatpush3.bf16.msra.mxu0 %v3123_v18 }
  0xc6   : > { %2966 = vmatpush3.bf16.msra.mxu1 %v3124_v19  ;;  %2939 = vmatprep.subr.bf16.mxu0 %v3125_v20 }
  0xc7   : > { %2967 = vmatprep.subr.bf16.mxu1 %v3126_v21 }
  0xc9   : > { %2940 = vmatpush3.bf16.msra.mxu0 %v3127_v22 }
  0xca   : > { %2968 = vmatpush3.bf16.msra.mxu1 %v3128_v23  ;;  %2941 = vmatprep.subr.bf16.mxu0 %v3135_v28 }
  0xcb   : > { %2969 = vmatprep.subr.bf16.mxu1 %v3136_v29 }
  0xcd   : > { %2942 = vmatpush3.bf16.msra.mxu0 %v3137_v30 }
  0xce   : > { %2970 = vmatpush3.bf16.msra.mxu1 %v3138_v31  ;;  %2943 = vmatprep.subr.bf16.mxu0 %v3139_v32 }
  0xcf   : > { %2971 = vmatprep.subr.bf16.mxu1 %v3140_v33 }
  0xd1   : > { %2944 = vmatpush3.bf16.msra.mxu0 %v3141_v34 }
  0xd2   : > { %2972 = vmatpush3.bf16.msra.mxu1 %v3142_v35  ;;  %2945 = vmatprep.subr.bf16.mxu0 %v3143_v36 }
  0xd3   : > { %2973 = vmatprep.subr.bf16.mxu1 %v3144_v37 }
  0xd5   : > { %2946 = vmatpush3.bf16.msra.mxu0 %v3145_v38 }
  0xd6   : > { %2974 = vmatpush3.bf16.msra.mxu1 %v3146_v39  ;;  %2987 = vmatprep.subr.bf16.mxu0 %v3153_v44 }
  0xd7   : > { %3015 = vmatprep.subr.bf16.mxu1 %v3153_v44 }
  0xd8   : > { %1997 = vmatmul.mubr.bf16.vlgmr.msra.gmra.mxu0 %v3147_v40 }
  0xd9   : > { %2202 = vmatmul.mubr.bf16.vlgmr.msra.gmra.mxu1 %v3150_v42  ;;  %2988 = vmatpush3.bf16.msra.mxu0 %v3154_v45 }
  0xda   : > { %3023 = vmatpush3.bf16.msra.mxu1 %v3154_v45  ;;  %2989 = vmatprep.subr.bf16.mxu0 %v3155_v46 }
  0xdb   : > { %3016 = vmatprep.subr.bf16.mxu1 %v3155_v46  ;;  %2004 = vmatprep.mubr.bf16.mxu0 %v3157_v48 }
  0xdc   : > { %2209 = vmatprep.mubr.bf16.mxu1 %v3161_v51 }
  0xdd   : > { %2990 = vmatpush3.bf16.msra.mxu0 %v3156_v47 }
  0xde   : > { %3024 = vmatpush3.bf16.msra.mxu1 %v3156_v47  ;;  %2991 = vmatprep.subr.bf16.mxu0 %v3160_v50 }
  0xdf   : > { %3017 = vmatprep.subr.bf16.mxu1 %v3160_v50 }
  0xe0   : > { %2005 = vmatmul.mubr.bf16.gmra.mxu0 %v3159_v49 }
  0xe1   : > { %2992 = vmatpush3.bf16.msra.mxu0 %v3163_v52  ;;  %2210 = vmatmul.mubr.bf16.gmra.mxu1 %v3164_v53 }
  0xe2   : > { %3025 = vmatpush3.bf16.msra.mxu1 %v3163_v52  ;;  %2993 = vmatprep.subr.bf16.mxu0 %v3165_v54 }
  0xe3   : > { %3018 = vmatprep.subr.bf16.mxu1 %v3165_v54  ;;  %2406 = vmatprep.mubr.bf16.mxu0 %v3177_v60 }
  0xe4   : > { %2414 = vmatprep.mubr.bf16.mxu1 %v3180_v62 }
  0xe5   : > { %2994 = vmatpush3.bf16.msra.mxu0 %v3166_v55 }
  0xe6   : > { %3026 = vmatpush3.bf16.msra.mxu1 %v3166_v55  ;;  %2995 = vmatprep.subr.bf16.mxu0 %v3167_v56 }
  0xe7   : > { %3019 = vmatprep.subr.bf16.mxu1 %v3167_v56 }
  0xe9   : > { %2996 = vmatpush3.bf16.msra.mxu0 %v3168_v57 }
  0xea   : > { %3027 = vmatpush3.bf16.msra.mxu1 %v3168_v57  ;;  %2997 = vmatprep.subr.bf16.mxu0 %v3169_v58 }
  0xeb   : > { %3020 = vmatprep.subr.bf16.mxu1 %v3169_v58 }
  0xed   : > { %2998 = vmatpush3.bf16.msra.mxu0 %v3170_v59 }
  0xee   : > { %3028 = vmatpush3.bf16.msra.mxu1 %v3170_v59  ;;  %2999 = vmatprep.subr.bf16.mxu0 %v3171_v61 }
  0xef   : > { %3021 = vmatprep.subr.bf16.mxu1 %v3171_v61 }
  0xf1   : > { %3000 = vmatpush3.bf16.msra.mxu0 %v3172_v63 }
  0xf2   : > { %3029 = vmatpush3.bf16.msra.mxu1 %v3172_v63  ;;  %3001 = vmatprep.subr.bf16.mxu0 %v3173_v0 }
  0xf3   : > { %3022 = vmatprep.subr.bf16.mxu1 %v3173_v0 }
  0xf5   : > { %3002 = vmatpush3.bf16.msra.mxu0 %v3174_v1 }
  0xf6   : > { %3030 = vmatpush3.bf16.msra.mxu1 %v3174_v1 }
  0xf8   : > { %2407 = vmatmul.mubr.bf16.vlgmr.msra.gmra.mxu0 %v3175_v2 }
  0xf9   : > { %2415 = vmatmul.mubr.bf16.vlgmr.msra.gmra.mxu1 %v3178_v3 }
 0x178   : > { %v2891_v4 = vpop.f32.mrf.mxu0 }
 0x179   : > { %v2919_v5 = vpop.f32.mrf.mxu1 }
 0x17a   : > { %v2892_v6 = vpop.f32.mrf.mxu0 }
 0x17b   : > { %v2920_v7 = vpop.f32.mrf.mxu1  ;;  %v2893_v34 = vadd.f32 %v2892_v6, %v2891_v4 }
 0x17c   : > { %v2894_v8 = vpop.f32.mrf.mxu0  ;;  %v2921_v35 = vadd.f32 %v2920_v7, %v2919_v5 }
 0x17d   : > { %v2922_v9 = vpop.f32.mrf.mxu1 }
 0x17e   : > { %v2895_v10 = vpop.f32.mrf.mxu0  ;;  %v1798_v49 = vadd.f32 %v2921_v35, %v2893_v34 }
 0x17f   : > { %v2923_v12 = vpop.f32.mrf.mxu1  ;;  %v2896_v36 = vadd.f32 %v2895_v10, %v2894_v8 }
 0x180   : > { %v2897_v11 = vpop.f32.mrf.mxu0  ;;  %v2924_v37 = vadd.f32 %v2923_v12, %v2922_v9 }
 0x181   : > { %v2925_v13 = vpop.f32.mrf.mxu1 }
 0x182   : > { %v2898_v14 = vpop.f32.mrf.mxu0  ;;  %v1801_v50 = vadd.f32 %v2924_v37, %v2896_v36 }
 0x183   : > { %v2926_v15 = vpop.f32.mrf.mxu1  ;;  %v2899_v39 = vadd.f32 %v2898_v14, %v2897_v11 }
 0x184   : > { %v2900_v16 = vpop.f32.mrf.mxu0  ;;  %v2927_v40 = vadd.f32 %v2926_v15, %v2925_v13 }
 0x185   : > { %v2928_v17 = vpop.f32.mrf.mxu1 }
 0x186   : > { %v2901_v18 = vpop.f32.mrf.mxu0  ;;  %v1806_v52 = vadd.f32 %v2927_v40, %v2899_v39 }
 0x187   : > { %v2929_v20 = vpop.f32.mrf.mxu1  ;;  %v2902_v41 = vadd.f32 %v2901_v18, %v2900_v16 }
 0x188   : > { %v2930_v42 = vadd.f32 %v2929_v20, %v2928_v17 }
 0x18a   : > { %v1809_v53 = vadd.f32 %v2930_v42, %v2902_v41 }
 0x198   : > { %v2947_v19 = vpop.f32.mrf.mxu0 }
 0x199   : > { %v2975_v21 = vpop.f32.mrf.mxu1 }
 0x19a   : > { %v2948_v22 = vpop.f32.mrf.mxu0 }
 0x19b   : > { %v2976_v23 = vpop.f32.mrf.mxu1  ;;  %v2949_v43 = vadd.f32 %v2948_v22, %v2947_v19 }
 0x19c   : > { %v2950_v24 = vpop.f32.mrf.mxu0  ;;  %v2977_v63 = vadd.f32 %v2976_v23, %v2975_v21 }
 0x19d   : > { %v2978_v25 = vpop.f32.mrf.mxu1  ;;  %v2013_v55 = vadd.f32 %v2949_v43, %v1798_v49 }
 0x19e   : > { %v2951_v26 = vpop.f32.mrf.mxu0 }
 0x19f   : > { %v2979_v27 = vpop.f32.mrf.mxu1  ;;  %v2952_v44 = vadd.f32 %v2951_v26, %v2950_v24  ;;  %v2218_v5 = vadd.f32 %v2977_v63, %v2013_v55 }
 0x1a0   : > { %v2953_v28 = vpop.f32.mrf.mxu0  ;;  %v2980_v0 = vadd.f32 %v2979_v27, %v2978_v25 }
 0x1a1   : > { %v2981_v29 = vpop.f32.mrf.mxu1  ;;  %v2014_v56 = vadd.f32 %v2952_v44, %v1801_v50 }
 0x1a2   : > { %v2954_v30 = vpop.f32.mrf.mxu0 }
 0x1a3   : > { %v2982_v31 = vpop.f32.mrf.mxu1  ;;  %v2955_v46 = vadd.f32 %v2954_v30, %v2953_v28  ;;  %v2219_v6 = vadd.f32 %v2980_v0, %v2014_v56 }
 0x1a4   : > { %v2956_v32 = vpop.f32.mrf.mxu0  ;;  %v2983_v59 = vadd.f32 %v2982_v31, %v2981_v29 }
 0x1a5   : > { %v2984_v33 = vpop.f32.mrf.mxu1  ;;  %v2015_v58 = vadd.f32 %v2955_v46, %v1806_v52 }
 0x1a6   : > { %v2957_v38 = vpop.f32.mrf.mxu0 }
 0x1a7   : > { %v2985_v45 = vpop.f32.mrf.mxu1  ;;  %v2958_v47 = vadd.f32 %v2957_v38, %v2956_v32  ;;  %v2220_v9 = vadd.f32 %v2983_v59, %v2015_v58 }
 0x1a8   : > { %v2986_v61 = vadd.f32 %v2985_v45, %v2984_v33 }
 0x1a9   : > { %v2016_v60 = vadd.f32 %v2958_v47, %v1809_v53 }
 0x1ab   : > { %v2221_v10 = vadd.f32 %v2986_v61, %v2016_v60 }
 0x1b8   : > { %v3003_v48 = vpop.f32.mrf.mxu0 }
 0x1b9   : > { %v3009_v51 = vpop.f32.mrf.mxu1 }
 0x1ba   : > { %v3004_v54 = vpop.f32.mrf.mxu0 }
 0x1bb   : > { %v3010_v57 = vpop.f32.mrf.mxu1  ;;  %v3005_v1 = vadd.f32 %v3004_v54, %v3003_v48 }
 0x1bc   : > { %v3006_v62 = vpop.f32.mrf.mxu0  ;;  %v3011_v3 = vadd.f32 %v3010_v57, %v3009_v51 }
 0x1bd   : > { %v3012_v2 = vpop.f32.mrf.mxu1  ;;  %v2423_v12 = vadd.f32 %v3005_v1, %v2218_v5 }
 0x1be   : > { %v3007_v4 = vpop.f32.mrf.mxu0  ;;  %v2425_v14 = vadd.f32 %v3011_v3, %v2220_v9 }
 0x1bf   : > { %v3008_v7 = vadd.f32 %v3007_v4, %v3006_v62  ;;  %v3013_v8 = vpop.f32.mrf.mxu1 }
 0x1c0   : > { %v3014_v11 = vadd.f32 %v3013_v8, %v3012_v2 }
 0x1c1   : > { %v2424_v13 = vadd.f32 %v3008_v7, %v2219_v6 }
 0x1c2   : > { %v2426_v15 = vadd.f32 %v3014_v11, %v2221_v10  ;;  %2453 = sbr.rel (!%p3315_p6) target bundleno = 464 (0x1d0), region = 269 }
 0x1c3   : > { %v2867_v16 = vpack.c.bf16 %v2424_v13, %v2423_v12 }
 0x1c4   : > { %v2872_v17 = vpack.c.bf16 %v2426_v15, %v2425_v14 }
 0x1c5   : > { %2868 = vst [vmem:[%s1372_s21] sm:$0xff] %v2867_v16  }
 0x1c6   : > { %2874 = vst [vmem:[%s1372_s21 + $0x8] sm:$0xff] %v2872_v17  }
 0x1cc   : > { %v2475_v18 = vld [vmem:[%s1372_s21] sm:$0xf]  ;;  %v2477_v19 = vld [vmem:[%s1372_s21 + $0x4] sm:$0xf] }
 0x1cd   : > { %v2479_v20 = vld [vmem:[%s1372_s21 + $0x8] sm:$0xf]  ;;  %v2481_v21 = vld [vmem:[%s1372_s21 + $0xc] sm:$0xf]  ;;  %2476 = vst [vmem:[%s2458_s25] sm:$0xf] %v2475_v18 }
 0x1ce   : > { %2478 = vst [vmem:[%s2458_s25 + $0x8] sm:$0xf] %v2477_v19  ;;  %2480 = vst [vmem:[%s2458_s25 + $0x10] sm:$0xf] %v2479_v20 }
 0x1cf   : > { %2482 = vst [vmem:[%s2458_s25 + $0x18] sm:$0xf] %v2481_v21 }
 0x1d0 PF: > { %s20_s17 = sadd.s32 1, %s3219_s17   ;;  %s3896_s13 = smov %s3207_s14 }
 0x1d1   : > { %p17_p11 = scmp.ge.s32.totalorder %s20_s17, 4   ;;  %s3897_s14 = smov %s3320_s24 }
 0x1d2   : > { %s3898_s15 = smov %s3215_s16  ;;  %s3899_s16 = smov %s3901_s18 }
 0x1d3   :  { %19 = sbr.rel (!%p17_p11) target bundleno = 3 (0x3), region = 388 }

// kernel: deepv3plus_forward.28
= control target key start
LH: loop header
LB: loop body
LE: loop exit
PB: predicated region body
PF: predicated region fallthrough
CT: control target
= control target key end

     0   :  { %s2169_s9 = smov 0   ;;  %s2171_s10 = smov 0   ;;  %s2448_s0 = inlined_call_operand.vmem [shape: bf16[2,18,18,384], index: 0, kind: input, shape index: {}]   ;;  %s2449_s1 = inlined_call_operand.vmem [shape: bf16[3,1152,256], index: 1, kind: input, shape index: {}]   ;;  %s2450_s2 = inlined_call_operand.vmem [shape: bf16[2,16,16,256], index: 2, kind: output, shape index: {}]  }
   0x1   :  { %s2173_s11 = smov 0   ;;  %s2175_s12 = smov 0  }
   0x2   :  { %s2177_s13 = smov 0   ;;  %s2179_s14 = smov 0  }
   0x3   :  { %s2181_s15 = smov 0  }
   0x4 LB: > { %s27_s16 = sadd.s32 1, %s2138_s12  ;;  %s34_s17 = sadd.s32 1, %s2142_s13  ;;  %s2150_s15 = sphi %s2181_s15, %s12_s15   ;;  %s2146_s14 = sphi %s2179_s14, %s2456_s14   ;;  %s2142_s13 = sphi %s2177_s13, %s2455_s13   ;;  %s2138_s12 = sphi %s2175_s12, %s2454_s12   ;;  %s2134_s11 = sphi %s2173_s11, %s2453_s11   ;;  %s2130_s10 = sphi %s2171_s10, %s2452_s10   ;;  %s2126_s9 = sphi %s2169_s9, %s2451_s9  }
   0x5   : > { %p28_p0 = scmp.ge.s32.totalorder %s27_s16, 3  ;;  %p1648_p1 = scmp.ge.s32.totalorder %s2150_s15, 1 }
   0x6   : > { %p169_p2 = scmp.lt.s32.totalorder %s2150_s15, 97  ;;  %s38_s18 = sadd.s32 1, %s2146_s14 }
   0x7   : > { %s2458_s16 = smov (%p28_p0, %s27_s16), 0  ;;  %s2460_s17 = smov (!%p28_p0, %s34_s17), %s2142_s13 }
   0x8   : > { %p170_p3 = pnand %p1648_p1, %p169_p2  ;;  %p36_p4 = scmp.ge.s32.totalorder %s2460_s17, 16 }
   0x9   : > { %s213_s19 = sadd.s32 (!%p170_p3), %s2126_s9, %s2130_s10  ;;  %p214_p6 = scmp.lt.s32.totalorder (!%p170_p3), %s2134_s11, 1 }
   0xa   : > { %s2462_s17 = smov (%p36_p4, %s2460_s17), 0  ;;  %s2464_s18 = smov (!%p36_p4, %s38_s18), %s2146_s14 }
   0xb   : > { %p40_p5 = scmp.ge.s32.totalorder %s2464_s18, 2  ;;  %173 = sbr.rel (%p170_p3) target bundleno = 409 (0x199), region = 28 }
   0xc   : > { %p216_p7 = scmp.lt.s32.totalorder (!%p170_p3), %s213_s19, 17  ;;  %p225_p8 = scmp.lt.s32.totalorder (!%p170_p3), %s2126_s9, 2 }
   0xd   : > { %s2466_s18 = smov (%p40_p5, %s2464_s18), 0  ;;  %p237_p9 = scmp.lt.s32.totalorder (!%p170_p3), %s2130_s10, 15 }
   0xe   : > { %p1654_p10 = scmp.ne.s32.totalorder (!%p170_p3), %s2126_s9, 0 }
  0x10   : > { %s2468_s11 = smov (!%p214_p6, %s2134_s11), 1  ;;  %s2470_s19 = smov (!%p216_p7, %s213_s19), 17 }
  0x11   : > { %s1813_s20 = smul.u32 162, %s2468_s11  ;;  %s1652_s4 = sshll.u32 %s2468_s11, 6 }
  0x12   : > { %s1812_s21 = smul.u32 9, %s2470_s19  ;;  %s2472_s10 = smov (!%p237_p9, %s2130_s10), 15 }
  0x13   : > { %s226_s22 = scalar_select %p225_p8, %s2126_s9, 2 }
  0x14   : > { %s220_s23 = sadd.s32 %s1813_s20, %s1812_s21  ;;  %s1651_s5 = sshll.u32 %s2472_s10, 2 }
  0x15   : > { %s1649_s24 = sshll.u32 %s220_s23, 2  ;;  %s1814_s25 = smul.u32 1152, %s226_s22 }
  0x16   : > { %s2223_s28 = scalar_lea.vmem %s2448_s0, %s1649_s24  ;;  %s244_s6 = sadd.s32 %s1652_s4, %s1651_s5 }
  0x17   : > { %s2228_s3 = scalar_lea.vmem %s2449_s1, %s1814_s25  ;;  %s1653_s7 = sshll.u32 %s244_s6, 2 }
  0x18   : > { %s2234_s20 = scalar_lea.vmem %s2450_s2, %s1653_s7  ;;  %252 = sbr.rel (%p1654_p10) target bundleno = 32 (0x20), region = 32 }
  0x1d   : > { %v2152_v0 = vmov 0.0  }
  0x1e   : > { %253 = vst [vmem:[#allocation2 + $0x10] sm:$0xff] %v2152_v0  ;;  %254 = vst [vmem:[#allocation2] sm:$0xff] %v2152_v0 }
  0x1f   : > { %255 = vst [vmem:[#allocation2 + $0x18] sm:$0xff] %v2152_v0  ;;  %256 = vst [vmem:[#allocation2 + $0x8] sm:$0xff] %v2152_v0 }
  0x20 PF: > { %v1873_v1 = vld [vmem:[%s2228_s3 + $0x74] ss:$8 sps:$4 sm:$0xff]   ;;  %v2153_v3 = vmov 0   ;;  %v1877_v4 = vld [vmem:[%s2228_s3 + $0x70] ss:$8 sps:$4 sm:$0xff]   ;;  %vm1135_vm1 = vcmask 1046528  }
  0x21   : > { %v1875_v2 = vld [vmem:[%s2228_s3 + $0x174] ss:$8 sps:$4 sm:$0xff]   ;;  %742 = vmatprep.mubr.bf16.mxu1 %v2153_v3  ;;  %667 = vmatprep.subr.bf16.mxu0 %v1873_v1  ;;  %v1878_v5 = vld [vmem:[%s2228_s3 + $0x170] ss:$8 sps:$4 sm:$0xff]   ;;  %v1879_v6 = vld [vmem:[%s2228_s3 + $0x64] ss:$8 sps:$4 sm:$0xff]  }
  0x22   : > { %710 = vmatprep.subr.bf16.mxu1 %v1875_v2  ;;  %668 = vmatpush1.bf16.msra.mxu0 %v1877_v4  ;;  %v1881_v7 = vld [vmem:[%s2228_s3 + $0x164] ss:$8 sps:$4 sm:$0xff]   ;;  %v1883_v8 = vld [vmem:[%s2228_s3 + $0x60] ss:$8 sps:$4 sm:$0xff]   ;;  %v1885_v10 = vld [vmem:[%s2228_s3 + $0x54] ss:$8 sps:$4 sm:$0xff]  }
  0x23   : > { %711 = vmatpush1.bf16.msra.mxu1 %v1878_v5  ;;  %669 = vmatprep.subr.bf16.mxu0 %v1879_v6  ;;  %v1884_v9 = vld [vmem:[%s2228_s3 + $0x160] ss:$8 sps:$4 sm:$0xff]   ;;  %v1887_v11 = vld [vmem:[%s2228_s3 + $0x154] ss:$8 sps:$4 sm:$0xff]   ;;  %v1889_v12 = vld [vmem:[%s2228_s3 + $0x50] ss:$8 sps:$4 sm:$0xff]  }
  0x24   : > { %712 = vmatprep.subr.bf16.mxu1 %v1881_v7  ;;  %v1890_v13 = vld [vmem:[%s2228_s3 + $0x150] ss:$8 sps:$4 sm:$0xff]   ;;  %v1891_v14 = vld [vmem:[%s2228_s3 + $0x44] ss:$8 sps:$4 sm:$0xff]   ;;  %v1895_v16 = vld [vmem:[%s2228_s3 + $0x40] ss:$8 sps:$4 sm:$0xff]  }
  0x25   : > { %v1893_v15 = vld [vmem:[%s2228_s3 + $0x144] ss:$8 sps:$4 sm:$0xff]   ;;  %v1896_v17 = vld [vmem:[%s2228_s3 + $0x140] ss:$8 sps:$4 sm:$0xff]   ;;  %v1897_v18 = vld [vmem:[%s2228_s3 + $0x34] ss:$8 sps:$4 sm:$0xff]  }
  0x26   : > { %670 = vmatpush1.bf16.msra.mxu0 %v1883_v8  ;;  %v1899_v19 = vld [vmem:[%s2228_s3 + $0x134] ss:$8 sps:$4 sm:$0xff]   ;;  %v1901_v20 = vld [vmem:[%s2228_s3 + $0x30] ss:$8 sps:$4 sm:$0xff]   ;;  %v1903_v22 = vld [vmem:[%s2228_s3 + $0x24] ss:$8 sps:$4 sm:$0xff]  }
  0x27   : > { %713 = vmatpush1.bf16.msra.mxu1 %v1884_v9  ;;  %671 = vmatprep.subr.bf16.mxu0 %v1885_v10  ;;  %v1902_v21 = vld [vmem:[%s2228_s3 + $0x130] ss:$8 sps:$4 sm:$0xff]   ;;  %v1905_v23 = vld [vmem:[%s2228_s3 + $0x124] ss:$8 sps:$4 sm:$0xff]   ;;  %v1907_v24 = vld [vmem:[%s2228_s3 + $0x20] ss:$8 sps:$4 sm:$0xff]  }
  0x28   : > { %714 = vmatprep.subr.bf16.mxu1 %v1887_v11  ;;  %v1908_v25 = vld [vmem:[%s2228_s3 + $0x120] ss:$8 sps:$4 sm:$0xff]   ;;  %v1909_v26 = vld [vmem:[%s2228_s3 + $0x14] ss:$8 sps:$4 sm:$0xff]   ;;  %v1913_v28 = vld [vmem:[%s2228_s3 + $0x10] ss:$8 sps:$4 sm:$0xff]  }
  0x29   : > { %v1911_v27 = vld [vmem:[%s2228_s3 + $0x114] ss:$8 sps:$4 sm:$0xff]   ;;  %v1914_v29 = vld [vmem:[%s2228_s3 + $0x110] ss:$8 sps:$4 sm:$0xff]   ;;  %v1915_v30 = vld [vmem:[%s2228_s3 + $0x4] ss:$8 sps:$4 sm:$0xff]  }
  0x2a   : > { %672 = vmatpush1.bf16.msra.mxu0 %v1889_v12  ;;  %v1917_v31 = vld [vmem:[%s2228_s3 + $0x104] ss:$8 sps:$4 sm:$0xff]   ;;  %v1919_v32 = vld [vmem:[%s2228_s3] ss:$8 sps:$4 sm:$0xff]   ;;  %v1921_v34 = vld [vmem:[%s2228_s3 + $0xf4] ss:$8 sps:$4 sm:$0xff]  }
  0x2b   : > { %715 = vmatpush1.bf16.msra.mxu1 %v1890_v13  ;;  %673 = vmatprep.subr.bf16.mxu0 %v1891_v14  ;;  %v1920_v33 = vld [vmem:[%s2228_s3 + $0x100] ss:$8 sps:$4 sm:$0xff]   ;;  %v1925_v35 = vld [vmem:[%s2228_s3 + $0x1f4] ss:$8 sps:$4 sm:$0xff]   ;;  %v1923_v37 = vld [vmem:[%s2228_s3 + $0x1f0] ss:$8 sps:$4 sm:$0xff]  }
  0x2c   : > { %716 = vmatprep.subr.bf16.mxu1 %v1893_v15  ;;  %v2273_v36 = vld [vmem:[%s2223_s28 + $0x8] ss:$12 sps:$4 sm:$0xff]   ;;  %v1926_v38 = vld [vmem:[%s2228_s3 + $0xf0] ss:$8 sps:$4 sm:$0xff]   ;;  %v1928_v39 = vld [vmem:[%s2228_s3 + $0xe4] ss:$8 sps:$4 sm:$0xff]  }
  0x2d   : > { %v1932_v40 = vld [vmem:[%s2228_s3 + $0x1e4] ss:$8 sps:$4 sm:$0xff]   ;;  %v1930_v41 = vld [vmem:[%s2228_s3 + $0x1e0] ss:$8 sps:$4 sm:$0xff]   ;;  %v1934_v43 = vld [vmem:[%s2228_s3 + $0xd4] ss:$8 sps:$4 sm:$0xff]  }
  0x2e   : > { %674 = vmatpush1.bf16.msra.mxu0 %v1895_v16  ;;  %v1933_v42 = vld [vmem:[%s2228_s3 + $0xe0] ss:$8 sps:$4 sm:$0xff]   ;;  %v1938_v44 = vld [vmem:[%s2228_s3 + $0x1d4] ss:$8 sps:$4 sm:$0xff]   ;;  %v1936_v45 = vld [vmem:[%s2228_s3 + $0x1d0] ss:$8 sps:$4 sm:$0xff]  }
  0x2f   : > { %717 = vmatpush1.bf16.msra.mxu1 %v1896_v17  ;;  %675 = vmatprep.subr.bf16.mxu0 %v1897_v18  ;;  %v1939_v46 = vld [vmem:[%s2228_s3 + $0xd0] ss:$8 sps:$4 sm:$0xff]   ;;  %v1940_v47 = vld [vmem:[%s2228_s3 + $0xc4] ss:$8 sps:$4 sm:$0xff]   ;;  %v1942_v49 = vld [vmem:[%s2228_s3 + $0x1c0] ss:$8 sps:$4 sm:$0xff]  }
  0x30   : > { %718 = vmatprep.subr.bf16.mxu1 %v1899_v19  ;;  %v1944_v48 = vld [vmem:[%s2228_s3 + $0x1c4] ss:$8 sps:$4 sm:$0xff]   ;;  %v1945_v50 = vld [vmem:[%s2228_s3 + $0xc0] ss:$8 sps:$4 sm:$0xff]   ;;  %v1946_v51 = vld [vmem:[%s2228_s3 + $0xb4] ss:$8 sps:$4 sm:$0xff]  }
  0x31   : > { %v2292_v52 = vld [vmem:[%s2223_s28 + $0x4] ss:$12 sps:$4 sm:$0xff]   ;;  %v1950_v53 = vld [vmem:[%s2228_s3 + $0x1b4] ss:$8 sps:$4 sm:$0xff]   ;;  %v1954_v58 = vld [vmem:[%s2228_s3 + $0x1a0] ss:$8 sps:$4 sm:$0xff]  }
  0x32   : > { %676 = vmatpush1.bf16.msra.mxu0 %v1901_v20  ;;  %699 = vmatprep.mubr.bf16.mxu0 %v2292_v52  ;;  %v1948_v54 = vld [vmem:[%s2228_s3 + $0x1b0] ss:$8 sps:$4 sm:$0xff]   ;;  %v1952_v56 = vld [vmem:[%s2228_s3 + $0xa4] ss:$8 sps:$4 sm:$0xff]   ;;  %v1957_v59 = vld [vmem:[%s2228_s3 + $0xa0] ss:$8 sps:$4 sm:$0xff]  }
  0x33   : > { %719 = vmatpush1.bf16.msra.mxu1 %v1902_v21  ;;  %677 = vmatprep.subr.bf16.mxu0 %v1903_v22  ;;  %v1951_v55 = vld [vmem:[%s2228_s3 + $0xb0] ss:$8 sps:$4 sm:$0xff]   ;;  %v1956_v57 = vld [vmem:[%s2228_s3 + $0x1a4] ss:$8 sps:$4 sm:$0xff]   ;;  %v1958_v60 = vld [vmem:[%s2228_s3 + $0x94] ss:$8 sps:$4 sm:$0xff]  }
  0x34   : > { %720 = vmatprep.subr.bf16.mxu1 %v1905_v23  ;;  %v1962_v61 = vld [vmem:[%s2228_s3 + $0x194] ss:$8 sps:$4 sm:$0xff]   ;;  %v1960_v62 = vld [vmem:[%s2228_s3 + $0x190] ss:$8 sps:$4 sm:$0xff]   ;;  %v1964_v0 = vld [vmem:[%s2228_s3 + $0x84] ss:$8 sps:$4 sm:$0xff]  }
  0x35   : > { %v1963_v63 = vld [vmem:[%s2228_s3 + $0x90] ss:$8 sps:$4 sm:$0xff]   ;;  %v1968_v1 = vld [vmem:[%s2228_s3 + $0x184] ss:$8 sps:$4 sm:$0xff]   ;;  %v1966_v2 = vld [vmem:[%s2228_s3 + $0x180] ss:$8 sps:$4 sm:$0xff]  }
  0x36   : > { %678 = vmatpush1.bf16.msra.mxu0 %v1907_v24  ;;  %v1969_v4 = vld [vmem:[%s2228_s3 + $0x80] ss:$8 sps:$4 sm:$0xff]   ;;  %v1975_v5 = vld [vmem:[%s2228_s3 + $0x274] ss:$8 sps:$4 sm:$0xff]   ;;  %v781_v7 = vshll.u32 %v2292_v52, 16  ;;  %v779_v13 = vshrl.u32 %v2292_v52, 16 }
  0x37   : > { %721 = vmatpush1.bf16.msra.mxu1 %v1908_v25  ;;  %679 = vmatprep.subr.bf16.mxu0 %v1909_v26  ;;  %v1978_v6 = vld [vmem:[%s2228_s3 + $0x2f4] ss:$8 sps:$4 sm:$0xff]   ;;  %v2314_v8 = vld [vmem:[%s2223_s28] ss:$12 sps:$4 sm:$0xff]   ;;  %v1973_v9 = vld [vmem:[%s2228_s3 + $0x270] ss:$8 sps:$4 sm:$0xff]  }
  0x38   : > { %722 = vmatprep.subr.bf16.mxu1 %v1911_v27  ;;  %v1976_v10 = vld [vmem:[%s2228_s3 + $0x2f0] ss:$8 sps:$4 sm:$0xff]   ;;  %v1981_v11 = vld [vmem:[%s2228_s3 + $0x264] ss:$8 sps:$4 sm:$0xff]   ;;  %v783_v14 = vrot.slane %v781_v7, 1  ;;  %v1136_v24 = vrot.slane %v2314_v8, 1 }
  0x39   : > { %v1984_v12 = vld [vmem:[%s2228_s3 + $0x2e4] ss:$8 sps:$4 sm:$0xff]   ;;  %v261_v15 = vld [vmem:[%s2223_s28 + $0x18] sm:$0x11]  ;;  %v1979_v17 = vld [vmem:[%s2228_s3 + $0x260] ss:$8 sps:$4 sm:$0xff]  }
  0x3a   : > { %680 = vmatpush1.bf16.msra.mxu0 %v1913_v28  ;;  %v2323_v16 = vcombine.high %v261_v15, %v261_v15  ;;  %v1982_v18 = vld [vmem:[%s2228_s3 + $0x2e0] ss:$8 sps:$4 sm:$0xff]   ;;  %v1987_v19 = vld [vmem:[%s2228_s3 + $0x254] ss:$8 sps:$4 sm:$0xff]   ;;  %v784_v21 = vor.u32 %v783_v14, %v779_v13  ;;  %vm765_vm0 = vsmask.f32 7424  ;;  %v1706_v23 = vcombine.low %v261_v15, %v261_v15 }
  0x3b   : > { %723 = vmatpush1.bf16.msra.mxu1 %v1914_v29  ;;  %681 = vmatprep.subr.bf16.mxu0 %v1915_v30  ;;  %v1990_v20 = vld [vmem:[%s2228_s3 + $0x2d4] ss:$8 sps:$4 sm:$0xff]   ;;  %v1985_v25 = vld [vmem:[%s2228_s3 + $0x250] ss:$8 sps:$4 sm:$0xff]   ;;  %v1993_v28 = vld [vmem:[%s2228_s3 + $0x244] ss:$8 sps:$4 sm:$0xff]  }
  0x3c   : > { %724 = vmatprep.subr.bf16.mxu1 %v1917_v31  ;;  %v786_v22 = vshll.u32 %v2323_v16, 16  ;;  %v1988_v27 = vld [vmem:[%s2228_s3 + $0x2d0] ss:$8 sps:$4 sm:$0xff]   ;;  %v1137_v29 = vrot.slane %v1706_v23, 1  ;;  %v1996_v30 = vld [vmem:[%s2228_s3 + $0x2c4] ss:$8 sps:$4 sm:$0xff]  }
  0x3d   : > { %v2029_v7 = vld [vmem:[%s2228_s3 + $0x364] ss:$8 sps:$4 sm:$0xff]   ;;  %v2027_v13 = vld [vmem:[%s2228_s3 + $0x360] ss:$8 sps:$4 sm:$0xff]   ;;  %v2032_v15 = vld [vmem:[%s2228_s3 + $0x354] ss:$8 sps:$4 sm:$0xff]  }
  0x3e   : > { %682 = vmatpush1.bf16.msra.mxu0 %v1919_v32  ;;  %v788_v26 = vrot.slane %v786_v22, 1  ;;  %v2338_v32 = vsel %vm1135_vm1, %v1136_v24, %v1137_v29  ;;  %v2051_v14 = vld [vmem:[%s2228_s3 + $0x460] ss:$8 sps:$4 sm:$0xff]   ;;  %v2036_v24 = vld [vmem:[%s2228_s3 + $0x330] ss:$8 sps:$4 sm:$0xff]   ;;  %p1805_p11 = scmp.ne.s32.totalorder %s2126_s9, 2 }
  0x3f   : > { %725 = vmatpush1.bf16.msra.mxu1 %v1920_v33  ;;  %683 = vmatprep.subr.bf16.mxu0 %v1921_v34  ;;  %v1991_v33 = vld [vmem:[%s2228_s3 + $0x240] ss:$8 sps:$4 sm:$0xff]  }
  0x40   : > { %1045 = vmatprep.subr.bf16.mxu1 %v1925_v35  ;;  %v789_v31 = vsel %vm765_vm0, %v784_v21, %v788_v26  ;;  %v1994_v34 = vld [vmem:[%s2228_s3 + $0x2c0] ss:$8 sps:$4 sm:$0xff]   ;;  %v1999_v35 = vld [vmem:[%s2228_s3 + $0x234] ss:$8 sps:$4 sm:$0xff]   ;;  %v2041_v26 = vld [vmem:[%s2228_s3 + $0x324] ss:$8 sps:$4 sm:$0xff]  }
  0x41   : > { %v2033_v21 = vld [vmem:[%s2228_s3 + $0x340] ss:$8 sps:$4 sm:$0xff]  }
  0x42   : > { %743 = vmatmul.mubr.bf16.vlgmr.msra.gmra.mxu1 %v2273_v36  ;;  %684 = vmatpush2.bf16.msra.mxu0 %v1926_v38  ;;  %v1997_v38 = vld [vmem:[%s2228_s3 + $0x230] ss:$8 sps:$4 sm:$0xff]   ;;  %v2063_v22 = vld [vmem:[%s2228_s3 + $0x440] ss:$8 sps:$4 sm:$0xff]  }
  0x43   : > { %1046 = vmatpush1.bf16.msra.mxu1 %v1923_v37  ;;  %685 = vmatprep.subr.bf16.mxu0 %v1928_v39  ;;  %v2002_v37 = vld [vmem:[%s2228_s3 + $0x2b4] ss:$8 sps:$4 sm:$0xff]   ;;  %v2000_v39 = vld [vmem:[%s2228_s3 + $0x2b0] ss:$8 sps:$4 sm:$0xff]   ;;  %v2075_v29 = vld [vmem:[%s2228_s3 + $0x420] ss:$8 sps:$4 sm:$0xff]  }
  0x44   : > { %1047 = vmatprep.subr.bf16.mxu1 %v1932_v40  ;;  %1077 = vmatprep.mubr.bf16.mxu1 %v789_v31  ;;  %v2005_v40 = vld [vmem:[%s2228_s3 + $0x224] ss:$8 sps:$4 sm:$0xff]   ;;  %v2083_v31 = vld [vmem:[%s2228_s3 + $0x414] ss:$8 sps:$4 sm:$0xff]  }
  0x46   : > { %686 = vmatpush2.bf16.msra.mxu0 %v1933_v42  ;;  %v2003_v42 = vld [vmem:[%s2228_s3 + $0x220] ss:$8 sps:$4 sm:$0xff]  }
  0x47   : > { %1048 = vmatpush1.bf16.msra.mxu1 %v1930_v41  ;;  %687 = vmatprep.subr.bf16.mxu0 %v1934_v43  ;;  %v2008_v41 = vld [vmem:[%s2228_s3 + $0x2a4] ss:$8 sps:$4 sm:$0xff]   ;;  %v793_v43 = vshll.u32 %v2273_v36, 16 }
  0x48   : > { %1049 = vmatprep.subr.bf16.mxu1 %v1938_v44  ;;  %v2006_v44 = vld [vmem:[%s2228_s3 + $0x2a0] ss:$8 sps:$4 sm:$0xff]  }
  0x4a   : > { %688 = vmatpush2.bf16.msra.mxu0 %v1939_v46  ;;  %v769_v46 = vshll.u32 %v2314_v8, 16 }
  0x4b   : > { %1050 = vmatpush1.bf16.msra.mxu1 %v1936_v45  ;;  %689 = vmatprep.subr.bf16.mxu0 %v1940_v47  ;;  %v2011_v45 = vld [vmem:[%s2228_s3 + $0x214] ss:$8 sps:$4 sm:$0xff]   ;;  %v2354_v47 = vld [vmem:[%s2223_s28 + $0x20] ss:$0 sps:$4 sm:$0x11]  }
  0x4c   : > { %1051 = vmatprep.subr.bf16.mxu1 %v1944_v48  ;;  %v2014_v48 = vld [vmem:[%s2228_s3 + $0x294] ss:$8 sps:$4 sm:$0xff]  }
  0x4e   : > { %690 = vmatpush2.bf16.msra.mxu0 %v1945_v50  ;;  %v791_v50 = vshrl.u32 %v2273_v36, 16 }
  0x4f   : > { %1052 = vmatpush1.bf16.msra.mxu1 %v1942_v49  ;;  %691 = vmatprep.subr.bf16.mxu0 %v1946_v51  ;;  %v767_v49 = vshrl.u32 %v2314_v8, 16  ;;  %v795_v51 = vrot.slane %v793_v43, 1  ;;  %v2054_v43 = vld [vmem:[%s2228_s3 + $0x3f0] ss:$8 sps:$4 sm:$0xff]  }
  0x50   : > { %1053 = vmatprep.subr.bf16.mxu1 %v1950_v53  ;;  %v2009_v53 = vld [vmem:[%s2228_s3 + $0x210] ss:$8 sps:$4 sm:$0xff]  }
  0x52   : > { %692 = vmatpush2.bf16.msra.mxu0 %v1951_v55  ;;  %v771_v55 = vrot.slane %v769_v46, 1  ;;  %v2068_v46 = vld [vmem:[%s2228_s3 + $0x3d4] ss:$8 sps:$4 sm:$0xff]  }
  0x53   : > { %1054 = vmatpush1.bf16.msra.mxu1 %v1948_v54  ;;  %693 = vmatprep.subr.bf16.mxu0 %v1952_v56  ;;  %v2012_v54 = vld [vmem:[%s2228_s3 + $0x290] ss:$8 sps:$4 sm:$0xff]   ;;  %v2017_v56 = vld [vmem:[%s2228_s3 + $0x204] ss:$8 sps:$4 sm:$0xff]  }
  0x54   : > { %1055 = vmatprep.subr.bf16.mxu1 %v1956_v57  ;;  %v774_v57 = vshll.u32 %v1706_v23, 16  ;;  %v2071_v23 = vld [vmem:[%s2228_s3 + $0x434] ss:$8 sps:$4 sm:$0xff]  }
  0x56   : > { %694 = vmatpush2.bf16.msra.mxu0 %v1957_v59  ;;  %v2020_v59 = vld [vmem:[%s2228_s3 + $0x284] ss:$8 sps:$4 sm:$0xff]  }
  0x57   : > { %1056 = vmatpush1.bf16.msra.mxu1 %v1954_v58  ;;  %695 = vmatprep.subr.bf16.mxu0 %v1958_v60  ;;  %v798_v58 = vshll.u32 %v2354_v47, 16  ;;  %v2015_v60 = vld [vmem:[%s2228_s3 + $0x200] ss:$8 sps:$4 sm:$0xff]  }
  0x58   : > { %1057 = vmatprep.subr.bf16.mxu1 %v1962_v61  ;;  %v2018_v61 = vld [vmem:[%s2228_s3 + $0x280] ss:$8 sps:$4 sm:$0xff]  }
  0x5a   : > { %696 = vmatpush2.bf16.msra.mxu0 %v1963_v63  ;;  %v776_v63 = vrot.slane %v774_v57, 1  ;;  %v2095_v57 = vld [vmem:[%s2228_s3 + $0x384] ss:$8 sps:$4 sm:$0xff]  }
  0x5b   : > { %1058 = vmatpush1.bf16.msra.mxu1 %v1960_v62  ;;  %697 = vmatprep.subr.bf16.mxu0 %v1964_v0  ;;  %v772_v62 = vor.u32 %v771_v55, %v767_v49  ;;  %v796_v0 = vor.u32 %v795_v51, %v791_v50  ;;  %v2072_v49 = vld [vmem:[%s2228_s3 + $0x3c0] ss:$8 sps:$4 sm:$0xff]   ;;  %v2080_v50 = vld [vmem:[%s2228_s3 + $0x3b4] ss:$8 sps:$4 sm:$0xff]   ;;  %v2078_v51 = vld [vmem:[%s2228_s3 + $0x3b0] ss:$8 sps:$4 sm:$0xff]  }
  0x5c   : > { %1059 = vmatprep.subr.bf16.mxu1 %v1968_v1  ;;  %v800_v1 = vrot.slane %v798_v58, 1  ;;  %v2092_v55 = vld [vmem:[%s2228_s3 + $0x394] ss:$8 sps:$4 sm:$0xff]   ;;  %v2093_v58 = vld [vmem:[%s2228_s3 + $0x380] ss:$8 sps:$4 sm:$0xff]  }
  0x5e   : > { %698 = vmatpush2.bf16.msra.mxu0 %v1969_v4  ;;  %v2047_v4 = vld [vmem:[%s2228_s3 + $0x474] ss:$8 sps:$4 sm:$0xff]  }
  0x5f   : > { %1060 = vmatpush1.bf16.msra.mxu1 %v1966_v2  ;;  %1088 = vmatprep.subr.bf16.mxu0 %v1978_v6  ;;  %v2026_v2 = vld [vmem:[%s2228_s3 + $0x374] ss:$8 sps:$4 sm:$0xff]   ;;  %v2024_v6 = vld [vmem:[%s2228_s3 + $0x370] ss:$8 sps:$4 sm:$0xff]  }
  0x60   : > { %1061 = vmatprep.subr.bf16.mxu1 %v1975_v5  ;;  %v1139_v5 = vrot.slane %v2292_v52, 1 }
  0x61   : > { %700 = vmatmul.mubr.bf16.vlgmr.msra.gmra.mxu0 %v2314_v8  ;;  %v1140_v8 = vrot.slane %v2323_v16, 1  ;;  %v2059_v16 = vld [vmem:[%s2228_s3 + $0x454] ss:$8 sps:$4 sm:$0xff]  }
  0x62   : > { %1089 = vmatpush1.bf16.msra.mxu0 %v1976_v10  ;;  %1120 = vmatprep.mubr.bf16.mxu0 %v2153_v3  ;;  %v801_v10 = vsel %vm765_vm0, %v796_v0, %v800_v1 }
  0x63   : > { %1062 = vmatpush2.bf16.msra.mxu1 %v1973_v9  ;;  %1090 = vmatprep.subr.bf16.mxu0 %v1984_v12  ;;  %v777_v9 = vsel %vm765_vm0, %v772_v62, %v776_v63  ;;  %v2053_v12 = vld [vmem:[%s2228_s3 + $0x464] ss:$8 sps:$4 sm:$0xff]   ;;  %v1141_v52 = vsel %vm1135_vm1, %v1139_v5, %v1140_v8 }
  0x64   : > { %1063 = vmatprep.subr.bf16.mxu1 %v1981_v11  ;;  %v2045_v11 = vld [vmem:[%s2228_s3 + $0x470] ss:$8 sps:$4 sm:$0xff]  }
  0x66   : > { %1091 = vmatpush1.bf16.msra.mxu0 %v1982_v18  ;;  %v2057_v18 = vld [vmem:[%s2228_s3 + $0x450] ss:$8 sps:$4 sm:$0xff]  }
  0x67   : > { %1064 = vmatpush2.bf16.msra.mxu1 %v1979_v17  ;;  %1092 = vmatprep.subr.bf16.mxu0 %v1990_v20  ;;  %v2030_v17 = vld [vmem:[%s2228_s3 + $0x350] ss:$8 sps:$4 sm:$0xff]   ;;  %v2065_v20 = vld [vmem:[%s2228_s3 + $0x444] ss:$8 sps:$4 sm:$0xff]  }
  0x68   : > { %1065 = vmatprep.subr.bf16.mxu1 %v1987_v19  ;;  %v2035_v19 = vld [vmem:[%s2228_s3 + $0x344] ss:$8 sps:$4 sm:$0xff]  }
  0x6a   : > { %1093 = vmatpush1.bf16.msra.mxu0 %v1988_v27  ;;  %v2077_v27 = vld [vmem:[%s2228_s3 + $0x424] ss:$8 sps:$4 sm:$0xff]  }
  0x6b   : > { %1066 = vmatpush2.bf16.msra.mxu1 %v1985_v25  ;;  %1094 = vmatprep.subr.bf16.mxu0 %v1996_v30  ;;  %v2069_v25 = vld [vmem:[%s2228_s3 + $0x430] ss:$8 sps:$4 sm:$0xff]   ;;  %v2044_v30 = vld [vmem:[%s2228_s3 + $0x314] ss:$8 sps:$4 sm:$0xff]  }
  0x6c   : > { %1067 = vmatprep.subr.bf16.mxu1 %v1993_v28  ;;  %v2039_v28 = vld [vmem:[%s2228_s3 + $0x320] ss:$8 sps:$4 sm:$0xff]  }
  0x6e   : > { %1095 = vmatpush1.bf16.msra.mxu0 %v1994_v34  ;;  %v2081_v34 = vld [vmem:[%s2228_s3 + $0x410] ss:$8 sps:$4 sm:$0xff]  }
  0x6f   : > { %1068 = vmatpush2.bf16.msra.mxu1 %v1991_v33  ;;  %1096 = vmatprep.subr.bf16.mxu0 %v2002_v37  ;;  %v2042_v33 = vld [vmem:[%s2228_s3 + $0x310] ss:$8 sps:$4 sm:$0xff]   ;;  %v2089_v37 = vld [vmem:[%s2228_s3 + $0x404] ss:$8 sps:$4 sm:$0xff]  }
  0x70   : > { %1069 = vmatprep.subr.bf16.mxu1 %v1999_v35  ;;  %v2050_v35 = vld [vmem:[%s2228_s3 + $0x304] ss:$8 sps:$4 sm:$0xff]  }
  0x72   : > { %1097 = vmatpush1.bf16.msra.mxu0 %v2000_v39  ;;  %v2087_v39 = vld [vmem:[%s2228_s3 + $0x400] ss:$8 sps:$4 sm:$0xff]  }
  0x73   : > { %1070 = vmatpush2.bf16.msra.mxu1 %v1997_v38  ;;  %1098 = vmatprep.subr.bf16.mxu0 %v2008_v41  ;;  %v2048_v38 = vld [vmem:[%s2228_s3 + $0x300] ss:$8 sps:$4 sm:$0xff]   ;;  %v1143_v41 = vrot.slane %v2354_v47, 1  ;;  %v2066_v47 = vld [vmem:[%s2228_s3 + $0x3d0] ss:$8 sps:$4 sm:$0xff]  }
  0x74   : > { %1071 = vmatprep.subr.bf16.mxu1 %v2005_v40  ;;  %v1142_v40 = vrot.slane %v2273_v36, 1  ;;  %v2060_v36 = vld [vmem:[%s2228_s3 + $0x3e0] ss:$8 sps:$4 sm:$0xff]  }
  0x76   : > { %1099 = vmatpush1.bf16.msra.mxu0 %v2006_v44  ;;  %v1144_v44 = vsel %vm1135_vm1, %v1142_v40, %v1143_v41 }
  0x77   : > { %1072 = vmatpush2.bf16.msra.mxu1 %v2003_v42  ;;  %1100 = vmatprep.subr.bf16.mxu0 %v2014_v48  ;;  %v2056_v42 = vld [vmem:[%s2228_s3 + $0x3f4] ss:$8 sps:$4 sm:$0xff]   ;;  %v2074_v48 = vld [vmem:[%s2228_s3 + $0x3c4] ss:$8 sps:$4 sm:$0xff]  }
  0x78   : > { %1073 = vmatprep.subr.bf16.mxu1 %v2011_v45  ;;  %v2062_v45 = vld [vmem:[%s2228_s3 + $0x3e4] ss:$8 sps:$4 sm:$0xff]  }
  0x7a   : > { %1101 = vmatpush1.bf16.msra.mxu0 %v2012_v54  ;;  %v2084_v54 = vld [vmem:[%s2228_s3 + $0x3a0] ss:$8 sps:$4 sm:$0xff]  }
  0x7b   : > { %1074 = vmatpush2.bf16.msra.mxu1 %v2009_v53  ;;  %1102 = vmatprep.subr.bf16.mxu0 %v2020_v59  ;;  %v2086_v53 = vld [vmem:[%s2228_s3 + $0x3a4] ss:$8 sps:$4 sm:$0xff]  }
  0x7c   : > { %1075 = vmatprep.subr.bf16.mxu1 %v2017_v56  ;;  %v2090_v56 = vld [vmem:[%s2228_s3 + $0x390] ss:$8 sps:$4 sm:$0xff]  }
  0x7e   : > { %1103 = vmatpush1.bf16.msra.mxu0 %v2018_v61 }
  0x7f   : > { %1076 = vmatpush2.bf16.msra.mxu1 %v2015_v60  ;;  %1388 = vmatprep.subr.bf16.mxu0 %v2026_v2 }
  0x80   : > { %1431 = vmatprep.subr.bf16.mxu1 %v2047_v4 }
  0x81   : > { %1121 = vmatmul.mubr.bf16.vlgmr.msra.gmra.mxu0 %v801_v10 }
  0x82   : > { %1078 = vmatmul.mubr.bf16.vlgmr.msra.gmra.mxu1 %v777_v9  ;;  %1389 = vmatpush1.bf16.msra.mxu0 %v2024_v6 }
  0x83   : > { %1432 = vmatpush1.bf16.msra.mxu1 %v2045_v11  ;;  %1390 = vmatprep.subr.bf16.mxu0 %v2029_v7 }
  0x84   : > { %1433 = vmatprep.subr.bf16.mxu1 %v2053_v12  ;;  %1463 = vmatprep.mubr.bf16.mxu1 %v2153_v3  ;;  %v2038_v3 = vld [vmem:[%s2228_s3 + $0x334] ss:$8 sps:$4 sm:$0xff]  }
  0x85   : > { %1420 = vmatprep.mubr.bf16.mxu0 %v1141_v52  ;;  %v407_v52 = vld [vmem:[#allocation2 + $0x10] sm:$0xff] }
  0x86   : > { %1391 = vmatpush1.bf16.msra.mxu0 %v2027_v13 }
  0x87   : > { %1434 = vmatpush1.bf16.msra.mxu1 %v2051_v14  ;;  %1392 = vmatprep.subr.bf16.mxu0 %v2032_v15 }
  0x88   : > { %1435 = vmatprep.subr.bf16.mxu1 %v2059_v16 }
  0x8a   : > { %1393 = vmatpush1.bf16.msra.mxu0 %v2030_v17 }
  0x8b   : > { %1436 = vmatpush1.bf16.msra.mxu1 %v2057_v18  ;;  %1394 = vmatprep.subr.bf16.mxu0 %v2035_v19  ;;  %v409_v19 = vld [vmem:[#allocation2 + $0x18] sm:$0xff] }
  0x8c   : > { %1437 = vmatprep.subr.bf16.mxu1 %v2065_v20 }
  0x8e   : > { %1395 = vmatpush1.bf16.msra.mxu0 %v2033_v21 }
  0x8f   : > { %1438 = vmatpush1.bf16.msra.mxu1 %v2063_v22  ;;  %1396 = vmatprep.subr.bf16.mxu0 %v2038_v3 }
  0x90   : > { %1439 = vmatprep.subr.bf16.mxu1 %v2071_v23 }
  0x92   : > { %1397 = vmatpush1.bf16.msra.mxu0 %v2036_v24 }
  0x93   : > { %1440 = vmatpush1.bf16.msra.mxu1 %v2069_v25  ;;  %1398 = vmatprep.subr.bf16.mxu0 %v2041_v26 }
  0x94   : > { %1441 = vmatprep.subr.bf16.mxu1 %v2077_v27  ;;  %v410_v27 = vld [vmem:[#allocation2 + $0x8] sm:$0xff] }
  0x96   : > { %1399 = vmatpush1.bf16.msra.mxu0 %v2039_v28 }
  0x97   : > { %1442 = vmatpush1.bf16.msra.mxu1 %v2075_v29  ;;  %1400 = vmatprep.subr.bf16.mxu0 %v2044_v30 }
  0x98   : > { %1443 = vmatprep.subr.bf16.mxu1 %v2083_v31 }
  0x9a   : > { %1401 = vmatpush1.bf16.msra.mxu0 %v2042_v33 }
  0x9b   : > { %1444 = vmatpush1.bf16.msra.mxu1 %v2081_v34  ;;  %1402 = vmatprep.subr.bf16.mxu0 %v2050_v35 }
  0x9c   : > { %1445 = vmatprep.subr.bf16.mxu1 %v2089_v37 }
  0x9e   : > { %1403 = vmatpush1.bf16.msra.mxu0 %v2048_v38 }
  0x9f   : > { %1446 = vmatpush1.bf16.msra.mxu1 %v2087_v39  ;;  %1404 = vmatprep.subr.bf16.mxu0 %v2056_v42 }
  0xa2   : > { %1464 = vmatmul.mubr.bf16.vlgmr.msra.gmra.mxu1 %v1144_v44  ;;  %1405 = vmatpush2.bf16.msra.mxu0 %v2054_v43 }
  0xa3   : > { %1406 = vmatprep.subr.bf16.mxu0 %v2062_v45 }
  0xa6   : > { %1407 = vmatpush2.bf16.msra.mxu0 %v2060_v36 }
  0xa7   : > { %1408 = vmatprep.subr.bf16.mxu0 %v2068_v46 }
  0xaa   : > { %1409 = vmatpush2.bf16.msra.mxu0 %v2066_v47 }
  0xab   : > { %1410 = vmatprep.subr.bf16.mxu0 %v2074_v48 }
  0xae   : > { %1411 = vmatpush2.bf16.msra.mxu0 %v2072_v49 }
  0xaf   : > { %1412 = vmatprep.subr.bf16.mxu0 %v2080_v50 }
  0xb2   : > { %1413 = vmatpush2.bf16.msra.mxu0 %v2078_v51 }
  0xb3   : > { %1414 = vmatprep.subr.bf16.mxu0 %v2086_v53 }
  0xb6   : > { %1415 = vmatpush2.bf16.msra.mxu0 %v2084_v54 }
  0xb7   : > { %1416 = vmatprep.subr.bf16.mxu0 %v2092_v55 }
  0xba   : > { %1417 = vmatpush2.bf16.msra.mxu0 %v2090_v56 }
  0xbb   : > { %1418 = vmatprep.subr.bf16.mxu0 %v2095_v57 }
  0xbe   : > { %1419 = vmatpush2.bf16.msra.mxu0 %v2093_v58 }
  0xc1   : > { %1421 = vmatmul.mubr.bf16.vlgmr.msra.gmra.mxu0 %v2338_v32  ;;  %v408_v32 = vld [vmem:[#allocation2] sm:$0xff] }
 0x102   : > { %v744_v59 = vpop.f32.mrf.mxu1 }
 0x104   : > { %v746_v60 = vpop.f32.mrf.mxu1 }
 0x106   : > { %v748_v62 = vpop.f32.mrf.mxu1 }
 0x108   : > { %v750_v0 = vpop.f32.mrf.mxu1 }
 0x121   : > { %v701_v61 = vpop.f32.mrf.mxu0 }
 0x122   : > { %v745_v12 = vadd.f32 %v744_v59, %v701_v61 }
 0x123   : > { %v703_v63 = vpop.f32.mrf.mxu0 }
 0x124   : > { %v747_v13 = vadd.f32 %v746_v60, %v703_v63  ;;  %v753_v18 = vadd.f32 %v745_v12, %v407_v52 }
 0x125   : > { %v705_v1 = vpop.f32.mrf.mxu0 }
 0x126   : > { %v749_v15 = vadd.f32 %v748_v62, %v705_v1  ;;  %v754_v21 = vadd.f32 %v747_v13, %v408_v32 }
 0x127   : > { %v707_v4 = vpop.f32.mrf.mxu0 }
 0x128   : > { %v751_v3 = vadd.f32 %v750_v0, %v707_v4  ;;  %v755_v26 = vadd.f32 %v749_v15, %v409_v19 }
 0x12a   : > { %v756_v37 = vadd.f32 %v751_v3, %v410_v27 }
 0x141   : > { %v1122_v6 = vpop.f32.mrf.mxu0 }
 0x142   : > { %v1079_v2 = vpop.f32.mrf.mxu1 }
 0x143   : > { %v1124_v8 = vpop.f32.mrf.mxu0  ;;  %v1123_v14 = vadd.f32 %v1122_v6, %v1079_v2 }
 0x144   : > { %v1081_v5 = vpop.f32.mrf.mxu1 }
 0x145   : > { %v1126_v10 = vpop.f32.mrf.mxu0  ;;  %v1125_v20 = vadd.f32 %v1124_v8, %v1081_v5  ;;  %v1131_v23 = vadd.f32 %v1123_v14, %v753_v18 }
 0x146   : > { %v1083_v7 = vpop.f32.mrf.mxu1 }
 0x147   : > { %v1128_v16 = vpop.f32.mrf.mxu0  ;;  %v1127_v24 = vadd.f32 %v1126_v10, %v1083_v7  ;;  %v1132_v30 = vadd.f32 %v1125_v20, %v754_v21 }
 0x148   : > { %v1085_v9 = vpop.f32.mrf.mxu1 }
 0x149   : > { %v1129_v31 = vadd.f32 %v1128_v16, %v1085_v9  ;;  %v1133_v38 = vadd.f32 %v1127_v24, %v755_v26 }
 0x14b   : > { %v1134_v43 = vadd.f32 %v1129_v31, %v756_v37 }
 0x162   : > { %v1465_v11 = vpop.f32.mrf.mxu1 }
 0x164   : > { %v1467_v17 = vpop.f32.mrf.mxu1 }
 0x166   : > { %v1469_v28 = vpop.f32.mrf.mxu1 }
 0x168   : > { %v1471_v41 = vpop.f32.mrf.mxu1 }
 0x181   : > { %v1422_v22 = vpop.f32.mrf.mxu0 }
 0x182   : > { %v1466_v25 = vadd.f32 %v1465_v11, %v1422_v22 }
 0x183   : > { %v1424_v29 = vpop.f32.mrf.mxu0 }
 0x184   : > { %v1474_v33 = vadd.f32 %v1466_v25, %v1131_v23  ;;  %v1468_v34 = vadd.f32 %v1467_v17, %v1424_v29 }
 0x185   : > { %v1426_v35 = vpop.f32.mrf.mxu0 }
 0x186   : > { %1478 = vst [vmem:[#allocation2 + $0x10] sm:$0xff] %v1474_v33  ;;  %v1475_v39 = vadd.f32 %v1468_v34, %v1132_v30  ;;  %v1470_v40 = vadd.f32 %v1469_v28, %v1426_v35 }
 0x187   : > { %v1428_v42 = vpop.f32.mrf.mxu0 }
 0x188   : > { %1479 = vst [vmem:[#allocation2] sm:$0xff] %v1475_v39  ;;  %v1476_v44 = vadd.f32 %v1470_v40, %v1133_v38  ;;  %v1472_v45 = vadd.f32 %v1471_v41, %v1428_v42  ;;  %1485 = sbr.rel (%p1805_p11) target bundleno = 409 (0x199), region = 36 }
 0x18a   : > { %1480 = vst [vmem:[#allocation2 + $0x18] sm:$0xff] %v1476_v44  ;;  %v1477_v36 = vadd.f32 %v1472_v45, %v1134_v43 }
 0x18c   : > { %1481 = vst [vmem:[#allocation2 + $0x8] sm:$0xff] %v1477_v36 }
 0x18d   : > { %v1486_v46 = vld [vmem:[#allocation2 + $0x10] sm:$0xff] }
 0x18e   : > { %v1490_v49 = vmax.f32 %v1486_v46, 0.0 }
 0x18f   : > { %v1487_v47 = vld [vmem:[#allocation2] sm:$0xff] }
 0x190   : > { %v1491_v50 = vmax.f32 %v1487_v47, 0.0 }
 0x191   : > { %v1488_v48 = vld [vmem:[#allocation2 + $0x18] sm:$0xff] }
 0x192   : > { %v1492_v53 = vmax.f32 %v1488_v48, 0.0  ;;  %v1810_v55 = vpack.c.bf16 %v1491_v50, %v1490_v49 }
 0x193   : > { %v1489_v51 = vld [vmem:[#allocation2 + $0x8] sm:$0xff] }
 0x194   : > { %v1493_v54 = vmax.f32 %v1489_v51, 0.0  ;;  %1506 = vst [vmem:[%s2234_s20] sm:$0xff] %v1810_v55 }
 0x196   : > { %v1811_v56 = vpack.c.bf16 %v1493_v54, %v1492_v53 }
 0x198   : > { %1507 = vst [vmem:[%s2234_s20 + $0x8] sm:$0xff] %v1811_v56 }
 0x199 PF: > { %s12_s15 = sadd.s32 1, %s2150_s15   ;;  %s2451_s9 = smov %s2138_s12 }
 0x19a   : > { %p9_p12 = scmp.ge.s32.totalorder %s12_s15, 98   ;;  %s2452_s10 = smov %s2142_s13 }
 0x19b   : > { %s2453_s11 = smov %s2146_s14  ;;  %s2454_s12 = smov %s2458_s16 }
 0x19c   : > { %s2455_s13 = smov %s2462_s17  ;;  %s2456_s14 = smov %s2466_s18 }
 0x19d   :  { %11 = sbr.rel (!%p9_p12) target bundleno = 4 (0x4), region = 69 }

// kernel: deepv3plus_forward.31
= control target key start
LH: loop header
LB: loop body
LE: loop exit
PB: predicated region body
PF: predicated region fallthrough
CT: control target
= control target key end

     0   :  { %s813_s0 = inlined_call_operand.vmem [shape: s32[32], index: 0, kind: input, shape index: {}]   ;;  %s814_s2 = inlined_call_operand.vmem [shape: bf16[2,16,16,5], index: 2, kind: input, shape index: {}, may-alias: {2,3}]   ;;  %s815_s3 = inlined_call_operand.vmem [shape: bf16[2,16,16,5], index: 3, kind: input, shape index: {}, may-alias: {2,3}]   ;;  %s816_s4 = inlined_call_operand.vmem [shape: f32[32,16], index: 4, kind: input, shape index: {}]   ;;  %s817_s5 = inlined_call_operand.vmem [shape: bf16[2,32,32,5], index: 5, kind: output, shape index: {}]   ;;  %s818_s1 = inlined_call_operand.vmem [shape: s32[32], index: 1, kind: input, shape index: {}]  }
   0x1   :  { %s10_s20 = sshll.u32 %s813_s0, 4  ;;  %s14_s23 = sshll.u32 %s818_s1, 4  ;;  %s11_s20 = int_to_ptr.vmem [resolvable:$true] %s10_s20  ;;  %s15_s23 = int_to_ptr.vmem [resolvable:$true] %s14_s23 }
   0x2   :  { %s627_s24 = scalar_lea.vmem %s11_s20, 16  ;;  %p632_p1 = scmp.lt.s32.totalorder %s11_s20, %s11_s20 }
   0x3   :  { %p628_p0 = scmp.ne.s32.totalorder %s11_s20, %s627_s24  ;;  %p633_p2 = scmp.lt.s32.totalorder %s627_s24, %s627_s24 }
   0x5   :  { %p634_p3 = por %p633_p2, %p632_p1 }
   0x7   :  { %p635_p4 = pnand %p634_p3, %p628_p0 }
   0x9   :  { %638 = shalt.err (!%p635_p4)  }
   0xa   :  { %s693_s25 = smov [#allocation3]   ;;  %s639_s26 = scalar_lea.vmem %s15_s23, 16 }
   0xb   :  { %13 = dma.vmem_to_smem %s11_s20, 16, %s693_s25, [#allocation2] }
   0xc   :  { %p640_p5 = scmp.ne.s32.totalorder %s15_s23, %s639_s26  ;;  %p644_p6 = scmp.lt.s32.totalorder %s15_s23, %s15_s23 }
   0xd   :  { %p645_p7 = scmp.lt.s32.totalorder %s639_s26, %s639_s26 }
   0xf   :  { %p646_p8 = por %p645_p7, %p644_p6 }
  0x11   :  { %p647_p9 = pnand %p646_p8, %p640_p5 }
  0x13   :  { %650 = shalt.err (!%p647_p9)  }
  0x14   :  { %s694_s0 = smov [#allocation4]  }
  0x15   :  { %17 = dma.vmem_to_smem %s15_s23, 16, %s694_s0, [#allocation2] }
  0x16   :  { %671 = dma.done.wait [#allocation2], 32 }
  0x17   :  { %672 = vsyncadd [#allocation2], 4294967264 }
  0x18   :  { %19 = sfence }
  0x19   :  { %s731_s1 = smov 0   ;;  %s733_s27 = smov 0  }
  0x1a   :  { %s735_s28 = smov 0   ;;  %s737_s29 = smov 0  }
  0x1b   :  { %s739_s30 = smov 0  }
  0x1c LB: > { %s34_s6 = sadd.s32 1, %s683_s28  ;;  %s37_s7 = sadd.s32 1, %s687_s29  ;;  %s691_s30 = sphi %s739_s30, %s25_s30   ;;  %s687_s29 = sphi %s737_s29, %s822_s29   ;;  %s683_s28 = sphi %s735_s28, %s821_s28   ;;  %s679_s27 = sphi %s733_s27, %s820_s27   ;;  %s675_s1 = sphi %s731_s1, %s819_s1  }
  0x1d   : > { %p35_p10 = scmp.ge.s32.totalorder %s34_s6, 32  ;;  %p533_p11 = scmp.ge.s32.totalorder %s691_s30, 1 }
  0x1e   : > { %p193_p12 = scmp.lt.s32.totalorder %s691_s30, 65 }
  0x1f   : > { %s824_s6 = smov (%p35_p10, %s34_s6), 0  ;;  %s826_s7 = smov (!%p35_p10, %s37_s7), %s687_s29 }
  0x20   : > { %p194_p13 = pnand %p533_p11, %p193_p12  ;;  %p39_p0 = scmp.ge.s32.totalorder %s826_s7, 2 }
  0x21   : > { %s236_s8 = sld [smem:[#allocation3 + %s675_s1]] (!%p194_p13)  ;;  %p237_p1 = scmp.lt.s32.totalorder (!%p194_p13), %s679_s27, 1 }
  0x22   : > { %s828_s7 = smov (%p39_p0, %s826_s7), 0  ;;  %197 = sbr.rel (%p194_p13) target bundleno = 259 (0x103), region = 32 }
  0x23   : > { %s247_s13 = sld [smem:[#allocation4 + %s675_s1]] (!%p194_p13)  ;;  %s268_s15 = smul.u32 (!%p194_p13), 15, %s675_s1 }
  0x24   : > { %s267_s14 = sld [smem:[#allocation3 + %s675_s1]] (!%p194_p13)  ;;  %p260_p4 = scmp.lt.s32.totalorder (!%p194_p13), %s675_s1, 31 }
  0x27   : > { %v290_v0 = vld [vmem:[%s816_s4] sm:$0xff]  ;;  %vm294_vm0 = vcmask 130048   ;;  %v292_v1 = vld [vmem:[%s816_s4 + $0x10] sm:$0xff]  ;;  %s830_s27 = smov (!%p237_p1, %s679_s27), 1  ;;  %p239_p2 = scmp.lt.s32.totalorder %s236_s8, 15  ;;  %v291_v15 = vld [vmem:[%s816_s4 + $0x8] sm:$0xff] }
  0x28   : > { %575 = vmatprep.mubr.msk.f32.mxu0 %vm294_vm0, %v290_v0  ;;  %578 = vmatprep.mubr.msk.f32.mxu1 %vm294_vm0, %v292_v1  ;;  %s535_s16 = sshll.u32 %s830_s27, 5  ;;  %v293_v16 = vld [vmem:[%s816_s4 + $0x18] sm:$0xff]  ;;  %s836_s1 = smov (!%p260_p4, %s675_s1), 31  ;;  %vm408_vm1 = vcmask 35840  }
  0x29   : > { %p250_p3 = scmp.lt.s32.totalorder %s247_s13, 15  ;;  %s832_s8 = smov (!%p239_p2, %s236_s8), 15 }
  0x2a   : > { %s534_s17 = sshll.u32 %s832_s8, 1  ;;  %s269_s18 = smul.u32 31, %s267_s14 }
  0x2b   : > { %s834_s13 = smov (!%p250_p3, %s247_s13), 15  ;;  %s243_s19 = sadd.s32 %s535_s16, %s534_s17 }
  0x2c   : > { %s537_s20 = sshll.u32 %s834_s13, 1  ;;  %s536_s21 = sshll.u32 %s243_s19, 2 }
  0x2d   : > { %s254_s22 = sadd.s32 %s537_s20, %s535_s16  ;;  %s245_s25 = scalar_lea.vmem %s814_s2, %s536_s21 }
  0x2e   : > { %s539_s26 = sshll.u32 %s254_s22, 2  ;;  %s270_s11 = ssub.s32 %s268_s15, %s269_s18  ;;  %v558_v2 = vld [vmem:[%s245_s25] sm:$0xff]  }
  0x2f   : > { %s256_s10 = scalar_lea.vmem %s815_s3, %s539_s26  ;;  %s271_s12 = scvt.s32.f32 %s270_s11  ;;  %v560_v3 = vunpack.c.h.bf16 %v558_v2  ;;  %v559_v5 = vunpack.c.l.bf16 %v558_v2 }
  0x30   : > { %v562_v4 = vld [vmem:[%s256_s10] sm:$0xff]   ;;  %s540_s17 = sshll.u32 %s836_s1, 2  ;;  %s541_s18 = sshll.u32 %s830_s27, 7 }
  0x31   : > { %v564_v6 = vunpack.c.h.bf16 %v562_v4  ;;  %v563_v7 = vunpack.c.l.bf16 %v562_v4  ;;  %s274_s8 = smul.f32 0.032258064, %s271_s12  ;;  %s264_s19 = sadd.s32 %s541_s18, %s540_s17 }
  0x32   : > { %s542_s20 = sshll.u32 %s264_s19, 2 }
  0x33   : > { %v284_v8 = vsub.f32 %v564_v6, %v560_v3  ;;  %v283_v9 = vsub.f32 %v563_v7, %v559_v5  ;;  %v285_v10 = vstv %s274_s8  ;;  %s266_s23 = scalar_lea.vmem %s817_s5, %s542_s20 }
  0x35   : > { %v287_v11 = vmul.f32 %v285_v10, %v284_v8  ;;  %v286_v12 = vmul.f32 %v285_v10, %v283_v9 }
  0x37   : > { %v289_v13 = vadd.f32 %v560_v3, %v287_v11  ;;  %v288_v14 = vadd.f32 %v559_v5, %v286_v12 }
  0x39   : > { %571 = vmatprep.subr.mxu0 %v289_v13  ;;  %581 = vmatprep.subr.mxu1 %v289_v13 }
  0x3a   : > { %572 = vmatpush3.msra.mxu0 %v289_v13  ;;  %583 = vmatpush3.msra.mxu1 %v289_v13 }
  0x3b   : > { %573 = vmatprep.subr.mxu0 %v288_v14  ;;  %582 = vmatprep.subr.mxu1 %v288_v14 }
  0x3c   : > { %574 = vmatpush3.msra.mxu0 %v288_v14  ;;  %584 = vmatpush3.msra.mxu1 %v288_v14 }
  0x3d   : > { %576 = vmatmul.mubr.msk.f32.vlgmr.msra.gmra.mxu0 %vm294_vm0, %v291_v15  ;;  %579 = vmatmul.mubr.msk.f32.vlgmr.msra.gmra.mxu1 %vm294_vm0, %v293_v16 }
  0xfd   : > { %v577_v17 = vpop.f32.mrf.mxu0  ;;  %v580_v18 = vpop.f32.mrf.mxu1 }
  0xfe   : > { %v554_v19 = vpack.c.bf16 %v577_v17, %v577_v17  ;;  %v556_v20 = vpack.c.bf16 %v580_v18, %v580_v18 }
  0xff   : > { %v373_v21 = vpop.f32.mrf.mxu0  ;;  %v383_v22 = vpop.f32.mrf.mxu1 }
 0x100   : > { %410 = vst.msk [vmem:[%s266_s23 + $0x4] sm:$0xf] %vm408_vm1, %v554_v19  ;;  %412 = vst.msk [vmem:[%s266_s23 + $0xc] sm:$0xf] %vm408_vm1, %v556_v20  ;;  %v553_v23 = vpack.c.bf16 %v373_v21, %v373_v21  ;;  %v555_v24 = vpack.c.bf16 %v383_v22, %v383_v22 }
 0x102   : > { %409 = vst.msk [vmem:[%s266_s23] sm:$0xf] %vm408_vm1, %v553_v23  ;;  %411 = vst.msk [vmem:[%s266_s23 + $0x8] sm:$0xf] %vm408_vm1, %v555_v24 }
 0x103 PF: > { %s25_s30 = sadd.s32 1, %s691_s30   ;;  %s819_s1 = smov %s683_s28 }
 0x104   : > { %p22_p5 = scmp.ge.s32.totalorder %s25_s30, 66   ;;  %s820_s27 = smov %s687_s29 }
 0x105   : > { %s821_s28 = smov %s824_s6  ;;  %s822_s29 = smov %s828_s7 }
 0x106   :  { %24 = sbr.rel (!%p22_p5) target bundleno = 28 (0x1c), region = 65 }

// kernel: deepv3plus_forward.29
= control target key start
LH: loop header
LB: loop body
LE: loop exit
PB: predicated region body
PF: predicated region fallthrough
CT: control target
= control target key end

     0   :  { %s1596_s9 = smov 0   ;;  %s1598_s10 = smov 0   ;;  %s1800_s0 = inlined_call_operand.vmem [shape: bf16[2,18,18,256], index: 0, kind: input, shape index: {}]   ;;  %s1801_s1 = inlined_call_operand.vmem [shape: bf16[3,768,256], index: 1, kind: input, shape index: {}]   ;;  %s1802_s2 = inlined_call_operand.vmem [shape: bf16[2,16,16,256], index: 2, kind: output, shape index: {}]  }
   0x1   :  { %s1600_s11 = smov 0   ;;  %s1602_s12 = smov 0  }
   0x2   :  { %s1604_s13 = smov 0   ;;  %s1606_s14 = smov 0  }
   0x3   :  { %s1608_s15 = smov 0  }
   0x4 LB: > { %s27_s16 = sadd.s32 1, %s1566_s12  ;;  %s34_s17 = sadd.s32 1, %s1570_s13  ;;  %s1578_s15 = sphi %s1608_s15, %s12_s15   ;;  %s1574_s14 = sphi %s1606_s14, %s1808_s14   ;;  %s1570_s13 = sphi %s1604_s13, %s1807_s13   ;;  %s1566_s12 = sphi %s1602_s12, %s1806_s12   ;;  %s1562_s11 = sphi %s1600_s11, %s1805_s11   ;;  %s1558_s10 = sphi %s1598_s10, %s1804_s10   ;;  %s1554_s9 = sphi %s1596_s9, %s1803_s9  }
   0x5   : > { %p28_p0 = scmp.ge.s32.totalorder %s27_s16, 3  ;;  %p1201_p1 = scmp.ge.s32.totalorder %s1578_s15, 1 }
   0x6   : > { %p169_p2 = scmp.lt.s32.totalorder %s1578_s15, 97  ;;  %s38_s18 = sadd.s32 1, %s1574_s14 }
   0x7   : > { %s1810_s16 = smov (%p28_p0, %s27_s16), 0  ;;  %s1812_s17 = smov (!%p28_p0, %s34_s17), %s1570_s13 }
   0x8   : > { %p170_p3 = pnand %p1201_p1, %p169_p2  ;;  %p36_p4 = scmp.ge.s32.totalorder %s1812_s17, 16 }
   0x9   : > { %s213_s19 = sadd.s32 (!%p170_p3), %s1554_s9, %s1558_s10  ;;  %p214_p6 = scmp.lt.s32.totalorder (!%p170_p3), %s1562_s11, 1 }
   0xa   : > { %s1814_s17 = smov (%p36_p4, %s1812_s17), 0  ;;  %s1816_s18 = smov (!%p36_p4, %s38_s18), %s1574_s14 }
   0xb   : > { %p40_p5 = scmp.ge.s32.totalorder %s1816_s18, 2  ;;  %173 = sbr.rel (%p170_p3) target bundleno = 375 (0x177), region = 28 }
   0xc   : > { %p216_p7 = scmp.lt.s32.totalorder (!%p170_p3), %s213_s19, 17  ;;  %p225_p8 = scmp.lt.s32.totalorder (!%p170_p3), %s1554_s9, 2 }
   0xd   : > { %s1818_s18 = smov (%p40_p5, %s1816_s18), 0  ;;  %p237_p9 = scmp.lt.s32.totalorder (!%p170_p3), %s1558_s10, 15 }
   0xe   : > { %p1207_p10 = scmp.ne.s32.totalorder (!%p170_p3), %s1554_s9, 0 }
  0x10   : > { %s1820_s11 = smov (!%p214_p6, %s1562_s11), 1  ;;  %s1822_s19 = smov (!%p216_p7, %s213_s19), 17 }
  0x11   : > { %s1316_s20 = smul.u32 108, %s1820_s11  ;;  %s1205_s4 = sshll.u32 %s1820_s11, 6 }
  0x12   : > { %s1315_s21 = smul.u32 6, %s1822_s19  ;;  %s1824_s10 = smov (!%p237_p9, %s1558_s10), 15 }
  0x13   : > { %s226_s22 = scalar_select %p225_p8, %s1554_s9, 2 }
  0x14   : > { %s220_s23 = sadd.s32 %s1316_s20, %s1315_s21  ;;  %s1204_s5 = sshll.u32 %s1824_s10, 2 }
  0x15   : > { %s1202_s24 = sshll.u32 %s220_s23, 2  ;;  %s1317_s25 = smul.u32 768, %s226_s22 }
  0x16   : > { %s1650_s28 = scalar_lea.vmem %s1800_s0, %s1202_s24  ;;  %s244_s6 = sadd.s32 %s1205_s4, %s1204_s5 }
  0x17   : > { %s1655_s3 = scalar_lea.vmem %s1801_s1, %s1317_s25  ;;  %s1206_s7 = sshll.u32 %s244_s6, 2 }
  0x18   : > { %s1661_s20 = scalar_lea.vmem %s1802_s2, %s1206_s7  ;;  %251 = sbr.rel (%p1207_p10) target bundleno = 32 (0x20), region = 32 }
  0x1d   : > { %v1580_v0 = vmov 0.0  }
  0x1e   : > { %252 = vst [vmem:[#allocation2 + $0x10] sm:$0xff] %v1580_v0  ;;  %253 = vst [vmem:[#allocation2] sm:$0xff] %v1580_v0 }
  0x1f   : > { %254 = vst [vmem:[#allocation2 + $0x18] sm:$0xff] %v1580_v0  ;;  %255 = vst [vmem:[#allocation2 + $0x8] sm:$0xff] %v1580_v0 }
  0x20 PF: > { %v1375_v1 = vld [vmem:[%s1655_s3 + $0x74] ss:$8 sps:$4 sm:$0xff]   ;;  %v1377_v2 = vld [vmem:[%s1655_s3 + $0x70] ss:$8 sps:$4 sm:$0xff]   ;;  %v1381_v5 = vld [vmem:[%s1655_s3 + $0x64] ss:$8 sps:$4 sm:$0xff]  }
  0x21   : > { %529 = vmatprep.subr.bf16.mxu0 %v1375_v1  ;;  %v1378_v3 = vld [vmem:[%s1655_s3 + $0x174] ss:$8 sps:$4 sm:$0xff]   ;;  %v1380_v4 = vld [vmem:[%s1655_s3 + $0x170] ss:$8 sps:$4 sm:$0xff]   ;;  %v1383_v6 = vld [vmem:[%s1655_s3 + $0x60] ss:$8 sps:$4 sm:$0xff]  }
  0x22   : > { %530 = vmatpush1.bf16.msra.mxu0 %v1377_v2  ;;  %768 = vmatprep.subr.bf16.mxu1 %v1378_v3  ;;  %v1384_v7 = vld [vmem:[%s1655_s3 + $0x164] ss:$8 sps:$4 sm:$0xff]   ;;  %v1386_v8 = vld [vmem:[%s1655_s3 + $0x160] ss:$8 sps:$4 sm:$0xff]   ;;  %v1387_v9 = vld [vmem:[%s1655_s3 + $0x54] ss:$8 sps:$4 sm:$0xff]  }
  0x23   : > { %769 = vmatpush1.bf16.msra.mxu1 %v1380_v4  ;;  %531 = vmatprep.subr.bf16.mxu0 %v1381_v5  ;;  %v1389_v10 = vld [vmem:[%s1655_s3 + $0x50] ss:$8 sps:$4 sm:$0xff]   ;;  %v1390_v11 = vld [vmem:[%s1655_s3 + $0x154] ss:$8 sps:$4 sm:$0xff]   ;;  %v1393_v12 = vld [vmem:[%s1655_s3 + $0x44] ss:$8 sps:$4 sm:$0xff]  }
  0x24   : > { %770 = vmatprep.subr.bf16.mxu1 %v1384_v7  ;;  %v1392_v13 = vld [vmem:[%s1655_s3 + $0x150] ss:$8 sps:$4 sm:$0xff]   ;;  %v1396_v14 = vld [vmem:[%s1655_s3 + $0x144] ss:$8 sps:$4 sm:$0xff]   ;;  %v1395_v15 = vld [vmem:[%s1655_s3 + $0x40] ss:$8 sps:$4 sm:$0xff]  }
  0x25   : > { %v1399_v16 = vld [vmem:[%s1655_s3 + $0x34] ss:$8 sps:$4 sm:$0xff]   ;;  %v1398_v17 = vld [vmem:[%s1655_s3 + $0x140] ss:$8 sps:$4 sm:$0xff]   ;;  %v1401_v19 = vld [vmem:[%s1655_s3 + $0x30] ss:$8 sps:$4 sm:$0xff]  }
  0x26   : > { %532 = vmatpush1.bf16.msra.mxu0 %v1383_v6  ;;  %v1402_v18 = vld [vmem:[%s1655_s3 + $0x134] ss:$8 sps:$4 sm:$0xff]   ;;  %v1405_v20 = vld [vmem:[%s1655_s3 + $0x24] ss:$8 sps:$4 sm:$0xff]   ;;  %v1404_v21 = vld [vmem:[%s1655_s3 + $0x130] ss:$8 sps:$4 sm:$0xff]  }
  0x27   : > { %533 = vmatprep.subr.bf16.mxu0 %v1387_v9  ;;  %771 = vmatpush1.bf16.msra.mxu1 %v1386_v8  ;;  %v1408_v22 = vld [vmem:[%s1655_s3 + $0x124] ss:$8 sps:$4 sm:$0xff]   ;;  %v1407_v23 = vld [vmem:[%s1655_s3 + $0x20] ss:$8 sps:$4 sm:$0xff]   ;;  %v1411_v24 = vld [vmem:[%s1655_s3 + $0x14] ss:$8 sps:$4 sm:$0xff]  }
  0x28   : > { %772 = vmatprep.subr.bf16.mxu1 %v1390_v11  ;;  %v1410_v25 = vld [vmem:[%s1655_s3 + $0x120] ss:$8 sps:$4 sm:$0xff]   ;;  %v1414_v26 = vld [vmem:[%s1655_s3 + $0x114] ss:$8 sps:$4 sm:$0xff]   ;;  %v1413_v27 = vld [vmem:[%s1655_s3 + $0x10] ss:$8 sps:$4 sm:$0xff]  }
  0x29   : > { %v1417_v28 = vld [vmem:[%s1655_s3 + $0x4] ss:$8 sps:$4 sm:$0xff]   ;;  %v1416_v29 = vld [vmem:[%s1655_s3 + $0x110] ss:$8 sps:$4 sm:$0xff]   ;;  %v1419_v31 = vld [vmem:[%s1655_s3] ss:$8 sps:$4 sm:$0xff]  }
  0x2a   : > { %534 = vmatpush1.bf16.msra.mxu0 %v1389_v10  ;;  %v1420_v30 = vld [vmem:[%s1655_s3 + $0x104] ss:$8 sps:$4 sm:$0xff]   ;;  %v1423_v32 = vld [vmem:[%s1655_s3 + $0xf4] ss:$8 sps:$4 sm:$0xff]   ;;  %v1422_v33 = vld [vmem:[%s1655_s3 + $0x100] ss:$8 sps:$4 sm:$0xff]  }
  0x2b   : > { %535 = vmatprep.subr.bf16.mxu0 %v1393_v12  ;;  %773 = vmatpush1.bf16.msra.mxu1 %v1392_v13  ;;  %v1426_v34 = vld [vmem:[%s1655_s3 + $0x1f4] ss:$8 sps:$4 sm:$0xff]   ;;  %v1425_v35 = vld [vmem:[%s1655_s3 + $0xf0] ss:$8 sps:$4 sm:$0xff]   ;;  %v1429_v36 = vld [vmem:[%s1655_s3 + $0xe4] ss:$8 sps:$4 sm:$0xff]  }
  0x2c   : > { %774 = vmatprep.subr.bf16.mxu1 %v1396_v14  ;;  %v1428_v37 = vld [vmem:[%s1655_s3 + $0x1f0] ss:$8 sps:$4 sm:$0xff]   ;;  %v1432_v38 = vld [vmem:[%s1655_s3 + $0x1e4] ss:$8 sps:$4 sm:$0xff]   ;;  %v1431_v39 = vld [vmem:[%s1655_s3 + $0xe0] ss:$8 sps:$4 sm:$0xff]  }
  0x2d   : > { %v1435_v40 = vld [vmem:[%s1655_s3 + $0xd4] ss:$8 sps:$4 sm:$0xff]   ;;  %v1434_v41 = vld [vmem:[%s1655_s3 + $0x1e0] ss:$8 sps:$4 sm:$0xff]   ;;  %v1437_v43 = vld [vmem:[%s1655_s3 + $0xd0] ss:$8 sps:$4 sm:$0xff]  }
  0x2e   : > { %536 = vmatpush1.bf16.msra.mxu0 %v1395_v15  ;;  %v1438_v42 = vld [vmem:[%s1655_s3 + $0x1d4] ss:$8 sps:$4 sm:$0xff]   ;;  %v1441_v44 = vld [vmem:[%s1655_s3 + $0xc4] ss:$8 sps:$4 sm:$0xff]   ;;  %v1440_v45 = vld [vmem:[%s1655_s3 + $0x1d0] ss:$8 sps:$4 sm:$0xff]  }
  0x2f   : > { %537 = vmatprep.subr.bf16.mxu0 %v1399_v16  ;;  %775 = vmatpush1.bf16.msra.mxu1 %v1398_v17  ;;  %v1444_v46 = vld [vmem:[%s1655_s3 + $0x1c4] ss:$8 sps:$4 sm:$0xff]   ;;  %v1443_v47 = vld [vmem:[%s1655_s3 + $0xc0] ss:$8 sps:$4 sm:$0xff]   ;;  %v1447_v49 = vld [vmem:[%s1655_s3 + $0xb4] ss:$8 sps:$4 sm:$0xff]  }
  0x30   : > { %776 = vmatprep.subr.bf16.mxu1 %v1402_v18  ;;  %v1712_v48 = vld [vmem:[%s1650_s28 + $0x4] ss:$8 sps:$4 sm:$0xff]   ;;  %v1446_v50 = vld [vmem:[%s1655_s3 + $0x1c0] ss:$8 sps:$4 sm:$0xff]   ;;  %v258_v51 = vld [vmem:[%s1650_s28 + $0x10] sm:$0x11] }
  0x31   : > { %561 = vmatprep.mubr.bf16.mxu0 %v1712_v48  ;;  %v595_v52 = vshrl.u32 %v1712_v48, 16  ;;  %v597_v53 = vshll.u32 %v1712_v48, 16  ;;  %v1450_v54 = vld [vmem:[%s1655_s3 + $0x1b4] ss:$8 sps:$4 sm:$0xff]   ;;  %v1243_v55 = vcombine.high %v258_v51, %v258_v51  ;;  %v1449_v56 = vld [vmem:[%s1655_s3 + $0xb0] ss:$8 sps:$4 sm:$0xff]   ;;  %v1242_v1 = vcombine.low %v258_v51, %v258_v51 }
  0x32   : > { %538 = vmatpush1.bf16.msra.mxu0 %v1401_v19  ;;  %v1453_v58 = vld [vmem:[%s1655_s3 + $0xa4] ss:$8 sps:$4 sm:$0xff]   ;;  %vm581_vm0 = vsmask.f32 7424  ;;  %v1452_v60 = vld [vmem:[%s1655_s3 + $0x1b0] ss:$8 sps:$4 sm:$0xff]  }
  0x33   : > { %539 = vmatprep.subr.bf16.mxu0 %v1405_v20  ;;  %777 = vmatpush1.bf16.msra.mxu1 %v1404_v21  ;;  %v599_v57 = vrot.slane %v597_v53, 1  ;;  %v602_v59 = vshll.u32 %v1243_v55, 16  ;;  %v1473_v61 = vld [vmem:[%s1650_s28] ss:$8 sps:$4 sm:$0xff]   ;;  %v1456_v63 = vld [vmem:[%s1655_s3 + $0x1a4] ss:$8 sps:$4 sm:$0xff]  }
  0x34   : > { %778 = vmatprep.subr.bf16.mxu1 %v1408_v22  ;;  %v1455_v2 = vld [vmem:[%s1655_s3 + $0xa0] ss:$8 sps:$4 sm:$0xff]   ;;  %vm815_vm1 = vcmask 1046528   ;;  %v816_v3 = vrot.slane %v1473_v61, 1  ;;  %v1459_v4 = vld [vmem:[%s1655_s3 + $0x94] ss:$8 sps:$4 sm:$0xff]  }
  0x35   : > { %v600_v62 = vor.u32 %v599_v57, %v595_v52  ;;  %v604_v0 = vrot.slane %v602_v59, 1  ;;  %v817_v6 = vrot.slane %v1242_v1, 1  ;;  %v1458_v7 = vld [vmem:[%s1655_s3 + $0x1a0] ss:$8 sps:$4 sm:$0xff]   ;;  %v585_v8 = vshll.u32 %v1473_v61, 16  ;;  %p1308_p11 = scmp.ne.s32.totalorder %s1554_s9, 2 }
  0x36   : > { %540 = vmatpush1.bf16.msra.mxu0 %v1407_v23  ;;  %v1462_v9 = vld [vmem:[%s1655_s3 + $0x194] ss:$8 sps:$4 sm:$0xff]   ;;  %v1461_v11 = vld [vmem:[%s1655_s3 + $0x90] ss:$8 sps:$4 sm:$0xff]   ;;  %v1465_v13 = vld [vmem:[%s1655_s3 + $0x84] ss:$8 sps:$4 sm:$0xff]  }
  0x37   : > { %541 = vmatprep.subr.bf16.mxu0 %v1411_v24  ;;  %779 = vmatpush1.bf16.msra.mxu1 %v1410_v25  ;;  %v605_v5 = vsel %vm581_vm0, %v600_v62, %v604_v0  ;;  %v1732_v10 = vsel %vm815_vm1, %v816_v3, %v817_v6  ;;  %v1464_v12 = vld [vmem:[%s1655_s3 + $0x190] ss:$8 sps:$4 sm:$0xff]   ;;  %v583_v14 = vshrl.u32 %v1473_v61, 16  ;;  %v587_v15 = vrot.slane %v585_v8, 1  ;;  %v1468_v17 = vld [vmem:[%s1655_s3 + $0x184] ss:$8 sps:$4 sm:$0xff]  }
  0x38   : > { %780 = vmatprep.subr.bf16.mxu1 %v1414_v26  ;;  %800 = vmatprep.mubr.bf16.mxu1 %v605_v5  ;;  %v590_v16 = vshll.u32 %v1242_v1, 16  ;;  %v1467_v18 = vld [vmem:[%s1655_s3 + $0x80] ss:$8 sps:$4 sm:$0xff]   ;;  %v1476_v19 = vld [vmem:[%s1655_s3 + $0x274] ss:$8 sps:$4 sm:$0xff]   ;;  %v819_v20 = vrot.slane %v1712_v48, 1 }
  0x39   : > { %v820_v21 = vrot.slane %v1243_v55, 1  ;;  %v1472_v22 = vld [vmem:[%s1655_s3 + $0x180] ss:$8 sps:$4 sm:$0xff]   ;;  %v588_v23 = vor.u32 %v587_v15, %v583_v14  ;;  %v1474_v25 = vld [vmem:[%s1655_s3 + $0x270] ss:$8 sps:$4 sm:$0xff]  }
  0x3a   : > { %542 = vmatpush1.bf16.msra.mxu0 %v1413_v27  ;;  %v592_v24 = vrot.slane %v590_v16, 1  ;;  %v1481_v26 = vld [vmem:[%s1655_s3 + $0x264] ss:$8 sps:$4 sm:$0xff]   ;;  %v1512_v51 = vld [vmem:[%s1655_s3 + $0x2b0] ss:$8 sps:$4 sm:$0xff]  }
  0x3b   : > { %543 = vmatprep.subr.bf16.mxu0 %v1417_v28  ;;  %781 = vmatpush1.bf16.msra.mxu1 %v1416_v29  ;;  %v821_v27 = vsel %vm815_vm1, %v819_v20, %v820_v21  ;;  %v1479_v29 = vld [vmem:[%s1655_s3 + $0x260] ss:$8 sps:$4 sm:$0xff]   ;;  %v1511_v48 = vld [vmem:[%s1655_s3 + $0x2c4] ss:$8 sps:$4 sm:$0xff]   ;;  %v1518_v55 = vld [vmem:[%s1655_s3 + $0x290] ss:$8 sps:$4 sm:$0xff]  }
  0x3c   : > { %782 = vmatprep.subr.bf16.mxu1 %v1420_v30  ;;  %v593_v28 = vsel %vm581_vm0, %v588_v23, %v592_v24  ;;  %v1484_v30 = vld [vmem:[%s1655_s3 + $0x254] ss:$8 sps:$4 sm:$0xff]   ;;  %v1517_v52 = vld [vmem:[%s1655_s3 + $0x2a4] ss:$8 sps:$4 sm:$0xff]   ;;  %v1515_v53 = vld [vmem:[%s1655_s3 + $0x2a0] ss:$8 sps:$4 sm:$0xff]  }
  0x3d   : > { %v1521_v57 = vld [vmem:[%s1655_s3 + $0x280] ss:$8 sps:$4 sm:$0xff]  }
  0x3e   : > { %544 = vmatpush1.bf16.msra.mxu0 %v1419_v31  ;;  %v1482_v31 = vld [vmem:[%s1655_s3 + $0x250] ss:$8 sps:$4 sm:$0xff]   ;;  %v356_v62 = vld [vmem:[#allocation2] sm:$0xff] }
  0x3f   : > { %545 = vmatprep.subr.bf16.mxu0 %v1423_v32  ;;  %783 = vmatpush1.bf16.msra.mxu1 %v1422_v33  ;;  %v1487_v32 = vld [vmem:[%s1655_s3 + $0x244] ss:$8 sps:$4 sm:$0xff]   ;;  %v1485_v33 = vld [vmem:[%s1655_s3 + $0x240] ss:$8 sps:$4 sm:$0xff]  }
  0x40   : > { %784 = vmatprep.subr.bf16.mxu1 %v1426_v34  ;;  %v1490_v34 = vld [vmem:[%s1655_s3 + $0x234] ss:$8 sps:$4 sm:$0xff]  }
  0x42   : > { %546 = vmatpush2.bf16.msra.mxu0 %v1425_v35  ;;  %v1488_v35 = vld [vmem:[%s1655_s3 + $0x230] ss:$8 sps:$4 sm:$0xff]  }
  0x43   : > { %547 = vmatprep.subr.bf16.mxu0 %v1429_v36  ;;  %785 = vmatpush2.bf16.msra.mxu1 %v1428_v37  ;;  %v1493_v36 = vld [vmem:[%s1655_s3 + $0x224] ss:$8 sps:$4 sm:$0xff]   ;;  %v1491_v37 = vld [vmem:[%s1655_s3 + $0x220] ss:$8 sps:$4 sm:$0xff]  }
  0x44   : > { %786 = vmatprep.subr.bf16.mxu1 %v1432_v38  ;;  %v1496_v38 = vld [vmem:[%s1655_s3 + $0x214] ss:$8 sps:$4 sm:$0xff]  }
  0x46   : > { %548 = vmatpush2.bf16.msra.mxu0 %v1431_v39  ;;  %v1494_v39 = vld [vmem:[%s1655_s3 + $0x210] ss:$8 sps:$4 sm:$0xff]  }
  0x47   : > { %549 = vmatprep.subr.bf16.mxu0 %v1435_v40  ;;  %787 = vmatpush2.bf16.msra.mxu1 %v1434_v41  ;;  %v1499_v40 = vld [vmem:[%s1655_s3 + $0x204] ss:$8 sps:$4 sm:$0xff]   ;;  %v1497_v41 = vld [vmem:[%s1655_s3 + $0x200] ss:$8 sps:$4 sm:$0xff]  }
  0x48   : > { %788 = vmatprep.subr.bf16.mxu1 %v1438_v42  ;;  %v1502_v42 = vld [vmem:[%s1655_s3 + $0x2f4] ss:$8 sps:$4 sm:$0xff]  }
  0x4a   : > { %550 = vmatpush2.bf16.msra.mxu0 %v1437_v43  ;;  %v1500_v43 = vld [vmem:[%s1655_s3 + $0x2f0] ss:$8 sps:$4 sm:$0xff]  }
  0x4b   : > { %551 = vmatprep.subr.bf16.mxu0 %v1441_v44  ;;  %789 = vmatpush2.bf16.msra.mxu1 %v1440_v45  ;;  %v1505_v44 = vld [vmem:[%s1655_s3 + $0x2e4] ss:$8 sps:$4 sm:$0xff]   ;;  %v1503_v45 = vld [vmem:[%s1655_s3 + $0x2e0] ss:$8 sps:$4 sm:$0xff]  }
  0x4c   : > { %790 = vmatprep.subr.bf16.mxu1 %v1444_v46  ;;  %v1508_v46 = vld [vmem:[%s1655_s3 + $0x2d4] ss:$8 sps:$4 sm:$0xff]  }
  0x4e   : > { %552 = vmatpush2.bf16.msra.mxu0 %v1443_v47  ;;  %v1506_v47 = vld [vmem:[%s1655_s3 + $0x2d0] ss:$8 sps:$4 sm:$0xff]  }
  0x4f   : > { %553 = vmatprep.subr.bf16.mxu0 %v1447_v49  ;;  %791 = vmatpush2.bf16.msra.mxu1 %v1446_v50  ;;  %v1509_v49 = vld [vmem:[%s1655_s3 + $0x2c0] ss:$8 sps:$4 sm:$0xff]   ;;  %v1514_v50 = vld [vmem:[%s1655_s3 + $0x2b4] ss:$8 sps:$4 sm:$0xff]  }
  0x50   : > { %792 = vmatprep.subr.bf16.mxu1 %v1450_v54  ;;  %v1520_v54 = vld [vmem:[%s1655_s3 + $0x294] ss:$8 sps:$4 sm:$0xff]  }
  0x52   : > { %554 = vmatpush2.bf16.msra.mxu0 %v1449_v56  ;;  %v1523_v56 = vld [vmem:[%s1655_s3 + $0x284] ss:$8 sps:$4 sm:$0xff]  }
  0x53   : > { %555 = vmatprep.subr.bf16.mxu0 %v1453_v58  ;;  %793 = vmatpush2.bf16.msra.mxu1 %v1452_v60 }
  0x54   : > { %794 = vmatprep.subr.bf16.mxu1 %v1456_v63 }
  0x56   : > { %556 = vmatpush2.bf16.msra.mxu0 %v1455_v2  ;;  %v357_v2 = vld [vmem:[#allocation2 + $0x18] sm:$0xff] }
  0x57   : > { %557 = vmatprep.subr.bf16.mxu0 %v1459_v4  ;;  %795 = vmatpush2.bf16.msra.mxu1 %v1458_v7  ;;  %v358_v4 = vld [vmem:[#allocation2 + $0x8] sm:$0xff] }
  0x58   : > { %796 = vmatprep.subr.bf16.mxu1 %v1462_v9 }
  0x5a   : > { %558 = vmatpush2.bf16.msra.mxu0 %v1461_v11 }
  0x5b   : > { %559 = vmatprep.subr.bf16.mxu0 %v1465_v13  ;;  %797 = vmatpush2.bf16.msra.mxu1 %v1464_v12 }
  0x5c   : > { %798 = vmatprep.subr.bf16.mxu1 %v1468_v17 }
  0x5e   : > { %560 = vmatpush2.bf16.msra.mxu0 %v1467_v18 }
  0x5f   : > { %984 = vmatprep.subr.bf16.mxu0 %v1476_v19  ;;  %799 = vmatpush2.bf16.msra.mxu1 %v1472_v22 }
  0x61   : > { %562 = vmatmul.mubr.bf16.vlgmr.msra.gmra.mxu0 %v1473_v61  ;;  %v355_v61 = vld [vmem:[#allocation2 + $0x10] sm:$0xff] }
  0x62   : > { %985 = vmatpush1.bf16.msra.mxu0 %v1474_v25  ;;  %1016 = vmatprep.mubr.bf16.mxu0 %v821_v27 }
  0x63   : > { %801 = vmatmul.mubr.bf16.vlgmr.msra.gmra.mxu1 %v593_v28  ;;  %986 = vmatprep.subr.bf16.mxu0 %v1481_v26 }
  0x66   : > { %987 = vmatpush1.bf16.msra.mxu0 %v1479_v29 }
  0x67   : > { %988 = vmatprep.subr.bf16.mxu0 %v1484_v30 }
  0x6a   : > { %989 = vmatpush1.bf16.msra.mxu0 %v1482_v31 }
  0x6b   : > { %990 = vmatprep.subr.bf16.mxu0 %v1487_v32 }
  0x6e   : > { %991 = vmatpush1.bf16.msra.mxu0 %v1485_v33 }
  0x6f   : > { %992 = vmatprep.subr.bf16.mxu0 %v1490_v34 }
  0x72   : > { %993 = vmatpush1.bf16.msra.mxu0 %v1488_v35 }
  0x73   : > { %994 = vmatprep.subr.bf16.mxu0 %v1493_v36 }
  0x76   : > { %995 = vmatpush1.bf16.msra.mxu0 %v1491_v37 }
  0x77   : > { %996 = vmatprep.subr.bf16.mxu0 %v1496_v38 }
  0x7a   : > { %997 = vmatpush1.bf16.msra.mxu0 %v1494_v39 }
  0x7b   : > { %998 = vmatprep.subr.bf16.mxu0 %v1499_v40 }
  0x7e   : > { %999 = vmatpush1.bf16.msra.mxu0 %v1497_v41 }
  0x7f   : > { %1000 = vmatprep.subr.bf16.mxu0 %v1502_v42 }
  0x82   : > { %1001 = vmatpush2.bf16.msra.mxu0 %v1500_v43 }
  0x83   : > { %1002 = vmatprep.subr.bf16.mxu0 %v1505_v44 }
  0x86   : > { %1003 = vmatpush2.bf16.msra.mxu0 %v1503_v45 }
  0x87   : > { %1004 = vmatprep.subr.bf16.mxu0 %v1508_v46 }
  0x8a   : > { %1005 = vmatpush2.bf16.msra.mxu0 %v1506_v47 }
  0x8b   : > { %1006 = vmatprep.subr.bf16.mxu0 %v1511_v48 }
  0x8e   : > { %1007 = vmatpush2.bf16.msra.mxu0 %v1509_v49 }
  0x8f   : > { %1008 = vmatprep.subr.bf16.mxu0 %v1514_v50 }
  0x92   : > { %1009 = vmatpush2.bf16.msra.mxu0 %v1512_v51 }
  0x93   : > { %1010 = vmatprep.subr.bf16.mxu0 %v1517_v52 }
  0x96   : > { %1011 = vmatpush2.bf16.msra.mxu0 %v1515_v53 }
  0x97   : > { %1012 = vmatprep.subr.bf16.mxu0 %v1520_v54 }
  0x9a   : > { %1013 = vmatpush2.bf16.msra.mxu0 %v1518_v55 }
  0x9b   : > { %1014 = vmatprep.subr.bf16.mxu0 %v1523_v56 }
  0x9e   : > { %1015 = vmatpush2.bf16.msra.mxu0 %v1521_v57 }
  0xa1   : > { %1017 = vmatmul.mubr.bf16.vlgmr.msra.gmra.mxu0 %v1732_v10 }
 0x121   : > { %v563_v58 = vpop.f32.mrf.mxu0 }
 0x122   : > { %v572_v1 = vadd.f32 %v563_v58, %v355_v61 }
 0x123   : > { %v565_v59 = vpop.f32.mrf.mxu0  ;;  %v802_v60 = vpop.f32.mrf.mxu1 }
 0x124   : > { %v573_v3 = vadd.f32 %v565_v59, %v356_v62  ;;  %v811_v7 = vadd.f32 %v802_v60, %v572_v1 }
 0x125   : > { %v567_v63 = vpop.f32.mrf.mxu0  ;;  %v804_v0 = vpop.f32.mrf.mxu1 }
 0x126   : > { %v574_v8 = vadd.f32 %v567_v63, %v357_v2  ;;  %v812_v11 = vadd.f32 %v804_v0, %v573_v3 }
 0x127   : > { %v569_v5 = vpop.f32.mrf.mxu0  ;;  %v806_v6 = vpop.f32.mrf.mxu1 }
 0x128   : > { %v575_v12 = vadd.f32 %v569_v5, %v358_v4  ;;  %v813_v15 = vadd.f32 %v806_v6, %v574_v8 }
 0x129   : > { %v808_v10 = vpop.f32.mrf.mxu1 }
 0x12a   : > { %v814_v18 = vadd.f32 %v808_v10, %v575_v12 }
 0x161   : > { %v1018_v9 = vpop.f32.mrf.mxu0 }
 0x162   : > { %v1027_v13 = vadd.f32 %v1018_v9, %v811_v7 }
 0x163   : > { %v1020_v14 = vpop.f32.mrf.mxu0 }
 0x164   : > { %1031 = vst [vmem:[#allocation2 + $0x10] sm:$0xff] %v1027_v13  ;;  %v1028_v16 = vadd.f32 %v1020_v14, %v812_v11 }
 0x165   : > { %v1022_v17 = vpop.f32.mrf.mxu0 }
 0x166   : > { %1032 = vst [vmem:[#allocation2] sm:$0xff] %v1028_v16  ;;  %v1029_v19 = vadd.f32 %v1022_v17, %v813_v15  ;;  %1038 = sbr.rel (%p1308_p11) target bundleno = 375 (0x177), region = 36 }
 0x167   : > { %v1024_v20 = vpop.f32.mrf.mxu0 }
 0x168   : > { %1033 = vst [vmem:[#allocation2 + $0x18] sm:$0xff] %v1029_v19  ;;  %v1030_v21 = vadd.f32 %v1024_v20, %v814_v18 }
 0x16a   : > { %1034 = vst [vmem:[#allocation2 + $0x8] sm:$0xff] %v1030_v21 }
 0x16b   : > { %v1039_v22 = vld [vmem:[#allocation2 + $0x10] sm:$0xff] }
 0x16c   : > { %v1043_v25 = vmax.f32 %v1039_v22, 0.0 }
 0x16d   : > { %v1040_v23 = vld [vmem:[#allocation2] sm:$0xff] }
 0x16e   : > { %v1044_v26 = vmax.f32 %v1040_v23, 0.0 }
 0x16f   : > { %v1041_v24 = vld [vmem:[#allocation2 + $0x18] sm:$0xff] }
 0x170   : > { %v1045_v28 = vmax.f32 %v1041_v24, 0.0  ;;  %v1313_v30 = vpack.c.bf16 %v1044_v26, %v1043_v25 }
 0x171   : > { %v1042_v27 = vld [vmem:[#allocation2 + $0x8] sm:$0xff] }
 0x172   : > { %v1046_v29 = vmax.f32 %v1042_v27, 0.0  ;;  %1059 = vst [vmem:[%s1661_s20] sm:$0xff] %v1313_v30 }
 0x174   : > { %v1314_v31 = vpack.c.bf16 %v1046_v29, %v1045_v28 }
 0x176   : > { %1060 = vst [vmem:[%s1661_s20 + $0x8] sm:$0xff] %v1314_v31 }
 0x177 PF: > { %s12_s15 = sadd.s32 1, %s1578_s15   ;;  %s1803_s9 = smov %s1566_s12 }
 0x178   : > { %p9_p12 = scmp.ge.s32.totalorder %s12_s15, 98   ;;  %s1804_s10 = smov %s1570_s13 }
 0x179   : > { %s1805_s11 = smov %s1574_s14  ;;  %s1806_s12 = smov %s1810_s16 }
 0x17a   : > { %s1807_s13 = smov %s1814_s17  ;;  %s1808_s14 = smov %s1818_s18 }
 0x17b   :  { %11 = sbr.rel (!%p9_p12) target bundleno = 4 (0x4), region = 69 }

// kernel: deepv3plus_forward.30
= control target key start
LH: loop header
LB: loop body
LE: loop exit
PB: predicated region body
PF: predicated region fallthrough
CT: control target
= control target key end

     0   :  { %s1395_s9 = smov 0   ;;  %s1397_s10 = smov 0   ;;  %s1532_s0 = inlined_call_operand.vmem [shape: bf16[512,256], index: 0, kind: input, shape index: {}]   ;;  %s1533_s1 = inlined_call_operand.vmem [shape: bf16[256,128], index: 1, kind: input, shape index: {}]   ;;  %s1534_s2 = inlined_call_operand.vmem [shape: bf16[512,128], index: 2, kind: output, shape index: {}]  }
   0x1   :  { %s1399_s11 = smov 0  }
   0x2 LB: > { %s24_s12 = sadd.s32 1, %s1374_s10  ;;  %p924_p0 = scmp.ge.s32.totalorder %s1378_s11, 1  ;;  %s1378_s11 = sphi %s1399_s11, %s12_s11   ;;  %s1374_s10 = sphi %s1397_s10, %s1536_s10   ;;  %s1370_s9 = sphi %s1395_s9, %s1535_s9  }
   0x3   : > { %p26_p1 = scmp.ge.s32.totalorder %s24_s12, 2  ;;  %p137_p2 = scmp.lt.s32.totalorder %s1378_s11, 3 }
   0x5   : > { %s1538_s12 = smov (%p26_p1, %s24_s12), 0  ;;  %p138_p3 = pnand %p924_p0, %p137_p2 }
   0x6   : > { %s925_s15 = sshll.u32 (!%p138_p3), %s1370_s9, 5 }
   0x7   : > { %141 = sbr.rel (%p138_p3) target bundleno = 305 (0x131), region = 28  ;;  %p168_p4 = scmp.lt.s32.totalorder (!%p138_p3), %s925_s15, 63 }
   0xc   : > { %v1292_v0 = vld [vmem:[%s1533_s1 + $0x78] sm:$0xff]   ;;  %v1294_v2 = vld [vmem:[%s1533_s1 + $0x70] sm:$0xff]   ;;  %v1296_v4 = vld [vmem:[%s1533_s1 + $0x68] sm:$0xff]   ;;  %s1540_s15 = smov (!%p168_p4, %s925_s15), 63 }
   0xd   : > { %v1293_v1 = vld [vmem:[%s1533_s1 + $0x38] sm:$0xff]   ;;  %1140 = vmatprep.subr.bf16.mxu0 %v1292_v0  ;;  %1252 = vmatprep.subr.bf16.mxu1 %v1292_v0  ;;  %v1295_v3 = vld [vmem:[%s1533_s1 + $0x30] sm:$0xff]   ;;  %v1297_v5 = vld [vmem:[%s1533_s1 + $0x28] sm:$0xff]   ;;  %s1012_s30 = sshll.u32 %s1540_s15, 3  ;;  %s929_s26 = sshll.u32 %s1540_s15, 2 }
   0xe   : > { %1141 = vmatpush3.bf16.msra.mxu0 %v1293_v1  ;;  %1260 = vmatpush3.bf16.msra.mxu1 %v1293_v1  ;;  %v1298_v6 = vld [vmem:[%s1533_s1 + $0x60] sm:$0xff]   ;;  %v1300_v8 = vld [vmem:[%s1533_s1 + $0x58] sm:$0xff]   ;;  %s1446_s7 = scalar_lea.vmem %s1532_s0, %s1012_s30  ;;  %v1302_v10 = vld [vmem:[%s1533_s1 + $0x50] sm:$0xff]   ;;  %s1505_s29 = scalar_lea.vmem %s1534_s2, %s929_s26 }
   0xf   : > { %1142 = vmatprep.subr.bf16.mxu0 %v1294_v2  ;;  %1253 = vmatprep.subr.bf16.mxu1 %v1294_v2  ;;  %v1299_v7 = vld [vmem:[%s1533_s1 + $0x20] sm:$0xff]   ;;  %v1301_v9 = vld [vmem:[%s1533_s1 + $0x18] sm:$0xff]   ;;  %v1303_v13 = vld [vmem:[%s1533_s1 + $0x10] sm:$0xff]  }
  0x10   : > { %v1310_v11 = vld [vmem:[%s1446_s7 + $0x4] ss:$8 sps:$4 sm:$0xff]   ;;  %v1308_v18 = vld [vmem:[%s1446_s7] ss:$8 sps:$4 sm:$0xff]   ;;  %v1314_v20 = vld [vmem:[%s1446_s7 + $0x14] ss:$8 sps:$4 sm:$0xff]  }
  0x11   : > { %v1313_v12 = vld [vmem:[%s1446_s7 + $0x84] ss:$8 sps:$4 sm:$0xff]   ;;  %540 = vmatprep.mubr.bf16.mxu0 %v1310_v11  ;;  %v1311_v19 = vld [vmem:[%s1446_s7 + $0x80] ss:$8 sps:$4 sm:$0xff]   ;;  %v1316_v21 = vld [vmem:[%s1446_s7 + $0x94] ss:$8 sps:$4 sm:$0xff]  }
  0x12   : > { %1143 = vmatpush3.bf16.msra.mxu0 %v1295_v3  ;;  %1261 = vmatpush3.bf16.msra.mxu1 %v1295_v3  ;;  %v1304_v14 = vld [vmem:[%s1533_s1 + $0x48] sm:$0xff]   ;;  %v1306_v16 = vld [vmem:[%s1533_s1 + $0x40] sm:$0xff]   ;;  %v1318_v22 = vld [vmem:[%s1446_s7 + $0x10] ss:$8 sps:$4 sm:$0xff]  }
  0x13   : > { %1144 = vmatprep.subr.bf16.mxu0 %v1296_v4  ;;  %1254 = vmatprep.subr.bf16.mxu1 %v1296_v4  ;;  %v1305_v15 = vld [vmem:[%s1533_s1 + $0x8] sm:$0xff]   ;;  %v1307_v17 = vld [vmem:[%s1533_s1] sm:$0xff]   ;;  %v1319_v23 = vld [vmem:[%s1446_s7 + $0x90] ss:$8 sps:$4 sm:$0xff]  }
  0x14   : > { %604 = vmatprep.mubr.bf16.mxu1 %v1313_v12  ;;  %v1320_v24 = vld [vmem:[%s1446_s7 + $0x24] ss:$8 sps:$4 sm:$0xff]   ;;  %v1324_v26 = vld [vmem:[%s1446_s7 + $0x20] ss:$8 sps:$4 sm:$0xff]   ;;  %v1326_v28 = vld [vmem:[%s1446_s7 + $0x34] ss:$8 sps:$4 sm:$0xff]  }
  0x15   : > { %v1322_v25 = vld [vmem:[%s1446_s7 + $0xa4] ss:$8 sps:$4 sm:$0xff]   ;;  %v1325_v27 = vld [vmem:[%s1446_s7 + $0xa0] ss:$8 sps:$4 sm:$0xff]   ;;  %v1328_v29 = vld [vmem:[%s1446_s7 + $0xb4] ss:$8 sps:$4 sm:$0xff]  }
  0x16   : > { %1145 = vmatpush3.bf16.msra.mxu0 %v1297_v5  ;;  %1262 = vmatpush3.bf16.msra.mxu1 %v1297_v5  ;;  %v1330_v30 = vld [vmem:[%s1446_s7 + $0x30] ss:$8 sps:$4 sm:$0xff]   ;;  %v1332_v32 = vld [vmem:[%s1446_s7 + $0x44] ss:$8 sps:$4 sm:$0xff]   ;;  %v1336_v34 = vld [vmem:[%s1446_s7 + $0x40] ss:$8 sps:$4 sm:$0xff]  }
  0x17   : > { %1146 = vmatprep.subr.bf16.mxu0 %v1298_v6  ;;  %1255 = vmatprep.subr.bf16.mxu1 %v1298_v6  ;;  %v1331_v31 = vld [vmem:[%s1446_s7 + $0xb0] ss:$8 sps:$4 sm:$0xff]   ;;  %v1334_v33 = vld [vmem:[%s1446_s7 + $0xc4] ss:$8 sps:$4 sm:$0xff]   ;;  %v1337_v35 = vld [vmem:[%s1446_s7 + $0xc0] ss:$8 sps:$4 sm:$0xff]  }
  0x18   : > { %v1338_v36 = vld [vmem:[%s1446_s7 + $0x54] ss:$8 sps:$4 sm:$0xff]   ;;  %v1342_v38 = vld [vmem:[%s1446_s7 + $0x50] ss:$8 sps:$4 sm:$0xff]   ;;  %v1344_v40 = vld [vmem:[%s1446_s7 + $0x64] ss:$8 sps:$4 sm:$0xff]  }
  0x19   : > { %v1340_v37 = vld [vmem:[%s1446_s7 + $0xd4] ss:$8 sps:$4 sm:$0xff]   ;;  %v1343_v39 = vld [vmem:[%s1446_s7 + $0xd0] ss:$8 sps:$4 sm:$0xff]   ;;  %v1346_v41 = vld [vmem:[%s1446_s7 + $0xe4] ss:$8 sps:$4 sm:$0xff]  }
  0x1a   : > { %1147 = vmatpush3.bf16.msra.mxu0 %v1299_v7  ;;  %1263 = vmatpush3.bf16.msra.mxu1 %v1299_v7  ;;  %v1348_v42 = vld [vmem:[%s1446_s7 + $0x60] ss:$8 sps:$4 sm:$0xff]   ;;  %v1350_v44 = vld [vmem:[%s1446_s7 + $0x74] ss:$8 sps:$4 sm:$0xff]   ;;  %v1354_v46 = vld [vmem:[%s1446_s7 + $0x70] ss:$8 sps:$4 sm:$0xff]  }
  0x1b   : > { %1148 = vmatprep.subr.bf16.mxu0 %v1300_v8  ;;  %1256 = vmatprep.subr.bf16.mxu1 %v1300_v8  ;;  %v1349_v43 = vld [vmem:[%s1446_s7 + $0xe0] ss:$8 sps:$4 sm:$0xff]   ;;  %v1352_v45 = vld [vmem:[%s1446_s7 + $0xf4] ss:$8 sps:$4 sm:$0xff]   ;;  %v1355_v47 = vld [vmem:[%s1446_s7 + $0xf0] ss:$8 sps:$4 sm:$0xff]  }
  0x1e   : > { %1149 = vmatpush3.bf16.msra.mxu0 %v1301_v9  ;;  %1264 = vmatpush3.bf16.msra.mxu1 %v1301_v9 }
  0x1f   : > { %1150 = vmatprep.subr.bf16.mxu0 %v1302_v10  ;;  %1257 = vmatprep.subr.bf16.mxu1 %v1302_v10 }
  0x22   : > { %1151 = vmatpush3.bf16.msra.mxu0 %v1303_v13  ;;  %1265 = vmatpush3.bf16.msra.mxu1 %v1303_v13 }
  0x23   : > { %1152 = vmatprep.subr.bf16.mxu0 %v1304_v14  ;;  %1258 = vmatprep.subr.bf16.mxu1 %v1304_v14 }
  0x26   : > { %1153 = vmatpush3.bf16.msra.mxu0 %v1305_v15  ;;  %1266 = vmatpush3.bf16.msra.mxu1 %v1305_v15 }
  0x27   : > { %1154 = vmatprep.subr.bf16.mxu0 %v1306_v16  ;;  %1259 = vmatprep.subr.bf16.mxu1 %v1306_v16 }
  0x2a   : > { %1155 = vmatpush3.bf16.msra.mxu0 %v1307_v17  ;;  %1267 = vmatpush3.bf16.msra.mxu1 %v1307_v17 }
  0x2d   : > { %541 = vmatmul.mubr.bf16.vlgmr.msra.gmra.mxu0 %v1308_v18  ;;  %605 = vmatmul.mubr.bf16.vlgmr.msra.gmra.mxu1 %v1311_v19 }
  0x2e   : > { %548 = vmatprep.mubr.bf16.mxu0 %v1314_v20  ;;  %612 = vmatprep.mubr.bf16.mxu1 %v1316_v21 }
  0x35   : > { %549 = vmatmul.mubr.bf16.gmra.mxu0 %v1318_v22  ;;  %613 = vmatmul.mubr.bf16.gmra.mxu1 %v1319_v23 }
  0x36   : > { %556 = vmatprep.mubr.bf16.mxu0 %v1320_v24  ;;  %620 = vmatprep.mubr.bf16.mxu1 %v1322_v25 }
  0x3d   : > { %557 = vmatmul.mubr.bf16.gmra.mxu0 %v1324_v26  ;;  %621 = vmatmul.mubr.bf16.gmra.mxu1 %v1325_v27 }
  0x3e   : > { %564 = vmatprep.mubr.bf16.mxu0 %v1326_v28  ;;  %628 = vmatprep.mubr.bf16.mxu1 %v1328_v29 }
  0x45   : > { %565 = vmatmul.mubr.bf16.gmra.mxu0 %v1330_v30  ;;  %629 = vmatmul.mubr.bf16.gmra.mxu1 %v1331_v31 }
  0x46   : > { %572 = vmatprep.mubr.bf16.mxu0 %v1332_v32  ;;  %636 = vmatprep.mubr.bf16.mxu1 %v1334_v33 }
  0x4d   : > { %573 = vmatmul.mubr.bf16.gmra.mxu0 %v1336_v34  ;;  %637 = vmatmul.mubr.bf16.gmra.mxu1 %v1337_v35 }
  0x4e   : > { %580 = vmatprep.mubr.bf16.mxu0 %v1338_v36  ;;  %644 = vmatprep.mubr.bf16.mxu1 %v1340_v37 }
  0x55   : > { %581 = vmatmul.mubr.bf16.gmra.mxu0 %v1342_v38  ;;  %645 = vmatmul.mubr.bf16.gmra.mxu1 %v1343_v39 }
  0x56   : > { %588 = vmatprep.mubr.bf16.mxu0 %v1344_v40  ;;  %652 = vmatprep.mubr.bf16.mxu1 %v1346_v41 }
  0x5d   : > { %589 = vmatmul.mubr.bf16.gmra.mxu0 %v1348_v42  ;;  %653 = vmatmul.mubr.bf16.gmra.mxu1 %v1349_v43 }
  0x5e   : > { %596 = vmatprep.mubr.bf16.mxu0 %v1350_v44  ;;  %660 = vmatprep.mubr.bf16.mxu1 %v1352_v45 }
  0x65   : > { %597 = vmatmul.mubr.bf16.gmra.mxu0 %v1354_v46  ;;  %661 = vmatmul.mubr.bf16.gmra.mxu1 %v1355_v47 }
  0xed   : > { %v1156_v48 = vpop.f32.mrf.mxu0  ;;  %v1204_v49 = vpop.f32.mrf.mxu1 }
  0xef   : > { %v1157_v50 = vpop.f32.mrf.mxu0  ;;  %v1205_v51 = vpop.f32.mrf.mxu1 }
  0xf0   : > { %v1158_v56 = vadd.f32 %v1157_v50, %v1156_v48  ;;  %v1206_v57 = vadd.f32 %v1205_v51, %v1204_v49 }
  0xf1   : > { %v1159_v52 = vpop.f32.mrf.mxu0  ;;  %v1207_v53 = vpop.f32.mrf.mxu1 }
  0xf3   : > { %v1160_v54 = vpop.f32.mrf.mxu0  ;;  %v1208_v55 = vpop.f32.mrf.mxu1 }
  0xf4   : > { %v1161_v58 = vadd.f32 %v1160_v54, %v1159_v52  ;;  %v1209_v59 = vadd.f32 %v1208_v55, %v1207_v53 }
  0xf5   : > { %v1162_v60 = vpop.f32.mrf.mxu0  ;;  %v1210_v61 = vpop.f32.mrf.mxu1 }
  0xf6   : > { %v1048_v62 = vpack.c.bf16 %v1161_v58, %v1158_v56  ;;  %v1088_v63 = vpack.c.bf16 %v1209_v59, %v1206_v57 }
  0xf7   : > { %v1163_v0 = vpop.f32.mrf.mxu0  ;;  %v1211_v1 = vpop.f32.mrf.mxu1 }
  0xf8   : > { %1049 = vst [vmem:[%s1505_s29] sm:$0xff] %v1048_v62   ;;  %1132 = vst [vmem:[%s1505_s29 + $0x40] sm:$0xff] %v1088_v63   ;;  %v1164_v6 = vadd.f32 %v1163_v0, %v1162_v60  ;;  %v1212_v7 = vadd.f32 %v1211_v1, %v1210_v61 }
  0xf9   : > { %v1165_v2 = vpop.f32.mrf.mxu0  ;;  %v1213_v3 = vpop.f32.mrf.mxu1 }
  0xfb   : > { %v1166_v4 = vpop.f32.mrf.mxu0  ;;  %v1214_v5 = vpop.f32.mrf.mxu1 }
  0xfc   : > { %v1167_v8 = vadd.f32 %v1166_v4, %v1165_v2  ;;  %v1215_v9 = vadd.f32 %v1214_v5, %v1213_v3 }
  0xfd   : > { %v1168_v10 = vpop.f32.mrf.mxu0  ;;  %v1216_v11 = vpop.f32.mrf.mxu1 }
  0xfe   : > { %v1053_v12 = vpack.c.bf16 %v1167_v8, %v1164_v6  ;;  %v1093_v13 = vpack.c.bf16 %v1215_v9, %v1212_v7 }
  0xff   : > { %v1169_v14 = vpop.f32.mrf.mxu0  ;;  %v1217_v15 = vpop.f32.mrf.mxu1 }
 0x100   : > { %1125 = vst [vmem:[%s1505_s29 + $0x8] sm:$0xff] %v1053_v12   ;;  %1133 = vst [vmem:[%s1505_s29 + $0x48] sm:$0xff] %v1093_v13   ;;  %v1170_v20 = vadd.f32 %v1169_v14, %v1168_v10  ;;  %v1218_v21 = vadd.f32 %v1217_v15, %v1216_v11 }
 0x101   : > { %v1171_v16 = vpop.f32.mrf.mxu0  ;;  %v1219_v17 = vpop.f32.mrf.mxu1 }
 0x103   : > { %v1172_v18 = vpop.f32.mrf.mxu0  ;;  %v1220_v19 = vpop.f32.mrf.mxu1 }
 0x104   : > { %v1173_v22 = vadd.f32 %v1172_v18, %v1171_v16  ;;  %v1221_v23 = vadd.f32 %v1220_v19, %v1219_v17 }
 0x105   : > { %v1174_v24 = vpop.f32.mrf.mxu0  ;;  %v1222_v25 = vpop.f32.mrf.mxu1 }
 0x106   : > { %v1058_v26 = vpack.c.bf16 %v1173_v22, %v1170_v20  ;;  %v1098_v27 = vpack.c.bf16 %v1221_v23, %v1218_v21 }
 0x107   : > { %v1175_v28 = vpop.f32.mrf.mxu0  ;;  %v1223_v29 = vpop.f32.mrf.mxu1 }
 0x108   : > { %1126 = vst [vmem:[%s1505_s29 + $0x10] sm:$0xff] %v1058_v26   ;;  %1134 = vst [vmem:[%s1505_s29 + $0x50] sm:$0xff] %v1098_v27   ;;  %v1176_v34 = vadd.f32 %v1175_v28, %v1174_v24  ;;  %v1224_v35 = vadd.f32 %v1223_v29, %v1222_v25 }
 0x109   : > { %v1177_v30 = vpop.f32.mrf.mxu0  ;;  %v1225_v31 = vpop.f32.mrf.mxu1 }
 0x10b   : > { %v1178_v32 = vpop.f32.mrf.mxu0  ;;  %v1226_v33 = vpop.f32.mrf.mxu1 }
 0x10c   : > { %v1179_v36 = vadd.f32 %v1178_v32, %v1177_v30  ;;  %v1227_v37 = vadd.f32 %v1226_v33, %v1225_v31 }
 0x10d   : > { %v1180_v38 = vpop.f32.mrf.mxu0  ;;  %v1228_v39 = vpop.f32.mrf.mxu1 }
 0x10e   : > { %v1063_v40 = vpack.c.bf16 %v1179_v36, %v1176_v34  ;;  %v1103_v41 = vpack.c.bf16 %v1227_v37, %v1224_v35 }
 0x10f   : > { %v1181_v42 = vpop.f32.mrf.mxu0  ;;  %v1229_v43 = vpop.f32.mrf.mxu1 }
 0x110   : > { %1127 = vst [vmem:[%s1505_s29 + $0x18] sm:$0xff] %v1063_v40   ;;  %1135 = vst [vmem:[%s1505_s29 + $0x58] sm:$0xff] %v1103_v41   ;;  %v1182_v48 = vadd.f32 %v1181_v42, %v1180_v38  ;;  %v1230_v49 = vadd.f32 %v1229_v43, %v1228_v39 }
 0x111   : > { %v1183_v44 = vpop.f32.mrf.mxu0  ;;  %v1231_v45 = vpop.f32.mrf.mxu1 }
 0x113   : > { %v1184_v46 = vpop.f32.mrf.mxu0  ;;  %v1232_v47 = vpop.f32.mrf.mxu1 }
 0x114   : > { %v1185_v50 = vadd.f32 %v1184_v46, %v1183_v44  ;;  %v1233_v51 = vadd.f32 %v1232_v47, %v1231_v45 }
 0x115   : > { %v1186_v52 = vpop.f32.mrf.mxu0  ;;  %v1234_v53 = vpop.f32.mrf.mxu1 }
 0x116   : > { %v1068_v54 = vpack.c.bf16 %v1185_v50, %v1182_v48  ;;  %v1108_v55 = vpack.c.bf16 %v1233_v51, %v1230_v49 }
 0x117   : > { %v1187_v56 = vpop.f32.mrf.mxu0  ;;  %v1235_v57 = vpop.f32.mrf.mxu1 }
 0x118   : > { %1128 = vst [vmem:[%s1505_s29 + $0x20] sm:$0xff] %v1068_v54   ;;  %1136 = vst [vmem:[%s1505_s29 + $0x60] sm:$0xff] %v1108_v55   ;;  %v1188_v62 = vadd.f32 %v1187_v56, %v1186_v52  ;;  %v1236_v63 = vadd.f32 %v1235_v57, %v1234_v53 }
 0x119   : > { %v1189_v58 = vpop.f32.mrf.mxu0  ;;  %v1237_v59 = vpop.f32.mrf.mxu1 }
 0x11b   : > { %v1190_v60 = vpop.f32.mrf.mxu0  ;;  %v1238_v61 = vpop.f32.mrf.mxu1 }
 0x11c   : > { %v1191_v0 = vadd.f32 %v1190_v60, %v1189_v58  ;;  %v1239_v1 = vadd.f32 %v1238_v61, %v1237_v59 }
 0x11d   : > { %v1192_v2 = vpop.f32.mrf.mxu0  ;;  %v1240_v3 = vpop.f32.mrf.mxu1 }
 0x11e   : > { %v1073_v4 = vpack.c.bf16 %v1191_v0, %v1188_v62  ;;  %v1113_v5 = vpack.c.bf16 %v1239_v1, %v1236_v63 }
 0x11f   : > { %v1193_v6 = vpop.f32.mrf.mxu0  ;;  %v1241_v7 = vpop.f32.mrf.mxu1 }
 0x120   : > { %1129 = vst [vmem:[%s1505_s29 + $0x28] sm:$0xff] %v1073_v4   ;;  %1137 = vst [vmem:[%s1505_s29 + $0x68] sm:$0xff] %v1113_v5   ;;  %v1194_v12 = vadd.f32 %v1193_v6, %v1192_v2  ;;  %v1242_v13 = vadd.f32 %v1241_v7, %v1240_v3 }
 0x121   : > { %v1195_v8 = vpop.f32.mrf.mxu0  ;;  %v1243_v9 = vpop.f32.mrf.mxu1 }
 0x123   : > { %v1196_v10 = vpop.f32.mrf.mxu0  ;;  %v1244_v11 = vpop.f32.mrf.mxu1 }
 0x124   : > { %v1197_v14 = vadd.f32 %v1196_v10, %v1195_v8  ;;  %v1245_v15 = vadd.f32 %v1244_v11, %v1243_v9 }
 0x125   : > { %v1198_v16 = vpop.f32.mrf.mxu0  ;;  %v1246_v17 = vpop.f32.mrf.mxu1 }
 0x126   : > { %v1078_v18 = vpack.c.bf16 %v1197_v14, %v1194_v12  ;;  %v1118_v19 = vpack.c.bf16 %v1245_v15, %v1242_v13 }
 0x127   : > { %v1199_v20 = vpop.f32.mrf.mxu0  ;;  %v1247_v21 = vpop.f32.mrf.mxu1 }
 0x128   : > { %1130 = vst [vmem:[%s1505_s29 + $0x30] sm:$0xff] %v1078_v18   ;;  %1138 = vst [vmem:[%s1505_s29 + $0x70] sm:$0xff] %v1118_v19   ;;  %v1200_v26 = vadd.f32 %v1199_v20, %v1198_v16  ;;  %v1248_v27 = vadd.f32 %v1247_v21, %v1246_v17 }
 0x129   : > { %v1201_v22 = vpop.f32.mrf.mxu0  ;;  %v1249_v23 = vpop.f32.mrf.mxu1 }
 0x12b   : > { %v1202_v24 = vpop.f32.mrf.mxu0  ;;  %v1250_v25 = vpop.f32.mrf.mxu1 }
 0x12c   : > { %v1203_v28 = vadd.f32 %v1202_v24, %v1201_v22  ;;  %v1251_v29 = vadd.f32 %v1250_v25, %v1249_v23 }
 0x12e   : > { %v1083_v30 = vpack.c.bf16 %v1203_v28, %v1200_v26  ;;  %v1123_v31 = vpack.c.bf16 %v1251_v29, %v1248_v27 }
 0x130   : > { %1131 = vst [vmem:[%s1505_s29 + $0x38] sm:$0xff] %v1083_v30   ;;  %1139 = vst [vmem:[%s1505_s29 + $0x78] sm:$0xff] %v1123_v31  }
 0x131 PF: > { %s12_s11 = sadd.s32 1, %s1378_s11   ;;  %s1535_s9 = smov %s1374_s10 }
 0x132   : > { %p9_p5 = scmp.ge.s32.totalorder %s12_s11, 4   ;;  %s1536_s10 = smov %s1538_s12 }
 0x134   :  { %11 = sbr.rel (!%p9_p5) target bundleno = 2 (0x2), region = 61 }

</bundles_post_ra>
